<compile_context>
chip_gen: v5e
topology: v5e:2x2
jax: 0.10.0
libtpu: 0.0.40
codegen_flags: <defaults>
</compile_context>

<pallas_src>
import functools
import math

import jax
import jax.numpy as jnp
from jax.experimental import pallas as pl
from jax.experimental.pallas import tpu as pltpu

BN_EPS = 1e-4


def _round_up(x, m):
    return (x + m - 1) // m * m


# --------------------------------------------------------------------------- conv kernel

def _conv_kernel(xp_ref, w_ref, b_ref, *out_refs, kh, kw, rg, ng, wo, cin, with_stats):
    """Computes tr = rg*ng output rows of a stride-1 conv for one image.

    xp_ref : (1, Hp, Wp, Cin)   resident padded input (bf16)
    w_ref  : (kh, kw*Cin, Cout) resident weights, column taps folded into K (bf16)
    b_ref  : (1, Cout)          bias (f32, zeros if the conv has no bias)
    y_ref  : (1, tr, Wo, Cout)  output tile
    st_ref : (1, 1, 2, Cout)    per-program [sum ; sumsq] partials (if with_stats)
    """
    if with_stats:
        y_ref, st_ref = out_refs
    else:
        (y_ref,) = out_refs

    cout = y_ref.shape[-1]
    tr = rg * ng
    row0 = pl.program_id(1) * tr
    bias = b_ref[...]                                        # (1, Cout) f32

    def band(g, carry):
        ssum, qsum = carry
        base = row0 + g * rg
        acc = jnp.zeros((rg * wo, cout), jnp.float32)
        for dy in range(kh):                                 # static: 1, 3 or 5 taps
            rows = xp_ref[0, pl.ds(base + dy, rg)]           # (rg, Wp, Cin) bf16
            if kw == 1:
                a = rows                                     # Wp == Wo for 1x1 convs
            else:
                # Fold the kw column taps into the contraction dim: one dot, K=kw*Cin.
                a = jnp.concatenate([rows[:, dx:dx + wo, :] for dx in range(kw)],
                                    axis=-1)                 # (rg, Wo, kw*Cin)
            acc = acc + jnp.dot(a.reshape(rg * wo, kw * cin), w_ref[dy],
                                preferred_element_type=jnp.float32)
        r = acc + bias                                       # (rg*Wo, Cout) f32
        y_ref[0, pl.ds(g * rg, rg)] = r.reshape(rg, wo, cout).astype(y_ref.dtype)
        if with_stats:
            ssum = ssum + jnp.sum(r, axis=0, keepdims=True)
            qsum = qsum + jnp.sum(r * r, axis=0, keepdims=True)
        return ssum, qsum

    init = (jnp.zeros((1, cout), jnp.float32), jnp.zeros((1, cout), jnp.float32))
    if ng == 1:
        ssum, qsum = band(0, init)
    else:
        # Dynamic row index (bounded live ranges) instead of a static Python unroll.
        ssum, qsum = jax.lax.fori_loop(0, ng, band, init)

    if with_stats:
        st_ref[0, 0] = jnp.concatenate([ssum, qsum], axis=0)   # (2, Cout)


def conv2d(x, w, bias=None, padding=0, want_stats=False, out_dtype=jnp.float32):
    """x: (N,H,W,Cin), w: (kh,kw,Cin,Cout). Stride-1 cross-correlation (nn.Conv2d).

    Returns y (N,Ho,Wo,Cout) in out_dtype, plus per-program BN partial stats
    (N, R, 2, Cout) f32 if want_stats.
    """
    N, H, W, Cin = x.shape
    kh, kw, _, Cout = w.shape
    p = padding
    x = x.astype(jnp.bfloat16)
    xp = jnp.pad(x, ((0, 0), (p, p), (p, p), (0, 0))) if p else x
    Hp, Wp = H + 2 * p, W + 2 * p
    Ho, Wo = Hp - kh + 1, Wp - kw + 1
    K = kw * Cin

    w2 = w.reshape(kh, K, Cout).astype(jnp.bfloat16)           # dx-major, cin-minor
    b2 = (jnp.zeros((1, Cout), jnp.float32) if bias is None
          else bias.reshape(1, Cout).astype(jnp.float32))

    # rows per program (tr) and rows per GEMM (rg): big write-back tiles, M*Cout capped
    # so the f32 accumulator stays in vregs.
    tr = 1
    for cand in range(1, min(16, Ho) + 1):
        if Ho % cand == 0 and cand * Wo <= 8192:
            tr = cand
    rg = 1
    for cand in range(1, tr + 1):
        if tr % cand == 0 and cand * Wo * Cout <= 16384:
            rg = cand
    ng = tr // rg
    R = Ho // tr
    grid = (N, R)

    try:
        cap = pltpu.get_tpu_info().vmem_capacity_bytes
    except Exception:  # be conservative if the query is unavailable
        cap = 64 << 20

    out_itemsize = jnp.dtype(out_dtype).itemsize
    in_b = Hp * Wp * Cin * 2
    w_b = kh * K * Cout * 2
    y_b = tr * Wo * Cout * out_itemsize
    tmp_b = rg * Wo * K * 2 + rg * Wo * Cout * 4               # in-kernel temporaries

    # Double-buffer the resident image only if it comfortably fits; otherwise single
    # buffer it (its block index never changes across the row axis, so double buffering
    # only helps across images) so the 512^2 Cin=64 layers fit v7x's 64 MiB/TC VMEM.
    double_in = (2 * in_b + 2 * (w_b + y_b) + 4 * tmp_b + (8 << 20)) <= cap - (8 << 20)
    if double_in:
        xp_spec = pl.BlockSpec((1, Hp, Wp, Cin), lambda n, r: (n, 0, 0, 0))
        bufs_in = 2
    else:
        xp_spec = pl.BlockSpec((1, Hp, Wp, Cin), lambda n, r: (n, 0, 0, 0),
                               pipeline_mode=pl.Buffered(1))
        bufs_in = 1

    kernel = functools.partial(_conv_kernel, kh=kh, kw=kw, rg=rg, ng=ng, wo=Wo,
                               cin=Cin, with_stats=want_stats)

    if want_stats:
        out_shape = (jax.ShapeDtypeStruct((N, Ho, Wo, Cout), out_dtype),
                     jax.ShapeDtypeStruct((N, R, 2, Cout), jnp.float32))
        out_specs = [pl.BlockSpec((1, tr, Wo, Cout), lambda n, r: (n, r, 0, 0)),
                     pl.BlockSpec((1, 1, 2, Cout), lambda n, r: (n, r, 0, 0))]
    else:
        out_shape = jax.ShapeDtypeStruct((N, Ho, Wo, Cout), out_dtype)
        out_specs = pl.BlockSpec((1, tr, Wo, Cout), lambda n, r: (n, r, 0, 0))

    vmem = (bufs_in * in_b + 2 * (w_b + y_b + 3 * Cout * 4) + 4 * tmp_b + (6 << 20))
    vmem = int(min(max(vmem, 16 << 20), cap - (4 << 20)))

    outs = pl.pallas_call(
        kernel,
        out_shape=out_shape,
        grid_spec=pltpu.PrefetchScalarGridSpec(
            num_scalar_prefetch=0,
            grid=grid,
            in_specs=[
                xp_spec,
                pl.BlockSpec((kh, K, Cout), lambda n, r: (0, 0, 0)),
                pl.BlockSpec((1, Cout), lambda n, r: (0, 0)),
            ],
            out_specs=out_specs,
        ),
        compiler_params=pltpu.CompilerParams(
            dimension_semantics=("parallel", "parallel"),
            vmem_limit_bytes=vmem),
    )(xp, w2, b2)

    return outs


# --------------------------------------------------------------------------- affine+ReLU

def _affine_relu_kernel(x_ref, a_ref, b_ref, o_ref):
    x = x_ref[...].astype(jnp.float32)
    o_ref[...] = jnp.maximum(x * a_ref[...] + b_ref[...], 0.0).astype(o_ref.dtype)


def _affine_relu(y, scale, shift):
    """relu(y * scale + shift) per channel (BN apply). bf16 in -> bf16 out.

    For C < 128 the activation is repacked wrapper-side into lane-dense (rows, 128)
    tiles (scale/shift tiled 128//C times) so stores are not lane-masked.
    """
    N, H, W, C = y.shape
    M = N * H * W
    if C >= 128:
        f, Cp = 1, C
    else:
        f, Cp = 128 // C, 128
    tm = max(8, min(4096, _round_up((1 << 20) // (Cp * 2), 8)))   # ~1 MiB bf16 blocks
    tm = min(tm, _round_up(pl.cdiv(M, f), 8))
    Mp = _round_up(M, f * tm)

    y2 = y.reshape(M, C).astype(jnp.bfloat16)
    if Mp != M:
        y2 = jnp.pad(y2, ((0, Mp - M), (0, 0)))
    y2 = y2.reshape(Mp // f, Cp)
    a = jnp.tile(scale.astype(jnp.float32), f).reshape(1, Cp)
    b = jnp.tile(shift.astype(jnp.float32), f).reshape(1, Cp)
    rows = Mp // f

    out = pl.pallas_call(
        _affine_relu_kernel,
        out_shape=jax.ShapeDtypeStruct((rows, Cp), jnp.bfloat16),
        grid_spec=pltpu.PrefetchScalarGridSpec(
            num_scalar_prefetch=0,
            grid=(rows // tm,),
            in_specs=[pl.BlockSpec((tm, Cp), lambda i: (i, 0)),
                      pl.BlockSpec((1, Cp), lambda i: (0, 0)),
                      pl.BlockSpec((1, Cp), lambda i: (0, 0))],
            out_specs=pl.BlockSpec((tm, Cp), lambda i: (i, 0)),
        ),
        compiler_params=pltpu.CompilerParams(dimension_semantics=("parallel",)),
    )(y2, a, b)
    return out.reshape(Mp, C)[:M].reshape(N, H, W, C)


def conv_bn_relu(x, p, padding):
    """ConvBnRelu2d: conv (no bias) -> BatchNorm (training batch stats, eps=1e-4) -> ReLU."""
    y, st = conv2d(x, p["w"], bias=None, padding=padding, want_stats=True,
                   out_dtype=jnp.bfloat16)
    N, H, W, C = y.shape
    cnt = float(N * H * W)
    s = jnp.sum(st[:, :, 0, :], axis=(0, 1))
    q = jnp.sum(st[:, :, 1, :], axis=(0, 1))
    mean = s / cnt
    var = jnp.maximum(q / cnt - mean * mean, 0.0)      # biased var (BN training-mode norm)
    scale = p["gamma"] * jax.lax.rsqrt(var + BN_EPS)
    shift = p["beta"] - mean * scale
    return _affine_relu(y, scale, shift)


# --------------------------------------------------------------------------- head kernel

def _head_kernel(z_ref, y_ref, wz_ref, wy_ref, o_ref):
    z = z_ref[...].astype(jnp.float32)
    y = y_ref[...].astype(jnp.float32)
    o_ref[...] = (jnp.sum(z * wz_ref[...], axis=-1)
                  + jnp.sum(y * wy_ref[...], axis=-1))


def classify_head(z, y, post_p, cls_p):
    """postprocess(1x1,64->32,+b) o classify(1x1,32->1,+b) folded into one split-K pass.

    Consumes z and y directly (no channel concat, no 32-channel intermediate); output is
    written over lane-dense (rows, 128) tiles and the folded scalar bias is added after.
    """
    N, H, W, C = z.shape
    wf = (post_p["w"].reshape(2 * C, C).astype(jnp.float32)
          @ cls_p["w"].reshape(C, 1).astype(jnp.float32))               # (2C, 1)
    bf = post_p["b"].astype(jnp.float32) @ cls_p["w"].reshape(C, 1).astype(jnp.float32)
    bf = bf + cls_p["b"].astype(jnp.float32)                            # (1,)
    wz = wf[:C, 0].reshape(1, 1, C)
    wy = wf[C:, 0].reshape(1, 1, C)

    M = N * H * W
    tb = min(64, pl.cdiv(M, 128))
    Mp = _round_up(M, 128 * tb)
    zf = z.reshape(M, C).astype(jnp.float32)
    yf = y.reshape(M, C).astype(jnp.bfloat16)
    if Mp != M:
        zf = jnp.pad(zf, ((0, Mp - M), (0, 0)))
        yf = jnp.pad(yf, ((0, Mp - M), (0, 0)))
    rows = Mp // 128
    z3 = zf.reshape(rows, 128, C)
    y3 = yf.reshape(rows, 128, C)

    out = pl.pallas_call(
        _head_kernel,
        out_shape=jax.ShapeDtypeStruct((rows, 128), jnp.float32),
        grid_spec=pltpu.PrefetchScalarGridSpec(
            num_scalar_prefetch=0,
            grid=(rows // tb,),
            in_specs=[pl.BlockSpec((tb, 128, C), lambda i: (i, 0, 0)),
                      pl.BlockSpec((tb, 128, C), lambda i: (i, 0, 0)),
                      pl.BlockSpec((1, 1, C), lambda i: (0, 0, 0)),
                      pl.BlockSpec((1, 1, C), lambda i: (0, 0, 0))],
            out_specs=pl.BlockSpec((tb, 128), lambda i: (i, 0)),
        ),
        compiler_params=pltpu.CompilerParams(dimension_semantics=("parallel",)),
    )(z3, y3, wz, wy)
    return out.reshape(Mp)[:M].reshape(N, H, W, 1) + bf


# --------------------------------------------------------------------------- JAX glue ops

def _resize_coords(out_size, in_size):
    scale = in_size / out_size
    src = (jnp.arange(out_size, dtype=jnp.float32) + 0.5) * scale - 0.5
    src = jnp.maximum(src, 0.0)
    lo = jnp.minimum(jnp.floor(src).astype(jnp.int32), in_size - 1)
    hi = jnp.minimum(lo + 1, in_size - 1)
    return lo, hi, src - lo.astype(jnp.float32)


def resize_bilinear(x, out_h, out_w):
    """F.upsample(mode='bilinear') semantics (align_corners=False, no antialias)."""
    N, H, W, C = x.shape
    if (H, W) == (out_h, out_w):
        return x
    lo_h, hi_h, wh = _resize_coords(out_h, H)
    lo_w, hi_w, ww = _resize_coords(out_w, W)
    rows = (jnp.take(x, lo_h, axis=1) * (1.0 - wh)[None, :, None, None]
            + jnp.take(x, hi_h, axis=1) * wh[None, :, None, None])
    return (jnp.take(rows, lo_w, axis=2) * (1.0 - ww)[None, None, :, None]
            + jnp.take(rows, hi_w, axis=2) * ww[None, None, :, None])


def max_pool_2x2(x):
    """F.max_pool2d(kernel=2, stride=2, return_indices=True); index = slot in window."""
    N, H, W, C = x.shape
    xr = x.reshape(N, H // 2, 2, W // 2, 2, C).transpose(0, 1, 3, 2, 4, 5)
    xr = xr.reshape(N, H // 2, W // 2, 4, C)
    return jnp.max(xr, axis=3), jnp.argmax(xr, axis=3)


def max_unpool_2x2(x, idx):
    """F.max_unpool2d(kernel=2, stride=2): scatter each value back to its argmax slot."""
    N, h, w, C = x.shape
    one_hot = jax.nn.one_hot(idx, 4, dtype=x.dtype, axis=3)        # (N,h,w,4,C)
    y = x[:, :, :, None, :] * one_hot
    y = y.reshape(N, h, w, 2, 2, C).transpose(0, 1, 3, 2, 4, 5)
    return y.reshape(N, 2 * h, 2 * w, C)


# --------------------------------------------------------------------------- FRRU blocks

def _frru_apply(p, y_in, z_small):
    # torch.cat([z, y], 1); done in bf16 so the consumer conv reads it straight.
    cat = jnp.concatenate([z_small.astype(jnp.bfloat16), y_in.astype(jnp.bfloat16)],
                          axis=-1)
    y = conv_bn_relu(cat, p["conv0"], padding=1)
    y = conv_bn_relu(y, p["conv1"], padding=1)
    # residual: 1x1 conv with padding=1 (output spatial = input + 2), with bias
    z_res = conv2d(y, p["residual"]["w"], bias=p["residual"]["b"], padding=1,
                   out_dtype=jnp.float32)
    return y, z_res


def down_frru(p, y_prev, z_prev):
    y_pool, idx = max_pool_2x2(y_prev)
    # reference swaps H/W via size(-1)/size(-2); all maps are square -> equivalent
    z_small = resize_bilinear(z_prev, y_pool.shape[1], y_pool.shape[2])
    y, z_res = _frru_apply(p, y_pool, z_small)
    z = resize_bilinear(z_res, z_prev.shape[1], z_prev.shape[2]) + z_prev
    return y, z, idx


def up_frru(p, y_prev, z_prev, idx):
    y_up = max_unpool_2x2(y_prev, idx)
    z_small = resize_bilinear(z_prev, y_up.shape[1], y_up.shape[2])
    y, z_res = _frru_apply(p, y_up, z_small)
    z = resize_bilinear(z_res, z_prev.shape[1], z_prev.shape[2]) + z_prev
    return y, z


def frrunet512_forward(params, x_nchw, base=512):
    """FRRUNet512.forward; `base` is the internal working resolution (512 in the module)."""
    N, C, Hin, Win = x_nchw.shape
    assert C == 3
    x = jnp.transpose(x_nchw, (0, 2, 3, 1)).astype(jnp.float32)    # -> NHWC
    y = resize_bilinear(x, base, base)
    y = conv_bn_relu(y, params["preprocess"], padding=2)
    z = y
    indices = []
    for p in params["down"]:
        y, z, idx = down_frru(p, y, z)
        indices.append(idx)
    for p, idx in zip(params["up"], reversed(indices)):
        y, z = up_frru(p, y, z, idx)
    # postprocess + classify folded into one split-K head (no concat, no 32ch intermediate)
    out = classify_head(z, y, params["post"], params["cls"])       # (N, base, base, 1)
    out = resize_bilinear(out, Hin, Win)
    return out[..., 0]                                             # (N, Hin, Win)


# --------------------------------------------------------------------------- parameter init

def _he_conv(key, k, cin, cout, scale=2.0):
    std = math.sqrt(scale / (k * k * cin))
    return jax.random.normal(key, (k, k, cin, cout), jnp.float32) * std


def _init_cbr(key, cin, cout, k):
    return {"w": _he_conv(key, k, cin, cout),
            "gamma": jnp.ones((cout,), jnp.float32),
            "beta": jnp.zeros((cout,), jnp.float32)}


def _init_conv_bias(key, cin, cout, k):
    kw_, kb_ = jax.random.split(key)
    return {"w": _he_conv(kw_, k, cin, cout, scale=1.0),
            "b": 0.01 * jax.random.normal(kb_, (cout,), jnp.float32)}


def _init_frru(key, y_prev_c, z_prev_c, y_c, z_c):
    assert z_prev_c == z_c
    k0, k1, k2 = jax.random.split(key, 3)
    return {"conv0": _init_cbr(k0, z_prev_c + y_prev_c, y_c, 3),
            "conv1": _init_cbr(k1, y_c, y_c, 3),
            "residual": _init_conv_bias(k2, y_c, z_c, 1)}


def init_params(key):
    down_cfg = [(32, 32, 32, 32), (32, 32, 64, 32), (64, 32, 128, 32),
                (128, 32, 256, 32), (256, 32, 512, 32), (512, 32, 512, 32)]
    up_cfg = [(512, 32, 256, 32), (256, 32, 128, 32), (128, 32, 64, 32),
              (64, 32, 32, 32), (32, 32, 32, 32), (32, 32, 32, 32)]
    keys = jax.random.split(key, 3 + len(down_cfg) + len(up_cfg))
    return {
        "preprocess": _init_cbr(keys[0], 3, 32, 5),
        "post": _init_conv_bias(keys[1], 64, 32, 1),
        "cls": _init_conv_bias(keys[2], 32, 1, 1),
        "down": [_init_frru(k, *cfg) for k, cfg in zip(keys[3:9], down_cfg)],
        "up": [_init_frru(k, *cfg) for k, cfg in zip(keys[9:15], up_cfg)],
    }


# --------------------------------------------------------------------------- main

if __name__ == "__main__":
    key = jax.random.PRNGKey(0)
    kx, kp = jax.random.split(key)
    x = jax.random.normal(kx, (2, 3, 16, 16), jnp.float32)
    params = init_params(kp)
    # NOTE: FRRUNet512 hard-codes a 512x512 internal working resolution; the kernels
    # above are sized/budgeted for that scale, but the smoke test runs the identical
    # graph at base=64 (the smallest resolution that still exercises all 6 down + 6 up
    # FRRU stages) so it finishes quickly.
    out = frrunet512_forward(params, x, base=64)
    out = jax.block_until_ready(out)
    assert out.shape == (2, 16, 16), out.shape
    assert bool(jnp.isfinite(out).all())
    print("KERNEL_OK")
</pallas_src>

<mosaic_0001>
module attributes {stable_mosaic.version = 11 : i64} {
  func.func @_conv_kernel(%arg0: i32, %arg1: i32, %arg2: memref<1x68x68x3xbf16, #tpu.memory_space<vmem>>, %arg3: memref<5x15x32xbf16, #tpu.memory_space<vmem>>, %arg4: memref<1x32xf32, #tpu.memory_space<vmem>>, %arg5: memref<1x16x64x32xbf16, #tpu.memory_space<vmem>>, %arg6: memref<1x1x2x32xf32, #tpu.memory_space<vmem>>) attributes {dimension_semantics = [#tpu.dimension_semantics<parallel>, #tpu.dimension_semantics<parallel>], iteration_bounds = array<i64: 2, 4>, scalar_prefetch = 0 : i64, scratch_operands = 0 : i64, tpu.core_type = #tpu.core_type<tc>, window_params = [{transform_indices = @transform_0, window_bounds = array<i64: 1, 68, 68, 3>}, {pipeline_mode = #tpu.pipeline_mode<synchronous>, transform_indices = @transform_1, window_bounds = array<i64: 5, 15, 32>}, {pipeline_mode = #tpu.pipeline_mode<synchronous>, transform_indices = @transform_2, window_bounds = array<i64: 1, 32>}, {transform_indices = @transform_3, window_bounds = array<i64: 1, 16, 64, 32>}, {transform_indices = @transform_4, window_bounds = array<i64: 1, 1, 2, 32>}]} {
    %c16_i32 = arith.constant 16 : i32
    %0 = arith.muli %arg1, %c16_i32 : i32
    %c0 = arith.constant 0 : index
    %c0_0 = arith.constant 0 : index
    %1 = vector.load %arg4[%c0, %c0_0] : memref<1x32xf32, #tpu.memory_space<vmem>>, vector<1x32xf32>
    %cst = arith.constant 0.000000e+00 : f32
    %2 = vector.broadcast %cst : f32 to vector<1x32xf32>
    %cst_1 = arith.constant 0.000000e+00 : f32
    %3 = vector.broadcast %cst_1 : f32 to vector<1x32xf32>
    %c0_i32 = arith.constant 0 : i32
    %c2_i32 = arith.constant 2 : i32
    %4 = arith.addi %c0_i32, %c2_i32 : i32
    %c1_i32 = arith.constant 1 : i32
    %5:2 = scf.for %arg7 = %c0_i32 to %4 step %c1_i32 iter_args(%arg8 = %2, %arg9 = %3) -> (vector<1x32xf32>, vector<1x32xf32>)  : i32 {
      %c8_i32 = arith.constant 8 : i32
      %10 = arith.muli %arg7, %c8_i32 : i32
      %11 = arith.addi %0, %10 : i32
      %cst_7 = arith.constant 0.000000e+00 : f32
      %12 = vector.broadcast %cst_7 : f32 to vector<512x32xf32>
      %c0_i32_8 = arith.constant 0 : i32
      %13 = arith.addi %11, %c0_i32_8 : i32
      %c0_9 = arith.constant 0 : index
      %14 = arith.index_cast %13 : i32 to index
      %c0_10 = arith.constant 0 : index
      %c0_11 = arith.constant 0 : index
      %15 = vector.load %arg2[%c0_9, %14, %c0_10, %c0_11] : memref<1x68x68x3xbf16, #tpu.memory_space<vmem>>, vector<1x8x68x3xbf16>
      %16 = vector.shape_cast %15 : vector<1x8x68x3xbf16> to vector<8x68x3xbf16>
      %17 = vector.extract_strided_slice %16 {offsets = [0, 0, 0], sizes = [8, 64, 3], strides = [1, 1, 1]} : vector<8x68x3xbf16> to vector<8x64x3xbf16>
      %18 = vector.extract_strided_slice %16 {offsets = [0, 1, 0], sizes = [8, 64, 3], strides = [1, 1, 1]} : vector<8x68x3xbf16> to vector<8x64x3xbf16>
      %19 = vector.extract_strided_slice %16 {offsets = [0, 2, 0], sizes = [8, 64, 3], strides = [1, 1, 1]} : vector<8x68x3xbf16> to vector<8x64x3xbf16>
      %20 = vector.extract_strided_slice %16 {offsets = [0, 3, 0], sizes = [8, 64, 3], strides = [1, 1, 1]} : vector<8x68x3xbf16> to vector<8x64x3xbf16>
      %21 = vector.extract_strided_slice %16 {offsets = [0, 4, 0], sizes = [8, 64, 3], strides = [1, 1, 1]} : vector<8x68x3xbf16> to vector<8x64x3xbf16>
      %22 = tpu.concatenate %17, %18, %19, %20, %21 in 2 : vector<8x64x3xbf16>, vector<8x64x3xbf16>, vector<8x64x3xbf16>, vector<8x64x3xbf16>, vector<8x64x3xbf16> -> vector<8x64x15xbf16>
      %23 = vector.shape_cast %22 : vector<8x64x15xbf16> to vector<512x15xbf16>
      %c0_12 = arith.constant 0 : index
      %c0_13 = arith.constant 0 : index
      %c0_14 = arith.constant 0 : index
      %24 = vector.load %arg3[%c0_12, %c0_13, %c0_14] : memref<5x15x32xbf16, #tpu.memory_space<vmem>>, vector<1x15x32xbf16>
      %25 = vector.shape_cast %24 : vector<1x15x32xbf16> to vector<15x32xbf16>
      %cst_15 = arith.constant dense<0.000000e+00> : vector<512x32xf32>
      %26 = tpu.matmul %23, %25, %cst_15 {dimension_numbers = #tpu.dot_dimension_numbers<[1], [0], [0], [1], [0, 0, 1, 1], [], []>} : vector<512x15xbf16>, vector<15x32xbf16>, vector<512x32xf32> -> vector<512x32xf32>
      %27 = arith.addf %12, %26 : vector<512x32xf32>
      %c1_i32_16 = arith.constant 1 : i32
      %28 = arith.addi %11, %c1_i32_16 : i32
      %c0_17 = arith.constant 0 : index
      %29 = arith.index_cast %28 : i32 to index
      %c0_18 = arith.constant 0 : index
      %c0_19 = arith.constant 0 : index
      %30 = vector.load %arg2[%c0_17, %29, %c0_18, %c0_19] : memref<1x68x68x3xbf16, #tpu.memory_space<vmem>>, vector<1x8x68x3xbf16>
      %31 = vector.shape_cast %30 : vector<1x8x68x3xbf16> to vector<8x68x3xbf16>
      %32 = vector.extract_strided_slice %31 {offsets = [0, 0, 0], sizes = [8, 64, 3], strides = [1, 1, 1]} : vector<8x68x3xbf16> to vector<8x64x3xbf16>
      %33 = vector.extract_strided_slice %31 {offsets = [0, 1, 0], sizes = [8, 64, 3], strides = [1, 1, 1]} : vector<8x68x3xbf16> to vector<8x64x3xbf16>
      %34 = vector.extract_strided_slice %31 {offsets = [0, 2, 0], sizes = [8, 64, 3], strides = [1, 1, 1]} : vector<8x68x3xbf16> to vector<8x64x3xbf16>
      %35 = vector.extract_strided_slice %31 {offsets = [0, 3, 0], sizes = [8, 64, 3], strides = [1, 1, 1]} : vector<8x68x3xbf16> to vector<8x64x3xbf16>
      %36 = vector.extract_strided_slice %31 {offsets = [0, 4, 0], sizes = [8, 64, 3], strides = [1, 1, 1]} : vector<8x68x3xbf16> to vector<8x64x3xbf16>
      %37 = tpu.concatenate %32, %33, %34, %35, %36 in 2 : vector<8x64x3xbf16>, vector<8x64x3xbf16>, vector<8x64x3xbf16>, vector<8x64x3xbf16>, vector<8x64x3xbf16> -> vector<8x64x15xbf16>
      %38 = vector.shape_cast %37 : vector<8x64x15xbf16> to vector<512x15xbf16>
      %c1 = arith.constant 1 : index
      %c0_20 = arith.constant 0 : index
      %c0_21 = arith.constant 0 : index
      %39 = vector.load %arg3[%c1, %c0_20, %c0_21] : memref<5x15x32xbf16, #tpu.memory_space<vmem>>, vector<1x15x32xbf16>
      %40 = vector.shape_cast %39 : vector<1x15x32xbf16> to vector<15x32xbf16>
      %cst_22 = arith.constant dense<0.000000e+00> : vector<512x32xf32>
      %41 = tpu.matmul %38, %40, %cst_22 {dimension_numbers = #tpu.dot_dimension_numbers<[1], [0], [0], [1], [0, 0, 1, 1], [], []>} : vector<512x15xbf16>, vector<15x32xbf16>, vector<512x32xf32> -> vector<512x32xf32>
      %42 = arith.addf %27, %41 : vector<512x32xf32>
      %c2_i32_23 = arith.constant 2 : i32
      %43 = arith.addi %11, %c2_i32_23 : i32
      %c0_24 = arith.constant 0 : index
      %44 = arith.index_cast %43 : i32 to index
      %c0_25 = arith.constant 0 : index
      %c0_26 = arith.constant 0 : index
      %45 = vector.load %arg2[%c0_24, %44, %c0_25, %c0_26] : memref<1x68x68x3xbf16, #tpu.memory_space<vmem>>, vector<1x8x68x3xbf16>
      %46 = vector.shape_cast %45 : vector<1x8x68x3xbf16> to vector<8x68x3xbf16>
      %47 = vector.extract_strided_slice %46 {offsets = [0, 0, 0], sizes = [8, 64, 3], strides = [1, 1, 1]} : vector<8x68x3xbf16> to vector<8x64x3xbf16>
      %48 = vector.extract_strided_slice %46 {offsets = [0, 1, 0], sizes = [8, 64, 3], strides = [1, 1, 1]} : vector<8x68x3xbf16> to vector<8x64x3xbf16>
      %49 = vector.extract_strided_slice %46 {offsets = [0, 2, 0], sizes = [8, 64, 3], strides = [1, 1, 1]} : vector<8x68x3xbf16> to vector<8x64x3xbf16>
      %50 = vector.extract_strided_slice %46 {offsets = [0, 3, 0], sizes = [8, 64, 3], strides = [1, 1, 1]} : vector<8x68x3xbf16> to vector<8x64x3xbf16>
      %51 = vector.extract_strided_slice %46 {offsets = [0, 4, 0], sizes = [8, 64, 3], strides = [1, 1, 1]} : vector<8x68x3xbf16> to vector<8x64x3xbf16>
      %52 = tpu.concatenate %47, %48, %49, %50, %51 in 2 : vector<8x64x3xbf16>, vector<8x64x3xbf16>, vector<8x64x3xbf16>, vector<8x64x3xbf16>, vector<8x64x3xbf16> -> vector<8x64x15xbf16>
      %53 = vector.shape_cast %52 : vector<8x64x15xbf16> to vector<512x15xbf16>
      %c2 = arith.constant 2 : index
      %c0_27 = arith.constant 0 : index
      %c0_28 = arith.constant 0 : index
      %54 = vector.load %arg3[%c2, %c0_27, %c0_28] : memref<5x15x32xbf16, #tpu.memory_space<vmem>>, vector<1x15x32xbf16>
      %55 = vector.shape_cast %54 : vector<1x15x32xbf16> to vector<15x32xbf16>
      %cst_29 = arith.constant dense<0.000000e+00> : vector<512x32xf32>
      %56 = tpu.matmul %53, %55, %cst_29 {dimension_numbers = #tpu.dot_dimension_numbers<[1], [0], [0], [1], [0, 0, 1, 1], [], []>} : vector<512x15xbf16>, vector<15x32xbf16>, vector<512x32xf32> -> vector<512x32xf32>
      %57 = arith.addf %42, %56 : vector<512x32xf32>
      %c3_i32 = arith.constant 3 : i32
      %58 = arith.addi %11, %c3_i32 : i32
      %c0_30 = arith.constant 0 : index
      %59 = arith.index_cast %58 : i32 to index
      %c0_31 = arith.constant 0 : index
      %c0_32 = arith.constant 0 : index
      %60 = vector.load %arg2[%c0_30, %59, %c0_31, %c0_32] : memref<1x68x68x3xbf16, #tpu.memory_space<vmem>>, vector<1x8x68x3xbf16>
      %61 = vector.shape_cast %60 : vector<1x8x68x3xbf16> to vector<8x68x3xbf16>
      %62 = vector.extract_strided_slice %61 {offsets = [0, 0, 0], sizes = [8, 64, 3], strides = [1, 1, 1]} : vector<8x68x3xbf16> to vector<8x64x3xbf16>
      %63 = vector.extract_strided_slice %61 {offsets = [0, 1, 0], sizes = [8, 64, 3], strides = [1, 1, 1]} : vector<8x68x3xbf16> to vector<8x64x3xbf16>
      %64 = vector.extract_strided_slice %61 {offsets = [0, 2, 0], sizes = [8, 64, 3], strides = [1, 1, 1]} : vector<8x68x3xbf16> to vector<8x64x3xbf16>
      %65 = vector.extract_strided_slice %61 {offsets = [0, 3, 0], sizes = [8, 64, 3], strides = [1, 1, 1]} : vector<8x68x3xbf16> to vector<8x64x3xbf16>
      %66 = vector.extract_strided_slice %61 {offsets = [0, 4, 0], sizes = [8, 64, 3], strides = [1, 1, 1]} : vector<8x68x3xbf16> to vector<8x64x3xbf16>
      %67 = tpu.concatenate %62, %63, %64, %65, %66 in 2 : vector<8x64x3xbf16>, vector<8x64x3xbf16>, vector<8x64x3xbf16>, vector<8x64x3xbf16>, vector<8x64x3xbf16> -> vector<8x64x15xbf16>
      %68 = vector.shape_cast %67 : vector<8x64x15xbf16> to vector<512x15xbf16>
      %c3 = arith.constant 3 : index
      %c0_33 = arith.constant 0 : index
      %c0_34 = arith.constant 0 : index
      %69 = vector.load %arg3[%c3, %c0_33, %c0_34] : memref<5x15x32xbf16, #tpu.memory_space<vmem>>, vector<1x15x32xbf16>
      %70 = vector.shape_cast %69 : vector<1x15x32xbf16> to vector<15x32xbf16>
      %cst_35 = arith.constant dense<0.000000e+00> : vector<512x32xf32>
      %71 = tpu.matmul %68, %70, %cst_35 {dimension_numbers = #tpu.dot_dimension_numbers<[1], [0], [0], [1], [0, 0, 1, 1], [], []>} : vector<512x15xbf16>, vector<15x32xbf16>, vector<512x32xf32> -> vector<512x32xf32>
      %72 = arith.addf %57, %71 : vector<512x32xf32>
      %c4_i32 = arith.constant 4 : i32
      %73 = arith.addi %11, %c4_i32 : i32
      %c0_36 = arith.constant 0 : index
      %74 = arith.index_cast %73 : i32 to index
      %c0_37 = arith.constant 0 : index
      %c0_38 = arith.constant 0 : index
      %75 = vector.load %arg2[%c0_36, %74, %c0_37, %c0_38] : memref<1x68x68x3xbf16, #tpu.memory_space<vmem>>, vector<1x8x68x3xbf16>
      %76 = vector.shape_cast %75 : vector<1x8x68x3xbf16> to vector<8x68x3xbf16>
      %77 = vector.extract_strided_slice %76 {offsets = [0, 0, 0], sizes = [8, 64, 3], strides = [1, 1, 1]} : vector<8x68x3xbf16> to vector<8x64x3xbf16>
      %78 = vector.extract_strided_slice %76 {offsets = [0, 1, 0], sizes = [8, 64, 3], strides = [1, 1, 1]} : vector<8x68x3xbf16> to vector<8x64x3xbf16>
      %79 = vector.extract_strided_slice %76 {offsets = [0, 2, 0], sizes = [8, 64, 3], strides = [1, 1, 1]} : vector<8x68x3xbf16> to vector<8x64x3xbf16>
      %80 = vector.extract_strided_slice %76 {offsets = [0, 3, 0], sizes = [8, 64, 3], strides = [1, 1, 1]} : vector<8x68x3xbf16> to vector<8x64x3xbf16>
      %81 = vector.extract_strided_slice %76 {offsets = [0, 4, 0], sizes = [8, 64, 3], strides = [1, 1, 1]} : vector<8x68x3xbf16> to vector<8x64x3xbf16>
      %82 = tpu.concatenate %77, %78, %79, %80, %81 in 2 : vector<8x64x3xbf16>, vector<8x64x3xbf16>, vector<8x64x3xbf16>, vector<8x64x3xbf16>, vector<8x64x3xbf16> -> vector<8x64x15xbf16>
      %83 = vector.shape_cast %82 : vector<8x64x15xbf16> to vector<512x15xbf16>
      %c4 = arith.constant 4 : index
      %c0_39 = arith.constant 0 : index
      %c0_40 = arith.constant 0 : index
      %84 = vector.load %arg3[%c4, %c0_39, %c0_40] : memref<5x15x32xbf16, #tpu.memory_space<vmem>>, vector<1x15x32xbf16>
      %85 = vector.shape_cast %84 : vector<1x15x32xbf16> to vector<15x32xbf16>
      %cst_41 = arith.constant dense<0.000000e+00> : vector<512x32xf32>
      %86 = tpu.matmul %83, %85, %cst_41 {dimension_numbers = #tpu.dot_dimension_numbers<[1], [0], [0], [1], [0, 0, 1, 1], [], []>} : vector<512x15xbf16>, vector<15x32xbf16>, vector<512x32xf32> -> vector<512x32xf32>
      %87 = arith.addf %72, %86 : vector<512x32xf32>
      %88 = vector.broadcast %1 : vector<1x32xf32> to vector<512x32xf32>
      %89 = arith.addf %87, %88 : vector<512x32xf32>
      %90 = vector.shape_cast %89 : vector<512x32xf32> to vector<8x64x32xf32>
      %91 = arith.truncf %90 : vector<8x64x32xf32> to vector<8x64x32xbf16>
      %c8_i32_42 = arith.constant 8 : i32
      %92 = arith.muli %arg7, %c8_i32_42 : i32
      %c0_43 = arith.constant 0 : index
      %93 = arith.index_cast %92 : i32 to index
      %c0_44 = arith.constant 0 : index
      %c0_45 = arith.constant 0 : index
      %94 = vector.load %arg5[%c0_43, %93, %c0_44, %c0_45] : memref<1x16x64x32xbf16, #tpu.memory_space<vmem>>, vector<1x8x64x32xbf16>
      %95 = vector.shape_cast %94 : vector<1x8x64x32xbf16> to vector<8x64x32xbf16>
      %96 = vector.shape_cast %91 : vector<8x64x32xbf16> to vector<1x8x64x32xbf16>
      tpu.vector_store %arg5[%c0_43, %93, %c0_44, %c0_45], %96 {strides = array<i32>} : memref<1x16x64x32xbf16, #tpu.memory_space<vmem>>, vector<1x8x64x32xbf16>,
      %cst_46 = arith.constant dense<0.000000e+00> : vector<32xf32>
      %97 = vector.multi_reduction <add>, %89, %cst_46 [0] : vector<512x32xf32> to vector<32xf32>
      %98 = vector.shape_cast %97 : vector<32xf32> to vector<1x32xf32>
      %99 = arith.addf %arg8, %98 : vector<1x32xf32>
      %100 = arith.mulf %89, %89 : vector<512x32xf32>
      %cst_47 = arith.constant dense<0.000000e+00> : vector<32xf32>
      %101 = vector.multi_reduction <add>, %100, %cst_47 [0] : vector<512x32xf32> to vector<32xf32>
      %102 = vector.shape_cast %101 : vector<32xf32> to vector<1x32xf32>
      %103 = arith.addf %arg9, %102 : vector<1x32xf32>
      scf.yield %99, %103 : vector<1x32xf32>, vector<1x32xf32>
    }
    %c2_i32_2 = arith.constant 2 : i32
    %6 = tpu.concatenate %5#0, %5#1 in 0 : vector<1x32xf32>, vector<1x32xf32> -> vector<2x32xf32>
    %c0_3 = arith.constant 0 : index
    %c0_4 = arith.constant 0 : index
    %c0_5 = arith.constant 0 : index
    %c0_6 = arith.constant 0 : index
    %7 = vector.load %arg6[%c0_3, %c0_4, %c0_5, %c0_6] : memref<1x1x2x32xf32, #tpu.memory_space<vmem>>, vector<1x1x2x32xf32>
    %8 = vector.shape_cast %7 : vector<1x1x2x32xf32> to vector<2x32xf32>
    %9 = vector.shape_cast %6 : vector<2x32xf32> to vector<1x1x2x32xf32>
    tpu.vector_store %arg6[%c0_3, %c0_4, %c0_5, %c0_6], %9 {strides = array<i32>} : memref<1x1x2x32xf32, #tpu.memory_space<vmem>>, vector<1x1x2x32xf32>,
    return
  }
  func.func @transform_0(%arg0: i32, %arg1: i32) -> (i32, i32, i32, i32) {
    %c0_i32 = arith.constant 0 : i32
    %c0_i32_0 = arith.constant 0 : i32
    %c0_i32_1 = arith.constant 0 : i32
    %c0_i32_2 = arith.constant 0 : i32
    return %arg0, %c0_i32, %c0_i32_0, %c0_i32_1 : i32, i32, i32, i32
  }
  func.func @transform_1(%arg0: i32, %arg1: i32) -> (i32, i32, i32) {
    %c0_i32 = arith.constant 0 : i32
    %c0_i32_0 = arith.constant 0 : i32
    %c0_i32_1 = arith.constant 0 : i32
    %c0_i32_2 = arith.constant 0 : i32
    return %c0_i32, %c0_i32_0, %c0_i32_1 : i32, i32, i32
  }
  func.func @transform_2(%arg0: i32, %arg1: i32) -> (i32, i32) {
    %c0_i32 = arith.constant 0 : i32
    %c0_i32_0 = arith.constant 0 : i32
    %c0_i32_1 = arith.constant 0 : i32
    return %c0_i32, %c0_i32_0 : i32, i32
  }
  func.func @transform_3(%arg0: i32, %arg1: i32) -> (i32, i32, i32, i32) {
    %c0_i32 = arith.constant 0 : i32
    %c0_i32_0 = arith.constant 0 : i32
    %c0_i32_1 = arith.constant 0 : i32
    return %arg0, %arg1, %c0_i32, %c0_i32_0 : i32, i32, i32, i32
  }
  func.func @transform_4(%arg0: i32, %arg1: i32) -> (i32, i32, i32, i32) {
    %c0_i32 = arith.constant 0 : i32
    %c0_i32_0 = arith.constant 0 : i32
    %c0_i32_1 = arith.constant 0 : i32
    return %arg0, %arg1, %c0_i32, %c0_i32_0 : i32, i32, i32, i32
  }
}

</mosaic_0001>

<bundles_post_ra>
// kernel: tpu_custom_call.1
= control target key start
LH: loop header
LB: loop body
LE: loop exit
PB: predicated region body
PF: predicated region fallthrough
CT: control target
= control target key end

     0   :  { %s19014_s0 = inlined_call_operand.vmem [shape: bf16[2,68,68,3], index: 0, kind: input, shape index: {}]   ;;  %s19015_s1 = inlined_call_operand.vmem [shape: bf16[5,15,32], index: 1, kind: input, shape index: {}]   ;;  %s19016_s2 = inlined_call_operand.vmem [shape: f32[1,32], index: 2, kind: input, shape index: {}]   ;;  %s19017_s3 = inlined_call_operand.vmem [shape: bf16[2,64,64,32], index: 3, kind: output, shape index: {0}]   ;;  %s19018_s4 = inlined_call_operand.hbm [shape: f32[2,4,2,32], index: 4, kind: output, shape index: {1}]  }
   0x1   :  { %19311 = sst [smem:[#allocation243_spill]] %s19016_s2 }
   0x2   :  { %10 = vsyncpa [#allocation3], 0 }
   0x3   :  { %12 = vsyncpa [#allocation3 + $0x1], 0  ;;  %s11066_s15 = smov 0   ;;  %s11068_s16 = smov 0  }
   0x4   :  { %s11070_s17 = smov 0   ;;  %s11072_s18 = smov 0  }
   0x5   :  { %s11074_s19 = smov 0   ;;  %s11076_s20 = smov 0  }
   0x6   :  { %s11078_s21 = smov 0   ;;  %s11080_s22 = smov 0  }
   0x7 LB: > { %19312 = sst [smem:[#allocation5_spill]] %s11018_s21  ;;  %s9256_s23 = sadd.s32 4294967295, %s11022_s22   ;;  %s11022_s22 = sphi %s11080_s22, %s18_s22   ;;  %s11018_s21 = sphi %s11078_s21, %s20647_s21   ;;  %s11014_s20 = sphi %s11076_s20, %s20652_s20   ;;  %s11010_s19 = sphi %s11074_s19, %s20645_s19   ;;  %s11006_s18 = sphi %s11072_s18, %s20651_s18   ;;  %s11002_s17 = sphi %s11070_s17, %s20650_s17   ;;  %s10998_s16 = sphi %s11068_s16, %s20649_s16   ;;  %s10994_s15 = sphi %s11066_s15, %s20648_s15  }
   0x8   : > { %s9257_s24 = sadd.s32 4294967294, %s11022_s22   ;;  %s27_s25 = sadd.s32 1, %s11014_s20 }
   0x9   : > { %p28_p0 = scmp.ge.s32.totalorder %s27_s25, 4  ;;  %s30_s26 = sadd.s32 1, %s11018_s21 }
   0xa   : > { %p145_p1 = scmp.ne.s32.totalorder %s11002_s17, %s10998_s16  ;;  %p146_p2 = scmp.eq.s32.totalorder %s9256_s23, 7 }
   0xb   : > { %s20654_s25 = smov (%p28_p0, %s27_s25), 0  ;;  %s20656_s26 = smov (!%p28_p0, %s30_s26), %s11018_s21 }
   0xc   : > { %19313 = sst [smem:[#allocation6_spill]] %s20654_s25  ;;  %s131_s27 = ssub.s32 %s11014_s20, %s20654_s25 }
   0xd   : > { %p11117_p3 = por %p146_p2, %p145_p1  ;;  %p32_p4 = scmp.ge.s32.totalorder %s20656_s26, 2 }
   0xe   : > { %p151_p5 = scmp.ne.s32.totalorder %s10998_s16, %s10994_s15  ;;  %p152_p6 = scmp.eq.s32.totalorder %s9257_s24, 7 }
   0xf   : > { %p9260_p7 = scmp.ge.s32.totalorder %s11022_s22, 1  ;;  %s20658_s26 = smov (%p32_p4, %s20656_s26), 0 }
  0x10   : > { %19315 = sst [smem:[#allocation7_spill]] %s20658_s26  ;;  %p11126_p8 = por %p152_p6, %p151_p5 }
  0x11   : > { %p184_p9 = scmp.lt.s32.totalorder %s11022_s22, 9  ;;  %s130_s30 = ssub.s32 %s11018_s21, %s20658_s26 }
  0x12   : > { %s135_s5 = sadd.s32 1, %s11002_s17  ;;  %s132_s6 = sor.u32 %s131_s27, %s130_s30 }
  0x13   : > { %p185_p10 = pnand %p9260_p7, %p184_p9  ;;  %p133_p11 = scmp.eq.s32.totalorder %s132_s6, 0 }
  0x15   : > { %s11135_s7 = scalar_select %p133_p11, %s11002_s17, %s135_s5  }
  0x16   : > { %188 = sbr.rel (%p185_p10) target bundleno = 2040 (0x7f8), region = 32 }
  0x1b   : > { %s19019_s8 = sand.u32 1, %s10998_s16   ;;  %p220_p12 = scmp.lt.s32.totalorder %s11010_s19, 1  ;;  %v11165_v1 = vmov 0.0   ;;  %v11167_v2 = vmov 0.0  }
  0x1c   : > { %s19317_s2 = sld [smem:[#allocation243_spill]]  ;;  %s11146_s11 = sshll.u32 %s19019_s8, 1 }
  0x1d   : > { %s11149_s12 = sshll.u32 %s11006_s18, 4  ;;  %s219_s25 = scalar_lea.vmem [#allocation2], %s11146_s11 }
  0x1e   : > { %p228_p13 = scmp.lt.s32.totalorder %s11149_s12, 63  ;;  %s11169_s21 = smov 0  }
  0x1f   : > { %s221_s13 = scalar_select %p220_p12, %s11010_s19, 1 }
  0x20   : > { %s229_s14 = scalar_select %p228_p13, %s11149_s12, 63 }
  0x21   : > { %s10572_s23 = smul.u32 2448, %s221_s13  ;;  %s9265_s24 = sshll.u32 %s221_s13, 9 }
  0x22   : > { %v11142_v0 = vld [vmem:[%s19317_s2] sm:$0x1]  ;;  %s9264_s27 = sshll.u32 %s229_s14, 3 }
  0x23   : > { %19318 = vst [vmem:[#allocation8_spill] sm:$0xff] %v11142_v0  ;;  %s11157_s6 = scalar_lea.vmem %s19014_s0, %s10572_s23  ;;  %s232_s9 = sadd.s32 %s9265_s24, %s9264_s27 }
  0x24   : > { %s9266_s10 = sshll.u32 %s232_s9, 2 }
  0x25   : > { %s11162_s26 = scalar_lea.vmem %s19017_s3, %s9266_s10 }
  0x26 LB: >> { %19319 = vst [vmem:[#allocation9_spill] sm:$0xff] %v11026_v1  ;;  %s9268_s2 = sshll.u32 %s11034_s21, 3  ;;  %vm508_vm0 = vsmask.f32 7424  ;;  %s11036_s23 = smov 3   ;;  %vm861_vm1 = vcmask 1046528   ;;  %s11034_s21 = sphi %s11169_s21, %s244_s21   ;;  %v11030_v2 = vphi %v11167_v2, %v20643_v2   ;;  %v11026_v1 = vphi %v11165_v1, %v20642_v1  }
  0x27   : >> { %19320 = vst [vmem:[#allocation10_spill] sm:$0xff] %v11030_v2  ;;  %s248_s8 = sadd.s32 %s9268_s2, %s11149_s12  ;;  %s11037_s24 = smov 6   ;;  %vm998_vm2 = vsmask.f32 6400  ;;  %vm1231_vm3 = vcmask 1045504   ;;  %vm3076_vm4 = vcmask 1047552  }
  0x28   : >> { %s10401_s13 = smul.u32 36, %s248_s8  ;;  %s11038_s27 = smov 9   ;;  %vm1368_vm5 = vcmask 23552   ;;  %vm1433_vm6 = vcmask 48128   ;;  %vm1498_vm7 = vcmask 72704   ;;  %vm3010_vm8 = vcmask 121856  }
  0x29   : >> { %s11039_s30 = smov 12   ;;  %vm1563_vm9 = vcmask 97280   ;;  %s10568_s8 = sshll.u32 %s11034_s21, 8  ;;  %vm8666_vm10 = vcmask 257024   ;;  %vm8731_vm11 = vcmask 261120  }
  0x2a   : >> { %s11183_s14 = scalar_lea.vmem %s11157_s6, %s10401_s13  ;;  %s16833_s13 = scalar_lea.vmem %s11162_s26, %s10568_s8 }
  0x2b   : >> { %v11186_v3 = vld [vmem:[%s11183_s14 + $0x24] sm:$0xff]  ;;  %v11189_v4 = vld [vmem:[%s11183_s14 + $0x2c] sm:$0xff]  ;;  %v11195_v6 = vld [vmem:[%s11183_s14 + $0x18] sm:$0xff]  ;;  %s244_s21 = sadd.s32 1, %s11034_s21  }
  0x2c   : >> { %v11192_v5 = vld [vmem:[%s11183_s14 + $0x10] sm:$0xff]  ;;  %v11198_v7 = vld [vmem:[%s11183_s14] sm:$0xff]  ;;  %v11201_v8 = vld [vmem:[%s11183_s14 + $0x8] sm:$0xff]  ;;  %v19071_v9 = vshrl.u32 %v11186_v3, 16  ;;  %v19070_v10 = vshll.u32 %v11186_v3, 16  ;;  %v19066_v11 = vshll.u32 %v11189_v4, 16 }
  0x2d   : >> { %v19091_v12 = vshll.u32 %v11192_v5, 16  ;;  %v11208_v13 = vld [vmem:[%s11183_s14 + $0x34] sm:$0xff]  ;;  %v19092_v14 = vshrl.u32 %v11192_v5, 16  ;;  %v19061_v15 = vshll.u32 %v11195_v6, 16  ;;  %v19078_v16 = vshrl.u32 %v11198_v7, 16  ;;  %v11235_v31 = vld [vmem:[%s11183_s14 + $0x48] sm:$0xff] }
  0x2e   : >> { %v19072_v17 = vshll.u32 %v11198_v7, 16  ;;  %v260_v18 = vld [vmem:[%s11183_s14 + $0x20] sm:$0x3]  ;;  %v550_v19 = vrot.slane %v19070_v10, 1  ;;  %v555_v20 = vrot.slane %v19066_v11, 1  ;;  %v19093_v22 = vshll.u32 %v11201_v8, 16 }
  0x2f   : >> { %v527_v21 = vrot.slane %v19091_v12, 1  ;;  %v535_v23 = vrot.slane %v19061_v15, 1  ;;  %v19068_v25 = vshrl.u32 %v11189_v4, 16  ;;  %v19040_v26 = vshll.u32 %v11208_v13, 16  ;;  %v11245_v36 = vld [vmem:[%s11183_s14 + $0x3c] sm:$0xff]  ;;  %v11257_v43 = vld [vmem:[%s11183_s14 + $0x50] sm:$0xff] }
  0x30   : >> { %v514_v24 = vrot.slane %v19072_v17, 1  ;;  %v551_v27 = vor.u32 %v550_v19, %v19071_v9  ;;  %v519_v29 = vrot.slane %v19093_v22, 1  ;;  %v492_v30 = vunpack.c.l.b16 %v260_v18  ;;  %v269_v41 = vld [vmem:[%s11183_s14 + $0x44] sm:$0x3]  ;;  %v278_v50 = vld [vmem:[%s11183_s14 + $0x68] sm:$0x3] }
  0x31   : >> { %v531_v28 = vor.u32 %v19092_v14, %v527_v21  ;;  %v559_v33 = vor.u32 %v19068_v25, %v555_v20  ;;  %v563_v34 = vrot.slane %v19040_v26, 1  ;;  %v19062_v35 = vshrl.u32 %v11195_v6, 16  ;;  %v11278_v57 = vld [vmem:[%s11183_s14 + $0x60] sm:$0xff]  ;;  %v11285_v62 = vld [vmem:[%s11183_s14 + $0x58] sm:$0xff]  ;;  %p241_p0 = scmp.ge.s32.totalorder %s244_s21, 2  }
  0x32   : >> { %v515_v32 = vor.u32 %v514_v24, %v19078_v16  ;;  %v556_v37 = vsel %vm508_vm0, %v551_v27, %v555_v20  ;;  %v11249_v39 = vpack.c.b16 %v492_v30, %v492_v30  ;;  %v19094_v40 = vshrl.u32 %v11201_v8, 16  ;;  %v314_v15 = vld [vmem:[%s11183_s14 + $0xf8] sm:$0x3]  ;;  %v11508_v25 = vld [vmem:[%s11183_s14 + $0xfc] sm:$0xff]  ;;  %s20644_s12 = sand.u32 (%p241_p0), 1, %s10998_s16  }
  0x33   : >> { %v536_v38 = vsel %vm508_vm0, %v531_v28, %v535_v23  ;;  %805 = vrot.lane.b32.xlu2 %v556_v37, %s11036_s23  ;;  %v539_v44 = vor.u32 %v19062_v35, %v535_v23  ;;  %v19024_v46 = vshll.u32 %v11235_v31, 16  ;;  %v493_v48 = vunpack.c.l.b16 %v269_v41  ;;  %s9079_s6 = scalar_lea.sflag (%p241_p0), [#allocation3], %s20644_s12 }
  0x34   : >> { %801 = vrot.lane.b32.xlu1 %v536_v38, %s11036_s23  ;;  %v520_v42 = vsel %vm508_vm0, %v515_v32, %v519_v29  ;;  %v19060_v45 = vshll.u32 %v11249_v39, 16  ;;  %v523_v47 = vor.u32 %v19094_v40, %v519_v29  ;;  %v19049_v49 = vshll.u32 %v11245_v36, 16  ;;  %v11312_v38 = vld [vmem:[%s11183_s14 + $0x7c] sm:$0xff] }
  0x35   : >> { %797 = vrot.lane.b32.xlu0 %v520_v42, %s11036_s23  ;;  %v564_v51 = vsel %vm508_vm0, %v559_v33, %v563_v34  ;;  %v19025_v53 = vshrl.u32 %v11235_v31, 16  ;;  %v586_v54 = vrot.slane %v19024_v46, 1  ;;  %v19026_v55 = vshll.u32 %v11257_v43, 16 }
  0x36   : >> { %v543_v52 = vrot.slane %v19060_v45, 1  ;;  %v11275_v56 = vpack.c.b16 %v493_v48, %v493_v48  ;;  %v571_v59 = vrot.slane %v19049_v49, 1  ;;  %v19056_v60 = vshrl.u32 %v11245_v36, 16  ;;  %v11436_v49 = vld [vmem:[%s11183_s14 + $0xc4] sm:$0xff] }
  0x37   : >> { %v494_v61 = vunpack.c.l.b16 %v278_v50  ;;  %v528_v63 = vsel %vm508_vm0, %v523_v47, %v527_v21  ;;  %v19045_v19 = vshrl.u32 %v11208_v13, 16  ;;  %v587_v20 = vor.u32 %v586_v54, %v19025_v53 }
  0x38   : >> { %v544_v58 = vsel %vm508_vm0, %v539_v44, %v543_v52  ;;  %v19048_v18 = vshll.u32 %v11275_v56, 16  ;;  %v591_v23 = vrot.slane %v19026_v55, 1  ;;  %v19029_v24 = vshll.u32 %v11278_v57, 16  ;;  %v11330_v52 = vld [vmem:[%s11183_s14 + $0x84] sm:$0xff] }
  0x39   : >> { %v575_v21 = vor.u32 %v19056_v60, %v571_v59  ;;  %v11302_v28 = vpack.c.b16 %v494_v61, %v494_v61  ;;  %v19037_v29 = vshll.u32 %v11285_v62, 16  ;;  %v567_v30 = vor.u32 %v19045_v19, %v563_v34  ;;  %v11320_v34 = vld [vmem:[%s11183_s14 + $0x74] sm:$0xff]  ;;  %v11429_v19 = vld [vmem:[%s11183_s14 + $0xcc] sm:$0xff] }
  0x3a   : >> { %v579_v27 = vrot.slane %v19048_v18, 1  ;;  %v592_v32 = vsel %vm508_vm0, %v587_v20, %v591_v23  ;;  %v607_v33 = vrot.slane %v19029_v24, 1  ;;  %v19030_v37 = vshrl.u32 %v11278_v57, 16 }
  0x3b   : >> { %807 = vrot.lane.b32.xlu2 %v564_v51, %s11036_s23  ;;  %v19023_v42 = vshll.u32 %v11302_v28, 16  ;;  %v599_v44 = vrot.slane %v19037_v29, 1  ;;  %v19039_v47 = vshrl.u32 %v11285_v62, 16  ;;  %v572_v48 = vsel %vm508_vm0, %v567_v30, %v571_v59  ;;  %v11325_v51 = vld [vmem:[%s11183_s14 + $0x6c] sm:$0xff] }
  0x3c   : >> { %803 = vrot.lane.b32.xlu1 %v544_v58, %s11036_s23  ;;  %v580_v41 = vsel %vm508_vm0, %v575_v21, %v579_v27  ;;  %v19028_v50 = vshrl.u32 %v11257_v43, 16  ;;  %v19027_v54 = vshll.u32 %v11312_v38, 16  ;;  %v611_v58 = vor.u32 %v19030_v37, %v607_v33  ;;  %v287_v27 = vld [vmem:[%s11183_s14 + $0x8c] sm:$0x3] }
  0x3d   : >> { %799 = vrot.lane.b32.xlu0 %v528_v63, %s11036_s23  ;;  %v615_v59 = vrot.slane %v19023_v42, 1  ;;  %v603_v61 = vor.u32 %v19039_v47, %v599_v44  ;;  %v19032_v63 = vshll.u32 %v11320_v34, 16  ;;  %v19031_v21 = vshll.u32 %v11325_v51, 16  ;;  %v11353_v42 = vld [vmem:[%s11183_s14 + $0x90] sm:$0xff] }
  0x3e   : >> { %v595_v20 = vor.u32 %v19028_v50, %v591_v23  ;;  %v635_v30 = vrot.slane %v19027_v54, 1  ;;  %v19035_v55 = vshrl.u32 %v11320_v34, 16  ;;  %v19036_v50 = vshrl.u32 %v11325_v51, 16 }
  0x3f   : >> { %v616_v46 = vsel %vm508_vm0, %v611_v58, %v615_v59  ;;  %v608_v53 = vsel %vm508_vm0, %v603_v61, %v607_v33  ;;  %v627_v23 = vrot.slane %v19032_v63, 1  ;;  %v622_v24 = vrot.slane %v19031_v21, 1  ;;  %v11367_v33 = vld [vmem:[%s11183_s14 + $0xa0] sm:$0xff] }
  0x40   : >> { %v600_v54 = vsel %vm508_vm0, %v595_v20, %v599_v44  ;;  %v495_v37 = vunpack.c.l.b16 %v287_v27  ;;  %v19041_v59 = vshll.u32 %v11353_v42, 16  ;;  %v296_v27 = vld [vmem:[%s11183_s14 + $0xb0] sm:$0x3]  ;;  %v19042_v63 = vshll.u32 %v11367_v33, 16 }
  0x41   : >> { %v496_v29 = vunpack.c.l.b16 %v296_v27  ;;  %v19046_v47 = vshrl.u32 %v11330_v52, 16  ;;  %v19065_v60 = vshrl.u32 %v11436_v49, 16  ;;  %v498_v17 = vunpack.c.l.b16 %v314_v15 }
  0x42   : >> { %v11380_v20 = vpack.c.b16 %v495_v37, %v495_v37  ;;  %v910_v14 = vrot.slane %v11436_v49, 1  ;;  %vm9064_vm12 = vcmask (%p241_p0), 1040384   ;;  %vm9066_vm13 = vcmask (%p241_p0), 254976  }
  0x43   : >> { %813 = vrot.lane.b32.xlu2 %v592_v32, %s11036_s23  ;;  %v19033_v32 = vshrl.u32 %v11312_v38, 16 }
  0x44   : >> { %811 = vrot.lane.b32.xlu1 %v580_v41, %s11036_s23  ;;  %v19034_v41 = vshll.u32 %v11330_v52, 16  ;;  %v19047_v26 = vshll.u32 %v11380_v20, 16 }
  0x45   : >> { %809 = vrot.lane.b32.xlu0 %v572_v48, %s11036_s23  ;;  %v11350_v48 = vld [vmem:[%s11183_s14 + $0x98] sm:$0xff]  ;;  %v639_v44 = vor.u32 %v19033_v32, %v635_v30  ;;  %v19044_v32 = vshrl.u32 %v11353_v42, 16 }
  0x46   : >> { %v19038_v58 = vshll.u32 %v11350_v48, 16  ;;  %v643_v61 = vrot.slane %v19034_v41, 1  ;;  %v19043_v21 = vshrl.u32 %v11350_v48, 16  ;;  %v658_v41 = vrot.slane %v19041_v59, 1 }
  0x4b   : >> { %819 = vrot.lane.b32.xlu2 %v616_v46, %s11036_s23  ;;  %v631_v46 = vor.u32 %v19035_v55, %v627_v23  ;;  %v11391_v55 = vld [vmem:[%s11183_s14 + $0xb4] sm:$0xff] }
  0x4c   : >> { %817 = vrot.lane.b32.xlu1 %v608_v53, %s11036_s23  ;;  %v623_v53 = vor.u32 %v622_v24, %v19036_v50  ;;  %v644_v24 = vsel %vm508_vm0, %v639_v44, %v643_v61  ;;  %v11396_v50 = vld [vmem:[%s11183_s14 + $0xa8] sm:$0xff]  ;;  %v659_v44 = vor.u32 %v658_v41, %v19044_v32  ;;  %v19051_v41 = vshrl.u32 %v11391_v55, 16 }
  0x4d   : >> { %815 = vrot.lane.b32.xlu0 %v600_v54, %s11036_s23  ;;  %v663_v54 = vrot.slane %v19038_v58, 1  ;;  %v636_v37 = vsel %vm508_vm0, %v631_v46, %v635_v30  ;;  %v671_v30 = vrot.slane %v19042_v63, 1  ;;  %v11410_v46 = vld [vmem:[%s11183_s14 + $0xbc] sm:$0xff]  ;;  %v19053_v27 = vshll.u32 %v11396_v50, 16  ;;  %v305_v63 = vld [vmem:[%s11183_s14 + $0xd4] sm:$0x3] }
  0x4e   : >> { %v628_v58 = vsel %vm508_vm0, %v623_v53, %v627_v23  ;;  %v19050_v23 = vshll.u32 %v11391_v55, 16  ;;  %v11414_v53 = vpack.c.b16 %v496_v29, %v496_v29  ;;  %v19052_v29 = vshll.u32 %v11410_v46, 16 }
  0x4f   : >> { %v667_v59 = vor.u32 %v19043_v21, %v663_v54  ;;  %v664_v32 = vsel %vm508_vm0, %v659_v44, %v663_v54  ;;  %v497_v18 = vunpack.c.l.b16 %v305_v63  ;;  %v19058_v54 = vshrl.u32 %v11367_v33, 16 }
  0x50   : >> { %v19057_v63 = vshll.u32 %v11429_v19, 16 }
  0x51   : >> { %v672_v21 = vsel %vm508_vm0, %v667_v59, %v671_v30 }
  0x53   : >> { %825 = vrot.lane.b32.xlu2 %v644_v24, %s11036_s23  ;;  %v647_v24 = vor.u32 %v19046_v47, %v643_v61  ;;  %v679_v61 = vrot.slane %v19053_v27, 1  ;;  %v19054_v47 = vshrl.u32 %v11396_v50, 16  ;;  %v11462_v27 = vld [vmem:[%s11183_s14 + $0xe8] sm:$0xff] }
  0x54   : >> { %823 = vrot.lane.b32.xlu1 %v636_v37, %s11036_s23  ;;  %v651_v37 = vrot.slane %v19047_v26, 1  ;;  %v19055_v26 = vshll.u32 %v11414_v53, 16  ;;  %v19075_v35 = vshrl.u32 %v11462_v27, 16 }
  0x55   : >> { %821 = vrot.lane.b32.xlu0 %v628_v58, %s11036_s23  ;;  %v694_v58 = vrot.slane %v19050_v23, 1  ;;  %v699_v23 = vrot.slane %v19052_v29, 1  ;;  %v19063_v29 = vshrl.u32 %v11429_v19, 16 }
  0x56   : >> { %v652_v59 = vsel %vm508_vm0, %v647_v24, %v651_v37  ;;  %v683_v24 = vor.u32 %v19054_v47, %v679_v61  ;;  %v11452_v37 = vpack.c.b16 %v497_v18, %v497_v18 }
  0x57   : >> { %v695_v44 = vor.u32 %v694_v58, %v19051_v41  ;;  %v675_v58 = vor.u32 %v19058_v54, %v671_v30  ;;  %v11470_v30 = vld [vmem:[%s11183_s14 + $0xe0] sm:$0xff]  ;;  %v11475_v54 = vld [vmem:[%s11183_s14 + $0xd8] sm:$0xff] }
  0x58   : >> { %v19064_v18 = vshll.u32 %v11452_v37, 16  ;;  %v19074_v45 = vshll.u32 %v11475_v54, 16  ;;  %v19079_v10 = vshrl.u32 %v11475_v54, 16  ;;  %v916_v2 = vrot.slane %v11475_v54, 1 }
  0x59   : >> { %v700_v41 = vsel %vm508_vm0, %v695_v44, %v699_v23  ;;  %v680_v44 = vsel %vm508_vm0, %v675_v58, %v679_v61  ;;  %v917_v0 = vrot.slane %v11470_v30, 1 }
  0x5a   : >> { %v723_v61 = vrot.slane %v19064_v18, 1  ;;  %v11500_v18 = vld [vmem:[%s11183_s14 + $0x104] sm:$0xff]  ;;  %v730_v9 = vrot.slane %v19074_v45, 1 }
  0x5b   : >> { %831 = vrot.lane.b32.xlu2 %v672_v21, %s11036_s23  ;;  %v687_v21 = vrot.slane %v19055_v26, 1 }
  0x5c   : >> { %829 = vrot.lane.b32.xlu1 %v664_v32, %s11036_s23  ;;  %v19059_v32 = vshll.u32 %v11436_v49, 16 }
  0x5d   : >> { %827 = vrot.lane.b32.xlu0 %v652_v59, %s11036_s23  ;;  %v715_v59 = vrot.slane %v19057_v63, 1  ;;  %v688_v47 = vsel %vm508_vm0, %v683_v24, %v687_v21  ;;  %v19067_v63 = vshrl.u32 %v11410_v46, 16  ;;  %v11480_v24 = vld [vmem:[%s11183_s14 + $0xf0] sm:$0xff]  ;;  %v19069_v21 = vshll.u32 %v11462_v27, 16 }
  0x5e   : >> { %v707_v26 = vrot.slane %v19059_v32, 1 }
  0x5f   : >> { %v719_v32 = vor.u32 %v19063_v29, %v715_v59  ;;  %v19073_v29 = vshll.u32 %v11480_v24, 16 }
  0x60   : >> { %v711_v58 = vor.u32 %v19065_v60, %v707_v26 }
  0x61   : >> { %v724_v60 = vsel %vm508_vm0, %v719_v32, %v723_v61  ;;  %v11521_v61 = vld [vmem:[%s11183_s14 + $0x10c] sm:$0xff] }
  0x62   : >> { %v716_v11 = vsel %vm508_vm0, %v711_v58, %v715_v59  ;;  %v751_v59 = vrot.slane %v19073_v29, 1  ;;  %v11530_v58 = vpack.c.b16 %v498_v17, %v498_v17 }
  0x63   : >> { %837 = vrot.lane.b32.xlu2 %v700_v41, %s11036_s23  ;;  %v19076_v41 = vshll.u32 %v11470_v30, 16 }
  0x64   : >> { %835 = vrot.lane.b32.xlu1 %v688_v47, %s11036_s23  ;;  %v703_v47 = vor.u32 %v19067_v63, %v699_v23  ;;  %v19077_v63 = vshrl.u32 %v11470_v30, 16 }
  0x65   : >> { %833 = vrot.lane.b32.xlu0 %v680_v44, %s11036_s23  ;;  %v743_v44 = vrot.slane %v19069_v21, 1  ;;  %v735_v23 = vrot.slane %v19076_v41, 1 }
  0x66   : >> { %v708_v21 = vsel %vm508_vm0, %v703_v47, %v707_v26  ;;  %v19080_v26 = vshll.u32 %v11500_v18, 16  ;;  %v323_v47 = vld [vmem:[%s11183_s14 + $0x11c] sm:$0x3] }
  0x67   : >> { %v747_v32 = vor.u32 %v19075_v35, %v743_v44  ;;  %v739_v15 = vor.u32 %v19077_v63, %v735_v23  ;;  %v19081_v35 = vshrl.u32 %v11500_v18, 16  ;;  %v19084_v63 = vshrl.u32 %v11508_v25, 16 }
  0x68   : >> { %v771_v45 = vrot.slane %v19080_v26, 1  ;;  %v499_v17 = vunpack.c.l.b16 %v323_v47  ;;  %v19089_v26 = vshll.u32 %v11530_v58, 16 }
  0x69   : >> { %v752_v29 = vsel %vm508_vm0, %v747_v32, %v751_v59  ;;  %v744_v41 = vsel %vm508_vm0, %v739_v15, %v743_v44  ;;  %v19090_v32 = vshrl.u32 %v11480_v24, 16 }
  0x6a   : >> { %v775_v44 = vor.u32 %v19081_v35, %v771_v45 }
  0x6b   : >> { %843 = vrot.lane.b32.xlu2 %v724_v60, %s11036_s23  ;;  %v19082_v60 = vshll.u32 %v11508_v25, 16 }
  0x6c   : >> { %841 = vrot.lane.b32.xlu1 %v716_v11, %s11036_s23  ;;  %v731_v11 = vor.u32 %v730_v9, %v19079_v10  ;;  %v11543_v9 = vld [vmem:[%s11183_s14 + $0x114] sm:$0xff] }
  0x6d   : >> { %839 = vrot.lane.b32.xlu0 %v708_v21, %s11036_s23  ;;  %v19083_v21 = vshll.u32 %v11521_v61, 16  ;;  %v766_v16 = vrot.slane %v19082_v60, 1 }
  0x6e   : >> { %v736_v10 = vsel %vm508_vm0, %v731_v11, %v735_v23  ;;  %v11557_v23 = vpack.c.b16 %v499_v17, %v499_v17  ;;  %v19086_v11 = vshll.u32 %v11543_v9, 16 }
  0x6f   : >> { %v779_v15 = vrot.slane %v19083_v21, 1  ;;  %v767_v47 = vor.u32 %v766_v16, %v19084_v63  ;;  %v19088_v21 = vshrl.u32 %v11543_v9, 16  ;;  %v19087_v63 = vshrl.u32 %v11521_v61, 16 }
  0x70   : >> { %v19085_v16 = vshll.u32 %v11557_v23, 16 }
  0x71   : >> { %v780_v35 = vsel %vm508_vm0, %v775_v44, %v779_v15  ;;  %v772_v60 = vsel %vm508_vm0, %v767_v47, %v771_v45  ;;  %v862_v44 = vrot.slane %v11198_v7, 1  ;;  %v863_v47 = vrot.slane %v11201_v8, 1 }
  0x73   : >> { %849 = vrot.lane.b32.xlu2 %v752_v29, %s11036_s23  ;;  %v755_v29 = vor.u32 %v19090_v32, %v751_v59  ;;  %v795_v59 = vrot.slane %v19085_v16, 1  ;;  %v867_v16 = vrot.slane %v11195_v6, 1 }
  0x74   : >> { %847 = vrot.lane.b32.xlu1 %v744_v41, %s11036_s23  ;;  %v759_v41 = vrot.slane %v19089_v26, 1 }
  0x75   : >> { %845 = vrot.lane.b32.xlu0 %v736_v10, %s11036_s23  ;;  %v787_v10 = vrot.slane %v19086_v11, 1  ;;  %v869_v11 = vrot.slane %v11249_v39, 1 }
  0x76   : >> { %v760_v17 = vsel %vm508_vm0, %v755_v29, %v759_v41  ;;  %v783_v29 = vor.u32 %v19087_v63, %v779_v15  ;;  %v890_v63 = vrot.slane %v11320_v34, 1 }
  0x77   : >> { %v791_v45 = vor.u32 %v19088_v21, %v787_v10 }
  0x78   : >> { %v788_v41 = vsel %vm508_vm0, %v783_v29, %v787_v10  ;;  %v872_v10 = vrot.slane %v11189_v4, 1  ;;  %v876_v29 = vrot.slane %v11245_v36, 1 }
  0x7b   : >> { %855 = vrot.lane.b32.xlu2 %v780_v35, %s11036_s23  ;;  %v796_v35 = vsel %vm508_vm0, %v791_v45, %v795_v59  ;;  %v870_v45 = vsel %vm861_vm1, %v867_v16, %v869_v11 }
  0x7c   : >> { %853 = vrot.lane.b32.xlu1 %v772_v60, %s11036_s23  ;;  %v864_v60 = vsel %vm861_vm1, %v862_v44, %v863_v47  ;;  %v874_v44 = vrot.slane %v11208_v13, 1 }
  0x7d   : >> { %851 = vrot.lane.b32.xlu0 %v760_v17, %s11036_s23  ;;  %v865_v17 = vrot.slane %v11192_v5, 1 }
  0x7e   : >> { %v875_v11 = vsel %vm861_vm1, %v872_v10, %v874_v44 }
  0x7f   : >> { %v868_v15 = vsel %vm861_vm1, %v865_v17, %v867_v16  ;;  %v866_v59 = vsel %vm861_vm1, %v863_v47, %v865_v17  ;;  %v877_v16 = vsel %vm861_vm1, %v874_v44, %v876_v29  ;;  %v881_v17 = vrot.slane %v11257_v43, 1 }
  0x83   : >> { %934 = vrot.lane.b32.xlu2 %v864_v60, %s11037_s24  ;;  %v871_v60 = vrot.slane %v11186_v3, 1 }
  0x84   : >> { %859 = vrot.lane.b32.xlu1 %v796_v35, %s11036_s23 }
  0x85   : >> { %857 = vrot.lane.b32.xlu0 %v788_v41, %s11036_s23  ;;  %v873_v47 = vsel %vm861_vm1, %v871_v60, %v872_v10  ;;  %v880_v41 = vrot.slane %v11235_v31, 1 }
  0x87   : >> { %v882_v44 = vsel %vm861_vm1, %v880_v41, %v881_v17 }
  0x8b   : >> { %940 = vrot.lane.b32.xlu2 %v870_v45, %s11037_s24 }
  0x8c   : >> { %938 = vrot.lane.b32.xlu1 %v868_v15, %s11037_s24  ;;  %v883_v15 = vrot.slane %v11285_v62, 1 }
  0x8d   : >> { %936 = vrot.lane.b32.xlu0 %v866_v59, %s11037_s24  ;;  %v11601_v35 = vpop.permute.xlu2 %805  ;;  %v878_v59 = vrot.slane %v11275_v56, 1 }
  0x8e   : >> { %19321 = vst [vmem:[#allocation11_spill] sm:$0xff] %v11601_v35  ;;  %v884_v10 = vsel %vm861_vm1, %v881_v17, %v883_v15 }
  0x8f   : >> { %v879_v60 = vsel %vm861_vm1, %v876_v29, %v878_v59  ;;  %v892_v59 = vrot.slane %v11312_v38, 1 }
  0x93   : >> { %946 = vrot.lane.b32.xlu2 %v877_v16, %s11037_s24  ;;  %v887_v16 = vrot.slane %v11302_v28, 1 }
  0x94   : >> { %944 = vrot.lane.b32.xlu1 %v875_v11, %s11037_s24  ;;  %v885_v11 = vrot.slane %v11278_v57, 1 }
  0x95   : >> { %942 = vrot.lane.b32.xlu0 %v873_v47, %s11037_s24  ;;  %v11613_v45 = vpop.permute.xlu2 %807  ;;  %v889_v47 = vrot.slane %v11325_v51, 1 }
  0x96   : >> { %19322 = vst [vmem:[#allocation12_spill] sm:$0xff] %v11613_v45  ;;  %v888_v41 = vsel %vm861_vm1, %v885_v11, %v887_v16  ;;  %v886_v17 = vsel %vm861_vm1, %v883_v15, %v885_v11 }
  0x97   : >> { %v891_v29 = vsel %vm861_vm1, %v889_v47, %v890_v63  ;;  %v893_v47 = vsel %vm861_vm1, %v890_v63, %v892_v59 }
  0x9b   : >> { %952 = vrot.lane.b32.xlu2 %v884_v10, %s11037_s24  ;;  %v896_v10 = vrot.slane %v11380_v20, 1 }
  0x9c   : >> { %950 = vrot.lane.b32.xlu1 %v882_v44, %s11037_s24  ;;  %v894_v44 = vrot.slane %v11330_v52, 1 }
  0x9d   : >> { %948 = vrot.lane.b32.xlu0 %v879_v60, %s11037_s24  ;;  %v11626_v21 = vpop.permute.xlu2 %813 }
  0x9e   : >> { %19323 = vst [vmem:[#allocation13_spill] sm:$0xff] %v11626_v21  ;;  %v895_v15 = vsel %vm861_vm1, %v892_v59, %v894_v44  ;;  %v897_v11 = vsel %vm861_vm1, %v894_v44, %v896_v10  ;;  %v898_v44 = vrot.slane %v11353_v42, 1  ;;  %v19346_v21 = vshrl.u32 %v11198_v7, 16 }
  0xa3   : >> { %958 = vrot.lane.b32.xlu2 %v891_v29, %s11037_s24  ;;  %v901_v29 = vrot.slane %v11367_v33, 1 }
  0xa4   : >> { %956 = vrot.lane.b32.xlu1 %v888_v41, %s11037_s24  ;;  %v899_v41 = vrot.slane %v11350_v48, 1 }
  0xa5   : >> { %954 = vrot.lane.b32.xlu0 %v886_v17, %s11037_s24  ;;  %v11637_v60 = vpop.permute.xlu2 %819  ;;  %v903_v17 = vrot.slane %v11396_v50, 1 }
  0xa6   : >> { %19324 = vst [vmem:[#allocation14_spill] sm:$0xff] %v11637_v60  ;;  %v11639_v26 = vpop.permute.xlu1 %801  ;;  %v902_v63 = vsel %vm861_vm1, %v899_v41, %v901_v29 }
  0xa7   : >> { %19325 = vst [vmem:[#allocation15_spill] sm:$0xff] %v11639_v26  ;;  %v11641_v16 = vpop.permute.xlu0 %797  ;;  %v904_v59 = vsel %vm861_vm1, %v901_v29, %v903_v17  ;;  %v905_v29 = vrot.slane %v11414_v53, 1 }
  0xa8   : >> { %19326 = vst [vmem:[#allocation16_spill] sm:$0xff] %v11641_v16 }
  0xab   : >> { %964 = vrot.lane.b32.xlu2 %v897_v11, %s11037_s24  ;;  %v907_v11 = vrot.slane %v11391_v55, 1 }
  0xac   : >> { %962 = vrot.lane.b32.xlu1 %v895_v15, %s11037_s24  ;;  %v900_v15 = vsel %vm861_vm1, %v898_v44, %v899_v41 }
  0xad   : >> { %960 = vrot.lane.b32.xlu0 %v893_v47, %s11037_s24  ;;  %v11652_v32 = vpop.permute.xlu2 %825  ;;  %v908_v47 = vrot.slane %v11410_v46, 1 }
  0xae   : >> { %19327 = vst [vmem:[#allocation17_spill] sm:$0xff] %v11652_v32  ;;  %v11654_v12 = vpop.permute.xlu1 %803 }
  0xaf   : >> { %19328 = vst [vmem:[#allocation18_spill] sm:$0xff] %v11654_v12  ;;  %v11657_v10 = vpop.permute.xlu0 %799  ;;  %v909_v41 = vsel %vm861_vm1, %v907_v11, %v908_v47  ;;  %v911_v44 = vsel %vm861_vm1, %v908_v47, %v910_v14 }
  0xb0   : >> { %19329 = vst [vmem:[#allocation19_spill] sm:$0xff] %v11657_v10 }
  0xb3   : >> { %970 = vrot.lane.b32.xlu2 %v904_v59, %s11037_s24  ;;  %v912_v59 = vrot.slane %v11429_v19, 1 }
  0xb4   : >> { %968 = vrot.lane.b32.xlu1 %v902_v63, %s11037_s24  ;;  %v906_v63 = vsel %vm861_vm1, %v903_v17, %v905_v29  ;;  %v918_v29 = vsel %vm861_vm1, %v916_v2, %v917_v0 }
  0xb5   : >> { %966 = vrot.lane.b32.xlu0 %v900_v15, %s11037_s24  ;;  %v11668_v22 = vpop.permute.xlu2 %831  ;;  %v914_v15 = vrot.slane %v11452_v37, 1 }
  0xb6   : >> { %19330 = vst [vmem:[#allocation20_spill] sm:$0xff] %v11668_v22  ;;  %v11670_v40 = vpop.permute.xlu1 %811 }
  0xb7   : >> { %19331 = vst [vmem:[#allocation21_spill] sm:$0xff] %v11670_v40  ;;  %v11673_v1 = vpop.permute.xlu0 %809  ;;  %v915_v17 = vsel %vm861_vm1, %v912_v59, %v914_v15  ;;  %v999_v40 = vrot.slane %v19346_v21, 1 }
  0xb8   : >> { %19332 = vst [vmem:[#allocation22_spill] sm:$0xff] %v11673_v1 }
  0xbb   : >> { %976 = vrot.lane.b32.xlu2 %v911_v44, %s11037_s24  ;;  %v919_v44 = vrot.slane %v11462_v27, 1 }
  0xbc   : >> { %974 = vrot.lane.b32.xlu1 %v909_v41, %s11037_s24  ;;  %v913_v41 = vsel %vm861_vm1, %v910_v14, %v912_v59 }
  0xbd   : >> { %972 = vrot.lane.b32.xlu0 %v906_v63, %s11037_s24  ;;  %v11685_v22 = vpop.permute.xlu2 %837  ;;  %v921_v63 = vrot.slane %v11480_v24, 1  ;;  %v920_v59 = vsel %vm861_vm1, %v917_v0, %v919_v44 }
  0xbe   : >> { %19333 = vst [vmem:[#allocation23_spill] sm:$0xff] %v11685_v22  ;;  %v11687_v11 = vpop.permute.xlu1 %817  ;;  %v923_v22 = vrot.slane %v11530_v58, 1 }
  0xbf   : >> { %19334 = vst [vmem:[#allocation24_spill] sm:$0xff] %v11687_v11  ;;  %v11689_v47 = vpop.permute.xlu0 %815  ;;  %v922_v2 = vsel %vm861_vm1, %v919_v44, %v921_v63 }
  0xc0   : >> { %19335 = vst [vmem:[#allocation25_spill] sm:$0xff] %v11689_v47  ;;  %v924_v14 = vsel %vm861_vm1, %v921_v63, %v923_v22  ;;  %v925_v22 = vrot.slane %v11508_v25, 1 }
  0xc3   : >> { %982 = vrot.lane.b32.xlu2 %v918_v29, %s11037_s24  ;;  %v928_v29 = vrot.slane %v11521_v61, 1 }
  0xc4   : >> { %980 = vrot.lane.b32.xlu1 %v915_v17, %s11037_s24  ;;  %v926_v17 = vrot.slane %v11500_v18, 1 }
  0xc5   : >> { %978 = vrot.lane.b32.xlu0 %v913_v41, %s11037_s24  ;;  %v11700_v32 = vpop.permute.xlu2 %843  ;;  %v930_v41 = vrot.slane %v11543_v9, 1 }
  0xc6   : >> { %19336 = vst [vmem:[#allocation26_spill] sm:$0xff] %v11700_v32  ;;  %v11702_v60 = vpop.permute.xlu1 %823  ;;  %v929_v0 = vsel %vm861_vm1, %v926_v17, %v928_v29 }
  0xc7   : >> { %19337 = vst [vmem:[#allocation27_spill] sm:$0xff] %v11702_v60  ;;  %v11704_v15 = vpop.permute.xlu0 %821  ;;  %v931_v44 = vsel %vm861_vm1, %v928_v29, %v930_v41  ;;  %v927_v29 = vsel %vm861_vm1, %v925_v22, %v926_v17  ;;  %v19351_v17 = vshrl.u32 %v11186_v3, 16 }
  0xc8   : >> { %19338 = vst [vmem:[#allocation28_spill] sm:$0xff] %v11704_v15  ;;  %v19343_v15 = vshll.u32 %v11201_v8, 16 }
  0xc9   : >> { %v1020_v22 = vrot.slane %v19351_v17, 1 }
  0xca   : >> { %v1003_v11 = vrot.slane %v19343_v15, 2 }
  0xcb   : >> { %988 = vrot.lane.b32.xlu2 %v924_v14, %s11037_s24 }
  0xcc   : >> { %986 = vrot.lane.b32.xlu1 %v922_v2, %s11037_s24  ;;  %v19342_v2 = vshrl.u32 %v11201_v8, 16  ;;  %v1014_v8 = vshrl.u32 %v11249_v39, 16 }
  0xcd   : >> { %984 = vrot.lane.b32.xlu0 %v920_v59, %s11037_s24  ;;  %v11715_v32 = vpop.permute.xlu2 %849  ;;  %v19344_v59 = vshrl.u32 %v11192_v5, 16 }
  0xce   : >> { %19339 = vst [vmem:[#allocation29_spill] sm:$0xff] %v11715_v32  ;;  %v11717_v60 = vpop.permute.xlu1 %829  ;;  %v1002_v14 = vrot.slane %v19342_v2, 1  ;;  %v19345_v32 = vshll.u32 %v11192_v5, 16 }
  0xcf   : >> { %19340 = vst [vmem:[#allocation30_spill] sm:$0xff] %v11717_v60  ;;  %v11720_v63 = vpop.permute.xlu0 %827  ;;  %v1006_v47 = vrot.slane %v19344_v59, 1 }
  0xd0   : >> { %19341 = vst [vmem:[#allocation31_spill] sm:$0xff] %v11720_v63  ;;  %v1007_v60 = vrot.slane %v19345_v32, 2  ;;  %v19347_v63 = vshll.u32 %v11198_v7, 16  ;;  %v1004_v15 = vor.u32 %v1003_v11, %v1002_v14  ;;  %v932_v7 = vrot.slane %v11557_v23, 1 }
  0xd1   : >> { %v19356_v14 = vshll.u32 %v11195_v6, 16 }
  0xd2   : >> { %v1000_v1 = vrot.slane %v19347_v63, 2  ;;  %v1008_v2 = vor.u32 %v1007_v60, %v1006_v47  ;;  %v19352_v63 = vshll.u32 %v11186_v3, 16  ;;  %v19355_v60 = vshrl.u32 %v11195_v6, 16 }
  0xd3   : >> { %994 = vrot.lane.b32.xlu2 %v931_v44, %s11037_s24  ;;  %v19353_v44 = vshrl.u32 %v11189_v4, 16 }
  0xd4   : >> { %992 = vrot.lane.b32.xlu1 %v929_v0, %s11037_s24  ;;  %v1001_v5 = vor.u32 %v1000_v1, %v999_v40  ;;  %v1021_v0 = vrot.slane %v19352_v63, 2  ;;  %v19354_v1 = vshll.u32 %v11189_v4, 16  ;;  %v1010_v47 = vrot.slane %v19355_v60, 1 }
  0xd5   : >> { %990 = vrot.lane.b32.xlu0 %v927_v29, %s11037_s24  ;;  %v11741_v32 = vpop.permute.xlu2 %855  ;;  %v1023_v11 = vrot.slane %v19353_v44, 1  ;;  %v1011_v29 = vrot.slane %v19356_v14, 2  ;;  %v1009_v17 = vsel %vm998_vm2, %v1004_v15, %v1008_v2  ;;  %v933_v63 = vsel %vm861_vm1, %v930_v41, %v932_v7 }
  0xd6   : >> { %19348 = vst [vmem:[#allocation32_spill] sm:$0xff] %v11741_v32  ;;  %v11743_v59 = vpop.permute.xlu1 %835  ;;  %v1024_v40 = vrot.slane %v19354_v1, 2  ;;  %v1016_v32 = vrot.slane %v1014_v8, 1  ;;  %v1005_v3 = vsel %vm998_vm2, %v1001_v5, %v1004_v15  ;;  %v1022_v44 = vor.u32 %v1021_v0, %v1020_v22 }
  0xd7   : >> { %19349 = vst [vmem:[#allocation33_spill] sm:$0xff] %v11743_v59  ;;  %v11746_v21 = vpop.permute.xlu0 %833  ;;  %v19357_v59 = vshll.u32 %v11249_v39, 16  ;;  %v1012_v1 = vor.u32 %v1011_v29, %v1010_v47  ;;  %v1035_v8 = vshrl.u32 %v11275_v56, 16  ;;  %v19361_v7 = vshrl.u32 %v11245_v36, 16 }
  0xd8   : >> { %19350 = vst [vmem:[#allocation34_spill] sm:$0xff] %v11746_v21  ;;  %v1025_v4 = vor.u32 %v1024_v40, %v1023_v11  ;;  %v19362_v0 = vshll.u32 %v11245_v36, 16  ;;  %v19363_v11 = vshll.u32 %v11275_v56, 16  ;;  %v19364_v47 = vshrl.u32 %v11208_v13, 16 }
  0xd9   : >> { %v1017_v21 = vrot.slane %v19357_v59, 2  ;;  %v1031_v22 = vrot.slane %v19361_v7, 1  ;;  %v19365_v29 = vshll.u32 %v11208_v13, 16  ;;  %v19369_v13 = vshrl.u32 %v11285_v62, 16 }
  0xda   : >> { %v1026_v41 = vsel %vm998_vm2, %v1022_v44, %v1025_v4  ;;  %v1038_v40 = vrot.slane %v19363_v11, 2  ;;  %v1027_v14 = vrot.slane %v19364_v47, 1  ;;  %v19372_v11 = vshll.u32 %v11278_v57, 16 }
  0xdb   : >> { %1169 = vrot.lane.b32.xlu2 %v1009_v17, %s11038_s27  ;;  %v1018_v6 = vor.u32 %v1017_v21, %v1016_v32  ;;  %v1032_v32 = vrot.slane %v19362_v0, 2  ;;  %v1037_v21 = vrot.slane %v1035_v8, 1  ;;  %v1028_v17 = vrot.slane %v19365_v29, 2 }
  0xdc   : >> { %1167 = vrot.lane.b32.xlu1 %v1005_v3, %s11038_s27  ;;  %v1013_v3 = vsel %vm998_vm2, %v1008_v2, %v1012_v1  ;;  %v1048_v0 = vrot.slane %v19369_v13, 1  ;;  %v19370_v2 = vshll.u32 %v11285_v62, 16  ;;  %v19375_v62 = vshrl.u32 %v11235_v31, 16 }
  0xdd   : >> { %996 = vrot.lane.b32.xlu0 %v933_v63, %s11037_s24  ;;  %v11771_v60 = vpop.permute.xlu2 %934  ;;  %v1019_v5 = vsel %vm998_vm2, %v1012_v1, %v1018_v6  ;;  %v1033_v36 = vor.u32 %v1032_v32, %v1031_v22  ;;  %v1039_v63 = vor.u32 %v1038_v40, %v1037_v21  ;;  %v1029_v44 = vor.u32 %v1028_v17, %v1027_v14 }
  0xde   : >> { %v11769_v59 = vpop.permute.xlu1 %841  ;;  %19359 = vst [vmem:[#allocation36_spill] sm:$0xff] %v11771_v60  ;;  %v1049_v1 = vrot.slane %v19370_v2, 2  ;;  %v1053_v22 = vrot.slane %v19372_v11, 2  ;;  %v19373_v32 = vshrl.u32 %v11257_v43, 16  ;;  %v19374_v40 = vshll.u32 %v11257_v43, 16 }
  0xdf   : >> { %19358 = vst [vmem:[#allocation35_spill] sm:$0xff] %v11769_v59  ;;  %v11773_v15 = vpop.permute.xlu0 %839  ;;  %v1040_v14 = vsel %vm998_vm2, %v1033_v36, %v1039_v63  ;;  %v1034_v29 = vsel %vm998_vm2, %v1029_v44, %v1033_v36  ;;  %v1030_v17 = vsel %vm998_vm2, %v1025_v4, %v1029_v44  ;;  %v19376_v13 = vshll.u32 %v11235_v31, 16 }
  0xe0   : >> { %19360 = vst [vmem:[#allocation37_spill] sm:$0xff] %v11773_v15  ;;  %v1044_v21 = vrot.slane %v19373_v32, 1  ;;  %v1045_v47 = vrot.slane %v19374_v40, 2  ;;  %v1056_v44 = vshrl.u32 %v11302_v28, 16  ;;  %v19380_v40 = vshrl.u32 %v11320_v34, 16 }
  0xe1   : >> { %v1042_v2 = vrot.slane %v19376_v13, 2 }
  0xe2   : >> { %v1046_v43 = vor.u32 %v1045_v47, %v1044_v21  ;;  %v19383_v47 = vshll.u32 %v11312_v38, 16 }
  0xe3   : >> { %1175 = vrot.lane.b32.xlu2 %v1026_v41, %s11038_s27  ;;  %v19371_v41 = vshrl.u32 %v11278_v57, 16  ;;  %v1050_v57 = vor.u32 %v1049_v1, %v1048_v0  ;;  %v1065_v0 = vrot.slane %v19380_v40, 1  ;;  %v19381_v1 = vshll.u32 %v11320_v34, 16 }
  0xe4   : >> { %1173 = vrot.lane.b32.xlu1 %v1019_v5, %s11038_s27  ;;  %v1077_v34 = vshrl.u32 %v11380_v20, 16 }
  0xe5   : >> { %1171 = vrot.lane.b32.xlu0 %v1013_v3, %s11038_s27  ;;  %v11793_v8 = vpop.permute.xlu2 %940  ;;  %v1052_v5 = vrot.slane %v19371_v41, 1  ;;  %v1041_v3 = vrot.slane %v19375_v62, 1  ;;  %v1051_v32 = vsel %vm998_vm2, %v1046_v43, %v1050_v57  ;;  %v19385_v62 = vshll.u32 %v11325_v51, 16 }
  0xe6   : >> { %v11791_v6 = vpop.permute.xlu1 %847  ;;  %19367 = vst [vmem:[#allocation39_spill] sm:$0xff] %v11793_v8  ;;  %v12521_v8 = vld [vmem:[%s11183_s14 + $0x10c] sm:$0xff] }
  0xe7   : >> { %19366 = vst [vmem:[#allocation38_spill] sm:$0xff] %v11791_v6  ;;  %v11795_v7 = vpop.permute.xlu0 %845  ;;  %v1054_v41 = vor.u32 %v1053_v22, %v1052_v5  ;;  %v1043_v4 = vor.u32 %v1042_v2, %v1041_v3  ;;  %v1066_v5 = vrot.slane %v19381_v1, 2  ;;  %v19382_v22 = vshrl.u32 %v11312_v38, 16 }
  0xe8   : >> { %19368 = vst [vmem:[#allocation40_spill] sm:$0xff] %v11795_v7  ;;  %v1063_v3 = vrot.slane %v19385_v62, 2  ;;  %v1058_v2 = vrot.slane %v1056_v44, 1  ;;  %v19390_v44 = vshrl.u32 %v11353_v42, 16  ;;  %v19392_v62 = vshrl.u32 %v11350_v48, 16  ;;  %v10703_v7 = vld [vmem:[%s11183_s14 + $0xfc] sm:$0xff] }
  0xe9   : >> { %v1055_v31 = vsel %vm998_vm2, %v1050_v57, %v1054_v41  ;;  %v1069_v21 = vrot.slane %v19382_v22, 1  ;;  %v1047_v13 = vsel %vm998_vm2, %v1043_v4, %v1046_v43  ;;  %v19386_v57 = vshll.u32 %v11302_v28, 16 }
  0xea   : >> { %v1067_v38 = vor.u32 %v1066_v5, %v1065_v0  ;;  %v19393_v0 = vshll.u32 %v11350_v48, 16 }
  0xeb   : >> { %1181 = vrot.lane.b32.xlu2 %v1040_v14, %s11038_s27  ;;  %v1070_v14 = vrot.slane %v19383_v47, 2  ;;  %v1059_v40 = vrot.slane %v19386_v57, 2  ;;  %v1086_v57 = vrot.slane %v19392_v62, 1 }
  0xec   : >> { %1179 = vrot.lane.b32.xlu1 %v1034_v29, %s11038_s27  ;;  %v19384_v29 = vshrl.u32 %v11325_v51, 16  ;;  %v1087_v5 = vrot.slane %v19393_v0, 2 }
  0xed   : >> { %1177 = vrot.lane.b32.xlu0 %v1030_v17, %s11038_s27  ;;  %v11821_v36 = vpop.permute.xlu2 %946  ;;  %v1071_v1 = vor.u32 %v1070_v14, %v1069_v21  ;;  %v1060_v43 = vor.u32 %v1059_v40, %v1058_v2  ;;  %v19394_v21 = vshrl.u32 %v11330_v52, 16  ;;  %v19396_v2 = vshll.u32 %v11380_v20, 16 }
  0xee   : >> { %v11819_v63 = vpop.permute.xlu1 %853  ;;  %19378 = vst [vmem:[#allocation42_spill] sm:$0xff] %v11821_v36  ;;  %v1062_v17 = vrot.slane %v19384_v29, 1  ;;  %v1083_v29 = vrot.slane %v19390_v44, 1  ;;  %v1088_v48 = vor.u32 %v1087_v5, %v1086_v57  ;;  %v19402_v5 = vshll.u32 %v11414_v53, 16 }
  0xef   : >> { %19377 = vst [vmem:[#allocation41_spill] sm:$0xff] %v11819_v63  ;;  %v11824_v11 = vpop.permute.xlu0 %851  ;;  %v1073_v14 = vrot.slane %v19394_v21, 1  ;;  %v1080_v40 = vrot.slane %v19396_v2, 2  ;;  %v1072_v44 = vsel %vm998_vm2, %v1067_v38, %v1071_v1 }
  0xf0   : >> { %19379 = vst [vmem:[#allocation43_spill] sm:$0xff] %v11824_v11  ;;  %v1064_v22 = vor.u32 %v1063_v3, %v1062_v17  ;;  %v19395_v17 = vshll.u32 %v11330_v52, 16  ;;  %v1098_v52 = vshrl.u32 %v11414_v53, 16  ;;  %v1275_v11 = vrot.slane %v11414_v53, 2  ;;  %v10695_v53 = vld [vmem:[%s11183_s14 + $0xcc] sm:$0xff] }
  0xf2   : >> { %v1074_v3 = vrot.slane %v19395_v17, 2  ;;  %v1100_v57 = vrot.slane %v1098_v52, 1 }
  0xf3   : >> { %1187 = vrot.lane.b32.xlu2 %v1055_v31, %s11038_s27  ;;  %v19391_v31 = vshll.u32 %v11353_v42, 16  ;;  %v1068_v42 = vsel %vm998_vm2, %v1064_v22, %v1067_v38  ;;  %v19400_v22 = vshrl.u32 %v11396_v50, 16 }
  0xf4   : >> { %1185 = vrot.lane.b32.xlu1 %v1051_v32, %s11038_s27  ;;  %v1075_v0 = vor.u32 %v1074_v3, %v1073_v14  ;;  %v1101_v14 = vrot.slane %v19402_v5, 2  ;;  %v19403_v3 = vshrl.u32 %v11367_v33, 16  ;;  %v19411_v5 = vshll.u32 %v11429_v19, 16 }
  0xf5   : >> { %1183 = vrot.lane.b32.xlu0 %v1047_v13, %s11038_s27  ;;  %v11849_v51 = vpop.permute.xlu2 %952  ;;  %v1084_v32 = vrot.slane %v19391_v31, 2  ;;  %v1079_v13 = vrot.slane %v1077_v34, 1  ;;  %v1061_v31 = vsel %vm998_vm2, %v1054_v41, %v1060_v43  ;;  %v1094_v43 = vrot.slane %v19400_v22, 1 }
  0xf6   : >> { %v11847_v47 = vpop.permute.xlu1 %859  ;;  %19388 = vst [vmem:[#allocation45_spill] sm:$0xff] %v11849_v51 }
  0xf7   : >> { %19387 = vst [vmem:[#allocation44_spill] sm:$0xff] %v11847_v47  ;;  %v11851_v4 = vpop.permute.xlu0 %857  ;;  %v1085_v62 = vor.u32 %v1084_v32, %v1083_v29  ;;  %v1081_v21 = vor.u32 %v1080_v40, %v1079_v13  ;;  %v19401_v29 = vshll.u32 %v11396_v50, 16  ;;  %v1090_v13 = vrot.slane %v19403_v3, 1 }
  0xf8   : >> { %19389 = vst [vmem:[#allocation46_spill] sm:$0xff] %v11851_v4  ;;  %v19404_v40 = vshll.u32 %v11367_v33, 16  ;;  %v19408_v33 = vshrl.u32 %v11436_v49, 16  ;;  %v10690_v4 = vld [vmem:[%s11183_s14 + $0xa0] sm:$0xff] }
  0xf9   : >> { %v1089_v41 = vsel %vm998_vm2, %v1085_v62, %v1088_v48  ;;  %v1082_v38 = vsel %vm998_vm2, %v1075_v0, %v1081_v21  ;;  %v1095_v32 = vrot.slane %v19401_v29, 2 }
  0xfa   : >> { %v1111_v29 = vrot.slane %v19408_v33, 1  ;;  %v19415_v33 = vshll.u32 %v11391_v55, 16 }
  0xfb   : >> { %1193 = vrot.lane.b32.xlu2 %v1072_v44, %s11038_s27  ;;  %v1091_v44 = vrot.slane %v19404_v40, 2  ;;  %v1096_v50 = vor.u32 %v1095_v32, %v1094_v43  ;;  %v1116_v43 = vrot.slane %v19411_v5, 2  ;;  %v19412_v32 = vshrl.u32 %v11410_v46, 16 }
  0xfc   : >> { %1191 = vrot.lane.b32.xlu1 %v1068_v42, %s11038_s27  ;;  %v1076_v42 = vsel %vm998_vm2, %v1071_v1, %v1075_v0  ;;  %v19409_v1 = vshll.u32 %v11436_v49, 16  ;;  %v19414_v49 = vshrl.u32 %v11391_v55, 16 }
  0xfd   : >> { %1189 = vrot.lane.b32.xlu0 %v1061_v31, %s11038_s27  ;;  %v11876_v17 = vpop.permute.xlu2 %958  ;;  %v1102_v31 = vor.u32 %v1101_v14, %v1100_v57  ;;  %v1092_v62 = vor.u32 %v1091_v44, %v1090_v13  ;;  %v1107_v57 = vrot.slane %v19412_v32, 1  ;;  %v19413_v14 = vshll.u32 %v11410_v46, 16 }
  0xfe   : >> { %v11874_v34 = vpop.permute.xlu1 %938  ;;  %19398 = vst [vmem:[#allocation48_spill] sm:$0xff] %v11876_v17  ;;  %v1112_v0 = vrot.slane %v19409_v1, 2  ;;  %v1105_v1 = vrot.slane %v19415_v33, 2 }
  0xff   : >> { %19397 = vst [vmem:[#allocation47_spill] sm:$0xff] %v11874_v34  ;;  %v11878_v2 = vpop.permute.xlu0 %936  ;;  %v1108_v3 = vrot.slane %v19413_v14, 2  ;;  %v1103_v13 = vsel %vm998_vm2, %v1096_v50, %v1102_v31  ;;  %v1097_v40 = vsel %vm998_vm2, %v1092_v62, %v1096_v50  ;;  %v1093_v44 = vsel %vm998_vm2, %v1088_v48, %v1092_v62 }
 0x100   : >> { %19399 = vst [vmem:[#allocation49_spill] sm:$0xff] %v11878_v2  ;;  %v1119_v62 = vshrl.u32 %v11452_v37, 16  ;;  %v19419_v14 = vshrl.u32 %v11470_v30, 16 }
 0x101   : >> { %v1109_v46 = vor.u32 %v1108_v3, %v1107_v57  ;;  %v19422_v3 = vshll.u32 %v11462_v27, 16 }
 0x103   : >> { %1199 = vrot.lane.b32.xlu2 %v1089_v41, %s11038_s27  ;;  %v19410_v41 = vshrl.u32 %v11429_v19, 16  ;;  %v1113_v19 = vor.u32 %v1112_v0, %v1111_v29  ;;  %v1128_v29 = vrot.slane %v19419_v14, 1  ;;  %v19420_v0 = vshll.u32 %v11470_v30, 16 }
 0x104   : >> { %1197 = vrot.lane.b32.xlu1 %v1082_v38, %s11038_s27  ;;  %v1140_v30 = vshrl.u32 %v11530_v58, 16 }
 0x105   : >> { %1195 = vrot.lane.b32.xlu0 %v1076_v42, %s11038_s27  ;;  %v11898_v52 = vpop.permute.xlu2 %964  ;;  %v1115_v38 = vrot.slane %v19410_v41, 1  ;;  %v1104_v42 = vrot.slane %v19414_v49, 1  ;;  %v1114_v32 = vsel %vm998_vm2, %v1109_v46, %v1113_v19  ;;  %v19424_v49 = vshll.u32 %v11475_v54, 16 }
 0x106   : >> { %v11896_v21 = vpop.permute.xlu1 %944  ;;  %19406 = vst [vmem:[#allocation51_spill] sm:$0xff] %v11898_v52 }
 0x107   : >> { %19405 = vst [vmem:[#allocation50_spill] sm:$0xff] %v11896_v21  ;;  %v11900_v22 = vpop.permute.xlu0 %942  ;;  %v1117_v41 = vor.u32 %v1116_v43, %v1115_v38  ;;  %v1106_v48 = vor.u32 %v1105_v1, %v1104_v42  ;;  %v1129_v38 = vrot.slane %v19420_v0, 2  ;;  %v19421_v43 = vshrl.u32 %v11462_v27, 16 }
 0x108   : >> { %19407 = vst [vmem:[#allocation52_spill] sm:$0xff] %v11900_v22  ;;  %v1126_v42 = vrot.slane %v19424_v49, 2  ;;  %v1121_v1 = vrot.slane %v1119_v62, 1  ;;  %v19429_v62 = vshrl.u32 %v11508_v25, 16  ;;  %v19431_v49 = vshrl.u32 %v11500_v18, 16 }
 0x109   : >> { %v1118_v55 = vsel %vm998_vm2, %v1113_v19, %v1117_v41  ;;  %v1132_v57 = vrot.slane %v19421_v43, 1  ;;  %v1110_v33 = vsel %vm998_vm2, %v1106_v48, %v1109_v46  ;;  %v19425_v19 = vshll.u32 %v11452_v37, 16 }
 0x10a   : >> { %v1130_v27 = vor.u32 %v1129_v38, %v1128_v29  ;;  %v19432_v29 = vshll.u32 %v11500_v18, 16 }
 0x10b   : >> { %1205 = vrot.lane.b32.xlu2 %v1103_v13, %s11038_s27  ;;  %v1133_v13 = vrot.slane %v19422_v3, 2  ;;  %v1122_v14 = vrot.slane %v19425_v19, 2  ;;  %v1149_v19 = vrot.slane %v19431_v49, 1 }
 0x10c   : >> { %1203 = vrot.lane.b32.xlu1 %v1097_v40, %s11038_s27  ;;  %v19423_v40 = vshrl.u32 %v11475_v54, 16  ;;  %v1150_v38 = vrot.slane %v19432_v29, 2 }
 0x10d   : >> { %1201 = vrot.lane.b32.xlu0 %v1093_v44, %s11038_s27  ;;  %v11926_v50 = vpop.permute.xlu2 %970  ;;  %v1134_v0 = vor.u32 %v1133_v13, %v1132_v57  ;;  %v1123_v46 = vor.u32 %v1122_v14, %v1121_v1  ;;  %v19433_v57 = vshrl.u32 %v11480_v24, 16  ;;  %v19435_v1 = vshll.u32 %v11530_v58, 16 }
 0x10e   : >> { %v11924_v31 = vpop.permute.xlu1 %950  ;;  %19417 = vst [vmem:[#allocation54_spill] sm:$0xff] %v11926_v50  ;;  %v1125_v44 = vrot.slane %v19423_v40, 1  ;;  %v1146_v40 = vrot.slane %v19429_v62, 1  ;;  %v1151_v18 = vor.u32 %v1150_v38, %v1149_v19  ;;  %v19441_v38 = vshll.u32 %v11557_v23, 16 }
 0x10f   : >> { %19416 = vst [vmem:[#allocation53_spill] sm:$0xff] %v11924_v31  ;;  %v11929_v5 = vpop.permute.xlu0 %948  ;;  %v1136_v13 = vrot.slane %v19433_v57, 1  ;;  %v1143_v14 = vrot.slane %v19435_v1, 2  ;;  %v1135_v62 = vsel %vm998_vm2, %v1130_v27, %v1134_v0 }
 0x110   : >> { %19418 = vst [vmem:[#allocation55_spill] sm:$0xff] %v11929_v5  ;;  %v1127_v43 = vor.u32 %v1126_v42, %v1125_v44  ;;  %v19434_v44 = vshll.u32 %v11480_v24, 16  ;;  %v1161_v24 = vshrl.u32 %v11557_v23, 16 }
 0x112   : >> { %v1137_v42 = vrot.slane %v19434_v44, 2  ;;  %v1163_v19 = vrot.slane %v1161_v24, 1 }
 0x113   : >> { %1211 = vrot.lane.b32.xlu2 %v1118_v55, %s11038_s27  ;;  %v19430_v55 = vshll.u32 %v11508_v25, 16  ;;  %v1131_v25 = vsel %vm998_vm2, %v1127_v43, %v1130_v27  ;;  %v19439_v43 = vshrl.u32 %v11543_v9, 16 }
 0x114   : >> { %1209 = vrot.lane.b32.xlu1 %v1114_v32, %s11038_s27  ;;  %v1138_v29 = vor.u32 %v1137_v42, %v1136_v13  ;;  %v1164_v13 = vrot.slane %v19441_v38, 2  ;;  %v19442_v42 = vshrl.u32 %v11521_v61, 16 }
 0x115   : >> { %1207 = vrot.lane.b32.xlu0 %v1110_v33, %s11038_s27  ;;  %v11954_v54 = vpop.permute.xlu2 %976  ;;  %v1147_v32 = vrot.slane %v19430_v55, 2  ;;  %v1142_v33 = vrot.slane %v1140_v30, 1  ;;  %v1124_v55 = vsel %vm998_vm2, %v1117_v41, %v1123_v46  ;;  %v1157_v46 = vrot.slane %v19439_v43, 1 }
 0x116   : >> { %v11952_v3 = vpop.permute.xlu1 %956  ;;  %19427 = vst [vmem:[#allocation57_spill] sm:$0xff] %v11954_v54 }
 0x117   : >> { %19426 = vst [vmem:[#allocation56_spill] sm:$0xff] %v11952_v3  ;;  %v11956_v48 = vpop.permute.xlu0 %954  ;;  %v1148_v49 = vor.u32 %v1147_v32, %v1146_v40  ;;  %v1144_v57 = vor.u32 %v1143_v14, %v1142_v33  ;;  %v19440_v40 = vshll.u32 %v11543_v9, 16  ;;  %v1153_v33 = vrot.slane %v19442_v42, 1 }
 0x118   : >> { %19428 = vst [vmem:[#allocation58_spill] sm:$0xff] %v11956_v48  ;;  %v19443_v14 = vshll.u32 %v11521_v61, 16  ;;  %v12347_v48 = vld [vmem:[%s11183_s14 + $0xa0] sm:$0xff] }
 0x119   : >> { %v1152_v41 = vsel %vm998_vm2, %v1148_v49, %v1151_v18  ;;  %v1145_v27 = vsel %vm998_vm2, %v1138_v29, %v1144_v57  ;;  %v1158_v32 = vrot.slane %v19440_v40, 2  ;;  %v19108_v51 = vshrl.u32 %v12347_v48, 16 }
 0x11b   : >> { %1217 = vrot.lane.b32.xlu2 %v1135_v62, %s11038_s27  ;;  %v1154_v62 = vrot.slane %v19443_v14, 2  ;;  %v1159_v9 = vor.u32 %v1158_v32, %v1157_v46  ;;  %v10674_v46 = vld [vmem:[%s11183_s14 + $0x18] sm:$0xff]  ;;  %v10675_v32 = vld [vmem:[%s11183_s14 + $0x8] sm:$0xff] }
 0x11c   : >> { %1215 = vrot.lane.b32.xlu1 %v1131_v25, %s11038_s27  ;;  %v1139_v25 = vsel %vm998_vm2, %v1134_v0, %v1138_v29  ;;  %v1237_v40 = vrot.slane %v10674_v46, 2  ;;  %v1239_v46 = vrot.slane %v11249_v39, 2  ;;  %v10682_v39 = vld [vmem:[%s11183_s14 + $0x3c] sm:$0xff] }
 0x11d   : >> { %1213 = vrot.lane.b32.xlu0 %v1124_v55, %s11038_s27  ;;  %v11981_v44 = vpop.permute.xlu2 %982  ;;  %v1165_v55 = vor.u32 %v1164_v13, %v1163_v19  ;;  %v1155_v49 = vor.u32 %v1154_v62, %v1153_v33  ;;  %v1233_v19 = vrot.slane %v10675_v32, 2 }
 0x11e   : >> { %v11979_v30 = vpop.permute.xlu1 %962  ;;  %19437 = vst [vmem:[#allocation60_spill] sm:$0xff] %v11981_v44 }
 0x11f   : >> { %19436 = vst [vmem:[#allocation59_spill] sm:$0xff] %v11979_v30  ;;  %v11983_v1 = vpop.permute.xlu0 %960  ;;  %v1166_v0 = vsel %vm998_vm2, %v1159_v9, %v1165_v55  ;;  %v1160_v29 = vsel %vm998_vm2, %v1155_v49, %v1159_v9  ;;  %v10677_v9 = vld [vmem:[%s11183_s14 + $0x2c] sm:$0xff] }
 0x120   : >> { %19438 = vst [vmem:[#allocation61_spill] sm:$0xff] %v11983_v1  ;;  %v1242_v55 = vrot.slane %v10677_v9, 2 }
 0x123   : >> { %1223 = vrot.lane.b32.xlu2 %v1152_v41, %s11038_s27  ;;  %v1156_v41 = vsel %vm998_vm2, %v1151_v18, %v1155_v49  ;;  %v10676_v18 = vld [vmem:[%s11183_s14] sm:$0xff]  ;;  %v10678_v49 = vld [vmem:[%s11183_s14 + $0x34] sm:$0xff] }
 0x124   : >> { %1221 = vrot.lane.b32.xlu1 %v1145_v27, %s11038_s27  ;;  %v10673_v27 = vld [vmem:[%s11183_s14 + $0x10] sm:$0xff]  ;;  %v1232_v42 = vrot.slane %v10676_v18, 2 }
 0x125   : >> { %1219 = vrot.lane.b32.xlu0 %v1139_v25, %s11038_s27  ;;  %v12003_v24 = vpop.permute.xlu2 %988  ;;  %v1235_v43 = vrot.slane %v10673_v27, 2 }
 0x126   : >> { %v12001_v57 = vpop.permute.xlu1 %968  ;;  %19445 = vst [vmem:[#allocation63_spill] sm:$0xff] %v12003_v24  ;;  %v1234_v25 = vsel %vm1231_vm3, %v1232_v42, %v1233_v19  ;;  %v1240_v42 = vsel %vm1231_vm3, %v1237_v40, %v1239_v46 }
 0x127   : >> { %19444 = vst [vmem:[#allocation62_spill] sm:$0xff] %v12001_v57  ;;  %v12005_v61 = vpop.permute.xlu0 %966  ;;  %v1238_v14 = vsel %vm1231_vm3, %v1235_v43, %v1237_v40  ;;  %v1236_v62 = vsel %vm1231_vm3, %v1233_v19, %v1235_v43 }
 0x128   : >> { %19446 = vst [vmem:[#allocation64_spill] sm:$0xff] %v12005_v61 }
 0x12b   : >> { %1229 = vrot.lane.b32.xlu2 %v1166_v0, %s11038_s27  ;;  %v1244_v0 = vrot.slane %v10678_v49, 2  ;;  %v1246_v49 = vrot.slane %v10682_v39, 2 }
 0x12c   : >> { %1227 = vrot.lane.b32.xlu1 %v1160_v29, %s11038_s27  ;;  %v10679_v29 = vld [vmem:[%s11183_s14 + $0x24] sm:$0xff] }
 0x12d   : >> { %1225 = vrot.lane.b32.xlu0 %v1156_v41, %s11038_s27  ;;  %v12018_v13 = vpop.permute.xlu2 %994  ;;  %v1241_v41 = vrot.slane %v10679_v29, 2  ;;  %v1245_v19 = vsel %vm1231_vm3, %v1242_v55, %v1244_v0  ;;  %v1248_v29 = vrot.slane %v11275_v56, 2  ;;  %v10683_v56 = vld [vmem:[%s11183_s14 + $0x60] sm:$0xff] }
 0x12e   : >> { %v12016_v38 = vpop.permute.xlu1 %974  ;;  %19448 = vst [vmem:[#allocation66_spill] sm:$0xff] %v12018_v13 }
 0x12f   : >> { %19447 = vst [vmem:[#allocation65_spill] sm:$0xff] %v12016_v38  ;;  %v12021_v33 = vpop.permute.xlu0 %972  ;;  %v1243_v18 = vsel %vm1231_vm3, %v1241_v41, %v1242_v55  ;;  %v1249_v46 = vsel %vm1231_vm3, %v1246_v49, %v1248_v29 }
 0x130   : >> { %19449 = vst [vmem:[#allocation67_spill] sm:$0xff] %v12021_v33 }
 0x133   : >> { %1308 = vrot.lane.b32.xlu2 %v1238_v14, %s11039_s30  ;;  %v10680_v14 = vld [vmem:[%s11183_s14 + $0x48] sm:$0xff] }
 0x134   : >> { %1306 = vrot.lane.b32.xlu1 %v1236_v62, %s11039_s30  ;;  %v1250_v62 = vrot.slane %v10680_v14, 2  ;;  %v10684_v14 = vld [vmem:[%s11183_s14 + $0x58] sm:$0xff] }
 0x135   : >> { %1304 = vrot.lane.b32.xlu0 %v1234_v25, %s11039_s30  ;;  %v12034_v43 = vpop.permute.xlu2 %1169  ;;  %v10681_v25 = vld [vmem:[%s11183_s14 + $0x50] sm:$0xff] }
 0x136   : >> { %v12032_v27 = vpop.permute.xlu1 %980  ;;  %19451 = vst [vmem:[#allocation69_spill] sm:$0xff] %v12034_v43  ;;  %v1251_v9 = vrot.slane %v10681_v25, 2  ;;  %v1253_v25 = vrot.slane %v10684_v14, 2  ;;  %v10687_v14 = vld [vmem:[%s11183_s14 + $0x74] sm:$0xff] }
 0x137   : >> { %19450 = vst [vmem:[#allocation68_spill] sm:$0xff] %v12032_v27  ;;  %v12037_v32 = vpop.permute.xlu0 %978  ;;  %v1260_v13 = vrot.slane %v10687_v14, 2  ;;  %v1295_v27 = vrot.slane %v10703_v7, 2  ;;  %v12178_v7 = vld [vmem:[%s11183_s14 + $0x34] sm:$0xff] }
 0x138   : >> { %19452 = vst [vmem:[#allocation70_spill] sm:$0xff] %v12037_v32  ;;  %v1252_v41 = vsel %vm1231_vm3, %v1250_v62, %v1251_v9  ;;  %v9408_v32 = vld [vmem:[%s11183_s14 + $0x44] sm:$0x3]  ;;  %v19485_v50 = vshrl.u32 %v12178_v7, 16 }
 0x13b   : >> { %1314 = vrot.lane.b32.xlu2 %v1245_v19, %s11039_s30  ;;  %v1247_v19 = vsel %vm1231_vm3, %v1244_v0, %v1246_v49 }
 0x13c   : >> { %1312 = vrot.lane.b32.xlu1 %v1243_v18, %s11039_s30  ;;  %v1255_v18 = vrot.slane %v10683_v56, 2 }
 0x13d   : >> { %1310 = vrot.lane.b32.xlu0 %v1240_v42, %s11039_s30  ;;  %v12051_v55 = vpop.permute.xlu2 %1175  ;;  %v1257_v42 = vrot.slane %v11302_v28, 2  ;;  %v10685_v28 = vld [vmem:[%s11183_s14 + $0x7c] sm:$0xff] }
 0x13e   : >> { %v12049_v47 = vpop.permute.xlu1 %986  ;;  %19454 = vst [vmem:[#allocation72_spill] sm:$0xff] %v12051_v55  ;;  %v1256_v29 = vsel %vm1231_vm3, %v1253_v25, %v1255_v18  ;;  %v12475_v55 = vld [vmem:[%s11183_s14 + $0xfc] sm:$0xff] }
 0x13f   : >> { %19453 = vst [vmem:[#allocation71_spill] sm:$0xff] %v12049_v47  ;;  %v12053_v40 = vpop.permute.xlu0 %984  ;;  %v1258_v49 = vsel %vm1231_vm3, %v1255_v18, %v1257_v42  ;;  %v2296_v60 = vrot.slane %v12475_v55, 1 }
 0x140   : >> { %19455 = vst [vmem:[#allocation73_spill] sm:$0xff] %v12053_v40 }
 0x143   : >> { %1320 = vrot.lane.b32.xlu2 %v1252_v41, %s11039_s30  ;;  %v1254_v41 = vsel %vm1231_vm3, %v1251_v9, %v1253_v25  ;;  %v10688_v9 = vld [vmem:[%s11183_s14 + $0x6c] sm:$0xff] }
 0x144   : >> { %1318 = vrot.lane.b32.xlu1 %v1249_v46, %s11039_s30  ;;  %v1262_v46 = vrot.slane %v10685_v28, 2  ;;  %v1259_v25 = vrot.slane %v10688_v9, 2  ;;  %v1271_v9 = vrot.slane %v10690_v4, 2  ;;  %v10692_v4 = vld [vmem:[%s11183_s14 + $0xb4] sm:$0xff] }
 0x145   : >> { %1316 = vrot.lane.b32.xlu0 %v1247_v19, %s11039_s30  ;;  %v12066_v39 = vpop.permute.xlu2 %1181  ;;  %v10686_v19 = vld [vmem:[%s11183_s14 + $0x84] sm:$0xff] }
 0x146   : >> { %v12064_v62 = vpop.permute.xlu1 %992  ;;  %19457 = vst [vmem:[#allocation75_spill] sm:$0xff] %v12066_v39  ;;  %v1264_v56 = vrot.slane %v10686_v19, 2  ;;  %v1261_v28 = vsel %vm1231_vm3, %v1259_v25, %v1260_v13  ;;  %v10689_v19 = vld [vmem:[%s11183_s14 + $0x98] sm:$0xff] }
 0x147   : >> { %19456 = vst [vmem:[#allocation74_spill] sm:$0xff] %v12064_v62  ;;  %v12068_v0 = vpop.permute.xlu0 %990  ;;  %v1269_v14 = vrot.slane %v10689_v19, 2  ;;  %v10691_v62 = vld [vmem:[%s11183_s14 + $0x90] sm:$0xff]  ;;  %v10693_v19 = vld [vmem:[%s11183_s14 + $0xbc] sm:$0xff] }
 0x148   : >> { %19458 = vst [vmem:[#allocation76_spill] sm:$0xff] %v12068_v0  ;;  %v1278_v63 = vrot.slane %v10693_v19, 2 }
 0x14b   : >> { %1326 = vrot.lane.b32.xlu2 %v1258_v49, %s11039_s30 }
 0x14c   : >> { %1324 = vrot.lane.b32.xlu1 %v1256_v29, %s11039_s30  ;;  %v1265_v29 = vsel %vm1231_vm3, %v1262_v46, %v1264_v56 }
 0x14d   : >> { %1322 = vrot.lane.b32.xlu0 %v1254_v41, %s11039_s30  ;;  %v12079_v42 = vpop.permute.xlu2 %1187  ;;  %v1263_v41 = vsel %vm1231_vm3, %v1260_v13, %v1262_v46  ;;  %v1266_v13 = vrot.slane %v11380_v20, 2  ;;  %v10694_v20 = vld [vmem:[%s11183_s14 + $0xa8] sm:$0xff] }
 0x14e   : >> { %19459 = vst [vmem:[#allocation77_spill] sm:$0xff] %v12079_v42  ;;  %v12081_v18 = vpop.permute.xlu1 %1167  ;;  %v1273_v24 = vrot.slane %v10694_v20, 2 }
 0x14f   : >> { %19460 = vst [vmem:[#allocation78_spill] sm:$0xff] %v12081_v18  ;;  %v12084_v49 = vpop.permute.xlu0 %996 }
 0x150   : >> { %19461 = vst [vmem:[#allocation79_spill] sm:$0xff] %v12084_v49  ;;  %v1268_v49 = vrot.slane %v10691_v62, 2  ;;  %v1277_v62 = vrot.slane %v10692_v4, 2  ;;  %v10696_v4 = vld [vmem:[%s11183_s14 + $0xc4] sm:$0xff] }
 0x151   : >> { %v1280_v19 = vrot.slane %v10696_v4, 2  ;;  %v10699_v4 = vld [vmem:[%s11183_s14 + $0xe0] sm:$0xff] }
 0x152   : >> { %v1287_v40 = vrot.slane %v10699_v4, 2  ;;  %v10701_v4 = vld [vmem:[%s11183_s14 + $0x104] sm:$0xff] }
 0x153   : >> { %1332 = vrot.lane.b32.xlu2 %v1265_v29, %s11039_s30  ;;  %v1272_v29 = vsel %vm1231_vm3, %v1269_v14, %v1271_v9  ;;  %v1296_v6 = vrot.slane %v10701_v4, 2  ;;  %v12174_v4 = vld [vmem:[%s11183_s14 + $0x3c] sm:$0xff] }
 0x154   : >> { %1330 = vrot.lane.b32.xlu1 %v1263_v41, %s11039_s30  ;;  %v1270_v41 = vsel %vm1231_vm3, %v1268_v49, %v1269_v14  ;;  %v1279_v14 = vsel %vm1231_vm3, %v1277_v62, %v1278_v63 }
 0x155   : >> { %1328 = vrot.lane.b32.xlu0 %v1261_v28, %s11039_s30  ;;  %v12095_v0 = vpop.permute.xlu2 %1193  ;;  %v1267_v28 = vsel %vm1231_vm3, %v1264_v56, %v1266_v13  ;;  %v1276_v13 = vsel %vm1231_vm3, %v1273_v24, %v1275_v11  ;;  %v1297_v59 = vsel %vm1231_vm3, %v1295_v27, %v1296_v6 }
 0x156   : >> { %19462 = vst [vmem:[#allocation80_spill] sm:$0xff] %v12095_v0  ;;  %v12097_v46 = vpop.permute.xlu1 %1173 }
 0x157   : >> { %19463 = vst [vmem:[#allocation81_spill] sm:$0xff] %v12097_v46  ;;  %v12100_v25 = vpop.permute.xlu0 %1171 }
 0x158   : >> { %19464 = vst [vmem:[#allocation82_spill] sm:$0xff] %v12100_v25 }
 0x15b   : >> { %1338 = vrot.lane.b32.xlu2 %v1272_v29, %s11039_s30  ;;  %v1274_v29 = vsel %vm1231_vm3, %v1271_v9, %v1273_v24 }
 0x15c   : >> { %1336 = vrot.lane.b32.xlu1 %v1270_v41, %s11039_s30  ;;  %v1282_v41 = vrot.slane %v10695_v53, 2 }
 0x15d   : >> { %1334 = vrot.lane.b32.xlu0 %v1267_v28, %s11039_s30  ;;  %v12112_v47 = vpop.permute.xlu2 %1199  ;;  %v1284_v28 = vrot.slane %v11452_v37, 2  ;;  %v10697_v37 = vld [vmem:[%s11183_s14 + $0xe8] sm:$0xff] }
 0x15e   : >> { %19465 = vst [vmem:[#allocation83_spill] sm:$0xff] %v12112_v47  ;;  %v12114_v49 = vpop.permute.xlu1 %1179  ;;  %v1283_v20 = vsel %vm1231_vm3, %v1280_v19, %v1282_v41 }
 0x15f   : >> { %19466 = vst [vmem:[#allocation84_spill] sm:$0xff] %v12114_v49  ;;  %v12116_v56 = vpop.permute.xlu0 %1177  ;;  %v1285_v9 = vsel %vm1231_vm3, %v1282_v41, %v1284_v28 }
 0x160   : >> { %19467 = vst [vmem:[#allocation85_spill] sm:$0xff] %v12116_v56 }
 0x163   : >> { %1344 = vrot.lane.b32.xlu2 %v1279_v14, %s11039_s30  ;;  %v1281_v14 = vsel %vm1231_vm3, %v1278_v63, %v1280_v19  ;;  %v10700_v63 = vld [vmem:[%s11183_s14 + $0xd8] sm:$0xff] }
 0x164   : >> { %1342 = vrot.lane.b32.xlu1 %v1276_v13, %s11039_s30  ;;  %v1289_v13 = vrot.slane %v10697_v37, 2  ;;  %v1286_v19 = vrot.slane %v10700_v63, 2  ;;  %v12152_v37 = vld [vmem:[%s11183_s14 + $0x24] sm:$0xff]  ;;  %v10702_v63 = vld [vmem:[%s11183_s14 + $0x10c] sm:$0xff] }
 0x165   : >> { %1340 = vrot.lane.b32.xlu0 %v1274_v29, %s11039_s30  ;;  %v12127_v62 = vpop.permute.xlu2 %1205  ;;  %v10698_v29 = vld [vmem:[%s11183_s14 + $0xf0] sm:$0xff]  ;;  %v1298_v44 = vrot.slane %v10702_v63, 2 }
 0x166   : >> { %19468 = vst [vmem:[#allocation86_spill] sm:$0xff] %v12127_v62  ;;  %v12129_v11 = vpop.permute.xlu1 %1185  ;;  %v1291_v53 = vrot.slane %v10698_v29, 2  ;;  %v1288_v29 = vsel %vm1231_vm3, %v1286_v19, %v1287_v40 }
 0x167   : >> { %19469 = vst [vmem:[#allocation87_spill] sm:$0xff] %v12129_v11  ;;  %v12131_v24 = vpop.permute.xlu0 %1183  ;;  %v1299_v63 = vsel %vm1231_vm3, %v1296_v6, %v1298_v44 }
 0x168   : >> { %19470 = vst [vmem:[#allocation88_spill] sm:$0xff] %v12131_v24 }
 0x16b   : >> { %1350 = vrot.lane.b32.xlu2 %v1285_v9, %s11039_s30 }
 0x16c   : >> { %1348 = vrot.lane.b32.xlu1 %v1283_v20, %s11039_s30  ;;  %v1292_v20 = vsel %vm1231_vm3, %v1289_v13, %v1291_v53 }
 0x16d   : >> { %1346 = vrot.lane.b32.xlu0 %v1281_v14, %s11039_s30  ;;  %v12142_v28 = vpop.permute.xlu2 %1211  ;;  %v1290_v14 = vsel %vm1231_vm3, %v1287_v40, %v1289_v13  ;;  %v19095_v13 = vshrl.u32 %v12152_v37, 16 }
 0x16e   : >> { %19471 = vst [vmem:[#allocation89_spill] sm:$0xff] %v12142_v28  ;;  %v12144_v41 = vpop.permute.xlu1 %1191  ;;  %v12162_v28 = vld [vmem:[%s11183_s14 + $0x2c] sm:$0xff] }
 0x16f   : >> { %19472 = vst [vmem:[#allocation90_spill] sm:$0xff] %v12144_v41  ;;  %v12147_v9 = vpop.permute.xlu0 %1189  ;;  %v19096_v15 = vshll.u32 %v12162_v28, 16  ;;  %v12301_v41 = vld [vmem:[%s11183_s14 + $0x90] sm:$0xff] }
 0x170   : >> { %19473 = vst [vmem:[#allocation91_spill] sm:$0xff] %v12147_v9  ;;  %v19505_v3 = vshll.u32 %v12301_v41, 16 }
 0x172   : >> { %v2003_v42 = vrot.slane %v19505_v3, 1 }
 0x173   : >> { %1356 = vrot.lane.b32.xlu2 %v1292_v20, %s11039_s30  ;;  %v1293_v20 = vrot.slane %v11530_v58, 2 }
 0x174   : >> { %1354 = vrot.lane.b32.xlu1 %v1290_v14, %s11039_s30 }
 0x175   : >> { %1352 = vrot.lane.b32.xlu0 %v1288_v29, %s11039_s30  ;;  %v12166_v40 = vpop.permute.xlu2 %1217  ;;  %v1874_v29 = vunpack.c.l.b16 %v9408_v32  ;;  %v1294_v58 = vsel %vm1231_vm3, %v1291_v53, %v1293_v20  ;;  %v1900_v53 = vrot.slane %v19096_v15, 1  ;;  %v19482_v15 = vshll.u32 %v12178_v7, 16 }
 0x176   : >> { %19474 = vst [vmem:[#allocation92_spill] sm:$0xff] %v12166_v40  ;;  %v12168_v19 = vpop.permute.xlu1 %1197  ;;  %v19477_v40 = vshll.u32 %v12152_v37, 16 }
 0x177   : >> { %19475 = vst [vmem:[#allocation93_spill] sm:$0xff] %v12168_v19  ;;  %v12171_v14 = vpop.permute.xlu0 %1195  ;;  %v12189_v32 = vpack.c.b16 %v1874_v29, %v1874_v29  ;;  %v1908_v62 = vrot.slane %v19482_v15, 1  ;;  %v19483_v15 = vshrl.u32 %v12174_v4, 16  ;;  %v12257_v19 = vld [vmem:[%s11183_s14 + $0x6c] sm:$0xff] }
 0x178   : >> { %19476 = vst [vmem:[#allocation94_spill] sm:$0xff] %v12171_v14  ;;  %v1895_v54 = vrot.slane %v19477_v40, 1  ;;  %v10704_v40 = vld [vmem:[%s11183_s14 + $0x114] sm:$0xff]  ;;  %v19498_v1 = vshll.u32 %v12257_v19, 16 }
 0x179   : >> { %v1300_v20 = vrot.slane %v10704_v40, 2 }
 0x17a   : >> { %v1896_v27 = vor.u32 %v1895_v54, %v19095_v13  ;;  %v12223_v13 = vld [vmem:[%s11183_s14 + $0x48] sm:$0xff]  ;;  %v12236_v54 = vld [vmem:[%s11183_s14 + $0x60] sm:$0xff] }
 0x17b   : >> { %1362 = vrot.lane.b32.xlu2 %v1299_v63, %s11039_s30  ;;  %v1302_v63 = vrot.slane %v11557_v23, 2  ;;  %v12213_v23 = vld [vmem:[%s11183_s14 + $0x58] sm:$0xff]  ;;  %v19101_v0 = vshrl.u32 %v12236_v54, 16 }
 0x17c   : >> { %1360 = vrot.lane.b32.xlu1 %v1297_v59, %s11039_s30 }
 0x17d   : >> { %1358 = vrot.lane.b32.xlu0 %v1294_v58, %s11039_s30  ;;  %v12199_v59 = vpop.permute.xlu2 %1223  ;;  %v19481_v58 = vshll.u32 %v12174_v4, 16  ;;  %v1303_v33 = vsel %vm1231_vm3, %v1300_v20, %v1302_v63 }
 0x17e   : >> { %19478 = vst [vmem:[#allocation95_spill] sm:$0xff] %v12199_v59  ;;  %v12201_v29 = vpop.permute.xlu1 %1203  ;;  %v1901_v59 = vsel %vm508_vm0, %v1896_v27, %v1900_v53  ;;  %v19484_v27 = vshll.u32 %v12189_v32, 16 }
 0x17f   : >> { %19479 = vst [vmem:[#allocation96_spill] sm:$0xff] %v12201_v29  ;;  %v12203_v38 = vpop.permute.xlu0 %1201  ;;  %v1916_v6 = vrot.slane %v19481_v58, 1  ;;  %v12218_v29 = vld [vmem:[%s11183_s14 + $0x50] sm:$0xff]  ;;  %v1301_v58 = vsel %vm1231_vm3, %v1298_v44, %v1300_v20  ;;  %v1912_v44 = vor.u32 %v19485_v50, %v1908_v62  ;;  %v9417_v20 = vld [vmem:[%s11183_s14 + $0x68] sm:$0x3] }
 0x180   : >> { %19480 = vst [vmem:[#allocation97_spill] sm:$0xff] %v12203_v38  ;;  %v1924_v63 = vrot.slane %v19484_v27, 1  ;;  %v12249_v50 = vld [vmem:[%s11183_s14 + $0x74] sm:$0xff] }
 0x181   : >> { %v1920_v40 = vor.u32 %v19483_v15, %v1916_v6  ;;  %v19488_v15 = vshrl.u32 %v12162_v28, 16  ;;  %v1917_v61 = vsel %vm508_vm0, %v1912_v44, %v1916_v6  ;;  %v19492_v6 = vshll.u32 %v12223_v13, 16 }
 0x182   : >> { %v1875_v44 = vunpack.c.l.b16 %v9417_v20 }
 0x183   : >> { %2178 = vrot.lane.b32.xlu2 %v1901_v59, %s11036_s23  ;;  %v1904_v57 = vor.u32 %v19488_v15, %v1900_v53  ;;  %v19490_v59 = vshll.u32 %v12213_v23, 16  ;;  %v19097_v53 = vshll.u32 %v12236_v54, 16  ;;  %v19491_v15 = vshll.u32 %v12218_v29, 16 }
 0x184   : >> { %1366 = vrot.lane.b32.xlu1 %v1303_v33, %s11039_s30 }
 0x185   : >> { %1364 = vrot.lane.b32.xlu0 %v1301_v58, %s11039_s30  ;;  %v12239_v38 = vpop.permute.xlu2 %1229  ;;  %v1925_v58 = vsel %vm508_vm0, %v1920_v40, %v1924_v63  ;;  %v1936_v27 = vrot.slane %v19491_v15, 1  ;;  %v1909_v52 = vsel %vm508_vm0, %v1904_v57, %v1908_v62  ;;  %v19099_v40 = vshrl.u32 %v12223_v13, 16 }
 0x186   : >> { %19486 = vst [vmem:[#allocation98_spill] sm:$0xff] %v12239_v38  ;;  %v12241_v33 = vpop.permute.xlu1 %1209  ;;  %v1944_v38 = vrot.slane %v19490_v59, 1  ;;  %v1931_v63 = vrot.slane %v19492_v6, 1  ;;  %v12269_v59 = vld [vmem:[%s11183_s14 + $0x7c] sm:$0xff]  ;;  %v19493_v57 = vshrl.u32 %v12213_v23, 16  ;;  %v1952_v6 = vrot.slane %v19097_v53, 1 }
 0x187   : >> { %19487 = vst [vmem:[#allocation99_spill] sm:$0xff] %v12241_v33  ;;  %v12246_v47 = vpop.permute.xlu0 %1207  ;;  %v12288_v15 = vpack.c.b16 %v1875_v44, %v1875_v44  ;;  %v19500_v17 = vshll.u32 %v12269_v59, 16 }
 0x188   : >> { %19489 = vst [vmem:[#allocation100_spill] sm:$0xff] %v12246_v47  ;;  %v19098_v47 = vshrl.u32 %v12218_v29, 16  ;;  %v1948_v62 = vor.u32 %v19493_v57, %v1944_v38  ;;  %v19497_v57 = vshll.u32 %v12249_v50, 16 }
 0x189   : >> { %v1980_v9 = vrot.slane %v19500_v17, 1  ;;  %v9435_v17 = vld [vmem:[%s11183_s14 + $0xb0] sm:$0x3] }
 0x18a   : >> { %v1940_v20 = vor.u32 %v19098_v47, %v1936_v27  ;;  %v1972_v30 = vrot.slane %v19497_v57, 1  ;;  %v19100_v47 = vshll.u32 %v12288_v15, 16 }
 0x18b   : >> { %2184 = vrot.lane.b32.xlu2 %v1925_v58, %s11036_s23 }
 0x18c   : >> { %2182 = vrot.lane.b32.xlu1 %v1917_v61, %s11036_s23  ;;  %v1932_v61 = vor.u32 %v1931_v63, %v19099_v40  ;;  %v1953_v63 = vsel %vm508_vm0, %v1948_v62, %v1952_v6  ;;  %v1945_v44 = vsel %vm508_vm0, %v1940_v20, %v1944_v38  ;;  %v12306_v40 = vld [vmem:[%s11183_s14 + $0x84] sm:$0xff]  ;;  %v19501_v38 = vshrl.u32 %v12257_v19, 16  ;;  %v12322_v20 = vld [vmem:[%s11183_s14 + $0x98] sm:$0xff] }
 0x18d   : >> { %2180 = vrot.lane.b32.xlu0 %v1909_v52, %s11036_s23  ;;  %v12282_v33 = vpop.permute.xlu2 %1308  ;;  %v9426_v52 = vld [vmem:[%s11183_s14 + $0x8c] sm:$0x3] }
 0x18e   : >> { %19494 = vst [vmem:[#allocation101_spill] sm:$0xff] %v12282_v33  ;;  %v12284_v58 = vpop.permute.xlu1 %1215  ;;  %v1876_v57 = vunpack.c.l.b16 %v9426_v52  ;;  %v1937_v53 = vsel %vm508_vm0, %v1932_v61, %v1936_v27  ;;  %v12340_v27 = vld [vmem:[%s11183_s14 + $0xa8] sm:$0xff]  ;;  %v12561_v33 = vld [vmem:[%s11183_s14 + $0x130] sm:$0xff] }
 0x18f   : >> { %19495 = vst [vmem:[#allocation102_spill] sm:$0xff] %v12284_v58  ;;  %v12291_v14 = vpop.permute.xlu0 %1213  ;;  %v1967_v58 = vrot.slane %v19498_v1, 1  ;;  %v19545_v26 = vshll.u32 %v12561_v33, 16 }
 0x190   : >> { %19496 = vst [vmem:[#allocation103_spill] sm:$0xff] %v12291_v14  ;;  %v19499_v14 = vshrl.u32 %v12249_v50, 16  ;;  %v12324_v61 = vpack.c.b16 %v1876_v57, %v1876_v57 }
 0x191   : >> { %v1968_v62 = vor.u32 %v1967_v58, %v19501_v38  ;;  %v1960_v58 = vrot.slane %v19100_v47, 1  ;;  %v19506_v47 = vshll.u32 %v12306_v40, 16 }
 0x192   : >> { %v1976_v1 = vor.u32 %v19499_v14, %v1972_v30  ;;  %v19102_v14 = vshrl.u32 %v12301_v41, 16 }
 0x193   : >> { %2190 = vrot.lane.b32.xlu2 %v1953_v63, %s11036_s23  ;;  %v1973_v57 = vsel %vm508_vm0, %v1968_v62, %v1972_v30  ;;  %v19106_v30 = vshrl.u32 %v12269_v59, 16  ;;  %v19107_v62 = vshll.u32 %v12340_v27, 16 }
 0x194   : >> { %2188 = vrot.lane.b32.xlu1 %v1945_v44, %s11036_s23  ;;  %v1956_v44 = vor.u32 %v19101_v0, %v1952_v6  ;;  %v19103_v6 = vshll.u32 %v12322_v20, 16  ;;  %v1988_v0 = vrot.slane %v19506_v47, 1  ;;  %v2004_v47 = vor.u32 %v2003_v42, %v19102_v14 }
 0x195   : >> { %2186 = vrot.lane.b32.xlu0 %v1937_v53, %s11036_s23  ;;  %v12328_v52 = vpop.permute.xlu2 %1314  ;;  %v1981_v53 = vsel %vm508_vm0, %v1976_v1, %v1980_v9  ;;  %v19105_v1 = vshll.u32 %v12324_v61, 16  ;;  %v2024_v42 = vrot.slane %v19107_v62, 1 }
 0x196   : >> { %19502 = vst [vmem:[#allocation104_spill] sm:$0xff] %v12328_v52  ;;  %v12330_v63 = vpop.permute.xlu1 %1221  ;;  %v1961_v11 = vsel %vm508_vm0, %v1956_v44, %v1960_v58  ;;  %v2008_v44 = vrot.slane %v19103_v6, 1  ;;  %v12397_v6 = vld [vmem:[%s11183_s14 + $0xb4] sm:$0xff] }
 0x197   : >> { %19503 = vst [vmem:[#allocation105_spill] sm:$0xff] %v12330_v63  ;;  %v12336_v38 = vpop.permute.xlu0 %1219  ;;  %v1877_v63 = vunpack.c.l.b16 %v9435_v17 }
 0x198   : >> { %19504 = vst [vmem:[#allocation106_spill] sm:$0xff] %v12336_v38  ;;  %v19104_v38 = vshrl.u32 %v12306_v40, 16 }
 0x199   : >> { %v12359_v3 = vpack.c.b16 %v1877_v63, %v1877_v63 }
 0x19a   : >> { %v1992_v58 = vor.u32 %v19104_v38, %v1988_v0  ;;  %v19510_v38 = vshll.u32 %v12347_v48, 16 }
 0x19b   : >> { %2196 = vrot.lane.b32.xlu2 %v1981_v53, %s11036_s23  ;;  %v1996_v53 = vrot.slane %v19105_v1, 1 }
 0x19c   : >> { %2194 = vrot.lane.b32.xlu1 %v1973_v57, %s11036_s23  ;;  %v2016_v1 = vrot.slane %v19510_v38, 1  ;;  %v19511_v38 = vshrl.u32 %v12340_v27, 16 }
 0x19d   : >> { %2192 = vrot.lane.b32.xlu0 %v1961_v11, %s11036_s23  ;;  %v12371_v63 = vpop.permute.xlu2 %1320  ;;  %v1984_v11 = vor.u32 %v19106_v30, %v1980_v9  ;;  %v12389_v9 = vld [vmem:[%s11183_s14 + $0xc4] sm:$0xff]  ;;  %v12392_v30 = vld [vmem:[%s11183_s14 + $0xbc] sm:$0xff] }
 0x19e   : >> { %19507 = vst [vmem:[#allocation107_spill] sm:$0xff] %v12371_v63  ;;  %v12373_v57 = vpop.permute.xlu1 %1227  ;;  %v1997_v63 = vsel %vm508_vm0, %v1992_v58, %v1996_v53  ;;  %v19512_v58 = vshll.u32 %v12359_v3, 16  ;;  %v19517_v5 = vshll.u32 %v12389_v9, 16  ;;  %v19110_v36 = vshrl.u32 %v12392_v30, 16 }
 0x19f   : >> { %19508 = vst [vmem:[#allocation108_spill] sm:$0xff] %v12373_v57  ;;  %v12377_v17 = vpop.permute.xlu0 %1225  ;;  %v2009_v57 = vsel %vm508_vm0, %v2004_v47, %v2008_v44  ;;  %v1989_v62 = vsel %vm508_vm0, %v1984_v11, %v1988_v0  ;;  %v2028_v47 = vor.u32 %v19511_v38, %v2024_v42  ;;  %v2020_v0 = vor.u32 %v19108_v51, %v2016_v1  ;;  %v12409_v11 = vld [vmem:[%s11183_s14 + $0xcc] sm:$0xff]  ;;  %v12423_v51 = vld [vmem:[%s11183_s14 + $0xe0] sm:$0xff] }
 0x1a0   : >> { %19509 = vst [vmem:[#allocation109_spill] sm:$0xff] %v12377_v17  ;;  %v2032_v53 = vrot.slane %v19512_v58, 1  ;;  %v19515_v38 = vshrl.u32 %v12322_v20, 16  ;;  %v2052_v49 = vrot.slane %v19517_v5, 1  ;;  %v19113_v45 = vshrl.u32 %v12409_v11, 16 }
 0x1a1   : >> { %v2025_v14 = vsel %vm508_vm0, %v2020_v0, %v2024_v42  ;;  %v19519_v42 = vshll.u32 %v12397_v6, 16  ;;  %v19526_v22 = vshrl.u32 %v12423_v51, 16 }
 0x1a2   : >> { %v2012_v24 = vor.u32 %v19515_v38, %v2008_v44  ;;  %v2033_v39 = vsel %vm508_vm0, %v2028_v47, %v2032_v53  ;;  %v19109_v44 = vshll.u32 %v12409_v11, 16  ;;  %v19518_v38 = vshll.u32 %v12392_v30, 16 }
 0x1a3   : >> { %2202 = vrot.lane.b32.xlu2 %v2009_v57, %s11036_s23  ;;  %v19111_v47 = vshrl.u32 %v12397_v6, 16  ;;  %v2039_v53 = vrot.slane %v19519_v42, 1  ;;  %v12443_v57 = vld [vmem:[%s11183_s14 + $0xe8] sm:$0xff] }
 0x1a4   : >> { %2200 = vrot.lane.b32.xlu1 %v1997_v63, %s11036_s23  ;;  %v2044_v58 = vrot.slane %v19518_v38, 1  ;;  %v2017_v52 = vsel %vm508_vm0, %v2012_v24, %v2016_v1  ;;  %v19520_v24 = vshrl.u32 %v12389_v9, 16  ;;  %v2060_v42 = vrot.slane %v19109_v44, 1 }
 0x1a5   : >> { %2198 = vrot.lane.b32.xlu0 %v1989_v62, %s11036_s23  ;;  %v12413_v17 = vpop.permute.xlu2 %1326  ;;  %v9444_v62 = vld [vmem:[%s11183_s14 + $0xd4] sm:$0x3]  ;;  %v19527_v35 = vshll.u32 %v12443_v57, 16 }
 0x1a6   : >> { %19513 = vst [vmem:[#allocation110_spill] sm:$0xff] %v12413_v17  ;;  %v12415_v63 = vpop.permute.xlu1 %1306  ;;  %v12430_v17 = vld [vmem:[%s11183_s14 + $0xd8] sm:$0xff]  ;;  %v1878_v0 = vunpack.c.l.b16 %v9444_v62  ;;  %v2056_v1 = vor.u32 %v19520_v24, %v2052_v49  ;;  %v2048_v62 = vor.u32 %v19110_v36, %v2044_v58  ;;  %v19524_v24 = vshll.u32 %v12423_v51, 16 }
 0x1a7   : >> { %19514 = vst [vmem:[#allocation111_spill] sm:$0xff] %v12415_v63  ;;  %v12420_v31 = vpop.permute.xlu0 %1304  ;;  %v2160_v63 = vrot.slane %v19545_v26, 1 }
 0x1a8   : >> { %19516 = vst [vmem:[#allocation112_spill] sm:$0xff] %v12420_v31  ;;  %v12462_v38 = vpack.c.b16 %v1878_v0, %v1878_v0  ;;  %v2080_v21 = vrot.slane %v19524_v24, 1  ;;  %v2053_v0 = vsel %vm508_vm0, %v2048_v62, %v2052_v49  ;;  %v19528_v49 = vshrl.u32 %v12430_v17, 16  ;;  %v12496_v62 = vld [vmem:[%s11183_s14 + $0x104] sm:$0xff] }
 0x1aa   : >> { %v19112_v36 = vshll.u32 %v12462_v38, 16 }
 0x1ab   : >> { %2208 = vrot.lane.b32.xlu2 %v2033_v39, %s11036_s23 }
 0x1ac   : >> { %2206 = vrot.lane.b32.xlu1 %v2025_v14, %s11036_s23  ;;  %v2040_v14 = vor.u32 %v2039_v53, %v19111_v47  ;;  %v2061_v53 = vsel %vm508_vm0, %v2056_v1, %v2060_v42  ;;  %v12480_v47 = vld [vmem:[%s11183_s14 + $0xf0] sm:$0xff] }
 0x1ad   : >> { %2204 = vrot.lane.b32.xlu0 %v2017_v52, %s11036_s23  ;;  %v12456_v5 = vpop.permute.xlu2 %1332  ;;  %v9453_v52 = vld [vmem:[%s11183_s14 + $0xf8] sm:$0x3] }
 0x1ae   : >> { %19521 = vst [vmem:[#allocation113_spill] sm:$0xff] %v12456_v5  ;;  %v12458_v39 = vpop.permute.xlu1 %1312  ;;  %v19525_v5 = vshll.u32 %v12430_v17, 16  ;;  %v1879_v24 = vunpack.c.l.b16 %v9453_v52  ;;  %v2045_v44 = vsel %vm508_vm0, %v2040_v14, %v2044_v58  ;;  %v12514_v58 = vld [vmem:[%s11183_s14 + $0x114] sm:$0xff] }
 0x1af   : >> { %19522 = vst [vmem:[#allocation114_spill] sm:$0xff] %v12458_v39  ;;  %v12465_v56 = vpop.permute.xlu0 %1310 }
 0x1b0   : >> { %19523 = vst [vmem:[#allocation115_spill] sm:$0xff] %v12465_v56  ;;  %v2075_v39 = vrot.slane %v19525_v5, 1  ;;  %v2084_v5 = vor.u32 %v19526_v22, %v2080_v21  ;;  %v2088_v56 = vrot.slane %v19527_v35, 1  ;;  %v12498_v14 = vpack.c.b16 %v1879_v24, %v1879_v24  ;;  %v9462_v35 = vld [vmem:[%s11183_s14 + $0x11c] sm:$0x3] }
 0x1b1   : >> { %v19114_v22 = vshrl.u32 %v12475_v55, 16 }
 0x1b2   : >> { %v2076_v1 = vor.u32 %v2075_v39, %v19528_v49  ;;  %v2068_v39 = vrot.slane %v19112_v36, 1  ;;  %v19533_v36 = vshll.u32 %v12480_v47, 16 }
 0x1b3   : >> { %2214 = vrot.lane.b32.xlu2 %v2061_v53, %s11036_s23 }
 0x1b4   : >> { %2212 = vrot.lane.b32.xlu1 %v2053_v0, %s11036_s23  ;;  %v2064_v0 = vor.u32 %v19113_v45, %v2060_v42  ;;  %v2081_v24 = vsel %vm508_vm0, %v2076_v1, %v2080_v21  ;;  %v19115_v42 = vshll.u32 %v12496_v62, 16  ;;  %v2096_v45 = vrot.slane %v19533_v36, 1 }
 0x1b5   : >> { %2210 = vrot.lane.b32.xlu0 %v2045_v44, %s11036_s23  ;;  %v12502_v52 = vpop.permute.xlu2 %1338  ;;  %v2089_v44 = vsel %vm508_vm0, %v2084_v5, %v2088_v56  ;;  %v19117_v5 = vshll.u32 %v12498_v14, 16  ;;  %v19118_v21 = vshrl.u32 %v12443_v57, 16  ;;  %v19119_v1 = vshll.u32 %v12514_v58, 16 }
 0x1b6   : >> { %19529 = vst [vmem:[#allocation116_spill] sm:$0xff] %v12502_v52  ;;  %v12504_v53 = vpop.permute.xlu1 %1318  ;;  %v19532_v52 = vshll.u32 %v12475_v55, 16  ;;  %v2069_v12 = vsel %vm508_vm0, %v2064_v0, %v2068_v39  ;;  %v2116_v0 = vrot.slane %v19115_v42, 1  ;;  %v12571_v42 = vld [vmem:[%s11183_s14 + $0x120] sm:$0xff] }
 0x1b7   : >> { %19530 = vst [vmem:[#allocation117_spill] sm:$0xff] %v12504_v53  ;;  %v12510_v49 = vpop.permute.xlu0 %1316  ;;  %v1880_v53 = vunpack.c.l.b16 %v9462_v35 }
 0x1b8   : >> { %19531 = vst [vmem:[#allocation118_spill] sm:$0xff] %v12510_v49  ;;  %v2111_v46 = vrot.slane %v19532_v52, 1  ;;  %v19116_v49 = vshrl.u32 %v12480_v47, 16 }
 0x1b9   : >> { %v12533_v35 = vpack.c.b16 %v1880_v53, %v1880_v53 }
 0x1ba   : >> { %v2112_v36 = vor.u32 %v2111_v46, %v19114_v22  ;;  %v2100_v39 = vor.u32 %v19116_v49, %v2096_v45  ;;  %v2132_v46 = vrot.slane %v19119_v1, 1  ;;  %v19537_v49 = vshll.u32 %v12521_v8, 16 }
 0x1bb   : >> { %2220 = vrot.lane.b32.xlu2 %v2089_v44, %s11036_s23  ;;  %v2104_v44 = vrot.slane %v19117_v5, 1  ;;  %v19121_v22 = vshrl.u32 %v12561_v33, 16 }
 0x1bc   : >> { %2218 = vrot.lane.b32.xlu1 %v2081_v24, %s11036_s23  ;;  %v2124_v5 = vrot.slane %v19537_v49, 1  ;;  %v19538_v49 = vshrl.u32 %v12514_v58, 16 }
 0x1bd   : >> { %2216 = vrot.lane.b32.xlu0 %v2069_v12, %s11036_s23  ;;  %v12545_v53 = vpop.permute.xlu2 %1344  ;;  %v2092_v12 = vor.u32 %v19118_v21, %v2088_v56  ;;  %v2105_v56 = vsel %vm508_vm0, %v2100_v39, %v2104_v44  ;;  %v12566_v21 = vld [vmem:[%s11183_s14 + $0x128] sm:$0xff]  ;;  %v19540_v39 = vshrl.u32 %v12521_v8, 16  ;;  %v2164_v26 = vor.u32 %v19121_v22, %v2160_v63 }
 0x1be   : >> { %19534 = vst [vmem:[#allocation119_spill] sm:$0xff] %v12545_v53  ;;  %v12547_v24 = vpop.permute.xlu1 %1324  ;;  %v2136_v53 = vor.u32 %v19538_v49, %v2132_v46  ;;  %v19543_v49 = vshrl.u32 %v12496_v62, 16 }
 0x1bf   : >> { %19535 = vst [vmem:[#allocation120_spill] sm:$0xff] %v12547_v24  ;;  %v12551_v52 = vpop.permute.xlu0 %1322  ;;  %v2117_v24 = vsel %vm508_vm0, %v2112_v36, %v2116_v0  ;;  %v2097_v1 = vsel %vm508_vm0, %v2092_v12, %v2096_v45  ;;  %v19539_v36 = vshll.u32 %v12533_v35, 16  ;;  %v2128_v44 = vor.u32 %v19540_v39, %v2124_v5  ;;  %v12584_v12 = vld [vmem:[%s11183_s14 + $0x138] sm:$0xff]  ;;  %v9471_v39 = vld [vmem:[%s11183_s14 + $0x140] sm:$0x3] }
 0x1c0   : >> { %19536 = vst [vmem:[#allocation121_spill] sm:$0xff] %v12551_v52  ;;  %v2120_v25 = vor.u32 %v19543_v49, %v2116_v0  ;;  %v19122_v0 = vshrl.u32 %v12566_v21, 16  ;;  %v19125_v22 = vshrl.u32 %v12584_v12, 16 }
 0x1c1   : >> { %v2140_v52 = vrot.slane %v19539_v36, 1  ;;  %v19123_v36 = vshrl.u32 %v12571_v42, 16 }
 0x1c2   : >> { %v2125_v49 = vsel %vm508_vm0, %v2120_v25, %v2124_v5 }
 0x1c3   : >> { %2226 = vrot.lane.b32.xlu2 %v2117_v24, %s11036_s23  ;;  %v2141_v45 = vsel %vm508_vm0, %v2136_v53, %v2140_v52  ;;  %v19547_v52 = vshll.u32 %v12571_v42, 16 }
 0x1c4   : >> { %2224 = vrot.lane.b32.xlu1 %v2105_v56, %s11036_s23 }
 0x1c5   : >> { %2222 = vrot.lane.b32.xlu0 %v2097_v1, %s11036_s23  ;;  %v12587_v24 = vpop.permute.xlu2 %1350  ;;  %v2133_v1 = vsel %vm508_vm0, %v2128_v44, %v2132_v46  ;;  %v2147_v53 = vrot.slane %v19547_v52, 1  ;;  %v1881_v46 = vunpack.c.l.b16 %v9471_v39 }
 0x1c6   : >> { %19541 = vst [vmem:[#allocation122_spill] sm:$0xff] %v12587_v24  ;;  %v12589_v56 = vpop.permute.xlu1 %1330  ;;  %v19120_v24 = vshll.u32 %v12584_v12, 16 }
 0x1c7   : >> { %19542 = vst [vmem:[#allocation123_spill] sm:$0xff] %v12589_v56  ;;  %v12594_v34 = vpop.permute.xlu0 %1328  ;;  %v19546_v56 = vshll.u32 %v12566_v21, 16  ;;  %v12625_v39 = vpack.c.b16 %v1881_v46, %v1881_v46  ;;  %v2245_v46 = vrot.slane %v12178_v7, 1 }
 0x1c8   : >> { %19544 = vst [vmem:[#allocation124_spill] sm:$0xff] %v12594_v34  ;;  %v2168_v44 = vrot.slane %v19120_v24, 1 }
 0x1c9   : >> { %v2152_v43 = vrot.slane %v19546_v56, 1 }
 0x1cb   : >> { %2232 = vrot.lane.b32.xlu2 %v2141_v45, %s11036_s23  ;;  %v2156_v25 = vor.u32 %v19122_v0, %v2152_v43  ;;  %v2148_v45 = vor.u32 %v2147_v53, %v19123_v36  ;;  %v19124_v0 = vshll.u32 %v12625_v39, 16  ;;  %v2243_v53 = vrot.slane %v12162_v28, 1 }
 0x1cc   : >> { %2230 = vrot.lane.b32.xlu1 %v2133_v1, %s11036_s23 }
 0x1cd   : >> { %2228 = vrot.lane.b32.xlu0 %v2125_v49, %s11036_s23  ;;  %v12619_v5 = vpop.permute.xlu2 %1356  ;;  %v2169_v49 = vsel %vm508_vm0, %v2164_v26, %v2168_v44  ;;  %v2161_v52 = vsel %vm508_vm0, %v2156_v25, %v2160_v63  ;;  %v2153_v24 = vsel %vm508_vm0, %v2148_v45, %v2152_v43  ;;  %v2242_v26 = vrot.slane %v12152_v37, 1 }
 0x1ce   : >> { %19548 = vst [vmem:[#allocation125_spill] sm:$0xff] %v12619_v5  ;;  %v12621_v56 = vpop.permute.xlu1 %1336  ;;  %v2172_v43 = vor.u32 %v19125_v22, %v2168_v44  ;;  %v2176_v25 = vrot.slane %v19124_v0, 1  ;;  %v2252_v44 = vrot.slane %v12218_v29, 1  ;;  %v2247_v0 = vrot.slane %v12174_v4, 1 }
 0x1cf   : >> { %19549 = vst [vmem:[#allocation126_spill] sm:$0xff] %v12621_v56  ;;  %v12627_v1 = vpop.permute.xlu0 %1334  ;;  %v2249_v22 = vrot.slane %v12189_v32, 1 }
 0x1d0   : >> { %19550 = vst [vmem:[#allocation127_spill] sm:$0xff] %v12627_v1 }
 0x1d3   : >> { %2238 = vrot.lane.b32.xlu2 %v2169_v49, %s11036_s23  ;;  %v2244_v49 = vsel %vm861_vm1, %v2242_v26, %v2243_v53 }
 0x1d4   : >> { %2236 = vrot.lane.b32.xlu1 %v2161_v52, %s11036_s23  ;;  %v2177_v52 = vsel %vm508_vm0, %v2172_v43, %v2176_v25  ;;  %v2250_v43 = vsel %vm861_vm1, %v2247_v0, %v2249_v22  ;;  %v2248_v25 = vsel %vm861_vm1, %v2245_v46, %v2247_v0 }
 0x1d5   : >> { %2234 = vrot.lane.b32.xlu0 %v2153_v24, %s11036_s23  ;;  %v12640_v36 = vpop.permute.xlu2 %1362  ;;  %v2246_v24 = vsel %vm861_vm1, %v2243_v53, %v2245_v46 }
 0x1d6   : >> { %19551 = vst [vmem:[#allocation128_spill] sm:$0xff] %v12640_v36  ;;  %v12642_v63 = vpop.permute.xlu1 %1342  ;;  %v2251_v36 = vrot.slane %v12223_v13, 1 }
 0x1d7   : >> { %19552 = vst [vmem:[#allocation129_spill] sm:$0xff] %v12642_v63  ;;  %v12648_v45 = vpop.permute.xlu0 %1340 }
 0x1d8   : >> { %19553 = vst [vmem:[#allocation130_spill] sm:$0xff] %v12648_v45  ;;  %v2253_v26 = vsel %vm861_vm1, %v2251_v36, %v2252_v44 }
 0x1db   : >> { %2316 = vrot.lane.b32.xlu2 %v2246_v24, %s11037_s24  ;;  %v2256_v24 = vrot.slane %v12236_v54, 1 }
 0x1dc   : >> { %2314 = vrot.lane.b32.xlu1 %v2244_v49, %s11037_s24  ;;  %v2258_v49 = vrot.slane %v12288_v15, 1 }
 0x1dd   : >> { %2240 = vrot.lane.b32.xlu0 %v2177_v52, %s11036_s23  ;;  %v12660_v5 = vpop.permute.xlu2 %2178  ;;  %v2254_v52 = vrot.slane %v12213_v23, 1 }
 0x1de   : >> { %v12662_v63 = vpop.permute.xlu1 %1348  ;;  %v2259_v22 = vsel %vm861_vm1, %v2256_v24, %v2258_v49 }
 0x1df   : >> { %19554 = vst [vmem:[#allocation131_spill] sm:$0xff] %v12662_v63  ;;  %v12664_v53 = vpop.permute.xlu0 %1346  ;;  %v2257_v0 = vsel %vm861_vm1, %v2254_v52, %v2256_v24  ;;  %v2255_v46 = vsel %vm861_vm1, %v2252_v44, %v2254_v52  ;;  %v2260_v24 = vrot.slane %v12257_v19, 1 }
 0x1e0   : >> { %19555 = vst [vmem:[#allocation132_spill] sm:$0xff] %v12664_v53 }
 0x1e3   : >> { %2322 = vrot.lane.b32.xlu2 %v2253_v26, %s11037_s24  ;;  %v2263_v26 = vrot.slane %v12269_v59, 1 }
 0x1e4   : >> { %2320 = vrot.lane.b32.xlu1 %v2250_v43, %s11037_s24  ;;  %v2265_v43 = vrot.slane %v12306_v40, 1 }
 0x1e5   : >> { %2318 = vrot.lane.b32.xlu0 %v2248_v25, %s11037_s24  ;;  %v12675_v63 = vpop.permute.xlu2 %2184  ;;  %v2261_v25 = vrot.slane %v12249_v50, 1 }
 0x1e6   : >> { %v12677_v53 = vpop.permute.xlu1 %1354  ;;  %v2266_v44 = vsel %vm861_vm1, %v2263_v26, %v2265_v43 }
 0x1e7   : >> { %19556 = vst [vmem:[#allocation133_spill] sm:$0xff] %v12677_v53  ;;  %v12679_v36 = vpop.permute.xlu0 %1352  ;;  %v2264_v52 = vsel %vm861_vm1, %v2261_v25, %v2263_v26  ;;  %v2267_v26 = vrot.slane %v12324_v61, 1 }
 0x1e8   : >> { %19557 = vst [vmem:[#allocation134_spill] sm:$0xff] %v12679_v36 }
 0x1eb   : >> { %2328 = vrot.lane.b32.xlu2 %v2259_v22, %s11037_s24  ;;  %v2262_v22 = vsel %vm861_vm1, %v2260_v24, %v2261_v25 }
 0x1ec   : >> { %2326 = vrot.lane.b32.xlu1 %v2257_v0, %s11037_s24  ;;  %v2270_v0 = vrot.slane %v12322_v20, 1 }
 0x1ed   : >> { %2324 = vrot.lane.b32.xlu0 %v2255_v46, %s11037_s24  ;;  %v12690_v53 = vpop.permute.xlu2 %2190  ;;  %v2272_v46 = vrot.slane %v12347_v48, 1 }
 0x1ee   : >> { %19558 = vst [vmem:[#allocation135_spill] sm:$0xff] %v12690_v53  ;;  %v12692_v36 = vpop.permute.xlu1 %1360 }
 0x1ef   : >> { %19559 = vst [vmem:[#allocation136_spill] sm:$0xff] %v12692_v36  ;;  %v12695_v49 = vpop.permute.xlu0 %1358  ;;  %v2269_v36 = vrot.slane %v12301_v41, 1  ;;  %v2273_v25 = vsel %vm861_vm1, %v2270_v0, %v2272_v46 }
 0x1f0   : >> { %19560 = vst [vmem:[#allocation137_spill] sm:$0xff] %v12695_v49 }
 0x1f1   : >> { %v2271_v24 = vsel %vm861_vm1, %v2269_v36, %v2270_v0 }
 0x1f3   : >> { %2334 = vrot.lane.b32.xlu2 %v2266_v44, %s11037_s24  ;;  %v2268_v44 = vsel %vm861_vm1, %v2265_v43, %v2267_v26 }
 0x1f4   : >> { %2332 = vrot.lane.b32.xlu1 %v2264_v52, %s11037_s24  ;;  %v2278_v52 = vrot.slane %v12397_v6, 1 }
 0x1f5   : >> { %2330 = vrot.lane.b32.xlu0 %v2262_v22, %s11037_s24  ;;  %v12706_v45 = vpop.permute.xlu2 %2196  ;;  %v2279_v22 = vrot.slane %v12392_v30, 1 }
 0x1f6   : >> { %v12708_v49 = vpop.permute.xlu1 %1366 }
 0x1f7   : >> { %19561 = vst [vmem:[#allocation138_spill] sm:$0xff] %v12708_v49  ;;  %v12711_v56 = vpop.permute.xlu0 %1364  ;;  %v2274_v49 = vrot.slane %v12340_v27, 1  ;;  %v2280_v43 = vsel %vm861_vm1, %v2278_v52, %v2279_v22 }
 0x1f8   : >> { %19562 = vst [vmem:[#allocation139_spill] sm:$0xff] %v12711_v56  ;;  %v2276_v56 = vrot.slane %v12359_v3, 1 }
 0x1f9   : >> { %v2275_v26 = vsel %vm861_vm1, %v2272_v46, %v2274_v49 }
 0x1fa   : >> { %v2277_v0 = vsel %vm861_vm1, %v2274_v49, %v2276_v56 }
 0x1fb   : >> { %2340 = vrot.lane.b32.xlu2 %v2273_v25, %s11037_s24  ;;  %v2283_v25 = vrot.slane %v12409_v11, 1 }
 0x1fc   : >> { %2338 = vrot.lane.b32.xlu1 %v2271_v24, %s11037_s24  ;;  %v2285_v24 = vrot.slane %v12462_v38, 1 }
 0x1fd   : >> { %2336 = vrot.lane.b32.xlu0 %v2268_v44, %s11037_s24  ;;  %v12723_v1 = vpop.permute.xlu2 %2202  ;;  %v2281_v44 = vrot.slane %v12389_v9, 1 }
 0x1fe   : >> { %19563 = vst [vmem:[#allocation140_spill] sm:$0xff] %v12723_v1  ;;  %v12725_v34 = vpop.permute.xlu1 %2182  ;;  %v2286_v56 = vsel %vm861_vm1, %v2283_v25, %v2285_v24  ;;  %v2303_v1 = vrot.slane %v12533_v35, 1 }
 0x1ff   : >> { %v12727_v36 = vpop.permute.xlu0 %2180  ;;  %v2284_v49 = vsel %vm861_vm1, %v2281_v44, %v2283_v25  ;;  %v2282_v46 = vsel %vm861_vm1, %v2279_v22, %v2281_v44  ;;  %v2287_v25 = vrot.slane %v12430_v17, 1 }
 0x203   : >> { %2346 = vrot.lane.b32.xlu2 %v2280_v43, %s11037_s24  ;;  %v2290_v43 = vrot.slane %v12443_v57, 1 }
 0x204   : >> { %2344 = vrot.lane.b32.xlu1 %v2277_v0, %s11037_s24  ;;  %v2292_v0 = vrot.slane %v12480_v47, 1 }
 0x205   : >> { %2342 = vrot.lane.b32.xlu0 %v2275_v26, %s11037_s24  ;;  %v12738_v2 = vpop.permute.xlu2 %2208  ;;  %v2288_v26 = vrot.slane %v12423_v51, 1 }
 0x206   : >> { %19564 = vst [vmem:[#allocation141_spill] sm:$0xff] %v12738_v2  ;;  %v12740_v10 = vpop.permute.xlu1 %2188  ;;  %v2293_v22 = vsel %vm861_vm1, %v2290_v43, %v2292_v0 }
 0x207   : >> { %19565 = vst [vmem:[#allocation142_spill] sm:$0xff] %v12740_v10  ;;  %v12742_v52 = vpop.permute.xlu0 %2186  ;;  %v2291_v44 = vsel %vm861_vm1, %v2288_v26, %v2290_v43  ;;  %v2294_v43 = vrot.slane %v12498_v14, 1 }
 0x208   : >> { %19566 = vst [vmem:[#allocation143_spill] sm:$0xff] %v12742_v52 }
 0x20b   : >> { %2352 = vrot.lane.b32.xlu2 %v2286_v56, %s11037_s24  ;;  %v2289_v56 = vsel %vm861_vm1, %v2287_v25, %v2288_v26 }
 0x20c   : >> { %2350 = vrot.lane.b32.xlu1 %v2284_v49, %s11037_s24  ;;  %v2297_v49 = vrot.slane %v12496_v62, 1 }
 0x20d   : >> { %2348 = vrot.lane.b32.xlu0 %v2282_v46, %s11037_s24  ;;  %v12753_v31 = vpop.permute.xlu2 %2214  ;;  %v2299_v46 = vrot.slane %v12521_v8, 1 }
 0x20e   : >> { %19567 = vst [vmem:[#allocation144_spill] sm:$0xff] %v12753_v31  ;;  %v12755_v18 = vpop.permute.xlu1 %2194  ;;  %v2298_v25 = vsel %vm861_vm1, %v2296_v60, %v2297_v49 }
 0x20f   : >> { %v12758_v24 = vpop.permute.xlu0 %2192  ;;  %v2300_v26 = vsel %vm861_vm1, %v2297_v49, %v2299_v46 }
 0x210   : >> { %19568 = vst [vmem:[#allocation145_spill] sm:$0xff] %v12758_v24 }
 0x213   : >> { %2358 = vrot.lane.b32.xlu2 %v2293_v22, %s11037_s24  ;;  %v2295_v22 = vsel %vm861_vm1, %v2292_v0, %v2294_v43 }
 0x214   : >> { %2356 = vrot.lane.b32.xlu1 %v2291_v44, %s11037_s24  ;;  %v2305_v44 = vrot.slane %v12571_v42, 1 }
 0x215   : >> { %2354 = vrot.lane.b32.xlu0 %v2289_v56, %s11037_s24  ;;  %v12769_v16 = vpop.permute.xlu2 %2220  ;;  %v2306_v56 = vrot.slane %v12566_v21, 1 }
 0x216   : >> { %19569 = vst [vmem:[#allocation146_spill] sm:$0xff] %v12769_v16  ;;  %v12771_v2 = vpop.permute.xlu1 %2200  ;;  %v2301_v16 = vrot.slane %v12514_v58, 1 }
 0x217   : >> { %19570 = vst [vmem:[#allocation147_spill] sm:$0xff] %v12771_v2  ;;  %v12774_v24 = vpop.permute.xlu0 %2198  ;;  %v2307_v0 = vsel %vm861_vm1, %v2305_v44, %v2306_v56  ;;  %v19580_v2 = vshrl.u32 %v12174_v4, 16 }
 0x218   : >> { %19571 = vst [vmem:[#allocation148_spill] sm:$0xff] %v12774_v24  ;;  %v2304_v49 = vsel %vm861_vm1, %v2301_v16, %v2303_v1  ;;  %v2302_v43 = vsel %vm861_vm1, %v2299_v46, %v2301_v16  ;;  %v19578_v46 = vshrl.u32 %v12178_v7, 16 }
 0x219   : >> { %v2389_v24 = vrot.slane %v19580_v2, 1 }
 0x21b   : >> { %2364 = vrot.lane.b32.xlu2 %v2300_v26, %s11037_s24  ;;  %v2310_v26 = vrot.slane %v12584_v12, 1 }
 0x21c   : >> { %2362 = vrot.lane.b32.xlu1 %v2298_v25, %s11037_s24  ;;  %v2312_v25 = vrot.slane %v12625_v39, 1 }
 0x21d   : >> { %2360 = vrot.lane.b32.xlu0 %v2295_v22, %s11037_s24  ;;  %v12786_v53 = vpop.permute.xlu2 %2226  ;;  %v2308_v22 = vrot.slane %v12561_v33, 1 }
 0x21e   : >> { %19572 = vst [vmem:[#allocation149_spill] sm:$0xff] %v12786_v53  ;;  %v12788_v31 = vpop.permute.xlu1 %2206  ;;  %v2313_v16 = vsel %vm861_vm1, %v2310_v26, %v2312_v25  ;;  %v19584_v53 = vshrl.u32 %v12152_v37, 16 }
 0x21f   : >> { %19573 = vst [vmem:[#allocation150_spill] sm:$0xff] %v12788_v31  ;;  %v12790_v60 = vpop.permute.xlu0 %2204  ;;  %v2311_v1 = vsel %vm861_vm1, %v2308_v22, %v2310_v26  ;;  %v2309_v26 = vsel %vm861_vm1, %v2306_v56, %v2308_v22  ;;  %v19588_v22 = vshrl.u32 %v12218_v29, 16 }
 0x220   : >> { %19574 = vst [vmem:[#allocation151_spill] sm:$0xff] %v12790_v60 }
 0x223   : >> { %2370 = vrot.lane.b32.xlu2 %v2307_v0, %s11037_s24  ;;  %v2385_v0 = vrot.slane %v19578_v46, 1  ;;  %v2378_v46 = vrot.slane %v19584_v53, 1  ;;  %v2402_v53 = vrot.slane %v19588_v22, 1 }
 0x224   : >> { %2368 = vrot.lane.b32.xlu1 %v2304_v49, %s11037_s24  ;;  %v19579_v49 = vshll.u32 %v12178_v7, 16  ;;  %v19585_v7 = vshll.u32 %v12152_v37, 16  ;;  %v19589_v37 = vshll.u32 %v12218_v29, 16 }
 0x225   : >> { %2366 = vrot.lane.b32.xlu0 %v2302_v43, %s11037_s24  ;;  %v12801_v31 = vpop.permute.xlu2 %2232  ;;  %v19581_v43 = vshll.u32 %v12174_v4, 16 }
 0x226   : >> { %19575 = vst [vmem:[#allocation152_spill] sm:$0xff] %v12801_v31  ;;  %v12803_v60 = vpop.permute.xlu1 %2212  ;;  %v2386_v10 = vrot.slane %v19579_v49, 2  ;;  %v2379_v49 = vrot.slane %v19585_v7, 2 }
 0x227   : >> { %19576 = vst [vmem:[#allocation153_spill] sm:$0xff] %v12803_v60  ;;  %v12805_v44 = vpop.permute.xlu0 %2210  ;;  %v2390_v31 = vrot.slane %v19581_v43, 2  ;;  %v19582_v60 = vshrl.u32 %v12162_v28, 16 }
 0x228   : >> { %19577 = vst [vmem:[#allocation154_spill] sm:$0xff] %v12805_v44  ;;  %v19583_v44 = vshll.u32 %v12162_v28, 16  ;;  %v2387_v2 = vor.u32 %v2386_v10, %v2385_v0  ;;  %v2380_v56 = vor.u32 %v2379_v49, %v2378_v46 }
 0x229   : >> { %v2381_v52 = vrot.slane %v19582_v60, 1  ;;  %v2391_v4 = vor.u32 %v2390_v31, %v2389_v24  ;;  %v19592_v31 = vshll.u32 %v12213_v23, 16  ;;  %v19593_v24 = vshrl.u32 %v12223_v13, 16 }
 0x22a   : >> { %v2382_v25 = vrot.slane %v19583_v44, 2  ;;  %v2403_v44 = vrot.slane %v19589_v37, 2  ;;  %v19595_v37 = vshll.u32 %v12189_v32, 16 }
 0x22b   : >> { %2376 = vrot.lane.b32.xlu2 %v2313_v16, %s11037_s24  ;;  %v2393_v16 = vshrl.u32 %v12189_v32, 16  ;;  %v2399_v0 = vrot.slane %v19593_v24, 1  ;;  %v2392_v46 = vsel %vm998_vm2, %v2387_v2, %v2391_v4 }
 0x22c   : >> { %2374 = vrot.lane.b32.xlu1 %v2311_v1, %s11037_s24  ;;  %v2383_v60 = vor.u32 %v2382_v25, %v2381_v52  ;;  %v19591_v1 = vshrl.u32 %v12213_v23, 16  ;;  %v2407_v52 = vrot.slane %v19592_v31, 2  ;;  %v19594_v25 = vshll.u32 %v12223_v13, 16 }
 0x22d   : >> { %2372 = vrot.lane.b32.xlu0 %v2309_v26, %s11037_s24  ;;  %v12829_v43 = vpop.permute.xlu2 %2238  ;;  %v2395_v22 = vrot.slane %v2393_v16, 1  ;;  %v2414_v13 = vshrl.u32 %v12288_v15, 16 }
 0x22e   : >> { %19586 = vst [vmem:[#allocation155_spill] sm:$0xff] %v12829_v43  ;;  %v12831_v28 = vpop.permute.xlu1 %2218  ;;  %v2406_v10 = vrot.slane %v19591_v1, 1  ;;  %v2400_v26 = vrot.slane %v19594_v25, 2  ;;  %v2388_v29 = vsel %vm998_vm2, %v2383_v60, %v2387_v2  ;;  %v2384_v49 = vsel %vm998_vm2, %v2380_v56, %v2383_v60 }
 0x22f   : >> { %19587 = vst [vmem:[#allocation156_spill] sm:$0xff] %v12831_v28  ;;  %v12838_v7 = vpop.permute.xlu0 %2216  ;;  %v2396_v43 = vrot.slane %v19595_v37, 2  ;;  %v2404_v1 = vor.u32 %v2403_v44, %v2402_v53  ;;  %v19598_v44 = vshrl.u32 %v12257_v19, 16  ;;  %v2416_v37 = vrot.slane %v2414_v13, 1 }
 0x230   : >> { %19590 = vst [vmem:[#allocation157_spill] sm:$0xff] %v12838_v7  ;;  %v2408_v28 = vor.u32 %v2407_v52, %v2406_v10  ;;  %v2401_v23 = vor.u32 %v2400_v26, %v2399_v0  ;;  %v19599_v52 = vshll.u32 %v12257_v19, 16  ;;  %v19600_v0 = vshrl.u32 %v12249_v50, 16 }
 0x231   : >> { %v2397_v60 = vor.u32 %v2396_v43, %v2395_v22  ;;  %v2420_v10 = vrot.slane %v19598_v44, 1  ;;  %v19601_v26 = vshll.u32 %v12249_v50, 16  ;;  %v19602_v43 = vshrl.u32 %v12236_v54, 16 }
 0x232   : >> { %v2409_v16 = vsel %vm998_vm2, %v2404_v1, %v2408_v28  ;;  %v2405_v53 = vsel %vm998_vm2, %v2401_v23, %v2404_v1  ;;  %v2421_v24 = vrot.slane %v19599_v52, 2  ;;  %v2423_v25 = vrot.slane %v19600_v0, 1 }
 0x233   : >> { %2550 = vrot.lane.b32.xlu2 %v2392_v46, %s11038_s27  ;;  %v2424_v46 = vrot.slane %v19601_v26, 2  ;;  %v19604_v1 = vshll.u32 %v12288_v15, 16  ;;  %v2398_v44 = vsel %vm998_vm2, %v2391_v4, %v2397_v60  ;;  %v2435_v19 = vshrl.u32 %v12324_v61, 16 }
 0x234   : >> { %2548 = vrot.lane.b32.xlu1 %v2388_v29, %s11038_s27  ;;  %v2410_v29 = vrot.slane %v19602_v43, 1  ;;  %v2422_v50 = vor.u32 %v2421_v24, %v2420_v10  ;;  %v19607_v4 = vshrl.u32 %v12306_v40, 16  ;;  %v19610_v10 = vshrl.u32 %v12269_v59, 16 }
 0x235   : >> { %2546 = vrot.lane.b32.xlu0 %v2384_v49, %s11038_s27  ;;  %v12857_v31 = vpop.permute.xlu2 %2316  ;;  %v19603_v49 = vshll.u32 %v12236_v54, 16  ;;  %v2417_v23 = vrot.slane %v19604_v1, 2  ;;  %v2425_v52 = vor.u32 %v2424_v46, %v2423_v25  ;;  %v19609_v1 = vshll.u32 %v12324_v61, 16 }
 0x236   : >> { %v12859_v2 = vpop.permute.xlu1 %2224  ;;  %v2431_v60 = vrot.slane %v19607_v4, 1  ;;  %v2427_v24 = vrot.slane %v19610_v10, 1  ;;  %v19611_v25 = vshll.u32 %v12269_v59, 16 }
 0x237   : >> { %19596 = vst [vmem:[#allocation158_spill] sm:$0xff] %v12859_v2  ;;  %v12861_v56 = vpop.permute.xlu0 %2222  ;;  %v2411_v22 = vrot.slane %v19603_v49, 2  ;;  %v2418_v26 = vor.u32 %v2417_v23, %v2416_v37  ;;  %v2437_v49 = vrot.slane %v2435_v19, 1  ;;  %v13157_v2 = vld [vmem:[%s11183_s14 + $0x6c] sm:$0xff] }
 0x238   : >> { %19597 = vst [vmem:[#allocation159_spill] sm:$0xff] %v12861_v56  ;;  %v2428_v46 = vrot.slane %v19611_v25, 2 }
 0x239   : >> { %v2412_v0 = vor.u32 %v2411_v22, %v2410_v29  ;;  %v2426_v29 = vsel %vm998_vm2, %v2422_v50, %v2425_v52 }
 0x23a   : >> { %v2429_v19 = vor.u32 %v2428_v46, %v2427_v24  ;;  %v19619_v24 = vshrl.u32 %v12322_v20, 16  ;;  %v19620_v46 = vshll.u32 %v12322_v20, 16 }
 0x23b   : >> { %2556 = vrot.lane.b32.xlu2 %v2409_v16, %s11038_s27  ;;  %v19608_v16 = vshll.u32 %v12306_v40, 16  ;;  %v2419_v22 = vsel %vm998_vm2, %v2412_v0, %v2418_v26  ;;  %v2413_v37 = vsel %vm998_vm2, %v2408_v28, %v2412_v0  ;;  %v19615_v28 = vshrl.u32 %v12347_v48, 16 }
 0x23c   : >> { %2554 = vrot.lane.b32.xlu1 %v2405_v53, %s11038_s27  ;;  %v2444_v25 = vrot.slane %v19619_v24, 1 }
 0x23d   : >> { %2552 = vrot.lane.b32.xlu0 %v2398_v44, %s11038_s27  ;;  %v12884_v54 = vpop.permute.xlu2 %2322  ;;  %v2432_v53 = vrot.slane %v19608_v16, 2  ;;  %v2438_v44 = vrot.slane %v19609_v1, 2  ;;  %v2448_v0 = vrot.slane %v19615_v28, 1  ;;  %v19616_v1 = vshll.u32 %v12347_v48, 16 }
 0x23e   : >> { %v12886_v13 = vpop.permute.xlu1 %2230  ;;  %v19622_v48 = vshll.u32 %v12301_v41, 16 }
 0x23f   : >> { %19605 = vst [vmem:[#allocation160_spill] sm:$0xff] %v12886_v13  ;;  %v12888_v43 = vpop.permute.xlu0 %2228  ;;  %v2433_v40 = vor.u32 %v2432_v53, %v2431_v60  ;;  %v2439_v23 = vor.u32 %v2438_v44, %v2437_v49  ;;  %v2449_v60 = vrot.slane %v19616_v1, 2  ;;  %v19617_v53 = vshrl.u32 %v12340_v27, 16 }
 0x240   : >> { %19606 = vst [vmem:[#allocation161_spill] sm:$0xff] %v12888_v43  ;;  %v19618_v44 = vshll.u32 %v12340_v27, 16 }
 0x241   : >> { %v2440_v50 = vsel %vm998_vm2, %v2433_v40, %v2439_v23  ;;  %v2434_v26 = vsel %vm998_vm2, %v2429_v19, %v2433_v40  ;;  %v2452_v49 = vrot.slane %v19617_v53, 1  ;;  %v2442_v23 = vrot.slane %v19622_v48, 2 }
 0x242   : >> { %v2453_v10 = vrot.slane %v19618_v44, 2  ;;  %v2450_v27 = vor.u32 %v2449_v60, %v2448_v0  ;;  %v19627_v60 = vshll.u32 %v12389_v9, 16 }
 0x243   : >> { %2562 = vrot.lane.b32.xlu2 %v2426_v29, %s11038_s27  ;;  %v2445_v29 = vrot.slane %v19620_v46, 2 }
 0x244   : >> { %2560 = vrot.lane.b32.xlu1 %v2419_v22, %s11038_s27  ;;  %v2430_v22 = vsel %vm998_vm2, %v2425_v52, %v2429_v19  ;;  %v2454_v28 = vor.u32 %v2453_v10, %v2452_v49  ;;  %v19623_v19 = vshrl.u32 %v12392_v30, 16  ;;  %v2470_v49 = vrot.slane %v19627_v60, 2 }
 0x245   : >> { %2558 = vrot.lane.b32.xlu0 %v2413_v37, %s11038_s27  ;;  %v12906_v4 = vpop.permute.xlu2 %2328  ;;  %v19621_v37 = vshrl.u32 %v12301_v41, 16  ;;  %v2446_v1 = vor.u32 %v2445_v29, %v2444_v25  ;;  %v19624_v41 = vshll.u32 %v12392_v30, 16  ;;  %v19628_v10 = vshrl.u32 %v12397_v6, 16 }
 0x246   : >> { %19612 = vst [vmem:[#allocation162_spill] sm:$0xff] %v12906_v4  ;;  %v12908_v16 = vpop.permute.xlu1 %2236  ;;  %v2465_v44 = vrot.slane %v19623_v19, 1  ;;  %v19629_v29 = vshll.u32 %v12397_v6, 16  ;;  %v2477_v6 = vshrl.u32 %v12462_v38, 16  ;;  %v10726_v4 = vld [vmem:[%s11183_s14 + $0xe8] sm:$0xff] }
 0x247   : >> { %19613 = vst [vmem:[#allocation163_spill] sm:$0xff] %v12908_v16  ;;  %v12910_v59 = vpop.permute.xlu0 %2234  ;;  %v2441_v40 = vrot.slane %v19621_v37, 1  ;;  %v2466_v24 = vrot.slane %v19624_v41, 2  ;;  %v2462_v25 = vrot.slane %v19628_v10, 1  ;;  %v2455_v37 = vsel %vm998_vm2, %v2450_v27, %v2454_v28 }
 0x248   : >> { %19614 = vst [vmem:[#allocation164_spill] sm:$0xff] %v12910_v59  ;;  %v2451_v30 = vsel %vm998_vm2, %v2446_v1, %v2450_v27  ;;  %v13213_v59 = vld [vmem:[%s11183_s14 + $0xbc] sm:$0xff] }
 0x249   : >> { %v2443_v52 = vor.u32 %v2442_v23, %v2441_v40  ;;  %v19630_v23 = vshll.u32 %v12359_v3, 16  ;;  %v2467_v41 = vor.u32 %v2466_v24, %v2465_v44  ;;  %v19632_v24 = vshrl.u32 %v12430_v17, 16 }
 0x24b   : >> { %2568 = vrot.lane.b32.xlu2 %v2440_v50, %s11038_s27  ;;  %v2456_v50 = vshrl.u32 %v12359_v3, 16  ;;  %v2447_v40 = vsel %vm998_vm2, %v2443_v52, %v2446_v1  ;;  %v2459_v19 = vrot.slane %v19630_v23, 2 }
 0x24c   : >> { %2566 = vrot.lane.b32.xlu1 %v2434_v26, %s11038_s27  ;;  %v19626_v26 = vshrl.u32 %v12389_v9, 16 }
 0x24d   : >> { %2564 = vrot.lane.b32.xlu0 %v2430_v22, %s11038_s27  ;;  %v12934_v53 = vpop.permute.xlu2 %2334  ;;  %v2463_v22 = vrot.slane %v19629_v29, 2  ;;  %v2458_v48 = vrot.slane %v2456_v50, 1 }
 0x24e   : >> { %v12936_v20 = vpop.permute.xlu1 %2314  ;;  %v2469_v0 = vrot.slane %v19626_v26, 1 }
 0x24f   : >> { %v12943_v46 = vpop.permute.xlu0 %2240  ;;  %v2464_v9 = vor.u32 %v2463_v22, %v2462_v25  ;;  %v2460_v1 = vor.u32 %v2459_v19, %v2458_v48  ;;  %v19634_v25 = vshrl.u32 %v12423_v51, 16  ;;  %v19635_v22 = vshll.u32 %v12423_v51, 16 }
 0x250   : >> { %19625 = vst [vmem:[#allocation165_spill] sm:$0xff] %v12943_v46  ;;  %v2471_v26 = vor.u32 %v2470_v49, %v2469_v0  ;;  %v2483_v0 = vrot.slane %v19632_v24, 1  ;;  %v19633_v49 = vshll.u32 %v12430_v17, 16  ;;  %v19637_v48 = vshll.u32 %v12409_v11, 16  ;;  %v13153_v46 = vld [vmem:[%s11183_s14 + $0x7c] sm:$0xff] }
 0x251   : >> { %v2468_v44 = vsel %vm998_vm2, %v2464_v9, %v2467_v41  ;;  %v2486_v29 = vrot.slane %v19634_v25, 1  ;;  %v2479_v19 = vrot.slane %v2477_v6, 1  ;;  %v2461_v24 = vsel %vm998_vm2, %v2454_v28, %v2460_v1 }
 0x252   : >> { %v2472_v50 = vsel %vm998_vm2, %v2467_v41, %v2471_v26  ;;  %v2484_v10 = vrot.slane %v19633_v49, 2  ;;  %v2474_v23 = vrot.slane %v19637_v48, 2  ;;  %v19638_v41 = vshll.u32 %v12462_v38, 16 }
 0x253   : >> { %2574 = vrot.lane.b32.xlu2 %v2455_v37, %s11038_s27  ;;  %v2487_v37 = vrot.slane %v19635_v22, 2  ;;  %v2498_v17 = vshrl.u32 %v12498_v14, 16  ;;  %v19641_v28 = vshrl.u32 %v12480_v47, 16 }
 0x254   : >> { %2572 = vrot.lane.b32.xlu1 %v2451_v30, %s11038_s27  ;;  %v19636_v30 = vshrl.u32 %v12409_v11, 16  ;;  %v2480_v9 = vrot.slane %v19638_v41, 2  ;;  %v2485_v51 = vor.u32 %v2484_v10, %v2483_v0  ;;  %v19643_v41 = vshll.u32 %v12498_v14, 16 }
 0x255   : >> { %2570 = vrot.lane.b32.xlu0 %v2447_v40, %s11038_s27  ;;  %v12962_v60 = vpop.permute.xlu2 %2340  ;;  %v2488_v49 = vor.u32 %v2487_v37, %v2486_v29  ;;  %v2494_v1 = vrot.slane %v19641_v28, 1  ;;  %v2500_v48 = vrot.slane %v2498_v17, 1  ;;  %v19644_v0 = vshrl.u32 %v12443_v57, 16 }
 0x256   : >> { %19631 = vst [vmem:[#allocation166_spill] sm:$0xff] %v12962_v60  ;;  %v12964_v27 = vpop.permute.xlu1 %2320  ;;  %v2473_v40 = vrot.slane %v19636_v30, 1  ;;  %v2481_v22 = vor.u32 %v2480_v9, %v2479_v19  ;;  %v19645_v29 = vshll.u32 %v12443_v57, 16  ;;  %v2658_v60 = vrot.slane %v10726_v4, 2  ;;  %v10467_v4 = vld [vmem:[%s19015_s1 + $0x8] sm:$0xff] }
 0x257   : >> { %v12966_v52 = vpop.permute.xlu0 %2318  ;;  %v2490_v10 = vrot.slane %v19644_v0, 1 }
 0x258   : >> { %v2475_v25 = vor.u32 %v2474_v23, %v2473_v40  ;;  %v2491_v37 = vrot.slane %v19645_v29, 2  ;;  %v2489_v40 = vsel %vm998_vm2, %v2485_v51, %v2488_v49 }
 0x25a   : >> { %v2482_v23 = vsel %vm998_vm2, %v2475_v25, %v2481_v22  ;;  %v2476_v19 = vsel %vm998_vm2, %v2471_v26, %v2475_v25  ;;  %v2492_v17 = vor.u32 %v2491_v37, %v2490_v10  ;;  %v19647_v26 = vshrl.u32 %v12521_v8, 16 }
 0x25b   : >> { %2580 = vrot.lane.b32.xlu2 %v2472_v50, %s11038_s27  ;;  %v19642_v50 = vshll.u32 %v12480_v47, 16  ;;  %v19651_v10 = vshrl.u32 %v12496_v62, 16  ;;  %v19652_v37 = vshll.u32 %v12496_v62, 16 }
 0x25c   : >> { %2578 = vrot.lane.b32.xlu1 %v2468_v44, %s11038_s27  ;;  %v2511_v25 = vrot.slane %v19647_v26, 1 }
 0x25d   : >> { %2576 = vrot.lane.b32.xlu0 %v2461_v24, %s11038_s27  ;;  %v12989_v11 = vpop.permute.xlu2 %2346  ;;  %v2495_v44 = vrot.slane %v19642_v50, 2  ;;  %v2501_v24 = vrot.slane %v19643_v41, 2  ;;  %v19648_v41 = vshll.u32 %v12521_v8, 16  ;;  %v2507_v29 = vrot.slane %v19651_v10, 1 }
 0x25e   : >> { %v12991_v6 = vpop.permute.xlu1 %2326  ;;  %v19654_v8 = vshll.u32 %v12475_v55, 16 }
 0x25f   : >> { %19639 = vst [vmem:[#allocation167_spill] sm:$0xff] %v12991_v6  ;;  %v12993_v30 = vpop.permute.xlu0 %2324  ;;  %v2496_v47 = vor.u32 %v2495_v44, %v2494_v1  ;;  %v2502_v9 = vor.u32 %v2501_v24, %v2500_v48  ;;  %v2512_v1 = vrot.slane %v19648_v41, 2  ;;  %v19649_v44 = vshrl.u32 %v12514_v58, 16 }
 0x260   : >> { %19640 = vst [vmem:[#allocation168_spill] sm:$0xff] %v12993_v30  ;;  %v19650_v24 = vshll.u32 %v12514_v58, 16 }
 0x261   : >> { %v2503_v51 = vsel %vm998_vm2, %v2496_v47, %v2502_v9  ;;  %v2497_v22 = vsel %vm998_vm2, %v2492_v17, %v2496_v47  ;;  %v2515_v48 = vrot.slane %v19649_v44, 1  ;;  %v2505_v9 = vrot.slane %v19654_v8, 2 }
 0x262   : >> { %v2516_v0 = vrot.slane %v19650_v24, 2  ;;  %v2513_v58 = vor.u32 %v2512_v1, %v2511_v25  ;;  %v19661_v1 = vshll.u32 %v12561_v33, 16 }
 0x263   : >> { %2586 = vrot.lane.b32.xlu2 %v2489_v40, %s11038_s27  ;;  %v2508_v40 = vrot.slane %v19652_v37, 2  ;;  %v19660_v37 = vshrl.u32 %v12561_v33, 16 }
 0x264   : >> { %2584 = vrot.lane.b32.xlu1 %v2482_v23, %s11038_s27  ;;  %v2493_v23 = vsel %vm998_vm2, %v2488_v49, %v2492_v17  ;;  %v2517_v26 = vor.u32 %v2516_v0, %v2515_v48  ;;  %v2519_v17 = vshrl.u32 %v12533_v35, 16  ;;  %v2533_v48 = vrot.slane %v19661_v1, 2 }
 0x265   : >> { %2582 = vrot.lane.b32.xlu0 %v2476_v19, %s11038_s27  ;;  %v13011_v28 = vpop.permute.xlu2 %2352  ;;  %v19653_v19 = vshrl.u32 %v12475_v55, 16  ;;  %v2509_v41 = vor.u32 %v2508_v40, %v2507_v29  ;;  %v19658_v55 = vshrl.u32 %v12566_v21, 16  ;;  %v2532_v25 = vrot.slane %v19660_v37, 1 }
 0x266   : >> { %19646 = vst [vmem:[#allocation169_spill] sm:$0xff] %v13011_v28  ;;  %v13013_v50 = vpop.permute.xlu1 %2332  ;;  %v19662_v0 = vshrl.u32 %v12571_v42, 16  ;;  %v19663_v40 = vshll.u32 %v12571_v42, 16  ;;  %v2540_v42 = vshrl.u32 %v12625_v39, 16  ;;  %v10727_v28 = vld [vmem:[%s11183_s14 + $0xd8] sm:$0xff] }
 0x267   : >> { %v13015_v57 = vpop.permute.xlu0 %2330  ;;  %v2504_v47 = vrot.slane %v19653_v19, 1  ;;  %v2528_v10 = vrot.slane %v19658_v55, 1  ;;  %v2518_v19 = vsel %vm998_vm2, %v2513_v58, %v2517_v26  ;;  %v2655_v7 = vrot.slane %v10727_v28, 2 }
 0x268   : >> { %v2525_v29 = vrot.slane %v19662_v0, 1  ;;  %v11040_v28 = vmov 65535  }
 0x269   : >> { %v2506_v49 = vor.u32 %v2505_v9, %v2504_v47  ;;  %v2514_v47 = vsel %vm998_vm2, %v2509_v41, %v2513_v58  ;;  %v19664_v9 = vshll.u32 %v12533_v35, 16 }
 0x26b   : >> { %2592 = vrot.lane.b32.xlu2 %v2503_v51, %s11038_s27  ;;  %v19659_v51 = vshll.u32 %v12566_v21, 16  ;;  %v2510_v8 = vsel %vm998_vm2, %v2506_v49, %v2509_v41  ;;  %v2521_v21 = vrot.slane %v2519_v17, 1  ;;  %v2522_v55 = vrot.slane %v19664_v9, 2 }
 0x26c   : >> { %2590 = vrot.lane.b32.xlu1 %v2497_v22, %s11038_s27 }
 0x26d   : >> { %2588 = vrot.lane.b32.xlu0 %v2493_v23, %s11038_s27  ;;  %v13039_v44 = vpop.permute.xlu2 %2358  ;;  %v2529_v22 = vrot.slane %v19659_v51, 2  ;;  %v2526_v23 = vrot.slane %v19663_v40, 2  ;;  %v2534_v51 = vor.u32 %v2533_v48, %v2532_v25  ;;  %v2523_v41 = vor.u32 %v2522_v55, %v2521_v21  ;;  %v13090_v21 = vld [vmem:[%s11183_s14 + $0x2c] sm:$0xff] }
 0x26e   : >> { %19655 = vst [vmem:[#allocation170_spill] sm:$0xff] %v13039_v44  ;;  %v13041_v62 = vpop.permute.xlu1 %2338  ;;  %v19669_v25 = vshll.u32 %v12584_v12, 16  ;;  %v19670_v40 = vshll.u32 %v12625_v39, 16 }
 0x26f   : >> { %19656 = vst [vmem:[#allocation171_spill] sm:$0xff] %v13041_v62  ;;  %v13044_v24 = vpop.permute.xlu0 %2336  ;;  %v2530_v33 = vor.u32 %v2529_v22, %v2528_v10  ;;  %v2527_v37 = vor.u32 %v2526_v23, %v2525_v29  ;;  %v19668_v10 = vshrl.u32 %v12584_v12, 16  ;;  %v2542_v29 = vrot.slane %v2540_v42, 1 }
 0x270   : >> { %19657 = vst [vmem:[#allocation172_spill] sm:$0xff] %v13044_v24  ;;  %v2537_v48 = vrot.slane %v19669_v25, 2  ;;  %v2543_v23 = vrot.slane %v19670_v40, 2  ;;  %v2611_v12 = vrot.slane %v13090_v21, 2  ;;  %v13111_v25 = vld [vmem:[%s11183_s14 + $0x34] sm:$0xff] }
 0x271   : >> { %v2535_v17 = vsel %vm998_vm2, %v2530_v33, %v2534_v51  ;;  %v2531_v0 = vsel %vm998_vm2, %v2527_v37, %v2530_v33  ;;  %v2536_v22 = vrot.slane %v19668_v10, 1 }
 0x272   : >> { %v2544_v55 = vor.u32 %v2543_v23, %v2542_v29 }
 0x273   : >> { %2598 = vrot.lane.b32.xlu2 %v2518_v19, %s11038_s27  ;;  %v2524_v19 = vsel %vm998_vm2, %v2517_v26, %v2523_v41  ;;  %v2538_v9 = vor.u32 %v2537_v48, %v2536_v22  ;;  %v2617_v22 = vrot.slane %v12189_v32, 2  ;;  %v2613_v48 = vrot.slane %v13111_v25, 2  ;;  %v10709_v32 = vld [vmem:[%s11183_s14 + $0x58] sm:$0xff] }
 0x274   : >> { %2596 = vrot.lane.b32.xlu1 %v2514_v47, %s11038_s27  ;;  %v13086_v47 = vld [vmem:[%s11183_s14 + $0x24] sm:$0xff] }
 0x275   : >> { %2594 = vrot.lane.b32.xlu0 %v2510_v8, %s11038_s27  ;;  %v13067_v1 = vpop.permute.xlu2 %2364  ;;  %v2610_v8 = vrot.slane %v13086_v47, 2  ;;  %v2545_v41 = vsel %vm998_vm2, %v2538_v9, %v2544_v55  ;;  %v10710_v55 = vld [vmem:[%s11183_s14 + $0x60] sm:$0xff] }
 0x276   : >> { %19665 = vst [vmem:[#allocation173_spill] sm:$0xff] %v13067_v1  ;;  %v13069_v58 = vpop.permute.xlu1 %2344  ;;  %v9693_v1 = vld [vmem:[%s11183_s14 + $0x8c] sm:$0x3] }
 0x277   : >> { %19666 = vst [vmem:[#allocation174_spill] sm:$0xff] %v13069_v58  ;;  %v13071_v49 = vpop.permute.xlu0 %2342  ;;  %v2612_v42 = vsel %vm1231_vm3, %v2610_v8, %v2611_v12  ;;  %v2614_v8 = vsel %vm1231_vm3, %v2611_v12, %v2613_v48  ;;  %v10716_v58 = vld [vmem:[%s11183_s14 + $0x90] sm:$0xff] }
 0x278   : >> { %19667 = vst [vmem:[#allocation175_spill] sm:$0xff] %v13071_v49  ;;  %v2637_v16 = vrot.slane %v10716_v58, 2 }
 0x27b   : >> { %2604 = vrot.lane.b32.xlu2 %v2535_v17, %s11038_s27  ;;  %v2539_v17 = vsel %vm998_vm2, %v2534_v51, %v2538_v9  ;;  %v2622_v9 = vrot.slane %v10709_v32, 2 }
 0x27c   : >> { %2602 = vrot.lane.b32.xlu1 %v2531_v0, %s11038_s27  ;;  %v13106_v0 = vld [vmem:[%s11183_s14 + $0x3c] sm:$0xff] }
 0x27d   : >> { %2600 = vrot.lane.b32.xlu0 %v2524_v19, %s11038_s27  ;;  %v13093_v33 = vpop.permute.xlu2 %2370  ;;  %v2615_v10 = vrot.slane %v13106_v0, 2 }
 0x27e   : >> { %19671 = vst [vmem:[#allocation176_spill] sm:$0xff] %v13093_v33  ;;  %v13095_v26 = vpop.permute.xlu1 %2350 }
 0x27f   : >> { %19672 = vst [vmem:[#allocation177_spill] sm:$0xff] %v13095_v26  ;;  %v13097_v37 = vpop.permute.xlu0 %2348  ;;  %v2618_v23 = vsel %vm1231_vm3, %v2615_v10, %v2617_v22  ;;  %v2616_v19 = vsel %vm1231_vm3, %v2613_v48, %v2615_v10  ;;  %v13137_v22 = vld [vmem:[%s11183_s14 + $0x48] sm:$0xff]  ;;  %v10736_v26 = vld [vmem:[%s11183_s14 + $0x120] sm:$0xff] }
 0x280   : >> { %19673 = vst [vmem:[#allocation178_spill] sm:$0xff] %v13097_v37  ;;  %v2619_v48 = vrot.slane %v13137_v22, 2 }
 0x283   : >> { %2682 = vrot.lane.b32.xlu2 %v2612_v42, %s11039_s30  ;;  %v2624_v42 = vrot.slane %v10710_v55, 2  ;;  %v13149_v55 = vld [vmem:[%s11183_s14 + $0x74] sm:$0xff] }
 0x284   : >> { %2608 = vrot.lane.b32.xlu1 %v2545_v41, %s11038_s27  ;;  %v13129_v41 = vld [vmem:[%s11183_s14 + $0x50] sm:$0xff] }
 0x285   : >> { %2606 = vrot.lane.b32.xlu0 %v2539_v17, %s11038_s27  ;;  %v13114_v51 = vpop.permute.xlu2 %2376  ;;  %19677 = vst [vmem:[#allocation182_spill] sm:$0xff] %v13129_v41  ;;  %v2620_v17 = vrot.slane %v13129_v41, 2 }
 0x286   : >> { %19674 = vst [vmem:[#allocation179_spill] sm:$0xff] %v13114_v51  ;;  %v13116_v29 = vpop.permute.xlu1 %2356  ;;  %v2629_v51 = vrot.slane %v13149_v55, 2 }
 0x287   : >> { %19675 = vst [vmem:[#allocation180_spill] sm:$0xff] %v13116_v29  ;;  %v13118_v40 = vpop.permute.xlu0 %2354  ;;  %v2621_v32 = vsel %vm1231_vm3, %v2619_v48, %v2620_v17  ;;  %v10717_v29 = vld [vmem:[%s11183_s14 + $0x98] sm:$0xff] }
 0x288   : >> { %19676 = vst [vmem:[#allocation181_spill] sm:$0xff] %v13118_v40  ;;  %v2638_v33 = vrot.slane %v10717_v29, 2 }
 0x28b   : >> { %2688 = vrot.lane.b32.xlu2 %v2618_v23, %s11039_s30 }
 0x28c   : >> { %2686 = vrot.lane.b32.xlu1 %v2616_v19, %s11039_s30  ;;  %v2625_v19 = vsel %vm1231_vm3, %v2622_v9, %v2624_v42 }
 0x28d   : >> { %2684 = vrot.lane.b32.xlu0 %v2614_v8, %s11039_s30  ;;  %v13132_v10 = vpop.permute.xlu2 %2550  ;;  %v2623_v8 = vsel %vm1231_vm3, %v2620_v17, %v2622_v9  ;;  %v2628_v9 = vrot.slane %v13157_v2, 2 }
 0x28e   : >> { %v13134_v12 = vpop.permute.xlu1 %2362 }
 0x28f   : >> { %v13140_v23 = vpop.permute.xlu0 %2360  ;;  %v2630_v44 = vsel %vm1231_vm3, %v2628_v9, %v2629_v51 }
 0x290   : >> { %19678 = vst [vmem:[#allocation183_spill] sm:$0xff] %v13140_v23  ;;  %v2631_v23 = vrot.slane %v13153_v46, 2 }
 0x293   : >> { %2694 = vrot.lane.b32.xlu2 %v2625_v19, %s11039_s30  ;;  %v2626_v19 = vrot.slane %v12288_v15, 2  ;;  %v13176_v15 = vld [vmem:[%s11183_s14 + $0x84] sm:$0xff] }
 0x294   : >> { %2692 = vrot.lane.b32.xlu1 %v2623_v8, %s11039_s30  ;;  %19682 = vst [vmem:[#allocation187_spill] sm:$0xff] %v13176_v15  ;;  %v2633_v49 = vrot.slane %v13176_v15, 2  ;;  %v3737_v15 = vunpack.c.l.b16 %v9693_v1 }
 0x295   : >> { %2690 = vrot.lane.b32.xlu0 %v2621_v32, %s11039_s30  ;;  %v13160_v17 = vpop.permute.xlu2 %2556  ;;  %v2632_v32 = vsel %vm1231_vm3, %v2629_v51, %v2631_v23  ;;  %v2627_v56 = vsel %vm1231_vm3, %v2624_v42, %v2626_v19  ;;  %v2635_v51 = vrot.slane %v12324_v61, 2  ;;  %v10719_v61 = vld [vmem:[%s11183_s14 + $0xa8] sm:$0xff] }
 0x296   : >> { %19679 = vst [vmem:[#allocation184_spill] sm:$0xff] %v13160_v17  ;;  %v13162_v48 = vpop.permute.xlu1 %2368  ;;  %v2634_v58 = vsel %vm1231_vm3, %v2631_v23, %v2633_v49  ;;  %v2642_v29 = vrot.slane %v10719_v61, 2 }
 0x297   : >> { %19680 = vst [vmem:[#allocation185_spill] sm:$0xff] %v13162_v48  ;;  %v13165_v8 = vpop.permute.xlu0 %2366 }
 0x298   : >> { %19681 = vst [vmem:[#allocation186_spill] sm:$0xff] %v13165_v8 }
 0x29b   : >> { %2700 = vrot.lane.b32.xlu2 %v2632_v32, %s11039_s30  ;;  %v2644_v32 = vrot.slane %v12359_v3, 2  ;;  %v13208_v3 = vld [vmem:[%s11183_s14 + $0xc4] sm:$0xff] }
 0x29c   : >> { %2698 = vrot.lane.b32.xlu1 %v2630_v44, %s11039_s30  ;;  %v2636_v44 = vsel %vm1231_vm3, %v2633_v49, %v2635_v51  ;;  %19686 = vst [vmem:[#allocation191_spill] sm:$0xff] %v13208_v3 }
 0x29d   : >> { %2696 = vrot.lane.b32.xlu0 %v2627_v56, %s11039_s30  ;;  %v13180_v9 = vpop.permute.xlu2 %2562  ;;  %v2639_v56 = vsel %vm1231_vm3, %v2637_v16, %v2638_v33  ;;  %v2645_v23 = vsel %vm1231_vm3, %v2642_v29, %v2644_v32  ;;  %v13221_v32 = vld [vmem:[%s11183_s14 + $0xb4] sm:$0xff] }
 0x29e   : >> { %v13182_v42 = vpop.permute.xlu1 %2374 }
 0x29f   : >> { %19683 = vst [vmem:[#allocation188_spill] sm:$0xff] %v13182_v42  ;;  %v13184_v19 = vpop.permute.xlu0 %2372  ;;  %v10720_v42 = vld [vmem:[%s11183_s14 + $0xa0] sm:$0xff] }
 0x2a0   : >> { %19684 = vst [vmem:[#allocation189_spill] sm:$0xff] %v13184_v19  ;;  %v2640_v19 = vrot.slane %v10720_v42, 2  ;;  %v2649_v42 = vrot.slane %v13208_v3, 2  ;;  %v13321_v3 = vld [vmem:[%s11183_s14 + $0x6c] sm:$0xff] }
 0x2a1   : >> { %19701 = vst [vmem:[#allocation206_spill] sm:$0xff] %v13321_v3 }
 0x2a3   : >> { %2706 = vrot.lane.b32.xlu2 %v2639_v56, %s11039_s30  ;;  %v2643_v56 = vsel %vm1231_vm3, %v2640_v19, %v2642_v29  ;;  %v2647_v29 = vrot.slane %v13213_v59, 2 }
 0x2a4   : >> { %2704 = vrot.lane.b32.xlu1 %v2636_v44, %s11039_s30  ;;  %v2641_v44 = vsel %vm1231_vm3, %v2638_v33, %v2640_v19 }
 0x2a5   : >> { %2702 = vrot.lane.b32.xlu0 %v2634_v58, %s11039_s30  ;;  %v13195_v16 = vpop.permute.xlu2 %2568  ;;  %v10722_v58 = vld [vmem:[%s11183_s14 + $0xcc] sm:$0xff] }
 0x2a6   : >> { %19685 = vst [vmem:[#allocation190_spill] sm:$0xff] %v13195_v16  ;;  %v13197_v51 = vpop.permute.xlu1 %2548  ;;  %v2651_v61 = vrot.slane %v10722_v58, 2  ;;  %v2650_v58 = vsel %vm1231_vm3, %v2647_v29, %v2649_v42 }
 0x2a7   : >> { %v13199_v49 = vpop.permute.xlu0 %2546 }
 0x2ab   : >> { %2712 = vrot.lane.b32.xlu2 %v2645_v23, %s11039_s30  ;;  %v2646_v23 = vrot.slane %v13221_v32, 2 }
 0x2ac   : >> { %2710 = vrot.lane.b32.xlu1 %v2643_v56, %s11039_s30 }
 0x2ad   : >> { %2708 = vrot.lane.b32.xlu0 %v2641_v44, %s11039_s30  ;;  %v13216_v33 = vpop.permute.xlu2 %2574  ;;  %v2652_v44 = vsel %vm1231_vm3, %v2649_v42, %v2651_v61  ;;  %v2648_v40 = vsel %vm1231_vm3, %v2646_v23, %v2647_v29  ;;  %v2653_v42 = vrot.slane %v12462_v38, 2  ;;  %v13252_v38 = vld [vmem:[%s11183_s14 + $0xfc] sm:$0xff] }
 0x2ae   : >> { %19687 = vst [vmem:[#allocation192_spill] sm:$0xff] %v13216_v33  ;;  %v13218_v19 = vpop.permute.xlu1 %2554  ;;  %v10725_v33 = vld [vmem:[%s11183_s14 + $0xe0] sm:$0xff] }
 0x2af   : >> { %v13224_v56 = vpop.permute.xlu0 %2552  ;;  %v2656_v48 = vrot.slane %v10725_v33, 2  ;;  %v2654_v33 = vsel %vm1231_vm3, %v2651_v61, %v2653_v42  ;;  %v10730_v61 = vld [vmem:[%s11183_s14 + $0xf0] sm:$0xff] }
 0x2b0   : >> { %v2660_v42 = vrot.slane %v10730_v61, 2 }
 0x2b1   : >> { %v2659_v23 = vsel %vm1231_vm3, %v2656_v48, %v2658_v60 }
 0x2b3   : >> { %2718 = vrot.lane.b32.xlu2 %v2652_v44, %s11039_s30  ;;  %v3077_v44 = vsel %vm861_vm1, 4294967295, %v11040_v28  ;;  %v2662_v28 = vrot.slane %v12498_v14, 2  ;;  %v2661_v14 = vsel %vm1231_vm3, %v2658_v60, %v2660_v42 }
 0x2b4   : >> { %2716 = vrot.lane.b32.xlu1 %v2650_v58, %s11039_s30  ;;  %v2664_v58 = vrot.slane %v13252_v38, 2 }
 0x2b5   : >> { %2714 = vrot.lane.b32.xlu0 %v2648_v40, %s11039_s30  ;;  %v13235_v8 = vpop.permute.xlu2 %2580  ;;  %v2657_v40 = vsel %vm1231_vm3, %v2655_v7, %v2656_v48  ;;  %v13259_v7 = vld [vmem:[%s11183_s14 + $0x104] sm:$0xff]  ;;  %v2663_v61 = vsel %vm1231_vm3, %v2660_v42, %v2662_v28 }
 0x2b6   : >> { %19688 = vst [vmem:[#allocation193_spill] sm:$0xff] %v13235_v8  ;;  %v13237_v6 = vpop.permute.xlu1 %2560  ;;  %v2665_v48 = vrot.slane %v13259_v7, 2 }
 0x2b7   : >> { %19689 = vst [vmem:[#allocation194_spill] sm:$0xff] %v13237_v6  ;;  %v13240_v29 = vpop.permute.xlu0 %2558  ;;  %v13255_v6 = vsel %vm3076_vm4, %v3077_v44, 0 }
 0x2b8   : >> { %19690 = vst [vmem:[#allocation195_spill] sm:$0xff] %v13240_v29 }
 0x2b9   : >> { %19691 = vst [vmem:[#allocation196_spill] sm:$0xff] %v13255_v6 }
 0x2ba   : >> { %19692 = vst [vmem:[#allocation197_spill] sm:$0xff] %v13259_v7 }
 0x2bb   : >> { %2724 = vrot.lane.b32.xlu2 %v2659_v23, %s11039_s30  ;;  %v3080_v23 = vand.u32 %v10467_v4, %v13255_v6  ;;  %v13278_v4 = vld [vmem:[%s11183_s14 + $0x114] sm:$0xff] }
 0x2bc   : >> { %2722 = vrot.lane.b32.xlu1 %v2657_v40, %s11039_s30  ;;  %19694 = vst [vmem:[#allocation199_spill] sm:$0xff] %v13278_v4  ;;  %v2669_v6 = vrot.slane %v13278_v4, 2 }
 0x2bd   : >> { %2720 = vrot.lane.b32.xlu0 %v2654_v33, %s11039_s30  ;;  %v13265_v40 = vpop.permute.xlu2 %2586  ;;  %3089 = vmatpush.bf16.msra.mxu0 %v3080_v23  ;;  %v2666_v33 = vsel %vm1231_vm3, %v2664_v58, %v2665_v48  ;;  %v13283_v58 = vld [vmem:[%s11183_s14 + $0x10c] sm:$0xff] }
 0x2be   : >> { %19693 = vst [vmem:[#allocation198_spill] sm:$0xff] %v13265_v40  ;;  %v13267_v29 = vpop.permute.xlu1 %2566  ;;  %10569 = vmatpush.bf16.msra.mxu1 %v3080_v23  ;;  %10571 = vmatpush.bf16.msra.mxu3 %v3080_v23  ;;  %v2667_v28 = vrot.slane %v13283_v58, 2 }
 0x2bf   : >> { %v13269_v44 = vpop.permute.xlu0 %2564  ;;  %10570 = vmatpush.bf16.msra.mxu2 %v3080_v23  ;;  %v2671_v23 = vrot.slane %v12533_v35, 2  ;;  %19695 = vst [vmem:[#allocation200_spill] sm:$0xff] %v13283_v58  ;;  %v13298_v35 = vld [vmem:[%s11183_s14 + $0x48] sm:$0xff] }
 0x2c0   : >> { %v2670_v40 = vsel %vm1231_vm3, %v2667_v28, %v2669_v6  ;;  %v2668_v4 = vsel %vm1231_vm3, %v2665_v48, %v2667_v28  ;;  %v10735_v58 = vld [vmem:[%s11183_s14 + $0x128] sm:$0xff]  ;;  %v13328_v48 = vld [vmem:[%s11183_s14 + $0x60] sm:$0xff] }
 0x2c1   : >> { %v9684_v28 = vld [vmem:[%s11183_s14 + $0x68] sm:$0x3]  ;;  %v19710_v41 = vshll.u32 %v13328_v48, 16 }
 0x2c2   : >> { %v3736_v16 = vunpack.c.l.b16 %v9684_v28 }
 0x2c3   : >> { %2730 = vrot.lane.b32.xlu2 %v2666_v33, %s11039_s30 }
 0x2c4   : >> { %2728 = vrot.lane.b32.xlu1 %v2663_v61, %s11039_s30  ;;  %v13293_v61 = vld [vmem:[%s11183_s14 + $0x50] sm:$0xff]  ;;  %v13342_v28 = vpack.c.b16 %v3736_v16, %v3736_v16  ;;  %v2680_v16 = vrot.slane %v12625_v39, 2 }
 0x2c5   : >> { %2726 = vrot.lane.b32.xlu0 %v2661_v14, %s11039_s30  ;;  %v13286_v60 = vpop.permute.xlu2 %2592  ;;  %v2672_v14 = vsel %vm1231_vm3, %v2669_v6, %v2671_v23  ;;  %v2674_v23 = vrot.slane %v10735_v58, 2  ;;  %v19131_v13 = vshll.u32 %v13293_v61, 16  ;;  %v13309_v6 = vld [vmem:[%s11183_s14 + $0x58] sm:$0xff] }
 0x2c6   : >> { %19696 = vst [vmem:[#allocation201_spill] sm:$0xff] %v13286_v60  ;;  %v13288_v42 = vpop.permute.xlu1 %2572  ;;  %v10733_v60 = vld [vmem:[%s11183_s14 + $0x130] sm:$0xff] }
 0x2c7   : >> { %19697 = vst [vmem:[#allocation202_spill] sm:$0xff] %v13288_v42  ;;  %v13290_v33 = vpop.permute.xlu0 %2570  ;;  %v2676_v42 = vrot.slane %v10733_v60, 2  ;;  %v2673_v60 = vrot.slane %v10736_v26, 2  ;;  %v3762_v17 = vrot.slane %v19131_v13, 1  ;;  %v19135_v26 = vshrl.u32 %v13298_v35, 16  ;;  %v13340_v13 = vld [vmem:[%s11183_s14 + $0x74] sm:$0xff] }
 0x2c8   : >> { %19698 = vst [vmem:[#allocation203_spill] sm:$0xff] %v13290_v33  ;;  %v10734_v33 = vld [vmem:[%s11183_s14 + $0x138] sm:$0xff]  ;;  %v19714_v1 = vshll.u32 %v13340_v13, 16 }
 0x2c9   : >> { %v2678_v62 = vrot.slane %v10734_v33, 2  ;;  %v2675_v24 = vsel %vm1231_vm3, %v2673_v60, %v2674_v23  ;;  %19703 = vst [vmem:[#allocation207_spill] sm:$0xff] %v13340_v13 }
 0x2ca   : >> { %19704 = vst [vmem:[#allocation208_spill] sm:$0xff] %v13342_v28 }
 0x2cb   : >> { %2736 = vrot.lane.b32.xlu2 %v2672_v14, %s11039_s30  ;;  %v2679_v58 = vsel %vm1231_vm3, %v2676_v42, %v2678_v62 }
 0x2cc   : >> { %2734 = vrot.lane.b32.xlu1 %v2670_v40, %s11039_s30 }
 0x2cd   : >> { %2732 = vrot.lane.b32.xlu0 %v2668_v4, %s11039_s30  ;;  %v13313_v14 = vpop.permute.xlu2 %2598  ;;  %v2677_v4 = vsel %vm1231_vm3, %v2674_v23, %v2676_v42  ;;  %v19705_v23 = vshll.u32 %v13309_v6, 16 }
 0x2ce   : >> { %19699 = vst [vmem:[#allocation204_spill] sm:$0xff] %v13313_v14  ;;  %v13315_v40 = vpop.permute.xlu1 %2578  ;;  %v19133_v14 = vshrl.u32 %v13293_v61, 16 }
 0x2cf   : >> { %v13318_v33 = vpop.permute.xlu0 %2576  ;;  %v3770_v60 = vrot.slane %v19705_v23, 1 }
 0x2d0   : >> { %19700 = vst [vmem:[#allocation205_spill] sm:$0xff] %v13318_v33  ;;  %v19702_v33 = vshll.u32 %v13298_v35, 16 }
 0x2d2   : >> { %v3757_v30 = vrot.slane %v19702_v33, 1  ;;  %v3766_v33 = vor.u32 %v19133_v14, %v3762_v17  ;;  %v19709_v14 = vshll.u32 %v13321_v3, 16 }
 0x2d3   : >> { %2742 = vrot.lane.b32.xlu2 %v2679_v58, %s11039_s30 }
 0x2d4   : >> { %2740 = vrot.lane.b32.xlu1 %v2677_v4, %s11039_s30  ;;  %v3758_v58 = vor.u32 %v3757_v30, %v19135_v26  ;;  %v3793_v43 = vrot.slane %v19709_v14, 1  ;;  %v3778_v30 = vrot.slane %v19710_v41, 1  ;;  %v3771_v39 = vsel %vm508_vm0, %v3766_v33, %v3770_v60 }
 0x2d5   : >> { %2738 = vrot.lane.b32.xlu0 %v2675_v24, %s11039_s30  ;;  %v13352_v4 = vpop.permute.xlu2 %2604  ;;  %v13374_v24 = vld [vmem:[%s11183_s14 + $0x7c] sm:$0xff]  ;;  %v2681_v14 = vsel %vm1231_vm3, %v2678_v62, %v2680_v16  ;;  %v2747_v41 = vsel %vm1368_vm5, %v13086_v47, %v12660_v5  ;;  %v19715_v62 = vshrl.u32 %v13328_v48, 16 }
 0x2d6   : >> { %19706 = vst [vmem:[#allocation209_spill] sm:$0xff] %v13352_v4  ;;  %v13354_v42 = vpop.permute.xlu1 %2584  ;;  %v19713_v4 = vshrl.u32 %v13321_v3, 16  ;;  %v2811_v5 = vsel %vm1433_vm6, %v2747_v41, %v12936_v20  ;;  %v19138_v47 = vshll.u32 %v13374_v24, 16  ;;  %v13408_v41 = vld [vmem:[%s11183_s14 + $0xa0] sm:$0xff] }
 0x2d7   : >> { %19707 = vst [vmem:[#allocation210_spill] sm:$0xff] %v13354_v42  ;;  %v13358_v7 = vpop.permute.xlu0 %2582  ;;  %v13369_v42 = vld [vmem:[%s11183_s14 + $0x84] sm:$0xff]  ;;  %v3782_v33 = vor.u32 %v19715_v62, %v3778_v30 }
 0x2d8   : >> { %19708 = vst [vmem:[#allocation211_spill] sm:$0xff] %v13358_v7  ;;  %v3763_v7 = vsel %vm508_vm0, %v3758_v58, %v3762_v17  ;;  %v3794_v26 = vor.u32 %v3793_v43, %v19713_v4  ;;  %v3798_v17 = vrot.slane %v19714_v1, 1  ;;  %v19716_v58 = vshll.u32 %v13342_v28, 16  ;;  %v13460_v28 = vld [vmem:[%s11183_s14 + $0xbc] sm:$0xff] }
 0x2d9   : >> { %19711 = vst [vmem:[#allocation212_spill] sm:$0xff] %v13369_v42  ;;  %v19137_v23 = vshll.u32 %v13369_v42, 16  ;;  %v13395_v43 = vpack.c.b16 %v3737_v15, %v3737_v15  ;;  %v19719_v1 = vshrl.u32 %v13309_v6, 16 }
 0x2da   : >> { %19712 = vst [vmem:[#allocation213_spill] sm:$0xff] %v13374_v24  ;;  %v3786_v16 = vrot.slane %v19716_v58, 1  ;;  %v3799_v15 = vsel %vm508_vm0, %v3794_v26, %v3798_v17  ;;  %v19148_v26 = vshrl.u32 %v13340_v13, 16 }
 0x2db   : >> { %4042 = vrot.lane.b32.xlu2 %v3771_v39, %s11036_s23  ;;  %19717 = vst [vmem:[#allocation214_spill] sm:$0xff] %v13395_v43  ;;  %v3774_v62 = vor.u32 %v19719_v1, %v3770_v60  ;;  %v3814_v58 = vrot.slane %v19137_v23, 1  ;;  %v19139_v60 = vshrl.u32 %v13369_v42, 16  ;;  %v19142_v1 = vshll.u32 %v13395_v43, 16  ;;  %v9702_v43 = vld [vmem:[%s11183_s14 + $0xb0] sm:$0x3] }
 0x2dc   : >> { %4040 = vrot.lane.b32.xlu1 %v3763_v7, %s11036_s23  ;;  %v2875_v7 = vsel %vm1498_vm7, %v2811_v5, %v13199_v49  ;;  %19721 = vst [vmem:[#allocation217_spill] sm:$0xff] %v13408_v41  ;;  %v3787_v49 = vsel %vm508_vm0, %v3782_v33, %v3786_v16  ;;  %v13416_v5 = vld [vmem:[%s11183_s14 + $0x98] sm:$0xff]  ;;  %v13432_v16 = vld [vmem:[%s11183_s14 + $0xa8] sm:$0xff]  ;;  %v3802_v23 = vor.u32 %v19148_v26, %v3798_v17 }
 0x2dd   : >> { %2744 = vrot.lane.b32.xlu0 %v2681_v14, %s11039_s30  ;;  %v2683_v4 = vpop.permute.xlu2 %2682  ;;  %19722 = vst [vmem:[#allocation218_spill] sm:$0xff] %v13416_v5  ;;  %v13465_v33 = vld [vmem:[%s11183_s14 + $0xb4] sm:$0xff] }
 0x2de   : >> { %v13400_v39 = vpop.permute.xlu1 %2590  ;;  %v2939_v14 = vsel %vm1563_vm9, %v2875_v7, %v2683_v4  ;;  %v3806_v7 = vrot.slane %v19138_v47, 1  ;;  %v19145_v4 = vshrl.u32 %v13374_v24, 16  ;;  %19724 = vst [vmem:[#allocation220_spill] sm:$0xff] %v13432_v16 }
 0x2df   : >> { %19718 = vst [vmem:[#allocation215_spill] sm:$0xff] %v13400_v39  ;;  %v13404_v20 = vpop.permute.xlu0 %2588  ;;  %9606 = vmatmul.msk.bf16.vlgmr.msra.gmra.mxu0 %vm3010_vm8, %v2939_v14  ;;  %v3779_v14 = vsel %vm508_vm0, %v3774_v62, %v3778_v30  ;;  %v13426_v39 = vld [vmem:[%s11183_s14 + $0x90] sm:$0xff]  ;;  %v3818_v30 = vor.u32 %v19139_v60, %v3814_v58  ;;  %v3822_v62 = vrot.slane %v19142_v1, 1  ;;  %v19726_v60 = vshll.u32 %v13408_v41, 16 }
 0x2e0   : >> { %19720 = vst [vmem:[#allocation216_spill] sm:$0xff] %v13404_v20  ;;  %v3810_v47 = vor.u32 %v19145_v4, %v3806_v7  ;;  %v19727_v4 = vshll.u32 %v13416_v5, 16  ;;  %v19730_v42 = vshll.u32 %v13426_v39, 16 }
 0x2e1   : >> { %19723 = vst [vmem:[#allocation219_spill] sm:$0xff] %v13426_v39  ;;  %v3842_v20 = vrot.slane %v19726_v60, 1  ;;  %v3823_v17 = vsel %vm508_vm0, %v3818_v30, %v3822_v62  ;;  %v3807_v60 = vsel %vm508_vm0, %v3802_v23, %v3806_v7  ;;  %v19731_v30 = vshrl.u32 %v13408_v41, 16 }
 0x2e2   : >> { %v3834_v8 = vrot.slane %v19727_v4, 1  ;;  %19728 = vst [vmem:[#allocation222_spill] sm:$0xff] %v13460_v28  ;;  %v3815_v26 = vsel %vm508_vm0, %v3810_v47, %v3814_v58  ;;  %v3829_v37 = vrot.slane %v19730_v42, 1  ;;  %v3738_v4 = vunpack.c.l.b16 %v9702_v43  ;;  %v13482_v42 = vld [vmem:[%s11183_s14 + $0xc4] sm:$0xff] }
 0x2e3   : >> { %4048 = vrot.lane.b32.xlu2 %v3799_v15, %s11036_s23  ;;  %19729 = vst [vmem:[#allocation223_spill] sm:$0xff] %v13465_v33  ;;  %v3846_v62 = vor.u32 %v19731_v30, %v3842_v20  ;;  %v19732_v47 = vshll.u32 %v13432_v16, 16  ;;  %v19735_v30 = vshrl.u32 %v13426_v39, 16  ;;  %v19739_v43 = vshll.u32 %v13460_v28, 16 }
 0x2e4   : >> { %4046 = vrot.lane.b32.xlu1 %v3787_v49, %s11036_s23  ;;  %v13492_v41 = vpack.c.b16 %v3738_v4, %v3738_v4  ;;  %v19160_v39 = vshrl.u32 %v13460_v28, 16  ;;  %v9720_v4 = vld [vmem:[%s11183_s14 + $0xf8] sm:$0x3] }
 0x2e5   : >> { %4044 = vrot.lane.b32.xlu0 %v3779_v14, %s11036_s23  ;;  %v13442_v15 = vpop.permute.xlu2 %2688  ;;  %v3850_v58 = vrot.slane %v19732_v47, 1  ;;  %v3830_v47 = vor.u32 %v3829_v37, %v19735_v30  ;;  %v3870_v3 = vrot.slane %v19739_v43, 1  ;;  %v19161_v37 = vshll.u32 %v13482_v42, 16  ;;  %v13518_v43 = vld [vmem:[%s11183_s14 + $0xe0] sm:$0xff] }
 0x2e6   : >> { %v13444_v49 = vpop.permute.xlu1 %2596  ;;  %19736 = vst [vmem:[#allocation226_spill] sm:$0xff] %v13492_v41  ;;  %v19740_v30 = vshll.u32 %v13465_v33, 16 }
 0x2e7   : >> { %19725 = vst [vmem:[#allocation221_spill] sm:$0xff] %v13444_v49  ;;  %v13449_v14 = vpop.permute.xlu0 %2594  ;;  %v19153_v49 = vshrl.u32 %v13416_v5, 16  ;;  %v3835_v24 = vsel %vm508_vm0, %v3830_v47, %v3834_v8  ;;  %v3878_v47 = vrot.slane %v19161_v37, 1  ;;  %v13555_v37 = vld [vmem:[%s11183_s14 + $0xe8] sm:$0xff] }
 0x2e8   : >> { %19741 = vst [vmem:[#allocation229_spill] sm:$0xff] %v13518_v43 }
 0x2e9   : >> { %v3838_v23 = vor.u32 %v19153_v49, %v3834_v8  ;;  %v13497_v49 = vld [vmem:[%s11183_s14 + $0xd8] sm:$0xff]  ;;  %v3874_v8 = vor.u32 %v19160_v39, %v3870_v3  ;;  %19749 = vst [vmem:[#allocation234_spill] sm:$0xff] %v13555_v37 }
 0x2ea   : >> { %19738 = vst [vmem:[#allocation228_spill] sm:$0xff] %v13497_v49 }
 0x2eb   : >> { %4054 = vrot.lane.b32.xlu2 %v3823_v17, %s11036_s23  ;;  %v9711_v17 = vld [vmem:[%s11183_s14 + $0xd4] sm:$0x3]  ;;  %v3843_v7 = vsel %vm508_vm0, %v3838_v23, %v3842_v20  ;;  %v19169_v20 = vshll.u32 %v13492_v41, 16 }
 0x2ec   : >> { %4052 = vrot.lane.b32.xlu1 %v3815_v26, %s11036_s23  ;;  %v13552_v41 = vld [vmem:[%s11183_s14 + $0xf0] sm:$0xff] }
 0x2ed   : >> { %4050 = vrot.lane.b32.xlu0 %v3807_v60, %s11036_s23  ;;  %v13486_v26 = vpop.permute.xlu2 %2694  ;;  %v3851_v60 = vsel %vm508_vm0, %v3846_v62, %v3850_v58  ;;  %v19168_v62 = vshrl.u32 %v13432_v16, 16  ;;  %19748 = vst [vmem:[#allocation233_spill] sm:$0xff] %v13552_v41 }
 0x2ee   : >> { %19733 = vst [vmem:[#allocation224_spill] sm:$0xff] %v13486_v26  ;;  %v13488_v1 = vpop.permute.xlu1 %2602  ;;  %v13504_v26 = vld [vmem:[%s11183_s14 + $0xcc] sm:$0xff] }
 0x2ef   : >> { %19734 = vst [vmem:[#allocation225_spill] sm:$0xff] %v13488_v1  ;;  %v13494_v5 = vpop.permute.xlu0 %2600  ;;  %v3739_v1 = vunpack.c.l.b16 %v9711_v17 }
 0x2f0   : >> { %19737 = vst [vmem:[#allocation227_spill] sm:$0xff] %v13494_v5  ;;  %v3865_v5 = vrot.slane %v19740_v30, 1  ;;  %v19743_v30 = vshrl.u32 %v13465_v33, 16  ;;  %v19746_v33 = vshll.u32 %v13497_v49, 16 }
 0x2f1   : >> { %v13520_v17 = vpack.c.b16 %v3739_v1, %v3739_v1  ;;  %v3854_v1 = vor.u32 %v19168_v62, %v3850_v58  ;;  %v3879_v62 = vsel %vm508_vm0, %v3874_v8, %v3878_v47  ;;  %v19751_v8 = vshll.u32 %v13518_v43, 16 }
 0x2f2   : >> { %v3901_v28 = vrot.slane %v19746_v33, 1 }
 0x2f3   : >> { %4060 = vrot.lane.b32.xlu2 %v3851_v60, %s11036_s23  ;;  %19742 = vst [vmem:[#allocation230_spill] sm:$0xff] %v13520_v17  ;;  %v3866_v60 = vor.u32 %v3865_v5, %v19743_v30  ;;  %v19747_v30 = vshll.u32 %v13504_v26, 16  ;;  %v19175_v5 = vshrl.u32 %v13482_v42, 16 }
 0x2f4   : >> { %4058 = vrot.lane.b32.xlu1 %v3843_v7, %s11036_s23 }
 0x2f5   : >> { %4056 = vrot.lane.b32.xlu0 %v3835_v24, %s11036_s23  ;;  %v13530_v23 = vpop.permute.xlu2 %2700  ;;  %v3858_v24 = vrot.slane %v19169_v20, 1  ;;  %v3886_v13 = vrot.slane %v19747_v30, 1  ;;  %v3871_v20 = vsel %vm508_vm0, %v3866_v60, %v3870_v3  ;;  %v19750_v30 = vshrl.u32 %v13497_v49, 16 }
 0x2f6   : >> { %v13532_v7 = vpop.permute.xlu1 %2608  ;;  %v3906_v3 = vrot.slane %v19751_v8, 1  ;;  %v19752_v60 = vshll.u32 %v13520_v17, 16  ;;  %v9729_v17 = vld [vmem:[%s11183_s14 + $0x11c] sm:$0x3] }
 0x2f7   : >> { %19744 = vst [vmem:[#allocation231_spill] sm:$0xff] %v13532_v7  ;;  %v13539_v39 = vpop.permute.xlu0 %2606  ;;  %v19174_v7 = vshrl.u32 %v13504_v26, 16  ;;  %v3859_v33 = vsel %vm508_vm0, %v3854_v1, %v3858_v24  ;;  %v3902_v58 = vor.u32 %v3901_v28, %v19750_v30  ;;  %v2749_v1 = vsel %vm1368_vm5, %v13090_v21, %v12727_v36 }
 0x2f8   : >> { %19745 = vst [vmem:[#allocation232_spill] sm:$0xff] %v13539_v39  ;;  %v3740_v39 = vunpack.c.l.b16 %v9720_v4  ;;  %v3894_v16 = vrot.slane %v19752_v60, 1  ;;  %v19176_v28 = vshll.u32 %v13552_v41, 16  ;;  %v2813_v24 = vsel %vm1433_vm6, %v2749_v1, %v12857_v31 }
 0x2f9   : >> { %v3890_v4 = vor.u32 %v19174_v7, %v3886_v13  ;;  %v3882_v60 = vor.u32 %v19175_v5, %v3878_v47  ;;  %v2877_v36 = vsel %vm1498_vm7, %v2813_v24, %v13197_v51  ;;  %v3907_v7 = vsel %vm508_vm0, %v3902_v58, %v3906_v3 }
 0x2fa   : >> { %v19177_v1 = vshrl.u32 %v13552_v41, 16  ;;  %v3922_v47 = vrot.slane %v19176_v28, 1  ;;  %v19756_v24 = vshll.u32 %v13555_v37, 16 }
 0x2fb   : >> { %4066 = vrot.lane.b32.xlu2 %v3879_v62, %s11036_s23  ;;  %v13573_v62 = vpack.c.b16 %v3740_v39, %v3740_v39  ;;  %v13588_v39 = vld [vmem:[%s11183_s14 + $0x10c] sm:$0xff]  ;;  %v3895_v31 = vsel %vm508_vm0, %v3890_v4, %v3894_v16  ;;  %v3887_v58 = vsel %vm508_vm0, %v3882_v60, %v3886_v13  ;;  %v19190_v16 = vshrl.u32 %v13518_v43, 16  ;;  %v13607_v4 = vld [vmem:[%s11183_s14 + $0xfc] sm:$0xff] }
 0x2fc   : >> { %4064 = vrot.lane.b32.xlu1 %v3871_v20, %s11036_s23  ;;  %v13595_v20 = vld [vmem:[%s11183_s14 + $0x104] sm:$0xff]  ;;  %v3914_v5 = vrot.slane %v19756_v24, 1  ;;  %19757 = vst [vmem:[#allocation238_spill] sm:$0xff] %v13607_v4  ;;  %v3926_v13 = vor.u32 %v19177_v1, %v3922_v47  ;;  %v19759_v1 = vshll.u32 %v13588_v39, 16  ;;  %v19195_v41 = vshrl.u32 %v13607_v4, 16 }
 0x2fd   : >> { %4062 = vrot.lane.b32.xlu0 %v3859_v33, %s11036_s23  ;;  %19753 = vst [vmem:[#allocation235_spill] sm:$0xff] %v13573_v62  ;;  %v13579_v30 = vpop.permute.xlu2 %2706  ;;  %v19180_v51 = vshll.u32 %v13573_v62, 16  ;;  %v19764_v49 = vshrl.u32 %v13588_v39, 16 }
 0x2fe   : >> { %19754 = vst [vmem:[#allocation236_spill] sm:$0xff] %v13579_v30  ;;  %v13581_v8 = vpop.permute.xlu1 %2686  ;;  %v3950_v62 = vrot.slane %v19759_v1, 1 }
 0x2ff   : >> { %v2685_v21 = vpop.permute.xlu0 %2684  ;;  %19755 = vst [vmem:[#allocation237_spill] sm:$0xff] %v13595_v20  ;;  %v3930_v60 = vrot.slane %v19180_v51, 1  ;;  %v19763_v51 = vshll.u32 %v13607_v4, 16 }
 0x300   : >> { %v2941_v33 = vsel %vm1563_vm9, %v2877_v36, %v2685_v21  ;;  %v19185_v36 = vshrl.u32 %v13555_v37, 16  ;;  %v13610_v21 = vld [vmem:[%s11183_s14 + $0x114] sm:$0xff]  ;;  %v3954_v30 = vor.u32 %v19764_v49, %v3950_v62 }
 0x301   : >> { %9607 = vmatmul.msk.bf16.gmra.mxu0 %vm3010_vm8, %v2941_v33  ;;  %v3931_v37 = vsel %vm508_vm0, %v3926_v13, %v3930_v60  ;;  %v3937_v43 = vrot.slane %v19763_v51, 1  ;;  %v19765_v13 = vshll.u32 %v13610_v21, 16  ;;  %v2763_v60 = vsel %vm1368_vm5, %v13157_v2, %v12755_v18  ;;  %v13670_v51 = vld [vmem:[%s11183_s14 + $0x130] sm:$0xff] }
 0x302   : >> { %v3918_v24 = vor.u32 %v19185_v36, %v3914_v5  ;;  %v19760_v36 = vshll.u32 %v13595_v20, 16  ;;  %v2827_v49 = vsel %vm1433_vm6, %v2763_v60, %v13015_v57 }
 0x303   : >> { %4072 = vrot.lane.b32.xlu2 %v3907_v7, %s11036_s23 }
 0x304   : >> { %4070 = vrot.lane.b32.xlu1 %v3895_v31, %s11036_s23  ;;  %v3910_v31 = vor.u32 %v19190_v16, %v3906_v3  ;;  %v3923_v3 = vsel %vm508_vm0, %v3918_v24, %v3922_v47  ;;  %v13643_v16 = vld [vmem:[%s11183_s14 + $0x128] sm:$0xff]  ;;  %v3958_v47 = vrot.slane %v19765_v13, 1 }
 0x305   : >> { %4068 = vrot.lane.b32.xlu0 %v3887_v58, %s11036_s23  ;;  %v13623_v33 = vpop.permute.xlu2 %2712  ;;  %19761 = vst [vmem:[#allocation240_spill] sm:$0xff] %v13643_v16  ;;  %v13646_v58 = vld [vmem:[%s11183_s14 + $0x120] sm:$0xff]  ;;  %v19193_v18 = vshll.u32 %v13643_v16, 16 }
 0x306   : >> { %19758 = vst [vmem:[#allocation239_spill] sm:$0xff] %v13623_v33  ;;  %v13625_v7 = vpop.permute.xlu1 %2692  ;;  %v3942_v33 = vrot.slane %v19760_v36, 1  ;;  %v3915_v1 = vsel %vm508_vm0, %v3910_v31, %v3914_v5  ;;  %v3741_v36 = vunpack.c.l.b16 %v9729_v17  ;;  %v19766_v5 = vshrl.u32 %v13595_v20, 16 }
 0x307   : >> { %v13630_v28 = vpop.permute.xlu0 %2690  ;;  %19762 = vst [vmem:[#allocation241_spill] sm:$0xff] %v13646_v58  ;;  %v2751_v17 = vsel %vm1368_vm5, %v13111_v25, %v12725_v34  ;;  %v19194_v2 = vshll.u32 %v13646_v58, 16  ;;  %v2891_v34 = vsel %vm1498_vm7, %v2827_v49, %v13180_v9  ;;  %v13700_v49 = vld [vmem:[%s11183_s14 + $0x138] sm:$0xff] }
 0x308   : >> { %v3946_v24 = vor.u32 %v19766_v5, %v3942_v33  ;;  %v2815_v31 = vsel %vm1433_vm6, %v2751_v17, %v12966_v52  ;;  %v3959_v52 = vsel %vm508_vm0, %v3954_v30, %v3958_v47  ;;  %v13692_v17 = vld [vmem:[%s11183_s14 + $0x144] sm:$0xff]  ;;  %v3978_v30 = vrot.slane %v19193_v18, 1 }
 0x309   : >> { %v2879_v13 = vsel %vm1498_vm7, %v2815_v31, %v13132_v10  ;;  %v19197_v31 = vshll.u32 %v13670_v51, 16 }
 0x30a   : >> { %v2943_v9 = vsel %vm1563_vm9, %v2879_v13, %v13581_v8  ;;  %v3973_v8 = vrot.slane %v19194_v2, 1  ;;  %v13716_v13 = vld [vmem:[%s11183_s14 + $0x14c] sm:$0xff]  ;;  %v9747_v2 = vld [vmem:[%s11183_s14 + $0x164] sm:$0x3] }
 0x30b   : >> { %4078 = vrot.lane.b32.xlu2 %v3931_v37, %s11036_s23  ;;  %v9738_v37 = vld [vmem:[%s11183_s14 + $0x140] sm:$0x3] }
 0x30c   : >> { %4076 = vrot.lane.b32.xlu1 %v3923_v3, %s11036_s23  ;;  %v3938_v3 = vor.u32 %v3937_v43, %v19195_v41  ;;  %v3951_v43 = vsel %vm508_vm0, %v3946_v24, %v3950_v62  ;;  %v3742_v10 = vunpack.c.l.b16 %v9738_v37  ;;  %v19199_v62 = vshrl.u32 %v13610_v21, 16 }
 0x30d   : >> { %4074 = vrot.lane.b32.xlu0 %v3915_v1, %s11036_s23  ;;  %v13679_v25 = vpop.permute.xlu2 %2718  ;;  %v13683_v1 = vpack.c.b16 %v3741_v36, %v3741_v36  ;;  %v19196_v36 = vshrl.u32 %v13643_v16, 16  ;;  %v19205_v37 = vshll.u32 %v13692_v17, 16  ;;  %v3743_v16 = vunpack.c.l.b16 %v9747_v2 }
 0x30e   : >> { %v2699_v57 = vpop.permute.xlu1 %2698  ;;  %v19769_v2 = vshrl.u32 %v13692_v17, 16 }
 0x30f   : >> { %v13687_v60 = vpop.permute.xlu0 %2696  ;;  %v2955_v5 = vsel %vm1563_vm9, %v2891_v34, %v2699_v57  ;;  %v19198_v34 = vshrl.u32 %v13646_v58, 16  ;;  %v3943_v57 = vsel %vm508_vm0, %v3938_v3, %v3942_v33  ;;  %v19200_v24 = vshll.u32 %v13683_v1, 16 }
 0x310   : >> { %9614 = vmatmul.msk.bf16.vlgmr.msra.gmra.mxu1 %vm3010_vm8, %v2955_v5  ;;  %v13718_v5 = vpack.c.b16 %v3742_v10, %v3742_v10  ;;  %v3982_v33 = vor.u32 %v19196_v36, %v3978_v30  ;;  %v3986_v3 = vrot.slane %v19197_v31, 1  ;;  %v3962_v10 = vor.u32 %v19199_v62, %v3958_v47  ;;  %v13748_v62 = vld [vmem:[%s11183_s14 + $0x15c] sm:$0xff]  ;;  %v13753_v36 = vld [vmem:[%s11183_s14 + $0x154] sm:$0xff] }
 0x311   : >> { %9608 = vmatmul.msk.bf16.gmra.mxu0 %vm3010_vm8, %v2943_v9  ;;  %v19206_v9 = vshll.u32 %v13700_v49, 16  ;;  %v4009_v31 = vrot.slane %v19205_v37, 1  ;;  %v2765_v47 = vsel %vm1368_vm5, %v13149_v55, %v12706_v45  ;;  %v19209_v55 = vshll.u32 %v13748_v62, 16 }
 0x313   : >> { %4084 = vrot.lane.b32.xlu2 %v3959_v52, %s11036_s23  ;;  %v3974_v52 = vor.u32 %v3973_v8, %v19198_v34  ;;  %v3994_v34 = vrot.slane %v19206_v9, 1  ;;  %v19213_v8 = vshrl.u32 %v13670_v51, 16  ;;  %v2753_v9 = vsel %vm1368_vm5, %v13106_v0, %v12675_v63 }
 0x314   : >> { %4082 = vrot.lane.b32.xlu1 %v3951_v43, %s11036_s23  ;;  %v19771_v63 = vshrl.u32 %v13700_v49, 16 }
 0x315   : >> { %4080 = vrot.lane.b32.xlu0 %v3943_v57, %s11036_s23  ;;  %v13728_v18 = vpop.permute.xlu2 %2724  ;;  %v3966_v57 = vrot.slane %v19200_v24, 1  ;;  %v3987_v24 = vsel %vm508_vm0, %v3982_v33, %v3986_v3  ;;  %v3979_v58 = vsel %vm508_vm0, %v3974_v52, %v3978_v30  ;;  %v4010_v30 = vor.u32 %v4009_v31, %v19769_v2 }
 0x316   : >> { %19767 = vst [vmem:[#allocation242_spill] sm:$0xff] %v13728_v18  ;;  %v13730_v43 = vpop.permute.xlu1 %2704  ;;  %v19768_v18 = vld [vmem:[#allocation149_spill] sm:$0xff]  ;;  %v19770_v52 = vshll.u32 %v13716_v13, 16  ;;  %v3998_v0 = vor.u32 %v19771_v63, %v3994_v34  ;;  %v19211_v31 = vshll.u32 %v13753_v36, 16 }
 0x317   : >> { %v13737_v41 = vpop.permute.xlu0 %2702  ;;  %v3967_v37 = vsel %vm508_vm0, %v3962_v10, %v3966_v57  ;;  %v2795_v33 = vsel %vm1368_vm5, %v13252_v38, %v19768_v18  ;;  %v19772_v57 = vshll.u32 %v13718_v5, 16  ;;  %v2829_v38 = vsel %vm1433_vm6, %v2765_v47, %v13013_v50 }
 0x318   : >> { %v4014_v10 = vrot.slane %v19770_v52, 1  ;;  %v2859_v18 = vsel %vm1433_vm6, %v2795_v33, %v13134_v12  ;;  %v2893_v2 = vsel %vm1498_vm7, %v2829_v38, %v13269_v44  ;;  %v3990_v12 = vor.u32 %v19213_v8, %v3986_v3 }
 0x319   : >> { %v4002_v45 = vrot.slane %v19772_v57, 1  ;;  %v2923_v52 = vsel %vm1498_vm7, %v2859_v18, %v13449_v14  ;;  %v19212_v33 = vshrl.u32 %v13753_v36, 16 }
 0x31a   : >> { %v4015_v14 = vsel %vm508_vm0, %v4010_v30, %v4014_v10  ;;  %v3995_v57 = vsel %vm508_vm0, %v3990_v12, %v3994_v34  ;;  %v19208_v30 = vshrl.u32 %v13716_v13, 16 }
 0x31b   : >> { %4090 = vrot.lane.b32.xlu2 %v3987_v24, %s11036_s23  ;;  %v2817_v24 = vsel %vm1433_vm6, %v2753_v9, %v12964_v27  ;;  %v2957_v27 = vsel %vm1563_vm9, %v2893_v2, %v13530_v23  ;;  %v4003_v3 = vsel %vm508_vm0, %v3998_v0, %v4002_v45  ;;  %v19210_v23 = vshrl.u32 %v13748_v62, 16  ;;  %v19773_v0 = vld [vmem:[#allocation154_spill] sm:$0xff] }
 0x31c   : >> { %4088 = vrot.lane.b32.xlu1 %v3979_v58, %s11036_s23  ;;  %v13782_v58 = vpack.c.b16 %v3743_v16, %v3743_v16  ;;  %v2881_v16 = vsel %vm1498_vm7, %v2817_v24, %v13224_v56  ;;  %v4030_v56 = vrot.slane %v19209_v55, 1  ;;  %v2779_v45 = vsel %vm1368_vm5, %v13221_v32, %v19773_v0 }
 0x31d   : >> { %4086 = vrot.lane.b32.xlu0 %v3967_v37, %s11036_s23  ;;  %v2731_v63 = vpop.permute.xlu2 %2730  ;;  %v2945_v44 = vsel %vm1563_vm9, %v2881_v16, %v13442_v15  ;;  %v4022_v15 = vrot.slane %v19211_v31, 1  ;;  %v2843_v24 = vsel %vm1433_vm6, %v2779_v45, %v12989_v11  ;;  %v4018_v32 = vor.u32 %v19208_v30, %v4014_v10  ;;  %v19800_v30 = vld [vmem:[#allocation221_spill] sm:$0xff] }
 0x31e   : >> { %v13791_v50 = vpop.permute.xlu1 %2710  ;;  %v2987_v9 = vsel %vm1563_vm9, %v2923_v52, %v2731_v63  ;;  %v19207_v47 = vshll.u32 %v13782_v58, 16  ;;  %v4034_v38 = vor.u32 %v19210_v23, %v4030_v56  ;;  %v2907_v63 = vsel %vm1498_vm7, %v2843_v24, %v13315_v40 }
 0x31f   : >> { %v13797_v37 = vpop.permute.xlu0 %2708  ;;  %9630 = vmatmul.msk.bf16.vlgmr.msra.gmra.mxu3 %vm3010_vm8, %v2987_v9  ;;  %v4026_v34 = vor.u32 %v19212_v33, %v4022_v15  ;;  %v4023_v11 = vsel %vm508_vm0, %v4018_v32, %v4022_v15  ;;  %v4109_v15 = vrot.slane %v13328_v48, 1  ;;  %v19812_v33 = vld [vmem:[#allocation200_spill] sm:$0xff] }
 0x320   : >> { %9615 = vmatmul.msk.bf16.gmra.mxu1 %vm3010_vm8, %v2957_v27  ;;  %v4038_v18 = vrot.slane %v19207_v47, 1 }
 0x321   : >> { %9609 = vmatmul.msk.bf16.gmra.mxu0 %vm3010_vm8, %v2945_v44  ;;  %v4031_v9 = vsel %vm508_vm0, %v4026_v34, %v4030_v56  ;;  %v19774_v44 = vld [vmem:[#allocation143_spill] sm:$0xff]  ;;  %v4107_v56 = vrot.slane %v13309_v6, 1 }
 0x322   : >> { %v4039_v27 = vsel %vm508_vm0, %v4034_v38, %v4038_v18 }
 0x323   : >> { %4096 = vrot.lane.b32.xlu2 %v4015_v14, %s11036_s23  ;;  %v2755_v14 = vsel %vm1368_vm5, %v13137_v22, %v19774_v44 }
 0x324   : >> { %4094 = vrot.lane.b32.xlu1 %v4003_v3, %s11036_s23  ;;  %v19775_v3 = vld [vmem:[#allocation148_spill] sm:$0xff]  ;;  %v2819_v22 = vsel %vm1433_vm6, %v2755_v14, %v12884_v54 }
 0x325   : >> { %4092 = vrot.lane.b32.xlu0 %v3995_v57, %s11036_s23  ;;  %v13832_v2 = vpop.permute.xlu2 %2736  ;;  %v2767_v10 = vsel %vm1368_vm5, %v13153_v46, %v19775_v3  ;;  %v4105_v57 = vrot.slane %v13293_v61, 1  ;;  %v2883_v38 = vsel %vm1498_vm7, %v2819_v22, %v13218_v19  ;;  %v19776_v19 = vld [vmem:[#allocation153_spill] sm:$0xff] }
 0x326   : >> { %v2717_v52 = vpop.permute.xlu1 %2716  ;;  %v2831_v40 = vsel %vm1433_vm6, %v2767_v10, %v12934_v53  ;;  %v4104_v53 = vrot.slane %v13298_v35, 1  ;;  %v2947_v54 = vsel %vm1563_vm9, %v2883_v38, %v13630_v28  ;;  %v19777_v28 = vld [vmem:[#allocation207_spill] sm:$0xff]  ;;  %v19782_v10 = vld [vmem:[#allocation208_spill] sm:$0xff] }
 0x327   : >> { %v2715_v12 = vpop.permute.xlu0 %2714  ;;  %v2895_v46 = vsel %vm1498_vm7, %v2831_v40, %v13267_v29  ;;  %v4110_v29 = vsel %vm861_vm1, %v4107_v56, %v4109_v15  ;;  %v4108_v24 = vsel %vm861_vm1, %v4105_v57, %v4107_v56  ;;  %v4111_v40 = vrot.slane %v19782_v10, 1  ;;  %v19783_v56 = vld [vmem:[#allocation193_spill] sm:$0xff] }
 0x328   : >> { %v2971_v16 = vsel %vm1563_vm9, %v2907_v63, %v2715_v12  ;;  %v2959_v34 = vsel %vm1563_vm9, %v2895_v46, %v13737_v41  ;;  %v4106_v32 = vsel %vm861_vm1, %v4104_v53, %v4105_v57  ;;  %v2781_v41 = vsel %vm1368_vm5, %v13213_v59, %v19776_v19  ;;  %v19778_v12 = vld [vmem:[#allocation213_spill] sm:$0xff] }
 0x329   : >> { %9622 = vmatmul.msk.bf16.vlgmr.msra.gmra.mxu2 %vm3010_vm8, %v2971_v16  ;;  %v4114_v63 = vrot.slane %v19777_v28, 1  ;;  %v4116_v16 = vrot.slane %v19778_v12, 1  ;;  %v4112_v38 = vsel %vm861_vm1, %v4109_v15, %v4111_v40  ;;  %v19791_v15 = vld [vmem:[#allocation219_spill] sm:$0xff] }
 0x32b   : >> { %4102 = vrot.lane.b32.xlu2 %v4039_v27, %s11036_s23  ;;  %v19779_v27 = vld [vmem:[#allocation206_spill] sm:$0xff]  ;;  %v4117_v46 = vsel %vm861_vm1, %v4114_v63, %v4116_v16 }
 0x32c   : >> { %4100 = vrot.lane.b32.xlu1 %v4031_v9, %s11036_s23  ;;  %v4113_v9 = vrot.slane %v19779_v27, 1 }
 0x32d   : >> { %4098 = vrot.lane.b32.xlu0 %v4023_v11, %s11036_s23  ;;  %v13861_v0 = vpop.permute.xlu2 %2742  ;;  %v19780_v11 = vld [vmem:[#allocation178_spill] sm:$0xff] }
 0x32e   : >> { %v13863_v45 = vpop.permute.xlu1 %2722  ;;  %v2845_v44 = vsel %vm1433_vm6, %v2781_v41, %v19780_v11  ;;  %v4115_v53 = vsel %vm861_vm1, %v4113_v9, %v4114_v63  ;;  %v19788_v41 = vld [vmem:[#allocation161_spill] sm:$0xff]  ;;  %v4122_v63 = vrot.slane %v19791_v15, 1  ;;  %v19792_v9 = vld [vmem:[#allocation218_spill] sm:$0xff] }
 0x32f   : >> { %v13868_v18 = vpop.permute.xlu0 %2720  ;;  %v2909_v59 = vsel %vm1498_vm7, %v2845_v44, %v19783_v56  ;;  %v19789_v11 = vld [vmem:[#allocation197_spill] sm:$0xff]  ;;  %v19790_v44 = vld [vmem:[#allocation172_spill] sm:$0xff]  ;;  %v4123_v40 = vrot.slane %v19792_v9, 1 }
 0x330   : >> { %9616 = vmatmul.msk.bf16.gmra.mxu1 %vm3010_vm8, %v2959_v34  ;;  %v2973_v22 = vsel %vm1563_vm9, %v2909_v59, %v2717_v52  ;;  %v19784_v34 = vld [vmem:[#allocation147_spill] sm:$0xff]  ;;  %v2797_v52 = vsel %vm1368_vm5, %v19789_v11, %v19788_v41  ;;  %v19793_v59 = vld [vmem:[#allocation212_spill] sm:$0xff]  ;;  %v19796_v41 = vld [vmem:[#allocation173_spill] sm:$0xff] }
 0x331   : >> { %9610 = vmatmul.msk.bf16.gmra.mxu0 %vm3010_vm8, %v2947_v54  ;;  %v19785_v54 = vld [vmem:[#allocation187_spill] sm:$0xff]  ;;  %v19797_v11 = vld [vmem:[#allocation190_spill] sm:$0xff] }
 0x333   : >> { %4180 = vrot.lane.b32.xlu2 %v4110_v29, %s11037_s24  ;;  %v2769_v29 = vsel %vm1368_vm5, %v19785_v54, %v19784_v34  ;;  %v19794_v34 = vld [vmem:[#allocation214_spill] sm:$0xff] }
 0x334   : >> { %4178 = vrot.lane.b32.xlu1 %v4108_v24, %s11037_s24  ;;  %v19786_v24 = vld [vmem:[#allocation142_spill] sm:$0xff]  ;;  %v2833_v56 = vsel %vm1433_vm6, %v2769_v29, %v19790_v44  ;;  %v4120_v54 = vrot.slane %v19794_v34, 1  ;;  %v2861_v29 = vsel %vm1433_vm6, %v2797_v52, %v19796_v41  ;;  %v19799_v44 = vld [vmem:[#allocation184_spill] sm:$0xff]  ;;  %v19806_v41 = vld [vmem:[#allocation177_spill] sm:$0xff] }
 0x335   : >> { %4176 = vrot.lane.b32.xlu0 %v4106_v32, %s11037_s24  ;;  %v13890_v14 = vpop.permute.xlu2 %4042  ;;  %v19787_v32 = vld [vmem:[#allocation182_spill] sm:$0xff]  ;;  %v2925_v55 = vsel %vm1498_vm7, %v2861_v29, %v19800_v30 }
 0x336   : >> { %19781 = vst [vmem:[#allocation149_spill] sm:$0xff] %v13890_v14  ;;  %v13892_v3 = vpop.permute.xlu1 %2728  ;;  %v2757_v19 = vsel %vm1368_vm5, %v19787_v32, %v19786_v24  ;;  %v19795_v24 = vld [vmem:[#allocation168_spill] sm:$0xff] }
 0x337   : >> { %v13897_v57 = vpop.permute.xlu0 %2726  ;;  %v2821_v32 = vsel %vm1433_vm6, %v2757_v19, %v19795_v24 }
 0x338   : >> { %v2885_v47 = vsel %vm1498_vm7, %v2821_v32, %v19799_v44  ;;  %v19805_v32 = vld [vmem:[#allocation217_spill] sm:$0xff] }
 0x339   : >> { %9623 = vmatmul.msk.bf16.gmra.mxu2 %vm3010_vm8, %v2973_v22  ;;  %v4118_v22 = vrot.slane %v19793_v59, 1  ;;  %v2949_v19 = vsel %vm1563_vm9, %v2885_v47, %v13625_v7  ;;  %v19802_v7 = vld [vmem:[#allocation191_spill] sm:$0xff]  ;;  %v19804_v47 = vld [vmem:[#allocation226_spill] sm:$0xff] }
 0x33b   : >> { %4186 = vrot.lane.b32.xlu2 %v4117_v46, %s11037_s24  ;;  %v2897_v46 = vsel %vm1498_vm7, %v2833_v56, %v19797_v11  ;;  %v4124_v56 = vsel %vm861_vm1, %v4122_v63, %v4123_v40  ;;  %v4121_v24 = vsel %vm861_vm1, %v4118_v22, %v4120_v54  ;;  %v4119_v30 = vsel %vm861_vm1, %v4116_v16, %v4118_v22  ;;  %v19808_v11 = vld [vmem:[#allocation211_spill] sm:$0xff] }
 0x33c   : >> { %4184 = vrot.lane.b32.xlu1 %v4115_v53, %s11037_s24  ;;  %v2961_v31 = vsel %vm1563_vm9, %v2897_v46, %v13730_v43  ;;  %v19801_v43 = vld [vmem:[#allocation144_spill] sm:$0xff]  ;;  %v4129_v63 = vrot.slane %v19804_v47, 1  ;;  %v4125_v54 = vrot.slane %v19805_v32, 1 }
 0x33d   : >> { %4182 = vrot.lane.b32.xlu0 %v4112_v38, %s11037_s24  ;;  %v13928_v53 = vpop.permute.xlu2 %4048 }
 0x33e   : >> { %19798 = vst [vmem:[#allocation154_spill] sm:$0xff] %v13928_v53  ;;  %v2735_v38 = vpop.permute.xlu1 %2734 }
 0x33f   : >> { %v2733_v23 = vpop.permute.xlu0 %2732 }
 0x340   : >> { %9617 = vmatmul.msk.bf16.gmra.mxu1 %vm3010_vm8, %v2961_v31  ;;  %v2989_v52 = vsel %vm1563_vm9, %v2925_v55, %v2733_v23  ;;  %v2783_v31 = vsel %vm1368_vm5, %v19802_v7, %v19801_v43  ;;  %v19803_v55 = vld [vmem:[#allocation220_spill] sm:$0xff]  ;;  %v19809_v43 = vld [vmem:[#allocation135_spill] sm:$0xff] }
 0x341   : >> { %9611 = vmatmul.msk.bf16.gmra.mxu0 %vm3010_vm8, %v2949_v19  ;;  %9631 = vmatmul.msk.bf16.gmra.mxu3 %vm3010_vm8, %v2989_v52  ;;  %v4127_v23 = vrot.slane %v19803_v55, 1  ;;  %v2847_v16 = vsel %vm1433_vm6, %v2783_v31, %v19806_v41  ;;  %v10738_v31 = vld [vmem:[%s11183_s14 + $0x90] sm:$0xff]  ;;  %v19810_v41 = vld [vmem:[#allocation140_spill] sm:$0xff] }
 0x342   : >> { %v2911_v46 = vsel %vm1498_vm7, %v2847_v16, %v19808_v11  ;;  %v2771_v16 = vsel %vm1368_vm5, %v10738_v31, %v19810_v41  ;;  %v19811_v11 = vld [vmem:[#allocation160_spill] sm:$0xff]  ;;  %v19816_v31 = vld [vmem:[#allocation186_spill] sm:$0xff] }
 0x343   : >> { %4192 = vrot.lane.b32.xlu2 %v4124_v56, %s11037_s24  ;;  %v2975_v19 = vsel %vm1563_vm9, %v2911_v46, %v13679_v25  ;;  %v4130_v52 = vsel %vm861_vm1, %v4127_v23, %v4129_v63  ;;  %v4128_v56 = vsel %vm861_vm1, %v4125_v54, %v4127_v23  ;;  %v2799_v25 = vsel %vm1368_vm5, %v19812_v33, %v19811_v11  ;;  %v19813_v63 = vld [vmem:[#allocation171_spill] sm:$0xff]  ;;  %v19814_v46 = vld [vmem:[#allocation222_spill] sm:$0xff] }
 0x344   : >> { %4190 = vrot.lane.b32.xlu1 %v4121_v24, %s11037_s24  ;;  %v4126_v24 = vsel %vm861_vm1, %v4123_v40, %v4125_v54  ;;  %v2835_v23 = vsel %vm1433_vm6, %v2771_v16, %v19813_v63  ;;  %v4134_v40 = vrot.slane %v13482_v42, 1  ;;  %v4136_v54 = vrot.slane %v13504_v26, 1  ;;  %v19821_v63 = vld [vmem:[#allocation195_spill] sm:$0xff] }
 0x345   : >> { %4188 = vrot.lane.b32.xlu0 %v4119_v30, %s11037_s24  ;;  %v13956_v22 = vpop.permute.xlu2 %4054  ;;  %v10737_v30 = vld [vmem:[%s11183_s14 + $0x58] sm:$0xff]  ;;  %v2863_v33 = vsel %vm1433_vm6, %v2799_v25, %v19816_v31  ;;  %v19824_v31 = vld [vmem:[#allocation224_spill] sm:$0xff] }
 0x346   : >> { %19807 = vst [vmem:[#allocation143_spill] sm:$0xff] %v13956_v22  ;;  %v13958_v29 = vpop.permute.xlu1 %2740  ;;  %v2759_v7 = vsel %vm1368_vm5, %v10737_v30, %v19809_v43  ;;  %v19815_v30 = vld [vmem:[#allocation167_spill] sm:$0xff]  ;;  %v19822_v22 = vld [vmem:[#allocation204_spill] sm:$0xff] }
 0x347   : >> { %v13962_v44 = vpop.permute.xlu0 %2738  ;;  %v2823_v43 = vsel %vm1433_vm6, %v2759_v7, %v19815_v30  ;;  %v2927_v53 = vsel %vm1498_vm7, %v2863_v33, %v19822_v22  ;;  %v19823_v30 = vld [vmem:[#allocation236_spill] sm:$0xff] }
 0x348   : >> { %v2887_v8 = vsel %vm1498_vm7, %v2823_v43, %v19821_v63  ;;  %v4137_v43 = vsel %vm861_vm1, %v4134_v40, %v4136_v54 }
 0x349   : >> { %9624 = vmatmul.msk.bf16.gmra.mxu2 %vm3010_vm8, %v2975_v19  ;;  %v4132_v19 = vrot.slane %v19814_v46, 1 }
 0x34b   : >> { %4198 = vrot.lane.b32.xlu2 %v4130_v52, %s11037_s24  ;;  %v19817_v52 = vld [vmem:[#allocation203_spill] sm:$0xff]  ;;  %v4135_v22 = vsel %vm861_vm1, %v4132_v19, %v4134_v40 }
 0x34c   : >> { %4196 = vrot.lane.b32.xlu1 %v4128_v56, %s11037_s24  ;;  %v2899_v56 = vsel %vm1498_vm7, %v2835_v23, %v19817_v52  ;;  %v2951_v23 = vsel %vm1563_vm9, %v2887_v8, %v19824_v31  ;;  %v2991_v52 = vsel %vm1563_vm9, %v2927_v53, %v2735_v38  ;;  %v19825_v8 = vld [vmem:[#allocation157_spill] sm:$0xff]  ;;  %v19828_v31 = vld [vmem:[#allocation228_spill] sm:$0xff] }
 0x34d   : >> { %4194 = vrot.lane.b32.xlu0 %v4126_v24, %s11037_s24  ;;  %v13993_v41 = vpop.permute.xlu2 %4060  ;;  %v19820_v24 = vld [vmem:[#allocation223_spill] sm:$0xff]  ;;  %v2963_v25 = vsel %vm1563_vm9, %v2899_v56, %v19823_v30  ;;  %v10739_v56 = vld [vmem:[%s11183_s14 + $0xcc] sm:$0xff]  ;;  %v19827_v30 = vld [vmem:[#allocation234_spill] sm:$0xff]  ;;  %v4140_v40 = vrot.slane %v19828_v31, 1 }
 0x34e   : >> { %19818 = vst [vmem:[#allocation148_spill] sm:$0xff] %v13993_v41  ;;  %v13995_v16 = vpop.permute.xlu1 %4040  ;;  %v4131_v11 = vrot.slane %v19820_v24, 1  ;;  %v2785_v63 = vsel %vm1368_vm5, %v10739_v56, %v19825_v8  ;;  %v19826_v53 = vld [vmem:[#allocation229_spill] sm:$0xff]  ;;  %v19833_v56 = vld [vmem:[#allocation210_spill] sm:$0xff]  ;;  %v10741_v31 = vld [vmem:[%s11183_s14 + $0x60] sm:$0xff] }
 0x34f   : >> { %19819 = vst [vmem:[#allocation153_spill] sm:$0xff] %v13995_v16  ;;  %v14002_v7 = vpop.permute.xlu0 %2744  ;;  %v4141_v38 = vrot.slane %v19826_v53, 1  ;;  %v19836_v53 = vld [vmem:[#allocation145_spill] sm:$0xff] }
 0x350   : >> { %9618 = vmatmul.msk.bf16.gmra.mxu1 %vm3010_vm8, %v2963_v25  ;;  %v4133_v33 = vsel %vm861_vm1, %v4131_v11, %v4132_v19  ;;  %v4143_v25 = vrot.slane %v19827_v30, 1 }
 0x351   : >> { %9612 = vmatmul.msk.bf16.gmra.mxu0 %vm3010_vm8, %v2951_v23  ;;  %9632 = vmatmul.msk.bf16.gmra.mxu3 %vm3010_vm8, %v2991_v52  ;;  %v19829_v23 = vld [vmem:[#allocation169_spill] sm:$0xff] }
 0x352   : >> { %v2849_v19 = vsel %vm1433_vm6, %v2785_v63, %v19829_v23  ;;  %v4144_v14 = vsel %vm861_vm1, %v4141_v38, %v4143_v25  ;;  %v4142_v63 = vsel %vm861_vm1, %v4140_v40, %v4141_v38  ;;  %v4150_v38 = vrot.slane %v13595_v20, 1  ;;  %v19840_v40 = vld [vmem:[#allocation233_spill] sm:$0xff]  ;;  %v19847_v20 = vld [vmem:[#allocation227_spill] sm:$0xff] }
 0x353   : >> { %4204 = vrot.lane.b32.xlu2 %v4137_v43, %s11037_s24  ;;  %v19832_v43 = vld [vmem:[#allocation230_spill] sm:$0xff]  ;;  %v2913_v8 = vsel %vm1498_vm7, %v2849_v19, %v19833_v56  ;;  %v2761_v19 = vsel %vm1368_vm5, %v10741_v31, %v19836_v53  ;;  %v19837_v56 = vld [vmem:[#allocation152_spill] sm:$0xff]  ;;  %v19841_v53 = vld [vmem:[#allocation235_spill] sm:$0xff] }
 0x354   : >> { %4202 = vrot.lane.b32.xlu1 %v4135_v22, %s11037_s24  ;;  %v4138_v22 = vrot.slane %v19832_v43, 1  ;;  %v2977_v41 = vsel %vm1563_vm9, %v2913_v8, %v13868_v18  ;;  %v19839_v8 = vld [vmem:[#allocation166_spill] sm:$0xff]  ;;  %v4147_v31 = vrot.slane %v19841_v53, 1 }
 0x355   : >> { %4200 = vrot.lane.b32.xlu0 %v4133_v33, %s11037_s24  ;;  %v14026_v11 = vpop.permute.xlu2 %4066 }
 0x356   : >> { %19830 = vst [vmem:[#allocation207_spill] sm:$0xff] %v14026_v11  ;;  %v14028_v52 = vpop.permute.xlu1 %4046  ;;  %v4139_v23 = vsel %vm861_vm1, %v4136_v54, %v4138_v22  ;;  %v10740_v11 = vld [vmem:[%s11183_s14 + $0x98] sm:$0xff]  ;;  %v4149_v54 = vrot.slane %v13607_v4, 1 }
 0x357   : >> { %19831 = vst [vmem:[#allocation213_spill] sm:$0xff] %v14028_v52  ;;  %v14033_v33 = vpop.permute.xlu0 %4044  ;;  %v19835_v52 = vld [vmem:[#allocation151_spill] sm:$0xff] }
 0x358   : >> { %19834 = vst [vmem:[#allocation206_spill] sm:$0xff] %v14033_v33  ;;  %v2773_v16 = vsel %vm1368_vm5, %v10740_v11, %v19835_v52  ;;  %v19838_v33 = vld [vmem:[#allocation199_spill] sm:$0xff]  ;;  %v4145_v11 = vrot.slane %v19840_v40, 1  ;;  %v19842_v52 = vld [vmem:[#allocation162_spill] sm:$0xff] }
 0x359   : >> { %9625 = vmatmul.msk.bf16.gmra.mxu2 %vm3010_vm8, %v2977_v41  ;;  %v2801_v18 = vsel %vm1368_vm5, %v19838_v33, %v19837_v56  ;;  %v2837_v41 = vsel %vm1433_vm6, %v2773_v16, %v19839_v8  ;;  %v2825_v22 = vsel %vm1433_vm6, %v2761_v19, %v19842_v52  ;;  %v19843_v33 = vld [vmem:[#allocation185_spill] sm:$0xff]  ;;  %v19844_v56 = vld [vmem:[#allocation202_spill] sm:$0xff]  ;;  %v4151_v52 = vsel %vm861_vm1, %v4149_v54, %v4150_v38 }
 0x35a   : >> { %v2865_v16 = vsel %vm1433_vm6, %v2801_v18, %v19843_v33  ;;  %v19846_v8 = vld [vmem:[#allocation194_spill] sm:$0xff]  ;;  %v4156_v54 = vrot.slane %v13683_v1, 1 }
 0x35b   : >> { %4210 = vrot.lane.b32.xlu2 %v4144_v14, %s11037_s24  ;;  %v2901_v14 = vsel %vm1498_vm7, %v2837_v41, %v19844_v56  ;;  %v2889_v4 = vsel %vm1498_vm7, %v2825_v22, %v19846_v8  ;;  %v2929_v53 = vsel %vm1498_vm7, %v2865_v16, %v19847_v20  ;;  %v4148_v20 = vsel %vm861_vm1, %v4145_v11, %v4147_v31  ;;  %v19849_v31 = vld [vmem:[#allocation181_spill] sm:$0xff]  ;;  %v19852_v16 = vld [vmem:[#allocation198_spill] sm:$0xff] }
 0x35c   : >> { %4208 = vrot.lane.b32.xlu1 %v4142_v63, %s11037_s24  ;;  %v2965_v19 = vsel %vm1563_vm9, %v2901_v14, %v13797_v37  ;;  %v2953_v18 = vsel %vm1563_vm9, %v2889_v4, %v13687_v60  ;;  %v2993_v41 = vsel %vm1563_vm9, %v2929_v53, %v13832_v2  ;;  %v4146_v22 = vsel %vm861_vm1, %v4143_v25, %v4145_v11  ;;  %v10742_v4 = vld [vmem:[%s11183_s14 + $0xd8] sm:$0xff]  ;;  %v19848_v60 = vld [vmem:[#allocation156_spill] sm:$0xff] }
 0x35d   : >> { %4206 = vrot.lane.b32.xlu0 %v4139_v23, %s11037_s24  ;;  %v14065_v63 = vpop.permute.xlu2 %4072  ;;  %v2787_v37 = vsel %vm1368_vm5, %v10742_v4, %v19848_v60  ;;  %v4154_v2 = vrot.slane %v13610_v21, 1  ;;  %v4152_v53 = vrot.slane %v13588_v39, 1  ;;  %v10434_v4 = vld [vmem:[%s19015_s1] sm:$0xff] }
 0x35e   : >> { %19845 = vst [vmem:[#allocation178_spill] sm:$0xff] %v14065_v63  ;;  %v14067_v23 = vpop.permute.xlu1 %4052  ;;  %v2851_v25 = vsel %vm1433_vm6, %v2787_v37, %v19849_v31  ;;  %v10744_v60 = vld [vmem:[%s11183_s14 + $0x120] sm:$0xff] }
 0x35f   : >> { %v14073_v40 = vpop.permute.xlu0 %4050  ;;  %v2915_v56 = vsel %vm1498_vm7, %v2851_v25, %v19852_v16  ;;  %v19854_v37 = vld [vmem:[#allocation164_spill] sm:$0xff]  ;;  %v19855_v31 = vld [vmem:[#allocation175_spill] sm:$0xff] }
 0x360   : >> { %9619 = vmatmul.msk.bf16.gmra.mxu1 %vm3010_vm8, %v2965_v19  ;;  %v2979_v8 = vsel %vm1563_vm9, %v2915_v56, %v13863_v45  ;;  %v4157_v19 = vsel %vm861_vm1, %v4154_v2, %v4156_v54  ;;  %v2803_v45 = vsel %vm1368_vm5, %v10744_v60, %v19854_v37  ;;  %v19856_v54 = vld [vmem:[#allocation240_spill] sm:$0xff]  ;;  %v19863_v37 = vld [vmem:[#allocation225_spill] sm:$0xff] }
 0x361   : >> { %9613 = vmatmul.msk.bf16.gmra.mxu0 %vm3010_vm8, %v2953_v18  ;;  %9633 = vmatmul.msk.bf16.gmra.mxu3 %vm3010_vm8, %v2993_v41  ;;  %v4155_v18 = vsel %vm861_vm1, %v4152_v53, %v4154_v2  ;;  %v4153_v41 = vsel %vm861_vm1, %v4150_v38, %v4152_v53  ;;  %v4161_v38 = vrot.slane %v13670_v51, 1  ;;  %v4163_v2 = vrot.slane %v13700_v49, 1  ;;  %v19857_v16 = vld [vmem:[#allocation196_spill] sm:$0xff] }
 0x362   : >> { %v4159_v53 = vrot.slane %v19856_v54, 1  ;;  %v3321_v56 = vand.u32 %v10434_v4, %v19857_v16 }
 0x363   : >> { %4216 = vrot.lane.b32.xlu2 %v4151_v52, %s11037_s24  ;;  %v10743_v52 = vld [vmem:[%s11183_s14 + $0xa0] sm:$0xff] }
 0x364   : >> { %4214 = vrot.lane.b32.xlu1 %v4148_v20, %s11037_s24  ;;  %v19853_v20 = vld [vmem:[#allocation150_spill] sm:$0xff]  ;;  %3330 = vmatpush.bf16.msrb.mxu1 %v3321_v56  ;;  %v4170_v56 = vrot.slane %v13753_v36, 1 }
 0x365   : >> { %4212 = vrot.lane.b32.xlu0 %v4146_v22, %s11037_s24  ;;  %v14098_v11 = vpop.permute.xlu2 %4078  ;;  %v2775_v22 = vsel %vm1368_vm5, %v10743_v52, %v19853_v20  ;;  %v19859_v20 = vld [vmem:[#allocation192_spill] sm:$0xff] }
 0x366   : >> { %19850 = vst [vmem:[#allocation208_spill] sm:$0xff] %v14098_v11  ;;  %v14100_v33 = vpop.permute.xlu1 %4058  ;;  %v2839_v25 = vsel %vm1433_vm6, %v2775_v22, %v19855_v31 }
 0x367   : >> { %19851 = vst [vmem:[#allocation193_spill] sm:$0xff] %v14100_v33  ;;  %v14104_v14 = vpop.permute.xlu0 %4056  ;;  %v2903_v22 = vsel %vm1498_vm7, %v2839_v25, %v19859_v20  ;;  %v4164_v25 = vsel %vm861_vm1, %v4161_v38, %v4163_v2 }
 0x368   : >> { %v2967_v4 = vsel %vm1563_vm9, %v2903_v22, %v13791_v50  ;;  %v4168_v50 = vrot.slane %v13716_v13, 1  ;;  %v10745_v22 = vld [vmem:[%s11183_s14 + $0xe0] sm:$0xff] }
 0x369   : >> { %9626 = vmatmul.msk.bf16.gmra.mxu2 %vm3010_vm8, %v2979_v8  ;;  %v19858_v8 = vld [vmem:[#allocation176_spill] sm:$0xff] }
 0x36a   : >> { %v2867_v52 = vsel %vm1433_vm6, %v2803_v45, %v19858_v8  ;;  %v4162_v8 = vsel %vm861_vm1, %v4159_v53, %v4161_v38 }
 0x36b   : >> { %4222 = vrot.lane.b32.xlu2 %v4157_v19, %s11037_s24  ;;  %v2931_v31 = vsel %vm1498_vm7, %v2867_v52, %v19863_v37  ;;  %v4167_v52 = vrot.slane %v13692_v17, 1 }
 0x36c   : >> { %4220 = vrot.lane.b32.xlu1 %v4155_v18, %s11037_s24  ;;  %v19862_v18 = vld [vmem:[#allocation241_spill] sm:$0xff]  ;;  %v2995_v45 = vsel %vm1563_vm9, %v2931_v31, %v13962_v44  ;;  %v19865_v44 = vld [vmem:[#allocation146_spill] sm:$0xff]  ;;  %v19866_v31 = vld [vmem:[#allocation180_spill] sm:$0xff] }
 0x36d   : >> { %4218 = vrot.lane.b32.xlu0 %v4153_v41, %s11037_s24  ;;  %v14134_v60 = vpop.permute.xlu2 %4084  ;;  %v4158_v41 = vrot.slane %v19862_v18, 1  ;;  %v2789_v37 = vsel %vm1368_vm5, %v10745_v22, %v19865_v44  ;;  %v4169_v44 = vsel %vm861_vm1, %v4167_v52, %v4168_v50  ;;  %v10747_v52 = vld [vmem:[%s11183_s14 + $0x128] sm:$0xff] }
 0x36e   : >> { %19860 = vst [vmem:[#allocation147_spill] sm:$0xff] %v14134_v60  ;;  %v14136_v19 = vpop.permute.xlu1 %4064  ;;  %v2853_v38 = vsel %vm1433_vm6, %v2789_v37, %v19866_v31  ;;  %v19871_v60 = vld [vmem:[#allocation242_spill] sm:$0xff]  ;;  %v19872_v37 = vshrl.u32 %v13298_v35, 16 }
 0x36f   : >> { %19861 = vst [vmem:[#allocation187_spill] sm:$0xff] %v14136_v19  ;;  %v14141_v11 = vpop.permute.xlu0 %4062  ;;  %v4160_v20 = vsel %vm861_vm1, %v4158_v41, %v4159_v53  ;;  %v19876_v19 = vld [vmem:[#allocation141_spill] sm:$0xff] }
 0x370   : >> { %19864 = vst [vmem:[#allocation142_spill] sm:$0xff] %v14141_v11  ;;  %9620 = vmatmul.msk.bf16.gmra.mxu1 %vm3010_vm8, %v2967_v4  ;;  %v4165_v4 = vrot.slane %v13718_v5, 1  ;;  %v4240_v31 = vrot.slane %v19872_v37, 1  ;;  %v19878_v37 = vld [vmem:[#allocation174_spill] sm:$0xff] }
 0x371   : >> { %9634 = vmatmul.msk.bf16.gmra.mxu3 %vm3010_vm8, %v2995_v45  ;;  %v19869_v45 = vld [vmem:[#allocation216_spill] sm:$0xff] }
 0x373   : >> { %4228 = vrot.lane.b32.xlu2 %v4164_v25, %s11037_s24  ;;  %v2917_v25 = vsel %vm1498_vm7, %v2853_v38, %v19869_v45  ;;  %v19875_v45 = vshll.u32 %v13293_v61, 16 }
 0x374   : >> { %4226 = vrot.lane.b32.xlu1 %v4162_v8, %s11037_s24  ;;  %v2981_v22 = vsel %vm1563_vm9, %v2917_v25, %v19871_v60  ;;  %v4166_v60 = vsel %vm861_vm1, %v4163_v2, %v4165_v4  ;;  %v10746_v25 = vld [vmem:[%s11183_s14 + $0xa8] sm:$0xff]  ;;  %v4174_v4 = vrot.slane %v13782_v58, 1 }
 0x375   : >> { %4224 = vrot.lane.b32.xlu0 %v4160_v20, %s11037_s24  ;;  %v14163_v53 = vpop.permute.xlu2 %4090  ;;  %v4171_v20 = vsel %vm861_vm1, %v4168_v50, %v4170_v56  ;;  %v2777_v50 = vsel %vm1368_vm5, %v10746_v25, %v19876_v19 }
 0x376   : >> { %19867 = vst [vmem:[#allocation182_spill] sm:$0xff] %v14163_v53  ;;  %v14165_v41 = vpop.permute.xlu1 %4070  ;;  %v19873_v53 = vshll.u32 %v13298_v35, 16  ;;  %v2841_v35 = vsel %vm1433_vm6, %v2777_v50, %v19878_v37  ;;  %v19881_v50 = vld [vmem:[#allocation209_spill] sm:$0xff] }
 0x377   : >> { %19868 = vst [vmem:[#allocation161_spill] sm:$0xff] %v14165_v41  ;;  %v14170_v8 = vpop.permute.xlu0 %4068  ;;  %v19874_v41 = vshrl.u32 %v13293_v61, 16  ;;  %v4255_v61 = vshrl.u32 %v19782_v10, 16 }
 0x378   : >> { %19870 = vst [vmem:[#allocation197_spill] sm:$0xff] %v14170_v8  ;;  %v4241_v63 = vrot.slane %v19873_v53, 2  ;;  %v4244_v8 = vrot.slane %v19875_v45, 2  ;;  %v19879_v53 = vld [vmem:[#allocation189_spill] sm:$0xff] }
 0x379   : >> { %9627 = vmatmul.msk.bf16.gmra.mxu2 %vm3010_vm8, %v2981_v22  ;;  %v4243_v38 = vrot.slane %v19874_v41, 1  ;;  %v19877_v22 = vld [vmem:[#allocation163_spill] sm:$0xff]  ;;  %v4172_v41 = vrot.slane %v13748_v62, 1  ;;  %v19880_v45 = vld [vmem:[#allocation205_spill] sm:$0xff] }
 0x37a   : >> { %v2805_v11 = vsel %vm1368_vm5, %v10747_v52, %v19877_v22  ;;  %v4242_v2 = vor.u32 %v4241_v63, %v4240_v31  ;;  %v2905_v25 = vsel %vm1498_vm7, %v2841_v35, %v19880_v45  ;;  %v19886_v31 = vshrl.u32 %v13328_v48, 16 }
 0x37b   : >> { %v2869_v33 = vsel %vm1433_vm6, %v2805_v11, %v19879_v53  ;;  %4234 = vrot.lane.b32.xlu2 %v4171_v20, %s11037_s24  ;;  %v4245_v19 = vor.u32 %v4244_v8, %v4243_v38  ;;  %v19887_v22 = vshll.u32 %v13328_v48, 16  ;;  %v19888_v35 = vshll.u32 %v19782_v10, 16 }
 0x37c   : >> { %4232 = vrot.lane.b32.xlu1 %v4169_v44, %s11037_s24  ;;  %v2933_v11 = vsel %vm1498_vm7, %v2869_v33, %v19881_v50  ;;  %v4251_v38 = vrot.slane %v19886_v31, 1  ;;  %v4257_v33 = vrot.slane %v4255_v61, 1  ;;  %v19889_v45 = vshrl.u32 %v13309_v6, 16  ;;  %v19891_v61 = vld [vmem:[#allocation159_spill] sm:$0xff] }
 0x37d   : >> { %4230 = vrot.lane.b32.xlu0 %v4166_v60, %s11037_s24  ;;  %v14206_v52 = vpop.permute.xlu2 %4096  ;;  %v19885_v60 = vld [vmem:[#allocation239_spill] sm:$0xff]  ;;  %v2997_v8 = vsel %vm1563_vm9, %v2933_v11, %v13958_v29  ;;  %v4252_v37 = vrot.slane %v19887_v22, 2  ;;  %v4258_v53 = vrot.slane %v19888_v35, 2  ;;  %v4246_v29 = vsel %vm998_vm2, %v4242_v2, %v4245_v19 }
 0x37e   : >> { %19882 = vst [vmem:[#allocation172_spill] sm:$0xff] %v14206_v52  ;;  %v14208_v20 = vpop.permute.xlu1 %4076  ;;  %v2969_v63 = vsel %vm1563_vm9, %v2905_v25, %v19885_v60  ;;  %v4247_v50 = vrot.slane %v19889_v45, 1  ;;  %v19890_v25 = vshll.u32 %v13309_v6, 16  ;;  %v4175_v48 = vsel %vm861_vm1, %v4172_v41, %v4174_v4  ;;  %v19892_v45 = vld [vmem:[#allocation170_spill] sm:$0xff]  ;;  %v19893_v2 = vld [vmem:[#allocation215_spill] sm:$0xff]  ;;  %v19910_v52 = vld [vmem:[#allocation188_spill] sm:$0xff] }
 0x37f   : >> { %19883 = vst [vmem:[#allocation219_spill] sm:$0xff] %v14208_v20  ;;  %v14210_v44 = vpop.permute.xlu0 %4074  ;;  %v4173_v11 = vsel %vm861_vm1, %v4170_v56, %v4172_v41  ;;  %v4253_v22 = vor.u32 %v4252_v37, %v4251_v38  ;;  %v4259_v6 = vor.u32 %v4258_v53, %v4257_v33  ;;  %v10749_v41 = vld [vmem:[%s11183_s14] sm:$0xff]  ;;  %v19898_v53 = vshrl.u32 %v19778_v12, 16  ;;  %v10791_v20 = vld [vmem:[%s11183_s14 + $0x138] sm:$0xff] }
 0x380   : >> { %19884 = vst [vmem:[#allocation218_spill] sm:$0xff] %v14210_v44  ;;  %9621 = vmatmul.msk.bf16.gmra.mxu1 %vm3010_vm8, %v2969_v63  ;;  %v4248_v60 = vrot.slane %v19890_v25, 2  ;;  %v10748_v63 = vld [vmem:[%s11183_s14 + $0xe8] sm:$0xff] }
 0x381   : >> { %9635 = vmatmul.msk.bf16.gmra.mxu3 %vm3010_vm8, %v2997_v8  ;;  %v2791_v31 = vsel %vm1368_vm5, %v10748_v63, %v19891_v61  ;;  %v19895_v25 = vld [vmem:[#allocation16_spill] sm:$0xff]  ;;  %v4260_v37 = vsel %vm998_vm2, %v4253_v22, %v4259_v6  ;;  %v19900_v61 = vshrl.u32 %v19793_v59, 16  ;;  %v19903_v6 = vshll.u32 %v19777_v28, 16 }
 0x382   : >> { %v4249_v35 = vor.u32 %v4248_v60, %v4247_v50  ;;  %v2855_v8 = vsel %vm1433_vm6, %v2791_v31, %v19892_v45  ;;  %v1370_v63 = vsel %vm1368_vm5, %v10749_v41, %v19895_v25  ;;  %v4268_v50 = vrot.slane %v19898_v53, 1 }
 0x383   : >> { %4408 = vrot.lane.b32.xlu2 %v4246_v29, %s11038_s27  ;;  %v2919_v4 = vsel %vm1498_vm7, %v2855_v8, %v19893_v2  ;;  %v19899_v60 = vshll.u32 %v19778_v12, 16  ;;  %v4272_v31 = vrot.slane %v19900_v61, 1  ;;  %v19901_v45 = vshll.u32 %v19793_v59, 16  ;;  %v19907_v61 = vld [vmem:[#allocation78_spill] sm:$0xff] }
 0x384   : >> { %4238 = vrot.lane.b32.xlu1 %v4175_v48, %s11037_s24  ;;  %v2983_v38 = vsel %vm1563_vm9, %v2919_v4, %v13897_v57  ;;  %v4254_v33 = vsel %vm998_vm2, %v4249_v35, %v4253_v22  ;;  %v19902_v57 = vshrl.u32 %v19777_v28, 16  ;;  %v4265_v22 = vrot.slane %v19903_v6, 2  ;;  %v19904_v4 = vld [vmem:[#allocation36_spill] sm:$0xff] }
 0x385   : >> { %4236 = vrot.lane.b32.xlu0 %v4173_v11, %s11037_s24  ;;  %v14241_v56 = vpop.permute.xlu2 %4102  ;;  %v4269_v11 = vrot.slane %v19899_v60, 2  ;;  %v4273_v8 = vrot.slane %v19901_v45, 2  ;;  %v1435_v41 = vsel %vm1433_vm6, %v1370_v63, %v19904_v4  ;;  %v4250_v12 = vsel %vm998_vm2, %v4245_v19, %v4249_v35  ;;  %v10750_v45 = vld [vmem:[%s11183_s14 + $0x130] sm:$0xff]  ;;  %v19909_v28 = vld [vmem:[#allocation112_spill] sm:$0xff] }
 0x386   : >> { %19894 = vst [vmem:[#allocation212_spill] sm:$0xff] %v14241_v56  ;;  %v14246_v29 = vpop.permute.xlu1 %4082  ;;  %v4264_v2 = vrot.slane %v19902_v57, 1  ;;  %v19905_v25 = vshrl.u32 %v19779_v27, 16  ;;  %v19906_v53 = vshll.u32 %v19779_v27, 16  ;;  %v1500_v59 = vsel %vm1498_vm7, %v1435_v41, %v19907_v61  ;;  %v19908_v56 = vld [vmem:[#allocation155_spill] sm:$0xff]  ;;  %v19911_v19 = vld [vmem:[#allocation232_spill] sm:$0xff] }
 0x387   : >> { %19896 = vst [vmem:[#allocation214_spill] sm:$0xff] %v14246_v29  ;;  %v14248_v48 = vpop.permute.xlu0 %4080  ;;  %v2807_v57 = vsel %vm1368_vm5, %v10750_v45, %v19908_v56  ;;  %v1565_v6 = vsel %vm1563_vm9, %v1500_v59, %v19909_v28  ;;  %v4270_v4 = vor.u32 %v4269_v11, %v4268_v50  ;;  %v4274_v41 = vor.u32 %v4273_v8, %v4272_v31 }
 0x388   : >> { %19897 = vst [vmem:[#allocation168_spill] sm:$0xff] %v14248_v48  ;;  %v4262_v60 = vrot.slane %v19906_v53, 2  ;;  %v2871_v63 = vsel %vm1433_vm6, %v2807_v57, %v19910_v52  ;;  %v4266_v56 = vor.u32 %v4265_v22, %v4264_v2  ;;  %v19913_v61 = vshrl.u32 %v19792_v9, 16  ;;  %v10782_v48 = vld [vmem:[%s11183_s14 + $0x114] sm:$0xff] }
 0x389   : >> { %9628 = vmatmul.msk.bf16.gmra.mxu2 %vm3010_vm8, %v2983_v38  ;;  %v4261_v38 = vrot.slane %v19905_v25, 1  ;;  %v2935_v27 = vsel %vm1498_vm7, %v2871_v63, %v19911_v19  ;;  %v19918_v11 = vshll.u32 %v19805_v32, 16  ;;  %v19919_v8 = vshrl.u32 %v19791_v15, 16 }
 0x38a   : >> { %v4285_v52 = vrot.slane %v19913_v61, 1  ;;  %v19920_v22 = vshll.u32 %v19791_v15, 16  ;;  %v4271_v28 = vsel %vm998_vm2, %v4266_v56, %v4270_v4  ;;  %v19921_v19 = vshll.u32 %v19794_v34, 16 }
 0x38b   : >> { %4414 = vrot.lane.b32.xlu2 %v4260_v37, %s11038_s27  ;;  %v4263_v53 = vor.u32 %v4262_v60, %v4261_v38  ;;  %v19914_v37 = vshll.u32 %v19792_v9, 16  ;;  %v4290_v31 = vrot.slane %v19918_v11, 2  ;;  %v4282_v2 = vrot.slane %v19919_v8, 1  ;;  %v10751_v11 = vld [vmem:[%s11183_s14 + $0xf0] sm:$0xff] }
 0x38c   : >> { %4412 = vrot.lane.b32.xlu1 %v4254_v33, %s11038_s27  ;;  %v4276_v33 = vshrl.u32 %v19794_v34, 16  ;;  %v4283_v9 = vrot.slane %v19920_v22, 2  ;;  %v2999_v38 = vsel %vm1563_vm9, %v2935_v27, %v13861_v0  ;;  %v4275_v60 = vsel %vm998_vm2, %v4270_v4, %v4274_v41  ;;  %v19922_v8 = vld [vmem:[#allocation158_spill] sm:$0xff] }
 0x38d   : >> { %4410 = vrot.lane.b32.xlu0 %v4250_v12, %s11038_s27  ;;  %v14288_v35 = vpop.f32.mrf.mxu1  ;;  %v14290_v25 = vpop.permute.xlu2 %4180  ;;  %v4286_v59 = vrot.slane %v19914_v37, 2  ;;  %v19917_v12 = vshrl.u32 %v19805_v32, 16  ;;  %v4267_v32 = vsel %vm998_vm2, %v4263_v53, %v4266_v56  ;;  %v4279_v61 = vrot.slane %v19921_v19, 2  ;;  %v19925_v53 = vld [vmem:[#allocation201_spill] sm:$0xff] }
 0x38e   : >> { %19912 = vst [vmem:[#allocation173_spill] sm:$0xff] %v14288_v35  ;;  %v14297_v45 = vpop.permute.xlu1 %4088  ;;  %v4278_v63 = vrot.slane %v4276_v33, 1  ;;  %v2793_v0 = vsel %vm1368_vm5, %v10751_v11, %v19922_v8  ;;  %v4297_v56 = vshrl.u32 %v19804_v47, 16 }
 0x38f   : >> { %19915 = vst [vmem:[#allocation190_spill] sm:$0xff] %v14297_v45  ;;  %v14299_v57 = vpop.permute.xlu0 %4086  ;;  %v4289_v50 = vrot.slane %v19917_v12, 1  ;;  %v4287_v37 = vor.u32 %v4286_v59, %v4285_v52  ;;  %v4284_v12 = vor.u32 %v4283_v9, %v4282_v2 }
 0x390   : >> { %19916 = vst [vmem:[#allocation184_spill] sm:$0xff] %v14299_v57  ;;  %9642 = vmatmul.msk.bf16.vlgmr.msrb.gmra.mxu1 %vm3010_vm8, %v1565_v6  ;;  %v19923_v6 = vld [vmem:[#allocation183_spill] sm:$0xff]  ;;  %v4280_v33 = vor.u32 %v4279_v61, %v4278_v63  ;;  %v19930_v63 = vshrl.u32 %v19814_v46, 16  ;;  %v19931_v61 = vshll.u32 %v19814_v46, 16 }
 0x391   : >> { %9636 = vmatmul.msk.bf16.gmra.mxu3 %vm3010_vm8, %v2999_v38  ;;  %v4291_v15 = vor.u32 %v4290_v31, %v4289_v50  ;;  %v2857_v27 = vsel %vm1433_vm6, %v2793_v0, %v19923_v6  ;;  %v4288_v9 = vsel %vm998_vm2, %v4284_v12, %v4287_v37  ;;  %v19928_v38 = vshrl.u32 %v19820_v24, 16  ;;  %v10753_v46 = vld [vmem:[%s11183_s14 + $0x138] sm:$0xff] }
 0x392   : >> { %v2921_v52 = vsel %vm1498_vm7, %v2857_v27, %v19925_v53  ;;  %v4306_v19 = vrot.slane %v19930_v63, 1  ;;  %v4307_v11 = vrot.slane %v19931_v61, 2  ;;  %v19933_v0 = vshll.u32 %v19803_v55, 16  ;;  %v10752_v53 = vld [vmem:[%s11183_s14 + $0x8] sm:$0xff] }
 0x393   : >> { %4420 = vrot.lane.b32.xlu2 %v4275_v60, %s11038_s27  ;;  %v2985_v2 = vsel %vm1563_vm9, %v2921_v52, %v13892_v3  ;;  %v4292_v22 = vsel %vm998_vm2, %v4287_v37, %v4291_v15  ;;  %v4303_v60 = vrot.slane %v19928_v38, 1  ;;  %v19932_v3 = vshrl.u32 %v19803_v55, 16  ;;  %v19935_v52 = vld [vmem:[#allocation19_spill] sm:$0xff]  ;;  %v19937_v63 = vld [vmem:[#allocation49_spill] sm:$0xff] }
 0x394   : >> { %4418 = vrot.lane.b32.xlu1 %v4271_v28, %s11038_s27  ;;  %v19929_v28 = vshll.u32 %v19820_v24, 16  ;;  %v4294_v37 = vrot.slane %v19933_v0, 2  ;;  %v4299_v12 = vrot.slane %v4297_v56, 1  ;;  %v19934_v6 = vshll.u32 %v19804_v47, 16 }
 0x395   : >> { %4416 = vrot.lane.b32.xlu0 %v4267_v32, %s11038_s27  ;;  %v14326_v4 = vpop.f32.mrf.mxu1  ;;  %v14331_v59 = vpop.permute.xlu2 %4186  ;;  %v4293_v8 = vrot.slane %v19932_v3, 1  ;;  %v4281_v24 = vsel %vm998_vm2, %v4274_v41, %v4280_v33  ;;  %v1372_v38 = vsel %vm1368_vm5, %v10752_v53, %v19935_v52  ;;  %v19938_v3 = vld [vmem:[#allocation179_spill] sm:$0xff]  ;;  %v4318_v41 = vshrl.u32 %v19832_v43, 16  ;;  %v19940_v52 = vld [vmem:[#allocation69_spill] sm:$0xff] }
 0x396   : >> { %19924 = vst [vmem:[#allocation221_spill] sm:$0xff] %v14326_v4  ;;  %v14333_v50 = vpop.permute.xlu1 %4094  ;;  %v4304_v32 = vrot.slane %v19929_v28, 2  ;;  %v4300_v27 = vrot.slane %v19934_v6, 2  ;;  %v19936_v28 = vld [vmem:[#allocation165_spill] sm:$0xff]  ;;  %v1437_v61 = vsel %vm1433_vm6, %v1372_v38, %v19937_v63  ;;  %v4308_v0 = vor.u32 %v4307_v11, %v4306_v19  ;;  %v19945_v63 = vld [vmem:[#allocation111_spill] sm:$0xff] }
 0x397   : >> { %19926 = vst [vmem:[#allocation144_spill] sm:$0xff] %v14333_v50  ;;  %v14335_v31 = vpop.permute.xlu0 %4092  ;;  %v4295_v6 = vor.u32 %v4294_v37, %v4293_v8  ;;  %v1502_v38 = vsel %vm1498_vm7, %v1437_v61, %v19940_v52  ;;  %v19947_v11 = vshll.u32 %v13504_v26, 16  ;;  %v4320_v37 = vrot.slane %v4318_v41, 1 }
 0x398   : >> { %19927 = vst [vmem:[#allocation191_spill] sm:$0xff] %v14335_v31  ;;  %v4305_v33 = vor.u32 %v4304_v32, %v4303_v60  ;;  %v4301_v53 = vor.u32 %v4300_v27, %v4299_v12  ;;  %v1567_v60 = vsel %vm1563_vm9, %v1502_v38, %v19945_v63  ;;  %v19946_v32 = vshrl.u32 %v13504_v26, 16 }
 0x399   : >> { %9629 = vmatmul.msk.bf16.gmra.mxu2 %vm3010_vm8, %v2985_v2  ;;  %v2809_v2 = vsel %vm1368_vm5, %v10753_v46, %v19936_v28  ;;  %v19941_v46 = vld [vmem:[#allocation231_spill] sm:$0xff]  ;;  %v4315_v8 = vrot.slane %v19947_v11, 2  ;;  %v19948_v12 = vshll.u32 %v19832_v43, 16  ;;  %v19949_v61 = vshrl.u32 %v13482_v42, 16  ;;  %v19955_v11 = vld [vmem:[#allocation233_spill] sm:$0xff] }
 0x39a   : >> { %v2873_v55 = vsel %vm1433_vm6, %v2809_v2, %v19938_v3  ;;  %v4314_v19 = vrot.slane %v19946_v32, 1  ;;  %v4309_v52 = vsel %vm998_vm2, %v4305_v33, %v4308_v0  ;;  %v4302_v38 = vsel %vm998_vm2, %v4295_v6, %v4301_v53 }
 0x39b   : >> { %4426 = vrot.lane.b32.xlu2 %v4292_v22, %s11038_s27  ;;  %v2937_v28 = vsel %vm1498_vm7, %v2873_v55, %v19941_v46  ;;  %v4321_v27 = vrot.slane %v19948_v12, 2  ;;  %v4310_v3 = vrot.slane %v19949_v61, 1  ;;  %v4296_v26 = vsel %vm998_vm2, %v4291_v15, %v4295_v6  ;;  %v19958_v61 = vld [vmem:[#allocation229_spill] sm:$0xff] }
 0x39c   : >> { %4424 = vrot.lane.b32.xlu1 %v4288_v9, %s11038_s27  ;;  %v4316_v41 = vor.u32 %v4315_v8, %v4314_v19  ;;  %v19953_v53 = vshrl.u32 %v19827_v30, 16  ;;  %v19954_v32 = vshll.u32 %v19827_v30, 16  ;;  %v19956_v8 = vshrl.u32 %v19955_v11, 16  ;;  %v19962_v30 = vld [vmem:[#allocation228_spill] sm:$0xff] }
 0x39d   : >> { %4422 = vrot.lane.b32.xlu0 %v4281_v24, %s11038_s27  ;;  %v14371_v56 = vpop.f32.mrf.mxu1  ;;  %v14377_v2 = vpop.permute.xlu2 %4192  ;;  %v3001_v24 = vsel %vm1563_vm9, %v2937_v28, %v14002_v7  ;;  %v19950_v7 = vshll.u32 %v13482_v42, 16  ;;  %v4322_v46 = vor.u32 %v4321_v27, %v4320_v37  ;;  %v19957_v12 = vshll.u32 %v19955_v11, 16  ;;  %v19965_v11 = vld [vmem:[#allocation47_spill] sm:$0xff] }
 0x39e   : >> { %19939 = vst [vmem:[#allocation220_spill] sm:$0xff] %v14371_v56  ;;  %v14379_v22 = vpop.permute.xlu1 %4100  ;;  %v4332_v19 = vrot.slane %v19954_v32, 2  ;;  %v4335_v37 = vrot.slane %v19956_v8, 1  ;;  %v19964_v8 = vshll.u32 %v19962_v30, 16 }
 0x39f   : >> { %19942 = vst [vmem:[#allocation226_spill] sm:$0xff] %v14377_v2  ;;  %v14381_v9 = vpop.permute.xlu0 %4098  ;;  %v4311_v55 = vrot.slane %v19950_v7, 2  ;;  %v4323_v15 = vsel %vm998_vm2, %v4316_v41, %v4322_v46  ;;  %v4336_v27 = vrot.slane %v19957_v12, 2  ;;  %v20143_v2 = vld [vmem:[#allocation153_spill] sm:$0xff] }
 0x3a0   : >> { %19943 = vst [vmem:[#allocation217_spill] sm:$0xff] %v14379_v22  ;;  %9643 = vmatmul.msk.bf16.gmra.mxu1 %vm3010_vm8, %v1567_v60  ;;  %v4331_v60 = vrot.slane %v19953_v53, 1  ;;  %v19963_v53 = vshrl.u32 %v19962_v30, 16  ;;  %v4325_v22 = vrot.slane %v19964_v8, 2 }
 0x3a1   : >> { %19944 = vst [vmem:[#allocation177_spill] sm:$0xff] %v14381_v9  ;;  %9637 = vmatmul.msk.bf16.gmra.mxu3 %vm3010_vm8, %v3001_v24  ;;  %v4312_v28 = vor.u32 %v4311_v55, %v4310_v3  ;;  %v19959_v3 = vshrl.u32 %v19958_v61, 16  ;;  %v19960_v55 = vshll.u32 %v19958_v61, 16  ;;  %v19966_v9 = vld [vmem:[#allocation82_spill] sm:$0xff] }
 0x3a2   : >> { %v4324_v32 = vrot.slane %v19963_v53, 1  ;;  %v19970_v53 = vld [vmem:[#allocation237_spill] sm:$0xff] }
 0x3a3   : >> { %4432 = vrot.lane.b32.xlu2 %v4309_v52, %s11038_s27  ;;  %v4317_v6 = vsel %vm998_vm2, %v4312_v28, %v4316_v41  ;;  %v4327_v7 = vrot.slane %v19959_v3, 1  ;;  %v4328_v52 = vrot.slane %v19960_v55, 2  ;;  %v4313_v46 = vsel %vm998_vm2, %v4308_v0, %v4312_v28  ;;  %v19968_v0 = vld [vmem:[#allocation101_spill] sm:$0xff] }
 0x3a4   : >> { %4430 = vrot.lane.b32.xlu1 %v4302_v38, %s11038_s27  ;;  %v10754_v38 = vld [vmem:[%s11183_s14 + $0x10] sm:$0xff]  ;;  %v4333_v55 = vor.u32 %v4332_v19, %v4331_v60  ;;  %v19971_v8 = vshrl.u32 %v19970_v53, 16  ;;  %v19975_v19 = vshll.u32 %v13588_v39, 16 }
 0x3a5   : >> { %4428 = vrot.lane.b32.xlu0 %v4296_v26, %s11038_s27  ;;  %v14405_v42 = vpop.f32.mrf.mxu1  ;;  %v14407_v63 = vpop.permute.xlu2 %4198  ;;  %v19961_v26 = vld [vmem:[#allocation15_spill] sm:$0xff] }
 0x3a6   : >> { %19951 = vst [vmem:[#allocation211_spill] sm:$0xff] %v14405_v42  ;;  %v14409_v24 = vpop.permute.xlu1 %4178  ;;  %v1374_v41 = vsel %vm1368_vm5, %v10754_v38, %v19961_v26  ;;  %v4337_v38 = vor.u32 %v4336_v27, %v4335_v37  ;;  %v4329_v26 = vor.u32 %v4328_v52, %v4327_v7  ;;  %v4353_v37 = vrot.slane %v19975_v19, 2  ;;  %v19976_v27 = vld [vmem:[#allocation238_spill] sm:$0xff] }
 0x3a7   : >> { %19952 = vst [vmem:[#allocation135_spill] sm:$0xff] %v14407_v63  ;;  %v14411_v33 = vpop.permute.xlu0 %4176  ;;  %v1439_v12 = vsel %vm1433_vm6, %v1374_v41, %v19965_v11  ;;  %v4326_v41 = vor.u32 %v4325_v22, %v4324_v32  ;;  %v19977_v22 = vshrl.u32 %v19976_v27, 16  ;;  %v19978_v52 = vshll.u32 %v19976_v27, 16  ;;  %v14921_v63 = vld [vmem:[%s11183_s14 + $0xb4] sm:$0xff] }
 0x3a8   : >> { %v1504_v3 = vsel %vm1498_vm7, %v1439_v12, %v19966_v9  ;;  %v4348_v9 = vrot.slane %v19971_v8, 1  ;;  %v4360_v27 = vshrl.u32 %v13683_v1, 16  ;;  %20094 = vst [vmem:[#allocation78_spill] sm:$0xff] %v14921_v63 }
 0x3a9   : >> { %v1569_v28 = vsel %vm1563_vm9, %v1504_v3, %v19968_v0  ;;  %v19974_v3 = vshrl.u32 %v13588_v39, 16  ;;  %v4345_v7 = vrot.slane %v19977_v22, 1  ;;  %v4346_v32 = vrot.slane %v19978_v52, 2 }
 0x3aa   : >> { %v4338_v0 = vsel %vm998_vm2, %v4333_v55, %v4337_v38  ;;  %v4330_v8 = vsel %vm998_vm2, %v4326_v41, %v4329_v26  ;;  %v19983_v22 = vshll.u32 %v19862_v18, 16  ;;  %v19984_v52 = vshrl.u32 %v19856_v54, 16 }
 0x3ab   : >> { %4438 = vrot.lane.b32.xlu2 %v4323_v15, %s11038_s27  ;;  %v19972_v15 = vshll.u32 %v19970_v53, 16  ;;  %v4352_v60 = vrot.slane %v19974_v3, 1  ;;  %v4334_v53 = vsel %vm998_vm2, %v4329_v26, %v4333_v55  ;;  %v4347_v45 = vor.u32 %v4346_v32, %v4345_v7 }
 0x3ac   : >> { %4436 = vrot.lane.b32.xlu1 %v4317_v6, %s11038_s27  ;;  %v19973_v6 = vld [vmem:[#allocation235_spill] sm:$0xff]  ;;  %v4367_v7 = vrot.slane %v19983_v22, 2  ;;  %v4369_v32 = vrot.slane %v19984_v52, 1  ;;  %v4362_v57 = vrot.slane %v4360_v27, 1  ;;  %v19989_v22 = vld [vmem:[#allocation18_spill] sm:$0xff] }
 0x3ad   : >> { %4434 = vrot.lane.b32.xlu0 %v4313_v46, %s11038_s27  ;;  %v14442_v61 = vpop.f32.mrf.mxu1  ;;  %v14446_v30 = vpop.permute.xlu2 %4204  ;;  %v4349_v11 = vrot.slane %v19972_v15, 2  ;;  %v4339_v12 = vshrl.u32 %v19973_v6, 16  ;;  %v19979_v3 = vshll.u32 %v19973_v6, 16  ;;  %v4354_v19 = vor.u32 %v4353_v37, %v4352_v60  ;;  %v19990_v52 = vld [vmem:[#allocation39_spill] sm:$0xff] }
 0x3ae   : >> { %19967 = vst [vmem:[#allocation140_spill] sm:$0xff] %v14442_v61  ;;  %v14453_v46 = vpop.permute.xlu1 %4184  ;;  %v19982_v60 = vshrl.u32 %v19862_v18, 16  ;;  %v10755_v18 = vld [vmem:[%s11183_s14 + $0x18] sm:$0xff] }
 0x3af   : >> { %19969 = vst [vmem:[#allocation160_spill] sm:$0xff] %v14446_v30  ;;  %v14455_v50 = vpop.permute.xlu0 %4182  ;;  %v4341_v15 = vrot.slane %v4339_v12, 1  ;;  %v4342_v31 = vrot.slane %v19979_v3, 2  ;;  %v4350_v39 = vor.u32 %v4349_v11, %v4348_v9  ;;  %v1376_v29 = vsel %vm1368_vm5, %v10755_v18, %v19989_v22  ;;  %v20086_v30 = vld [vmem:[#allocation58_spill] sm:$0xff] }
 0x3b0   : >> { %9644 = vmatmul.msk.bf16.gmra.mxu1 %vm3010_vm8, %v1569_v28  ;;  %v4366_v37 = vrot.slane %v19982_v60, 1 }
 0x3b1   : >> { %v4343_v26 = vor.u32 %v4342_v31, %v4341_v15  ;;  %v4355_v9 = vsel %vm998_vm2, %v4350_v39, %v4354_v19  ;;  %v4351_v11 = vsel %vm998_vm2, %v4347_v45, %v4350_v39  ;;  %v19987_v15 = vshll.u32 %v13610_v21, 16 }
 0x3b2   : >> { %v19988_v45 = vshll.u32 %v13683_v1, 16 }
 0x3b3   : >> { %4444 = vrot.lane.b32.xlu2 %v4338_v0, %s11038_s27  ;;  %v19985_v0 = vshll.u32 %v19856_v54, 16  ;;  %v4357_v3 = vrot.slane %v19987_v15, 2  ;;  %v4344_v60 = vsel %vm998_vm2, %v4337_v38, %v4343_v26  ;;  %v1441_v54 = vsel %vm1433_vm6, %v1376_v29, %v19990_v52  ;;  %v19992_v15 = vld [vmem:[#allocation81_spill] sm:$0xff] }
 0x3b4   : >> { %4442 = vrot.lane.b32.xlu1 %v4334_v53, %s11038_s27  ;;  %v19986_v53 = vshrl.u32 %v13610_v21, 16  ;;  %v4363_v39 = vrot.slane %v19988_v45, 2  ;;  %v4381_v21 = vshrl.u32 %v13718_v5, 16  ;;  %v1506_v45 = vsel %vm1498_vm7, %v1441_v54, %v19992_v15 }
 0x3b5   : >> { %4440 = vrot.lane.b32.xlu0 %v4330_v8, %s11038_s27  ;;  %v14474_v28 = vpop.f32.mrf.mxu1  ;;  %v14477_v55 = vpop.permute.xlu2 %4210  ;;  %v4370_v31 = vrot.slane %v19985_v0, 2  ;;  %v4368_v0 = vor.u32 %v4367_v7, %v4366_v37  ;;  %v19998_v37 = vshll.u32 %v13700_v49, 16 }
 0x3b6   : >> { %19980 = vst [vmem:[#allocation200_spill] sm:$0xff] %v14474_v28  ;;  %v14479_v41 = vpop.permute.xlu1 %4190  ;;  %v4356_v8 = vrot.slane %v19986_v53, 1  ;;  %v4364_v26 = vor.u32 %v4363_v39, %v4362_v57  ;;  %v4383_v57 = vrot.slane %v4381_v21, 1  ;;  %v20001_v39 = vshll.u32 %v13670_v51, 16 }
 0x3b7   : >> { %19981 = vst [vmem:[#allocation171_spill] sm:$0xff] %v14477_v55  ;;  %v14481_v12 = vpop.permute.xlu0 %4188  ;;  %v4371_v53 = vor.u32 %v4370_v31, %v4369_v32  ;;  %v4378_v7 = vrot.slane %v19998_v37, 2  ;;  %v19999_v32 = vshll.u32 %v13718_v5, 16 }
 0x3b8   : >> { %v4358_v38 = vor.u32 %v4357_v3, %v4356_v8  ;;  %v20000_v8 = vshrl.u32 %v13670_v51, 16  ;;  %v4374_v54 = vrot.slane %v20001_v39, 2  ;;  %v20010_v39 = vshrl.u32 %v13716_v13, 16 }
 0x3b9   : >> { %v4384_v31 = vrot.slane %v19999_v32, 2  ;;  %v4372_v15 = vsel %vm998_vm2, %v4368_v0, %v4371_v53  ;;  %v20008_v32 = vshrl.u32 %v13748_v62, 16 }
 0x3ba   : >> { %v4373_v3 = vrot.slane %v20000_v8, 1  ;;  %v20009_v8 = vshll.u32 %v13748_v62, 16  ;;  %v20015_v62 = vld [vmem:[#allocation52_spill] sm:$0xff] }
 0x3bb   : >> { %4450 = vrot.lane.b32.xlu2 %v4355_v9, %s11038_s27  ;;  %v4385_v21 = vor.u32 %v4384_v31, %v4383_v57  ;;  %v4398_v31 = vrot.slane %v20008_v32, 1 }
 0x3bc   : >> { %4448 = vrot.lane.b32.xlu1 %v4351_v11, %s11038_s27  ;;  %v19996_v11 = vld [vmem:[#allocation115_spill] sm:$0xff] }
 0x3bd   : >> { %4446 = vrot.lane.b32.xlu0 %v4344_v60, %s11038_s27  ;;  %v14509_v27 = vpop.f32.mrf.mxu1  ;;  %v14513_v18 = vpop.permute.xlu2 %4216  ;;  %v1571_v22 = vsel %vm1563_vm9, %v1506_v45, %v19996_v11  ;;  %v19997_v60 = vshrl.u32 %v13700_v49, 16  ;;  %v4365_v45 = vsel %vm998_vm2, %v4358_v38, %v4364_v26  ;;  %v4359_v11 = vsel %vm998_vm2, %v4354_v19, %v4358_v38 }
 0x3be   : >> { %19991 = vst [vmem:[#allocation222_spill] sm:$0xff] %v14509_v27  ;;  %v14515_v29 = vpop.permute.xlu1 %4196  ;;  %v20006_v26 = vshrl.u32 %v13753_v36, 16 }
 0x3bf   : >> { %19993 = vst [vmem:[#allocation167_spill] sm:$0xff] %v14513_v18  ;;  %v14517_v9 = vpop.permute.xlu0 %4194  ;;  %v4377_v52 = vrot.slane %v19997_v60, 1 }
 0x3c0   : >> { %19994 = vst [vmem:[#allocation186_spill] sm:$0xff] %v14515_v29  ;;  %9645 = vmatmul.msk.bf16.gmra.mxu1 %vm3010_vm8, %v1571_v22  ;;  %v4375_v22 = vor.u32 %v4374_v54, %v4373_v3  ;;  %v4399_v3 = vrot.slane %v20009_v8, 2  ;;  %v4390_v54 = vrot.slane %v20010_v39, 1  ;;  %v14981_v29 = vld [vmem:[%s11183_s14 + $0xcc] sm:$0xff] }
 0x3c1   : >> { %19995 = vst [vmem:[#allocation203_spill] sm:$0xff] %v14517_v9  ;;  %v4379_v49 = vor.u32 %v4378_v7, %v4377_v52  ;;  %v4394_v52 = vrot.slane %v20006_v26, 1  ;;  %v20007_v7 = vshll.u32 %v13753_v36, 16  ;;  %v20013_v36 = vshll.u32 %v13692_v17, 16  ;;  %v20138_v9 = vld [vmem:[#allocation28_spill] sm:$0xff] }
 0x3c2   : >> { %v4400_v8 = vor.u32 %v4399_v3, %v4398_v31  ;;  %20108 = vst [vmem:[#allocation19_spill] sm:$0xff] %v14981_v29 }
 0x3c3   : >> { %4456 = vrot.lane.b32.xlu2 %v4372_v15, %s11038_s27  ;;  %v4386_v19 = vsel %vm998_vm2, %v4379_v49, %v4385_v21  ;;  %v4380_v38 = vsel %vm998_vm2, %v4375_v22, %v4379_v49  ;;  %v4395_v57 = vrot.slane %v20007_v7, 2  ;;  %v20011_v15 = vshll.u32 %v13716_v13, 16  ;;  %v10756_v7 = vld [vmem:[%s11183_s14 + $0x24] sm:$0xff] }
 0x3c4   : >> { %4454 = vrot.lane.b32.xlu1 %v4365_v45, %s11038_s27  ;;  %v20012_v49 = vshrl.u32 %v13692_v17, 16  ;;  %v4388_v26 = vrot.slane %v20013_v36, 2  ;;  %v20017_v17 = vld [vmem:[#allocation72_spill] sm:$0xff] }
 0x3c5   : >> { %4452 = vrot.lane.b32.xlu0 %v4359_v11, %s11038_s27  ;;  %v14538_v60 = vpop.f32.mrf.mxu1  ;;  %v14540_v51 = vpop.permute.xlu2 %4222  ;;  %v4391_v45 = vrot.slane %v20011_v15, 2  ;;  %v4376_v11 = vsel %vm998_vm2, %v4371_v53, %v4375_v22  ;;  %v4396_v22 = vor.u32 %v4395_v57, %v4394_v52 }
 0x3c6   : >> { %20002 = vst [vmem:[#allocation223_spill] sm:$0xff] %v14538_v60  ;;  %v14542_v37 = vpop.permute.xlu1 %4202  ;;  %v4387_v21 = vrot.slane %v20012_v49, 1 }
 0x3c7   : >> { %20003 = vst [vmem:[#allocation195_spill] sm:$0xff] %v14540_v51  ;;  %v14544_v0 = vpop.permute.xlu0 %4200  ;;  %v20014_v51 = vld [vmem:[#allocation11_spill] sm:$0xff]  ;;  %v4392_v39 = vor.u32 %v4391_v45, %v4390_v54  ;;  %v4401_v52 = vsel %vm998_vm2, %v4396_v22, %v4400_v8  ;;  %v20022_v54 = vshll.u32 %v13782_v58, 16 }
 0x3c8   : >> { %20004 = vst [vmem:[#allocation204_spill] sm:$0xff] %v14542_v37  ;;  %v1378_v32 = vsel %vm1368_vm5, %v10756_v7, %v20014_v51  ;;  %v4389_v51 = vor.u32 %v4388_v26, %v4387_v21  ;;  %v14598_v26 = vld [vmem:[%s11183_s14 + $0x50] sm:$0xff] }
 0x3c9   : >> { %20005 = vst [vmem:[#allocation236_spill] sm:$0xff] %v14544_v0  ;;  %v1443_v13 = vsel %vm1433_vm6, %v1378_v32, %v20015_v62  ;;  %v4397_v57 = vsel %vm998_vm2, %v4392_v39, %v4396_v22  ;;  %v4405_v45 = vrot.slane %v20022_v54, 2  ;;  %v4473_v32 = vrot.slane %v14598_v26, 2  ;;  %v14602_v62 = vld [vmem:[%s11183_s14 + $0x58] sm:$0xff]  ;;  %v14606_v22 = vld [vmem:[%s11183_s14 + $0x48] sm:$0xff] }
 0x3ca   : >> { %v1508_v15 = vsel %vm1498_vm7, %v1443_v13, %v20017_v17  ;;  %v4393_v31 = vsel %vm998_vm2, %v4389_v51, %v4392_v39  ;;  %v4475_v13 = vrot.slane %v14602_v62, 2  ;;  %v4472_v39 = vrot.slane %v14606_v22, 2  ;;  %v20088_v37 = vld [vmem:[#allocation77_spill] sm:$0xff]  ;;  %v20091_v0 = vld [vmem:[#allocation120_spill] sm:$0xff] }
 0x3cb   : >> { %4462 = vrot.lane.b32.xlu2 %v4386_v19, %s11038_s27  ;;  %v4402_v19 = vshrl.u32 %v13782_v58, 16 }
 0x3cc   : >> { %4460 = vrot.lane.b32.xlu1 %v4380_v38, %s11038_s27  ;;  %v20019_v38 = vld [vmem:[#allocation114_spill] sm:$0xff] }
 0x3cd   : >> { %4458 = vrot.lane.b32.xlu0 %v4376_v11, %s11038_s27  ;;  %v14573_v53 = vpop.f32.mrf.mxu1  ;;  %v14577_v49 = vpop.permute.xlu2 %4228  ;;  %v1573_v36 = vsel %vm1563_vm9, %v1508_v15, %v20019_v38  ;;  %v4404_v3 = vrot.slane %v4402_v19, 1  ;;  %v4476_v38 = vsel %vm1231_vm3, %v4473_v32, %v4475_v13 }
 0x3ce   : >> { %20016 = vst [vmem:[#allocation224_spill] sm:$0xff] %v14573_v53  ;;  %v14582_v7 = vpop.permute.xlu1 %4208  ;;  %v20040_v53 = vld [vmem:[#allocation84_spill] sm:$0xff] }
 0x3cf   : >> { %20018 = vst [vmem:[#allocation157_spill] sm:$0xff] %v14577_v49  ;;  %v14584_v11 = vpop.permute.xlu0 %4206  ;;  %v4406_v15 = vor.u32 %v4405_v45, %v4404_v3  ;;  %v20028_v49 = vld [vmem:[#allocation50_spill] sm:$0xff]  ;;  %v10761_v45 = vld [vmem:[%s11183_s14 + $0x6c] sm:$0xff] }
 0x3d0   : >> { %20020 = vst [vmem:[#allocation234_spill] sm:$0xff] %v14582_v7  ;;  %9646 = vmatmul.msk.bf16.gmra.mxu1 %vm3010_vm8, %v1573_v36  ;;  %v4474_v36 = vsel %vm1231_vm3, %v4472_v39, %v4473_v32  ;;  %v10762_v32 = vld [vmem:[%s11183_s14 + $0x74] sm:$0xff] }
 0x3d1   : >> { %20021 = vst [vmem:[#allocation169_spill] sm:$0xff] %v14584_v11  ;;  %v4482_v39 = vrot.slane %v10762_v32, 2  ;;  %v14871_v7 = vld [vmem:[%s11183_s14 + $0x98] sm:$0xff] }
 0x3d3   : >> { %4468 = vrot.lane.b32.xlu2 %v4401_v52, %s11038_s27  ;;  %v4407_v52 = vsel %vm998_vm2, %v4400_v8, %v4406_v15  ;;  %v14631_v8 = vld [vmem:[%s11183_s14 + $0x60] sm:$0xff] }
 0x3d4   : >> { %4466 = vrot.lane.b32.xlu1 %v4397_v57, %s11038_s27  ;;  %v10760_v57 = vld [vmem:[%s11183_s14 + $0x2c] sm:$0xff]  ;;  %v4477_v15 = vrot.slane %v14631_v8, 2 }
 0x3d5   : >> { %4464 = vrot.lane.b32.xlu0 %v4393_v31, %s11038_s27  ;;  %v14595_v21 = vpop.f32.mrf.mxu1  ;;  %v14609_v17 = vpop.permute.xlu2 %4234  ;;  %v20027_v31 = vld [vmem:[#allocation12_spill] sm:$0xff] }
 0x3d6   : >> { %20023 = vst [vmem:[#allocation230_spill] sm:$0xff] %v14595_v21  ;;  %v14611_v51 = vpop.permute.xlu1 %4214  ;;  %v1380_v54 = vsel %vm1368_vm5, %v10760_v57, %v20027_v31  ;;  %v4481_v21 = vrot.slane %v10761_v45, 2  ;;  %v4479_v57 = vrot.slane %v19782_v10, 2  ;;  %v4478_v10 = vsel %vm1231_vm3, %v4475_v13, %v4477_v15 }
 0x3d7   : >> { %20024 = vst [vmem:[#allocation210_spill] sm:$0xff] %v14609_v17  ;;  %v14613_v19 = vpop.permute.xlu0 %4212  ;;  %v1445_v17 = vsel %vm1433_vm6, %v1380_v54, %v20028_v49  ;;  %v20030_v49 = vld [vmem:[#allocation85_spill] sm:$0xff] }
 0x3d8   : >> { %20025 = vst [vmem:[#allocation151_spill] sm:$0xff] %v14611_v51  ;;  %v4483_v32 = vsel %vm1231_vm3, %v4481_v21, %v4482_v39  ;;  %v20059_v51 = vld [vmem:[#allocation88_spill] sm:$0xff] }
 0x3d9   : >> { %20026 = vst [vmem:[#allocation145_spill] sm:$0xff] %v14613_v19  ;;  %v20068_v19 = vld [vmem:[#allocation45_spill] sm:$0xff] }
 0x3db   : >> { %4546 = vrot.lane.b32.xlu2 %v4476_v38, %s11039_s30  ;;  %v1510_v38 = vsel %vm1498_vm7, %v1445_v17, %v20030_v49  ;;  %v10764_v49 = vld [vmem:[%s11183_s14 + $0x84] sm:$0xff] }
 0x3dc   : >> { %4544 = vrot.lane.b32.xlu1 %v4474_v36, %s11039_s30 }
 0x3dd   : >> { %4470 = vrot.lane.b32.xlu0 %v4407_v52, %s11038_s27  ;;  %v14626_v3 = vpop.f32.mrf.mxu1  ;;  %v14637_v36 = vpop.permute.xlu2 %4408  ;;  %v20031_v52 = vld [vmem:[#allocation104_spill] sm:$0xff] }
 0x3de   : >> { %20029 = vst [vmem:[#allocation152_spill] sm:$0xff] %v14626_v3  ;;  %v1575_v31 = vsel %vm1563_vm9, %v1510_v38, %v20031_v52  ;;  %v14641_v54 = vpop.permute.xlu1 %4220  ;;  %v4480_v3 = vsel %vm1231_vm3, %v4477_v15, %v4479_v57  ;;  %v4486_v38 = vrot.slane %v10764_v49, 2  ;;  %v4488_v52 = vrot.slane %v19794_v34, 2  ;;  %v10766_v49 = vld [vmem:[%s11183_s14 + $0x34] sm:$0xff] }
 0x3df   : >> { %20032 = vst [vmem:[#allocation199_spill] sm:$0xff] %v14641_v54  ;;  %v14643_v45 = vpop.permute.xlu0 %4218  ;;  %v20037_v34 = vld [vmem:[#allocation22_spill] sm:$0xff]  ;;  %v10768_v54 = vld [vmem:[%s11183_s14 + $0xa8] sm:$0xff] }
 0x3e0   : >> { %20033 = vst [vmem:[#allocation166_spill] sm:$0xff] %v14643_v45  ;;  %9647 = vmatmul.msk.bf16.gmra.mxu1 %vm3010_vm8, %v1575_v31  ;;  %v10765_v31 = vld [vmem:[%s11183_s14 + $0x7c] sm:$0xff] }
 0x3e1   : >> { %v4484_v21 = vrot.slane %v10765_v31, 2  ;;  %v20038_v31 = vld [vmem:[#allocation42_spill] sm:$0xff] }
 0x3e3   : >> { %4552 = vrot.lane.b32.xlu2 %v4483_v32, %s11039_s30  ;;  %v4487_v32 = vsel %vm1231_vm3, %v4484_v21, %v4486_v38 }
 0x3e4   : >> { %4550 = vrot.lane.b32.xlu1 %v4480_v3, %s11039_s30  ;;  %v4489_v3 = vsel %vm1231_vm3, %v4486_v38, %v4488_v52  ;;  %v10767_v52 = vld [vmem:[%s11183_s14 + $0xa0] sm:$0xff] }
 0x3e5   : >> { %4548 = vrot.lane.b32.xlu0 %v4478_v10, %s11039_s30  ;;  %v14652_v17 = vpop.f32.mrf.mxu1  ;;  %v14657_v57 = vpop.permute.xlu2 %4414  ;;  %v4485_v10 = vsel %vm1231_vm3, %v4482_v39, %v4484_v21  ;;  %v4493_v38 = vrot.slane %v10767_v52, 2  ;;  %v4495_v39 = vrot.slane %v10768_v54, 2  ;;  %v10769_v21 = vld [vmem:[%s11183_s14 + $0x98] sm:$0xff] }
 0x3e6   : >> { %20034 = vst [vmem:[#allocation162_spill] sm:$0xff] %v14652_v17  ;;  %v14659_v13 = vpop.permute.xlu1 %4226  ;;  %v1382_v17 = vsel %vm1368_vm5, %v10766_v49, %v20037_v34  ;;  %v4491_v45 = vrot.slane %v10769_v21, 2 }
 0x3e7   : >> { %20035 = vst [vmem:[#allocation185_spill] sm:$0xff] %v14659_v13  ;;  %v14661_v15 = vpop.permute.xlu0 %4224  ;;  %v1447_v13 = vsel %vm1433_vm6, %v1382_v17, %v20038_v31  ;;  %v20041_v17 = vld [vmem:[#allocation118_spill] sm:$0xff]  ;;  %v4496_v54 = vsel %vm1231_vm3, %v4493_v38, %v4495_v39 }
 0x3e8   : >> { %20036 = vst [vmem:[#allocation202_spill] sm:$0xff] %v14661_v15  ;;  %v1512_v49 = vsel %vm1498_vm7, %v1447_v13, %v20040_v53  ;;  %v4494_v21 = vsel %vm1231_vm3, %v4491_v45, %v4493_v38 }
 0x3eb   : >> { %4558 = vrot.lane.b32.xlu2 %v4489_v3, %s11039_s30 }
 0x3ec   : >> { %4556 = vrot.lane.b32.xlu1 %v4487_v32, %s11039_s30  ;;  %v10770_v32 = vld [vmem:[%s11183_s14 + $0x90] sm:$0xff] }
 0x3ed   : >> { %4554 = vrot.lane.b32.xlu0 %v4485_v10, %s11039_s30  ;;  %v14674_v15 = vpop.f32.mrf.mxu1  ;;  %v14681_v3 = vpop.permute.xlu2 %4420  ;;  %v4490_v34 = vrot.slane %v10770_v32, 2  ;;  %v1577_v10 = vsel %vm1563_vm9, %v1512_v49, %v20041_v17  ;;  %v10771_v49 = vld [vmem:[%s11183_s14 + $0xbc] sm:$0xff]  ;;  %v10772_v17 = vld [vmem:[%s11183_s14 + $0xc4] sm:$0xff] }
 0x3ee   : >> { %20039 = vst [vmem:[#allocation194_spill] sm:$0xff] %v14674_v15  ;;  %v14686_v31 = vpop.permute.xlu1 %4232  ;;  %v4500_v32 = vrot.slane %v10771_v49, 2  ;;  %v10774_v49 = vld [vmem:[%s11183_s14 + $0x3c] sm:$0xff] }
 0x3ef   : >> { %20042 = vst [vmem:[#allocation227_spill] sm:$0xff] %v14686_v31  ;;  %v14688_v52 = vpop.permute.xlu0 %4230  ;;  %v4492_v53 = vsel %vm1231_vm3, %v4490_v34, %v4491_v45  ;;  %v4502_v31 = vrot.slane %v10772_v17, 2  ;;  %v4497_v45 = vrot.slane %v19804_v47, 2  ;;  %v20048_v17 = vld [vmem:[#allocation21_spill] sm:$0xff] }
 0x3f0   : >> { %20043 = vst [vmem:[#allocation156_spill] sm:$0xff] %v14688_v52  ;;  %9648 = vmatmul.msk.bf16.gmra.mxu1 %vm3010_vm8, %v1577_v10  ;;  %v10773_v10 = vld [vmem:[%s11183_s14 + $0xb4] sm:$0xff] }
 0x3f1   : >> { %v4499_v52 = vrot.slane %v10773_v10, 2  ;;  %v1384_v10 = vsel %vm1368_vm5, %v10774_v49, %v20048_v17  ;;  %v4506_v49 = vrot.slane %v19832_v43, 2  ;;  %v20051_v17 = vld [vmem:[#allocation75_spill] sm:$0xff] }
 0x3f3   : >> { %4564 = vrot.lane.b32.xlu2 %v4496_v54, %s11039_s30  ;;  %v4503_v54 = vsel %vm1231_vm3, %v4500_v32, %v4502_v31 }
 0x3f4   : >> { %4562 = vrot.lane.b32.xlu1 %v4494_v21, %s11039_s30  ;;  %v4501_v21 = vsel %vm1231_vm3, %v4499_v52, %v4500_v32  ;;  %v10776_v52 = vld [vmem:[%s11183_s14 + $0xe0] sm:$0xff] }
 0x3f5   : >> { %4560 = vrot.lane.b32.xlu0 %v4492_v53, %s11039_s30  ;;  %v14697_v13 = vpop.f32.mrf.mxu1  ;;  %v14702_v15 = vpop.permute.xlu2 %4426  ;;  %v4498_v53 = vsel %vm1231_vm3, %v4495_v39, %v4497_v45  ;;  %v4509_v32 = vrot.slane %v10776_v52, 2  ;;  %v10777_v39 = vld [vmem:[%s11183_s14 + $0xcc] sm:$0xff] }
 0x3f6   : >> { %20044 = vst [vmem:[#allocation181_spill] sm:$0xff] %v14697_v13  ;;  %v14705_v38 = vpop.permute.xlu1 %4238  ;;  %v20049_v13 = vld [vmem:[#allocation55_spill] sm:$0xff]  ;;  %v4504_v45 = vrot.slane %v10777_v39, 2  ;;  %v10778_v39 = vld [vmem:[%s11183_s14 + $0xf0] sm:$0xff] }
 0x3f7   : >> { %20045 = vst [vmem:[#allocation198_spill] sm:$0xff] %v14702_v15  ;;  %v14707_v34 = vpop.permute.xlu0 %4236  ;;  %v1449_v18 = vsel %vm1433_vm6, %v1384_v10, %v20049_v13 }
 0x3f8   : >> { %20046 = vst [vmem:[#allocation150_spill] sm:$0xff] %v14705_v38  ;;  %v10775_v38 = vld [vmem:[%s11183_s14 + $0xd8] sm:$0xff]  ;;  %v1514_v13 = vsel %vm1498_vm7, %v1449_v18, %v20051_v17  ;;  %v4507_v52 = vsel %vm1231_vm3, %v4504_v45, %v4506_v49  ;;  %v4505_v43 = vsel %vm1231_vm3, %v4502_v31, %v4504_v45  ;;  %v4513_v17 = vrot.slane %v10778_v39, 2 }
 0x3f9   : >> { %20047 = vst [vmem:[#allocation164_spill] sm:$0xff] %v14707_v34  ;;  %v4508_v34 = vrot.slane %v10775_v38, 2 }
 0x3fb   : >> { %4570 = vrot.lane.b32.xlu2 %v4503_v54, %s11039_s30  ;;  %v4510_v38 = vsel %vm1231_vm3, %v4508_v34, %v4509_v32 }
 0x3fc   : >> { %4568 = vrot.lane.b32.xlu1 %v4501_v21, %s11039_s30  ;;  %v20053_v21 = vld [vmem:[#allocation117_spill] sm:$0xff] }
 0x3fd   : >> { %4566 = vrot.lane.b32.xlu0 %v4498_v53, %s11039_s30  ;;  %v14720_v47 = vpop.f32.mrf.mxu1  ;;  %v14728_v54 = vpop.permute.xlu2 %4432  ;;  %v1579_v53 = vsel %vm1563_vm9, %v1514_v13, %v20053_v21  ;;  %v4515_v13 = vrot.slane %v19973_v6, 2  ;;  %v10779_v21 = vld [vmem:[%s11183_s14 + $0xe8] sm:$0xff] }
 0x3fe   : >> { %20050 = vst [vmem:[#allocation175_spill] sm:$0xff] %v14720_v47  ;;  %v14732_v10 = vpop.permute.xlu1 %4412  ;;  %v4511_v34 = vrot.slane %v10779_v21, 2  ;;  %v20056_v6 = vld [vmem:[#allocation13_spill] sm:$0xff] }
 0x3ff   : >> { %20052 = vst [vmem:[#allocation240_spill] sm:$0xff] %v14728_v54  ;;  %v14734_v47 = vpop.permute.xlu0 %4410  ;;  %v20057_v21 = vld [vmem:[#allocation53_spill] sm:$0xff] }
 0x400   : >> { %9649 = vmatmul.msk.bf16.gmra.mxu1 %vm3010_vm8, %v1579_v53  ;;  %v4516_v53 = vsel %vm1231_vm3, %v4513_v17, %v4515_v13  ;;  %v10781_v13 = vld [vmem:[%s11183_s14 + $0x10c] sm:$0xff] }
 0x403   : >> { %4576 = vrot.lane.b32.xlu2 %v4510_v38, %s11039_s30  ;;  %v4514_v38 = vsel %vm1231_vm3, %v4511_v34, %v4513_v17  ;;  %v4520_v17 = vrot.slane %v10781_v13, 2 }
 0x404   : >> { %4574 = vrot.lane.b32.xlu1 %v4507_v52, %s11039_s30  ;;  %v4512_v52 = vsel %vm1231_vm3, %v4509_v32, %v4511_v34  ;;  %v4522_v32 = vrot.slane %v10782_v48, 2  ;;  %v10783_v34 = vld [vmem:[%s11183_s14 + $0x104] sm:$0xff] }
 0x405   : >> { %4572 = vrot.lane.b32.xlu0 %v4505_v43, %s11039_s30  ;;  %v14743_v18 = vpop.f32.mrf.mxu1  ;;  %v14748_v49 = vpop.permute.xlu2 %4438  ;;  %v10780_v43 = vld [vmem:[%s11183_s14 + $0x48] sm:$0xff]  ;;  %v4518_v27 = vrot.slane %v10783_v34, 2 }
 0x406   : >> { %20054 = vst [vmem:[#allocation196_spill] sm:$0xff] %v14743_v18  ;;  %v14750_v31 = vpop.permute.xlu1 %4418  ;;  %v1386_v39 = vsel %vm1368_vm5, %v10780_v43, %v20056_v6  ;;  %v4523_v48 = vsel %vm1231_vm3, %v4520_v17, %v4522_v32 }
 0x407   : >> { %20055 = vst [vmem:[#allocation176_spill] sm:$0xff] %v14748_v49  ;;  %v14752_v45 = vpop.permute.xlu0 %4416  ;;  %v1451_v18 = vsel %vm1433_vm6, %v1386_v39, %v20057_v21  ;;  %v20061_v39 = vld [vmem:[#allocation107_spill] sm:$0xff]  ;;  %v4521_v34 = vsel %vm1231_vm3, %v4518_v27, %v4520_v17 }
 0x408   : >> { %v1516_v43 = vsel %vm1498_vm7, %v1451_v18, %v20059_v51 }
 0x40b   : >> { %4582 = vrot.lane.b32.xlu2 %v4516_v53, %s11039_s30 }
 0x40c   : >> { %4580 = vrot.lane.b32.xlu1 %v4514_v38, %s11039_s30  ;;  %v10784_v38 = vld [vmem:[%s11183_s14 + $0xfc] sm:$0xff] }
 0x40d   : >> { %4578 = vrot.lane.b32.xlu0 %v4512_v52, %s11039_s30  ;;  %v14765_v60 = vpop.f32.mrf.mxu1  ;;  %v14772_v53 = vpop.permute.xlu2 %4444  ;;  %v4517_v6 = vrot.slane %v10784_v38, 2  ;;  %v1581_v52 = vsel %vm1563_vm9, %v1516_v43, %v20061_v39  ;;  %v10785_v43 = vld [vmem:[%s11183_s14 + $0x128] sm:$0xff]  ;;  %v10786_v39 = vld [vmem:[%s11183_s14 + $0x130] sm:$0xff] }
 0x40e   : >> { %20058 = vst [vmem:[#allocation192_spill] sm:$0xff] %v14765_v60  ;;  %v14777_v21 = vpop.permute.xlu1 %4424  ;;  %v4527_v38 = vrot.slane %v10785_v43, 2  ;;  %v4529_v28 = vrot.slane %v10786_v39, 2  ;;  %v10788_v43 = vld [vmem:[%s11183_s14 + $0x50] sm:$0xff] }
 0x40f   : >> { %20060 = vst [vmem:[#allocation241_spill] sm:$0xff] %v14772_v53  ;;  %v14779_v13 = vpop.permute.xlu0 %4422  ;;  %v4519_v51 = vsel %vm1231_vm3, %v4517_v6, %v4518_v27  ;;  %v4524_v27 = vrot.slane %v13683_v1, 2  ;;  %v20067_v39 = vld [vmem:[#allocation25_spill] sm:$0xff] }
 0x410   : >> { %20062 = vst [vmem:[#allocation225_spill] sm:$0xff] %v14777_v21  ;;  %9650 = vmatmul.msk.bf16.gmra.mxu1 %vm3010_vm8, %v1581_v52  ;;  %v10787_v52 = vld [vmem:[%s11183_s14 + $0x120] sm:$0xff] }
 0x411   : >> { %v4526_v61 = vrot.slane %v10787_v52, 2  ;;  %v1388_v52 = vsel %vm1368_vm5, %v10788_v43, %v20067_v39  ;;  %v4531_v43 = vrot.slane %v10791_v20, 2  ;;  %v20070_v39 = vld [vmem:[#allocation87_spill] sm:$0xff]  ;;  %v14832_v20 = vld [vmem:[%s11183_s14 + $0x74] sm:$0xff] }
 0x412   : >> { %v20080_v35 = vshll.u32 %v14832_v20, 16 }
 0x413   : >> { %4588 = vrot.lane.b32.xlu2 %v4523_v48, %s11039_s30  ;;  %v4530_v48 = vsel %vm1231_vm3, %v4527_v38, %v4529_v28 }
 0x414   : >> { %4586 = vrot.lane.b32.xlu1 %v4521_v34, %s11039_s30  ;;  %v4528_v34 = vsel %vm1231_vm3, %v4526_v61, %v4527_v38  ;;  %v10789_v61 = vld [vmem:[%s11183_s14 + $0x144] sm:$0xff] }
 0x415   : >> { %4584 = vrot.lane.b32.xlu0 %v4519_v51, %s11039_s30  ;;  %v14788_v18 = vpop.f32.mrf.mxu1  ;;  %v14793_v53 = vpop.permute.xlu2 %4450  ;;  %v4525_v51 = vsel %vm1231_vm3, %v4522_v32, %v4524_v27  ;;  %v4535_v38 = vrot.slane %v10789_v61, 2  ;;  %v10790_v32 = vld [vmem:[%s11183_s14 + $0x14c] sm:$0xff] }
 0x416   : >> { %20063 = vst [vmem:[#allocation146_spill] sm:$0xff] %v14788_v18  ;;  %v14796_v17 = vpop.permute.xlu1 %4430  ;;  %v4536_v27 = vrot.slane %v10790_v32, 2  ;;  %v14829_v32 = vld [vmem:[%s11183_s14 + $0x7c] sm:$0xff] }
 0x417   : >> { %20064 = vst [vmem:[#allocation180_spill] sm:$0xff] %v14793_v53  ;;  %v14798_v6 = vpop.permute.xlu0 %4428  ;;  %v1453_v53 = vsel %vm1433_vm6, %v1388_v52, %v20068_v19  ;;  %v4533_v19 = vrot.slane %v13718_v5, 2  ;;  %v20072_v52 = vld [vmem:[#allocation121_spill] sm:$0xff] }
 0x418   : >> { %20065 = vst [vmem:[#allocation216_spill] sm:$0xff] %v14796_v17  ;;  %v4537_v5 = vsel %vm1231_vm3, %v4535_v38, %v4536_v27 }
 0x419   : >> { %20066 = vst [vmem:[#allocation242_spill] sm:$0xff] %v14798_v6 }
 0x41b   : >> { %4594 = vrot.lane.b32.xlu2 %v4530_v48, %s11039_s30  ;;  %v1518_v48 = vsel %vm1498_vm7, %v1453_v53, %v20070_v39  ;;  %v4534_v53 = vsel %vm1231_vm3, %v4531_v43, %v4533_v19  ;;  %v4532_v39 = vsel %vm1231_vm3, %v4529_v28, %v4531_v43  ;;  %v10792_v19 = vld [vmem:[%s11183_s14 + $0x15c] sm:$0xff]  ;;  %v4542_v28 = vrot.slane %v13782_v58, 2  ;;  %v10793_v43 = vld [vmem:[%s11183_s14 + $0x154] sm:$0xff] }
 0x41c   : >> { %4592 = vrot.lane.b32.xlu1 %v4528_v34, %s11039_s30  ;;  %v4540_v56 = vrot.slane %v10792_v19, 2  ;;  %v20079_v19 = vshll.u32 %v14829_v32, 16 }
 0x41d   : >> { %4590 = vrot.lane.b32.xlu0 %v4525_v51, %s11039_s30  ;;  %v14811_v1 = vpop.f32.mrf.mxu1  ;;  %v14819_v34 = vpop.permute.xlu2 %4456  ;;  %v1583_v51 = vsel %vm1563_vm9, %v1518_v48, %v20072_v52  ;;  %v14843_v48 = vld [vmem:[%s11183_s14 + $0x84] sm:$0xff] }
 0x41e   : >> { %20069 = vst [vmem:[#allocation141_spill] sm:$0xff] %v14811_v1  ;;  %v14823_v42 = vpop.permute.xlu1 %4436  ;;  %v5450_v4 = vrot.slane %v20079_v19, 1  ;;  %v4543_v55 = vsel %vm1231_vm3, %v4540_v56, %v4542_v28  ;;  %v10500_v28 = vld [vmem:[%s19015_s1 + $0x10] sm:$0xff]  ;;  %v20084_v19 = vshll.u32 %v14843_v48, 16 }
 0x41f   : >> { %20071 = vst [vmem:[#allocation163_spill] sm:$0xff] %v14819_v34  ;;  %v14825_v61 = vpop.permute.xlu0 %4434  ;;  %v14838_v34 = vld [vmem:[%s11183_s14 + $0x6c] sm:$0xff]  ;;  %v20110_v1 = vld [vmem:[#allocation14_spill] sm:$0xff] }
 0x420   : >> { %20073 = vst [vmem:[#allocation174_spill] sm:$0xff] %v14823_v42  ;;  %9651 = vmatmul.msk.bf16.gmra.mxu1 %vm3010_vm8, %v1583_v51  ;;  %v9924_v51 = vld [vmem:[%s11183_s14 + $0x8c] sm:$0x3]  ;;  %v20081_v58 = vshll.u32 %v14838_v34, 16 }
 0x421   : >> { %20074 = vst [vmem:[#allocation189_spill] sm:$0xff] %v14825_v61 }
 0x422   : >> { %v5437_v49 = vrot.slane %v20081_v58, 1  ;;  %v5458_v58 = vrot.slane %v20084_v19, 1  ;;  %v4937_v19 = vand.u32 %v10500_v28, %v19857_v16 }
 0x423   : >> { %4600 = vrot.lane.b32.xlu2 %v4537_v5, %s11039_s30  ;;  %v4538_v5 = vrot.slane %v10793_v43, 2  ;;  %v5442_v43 = vrot.slane %v20080_v35, 1  ;;  %v5416_v35 = vunpack.c.l.b16 %v9924_v51  ;;  %v20085_v51 = vshrl.u32 %v14832_v20, 16 }
 0x424   : >> { %4598 = vrot.lane.b32.xlu1 %v4534_v53, %s11039_s30  ;;  %4946 = vmatpush.bf16.msrb.mxu2 %v4937_v19 }
 0x425   : >> { %4596 = vrot.lane.b32.xlu0 %v4532_v39, %s11039_s30  ;;  %v14848_v38 = vpop.f32.mrf.mxu1  ;;  %v14853_v53 = vpop.permute.xlu2 %4462  ;;  %v4539_v39 = vsel %vm1231_vm3, %v4536_v27, %v4538_v5  ;;  %v20083_v27 = vshrl.u32 %v14829_v32, 16  ;;  %v5446_v42 = vor.u32 %v20085_v51, %v5442_v43 }
 0x426   : >> { %20075 = vst [vmem:[#allocation205_spill] sm:$0xff] %v14848_v38  ;;  %v14856_v44 = vpop.permute.xlu1 %4442  ;;  %v10795_v38 = vld [vmem:[%s11183_s14 + $0x60] sm:$0xff] }
 0x427   : >> { %20076 = vst [vmem:[#allocation209_spill] sm:$0xff] %v14853_v53  ;;  %v14858_v52 = vpop.permute.xlu0 %4440  ;;  %v10794_v53 = vld [vmem:[%s11183_s14 + $0x58] sm:$0xff] }
 0x428   : >> { %20077 = vst [vmem:[#allocation239_spill] sm:$0xff] %v14856_v44  ;;  %v4541_v44 = vsel %vm1231_vm3, %v4538_v5, %v4540_v56  ;;  %v20082_v56 = vld [vmem:[#allocation24_spill] sm:$0xff]  ;;  %v5454_v5 = vor.u32 %v20083_v27, %v5450_v4  ;;  %v9933_v27 = vld [vmem:[%s11183_s14 + $0xb0] sm:$0x3] }
 0x429   : >> { %20078 = vst [vmem:[#allocation159_spill] sm:$0xff] %v14858_v52  ;;  %v14874_v52 = vld [vmem:[%s11183_s14 + $0x90] sm:$0xff]  ;;  %v1390_v11 = vsel %vm1368_vm5, %v10794_v53, %v20082_v56  ;;  %v5417_v28 = vunpack.c.l.b16 %v9933_v27  ;;  %v14940_v27 = vpop.f32.mrf.mxu2 }
 0x42a   : >> { %v1455_v61 = vsel %vm1433_vm6, %v1390_v11, %v20086_v30  ;;  %v20090_v30 = vshrl.u32 %v14838_v34, 16  ;;  %v20097_v19 = vshll.u32 %v14874_v52, 16  ;;  %20098 = vst [vmem:[#allocation112_spill] sm:$0xff] %v14940_v27  ;;  %v9942_v27 = vld [vmem:[%s11183_s14 + $0xd4] sm:$0x3] }
 0x42b   : >> { %4606 = vrot.lane.b32.xlu2 %v4543_v55, %s11039_s30  ;;  %v14900_v55 = vld [vmem:[%s11183_s14 + $0xa0] sm:$0xff]  ;;  %v1520_v51 = vsel %vm1498_vm7, %v1455_v61, %v20088_v37  ;;  %v5459_v37 = vsel %vm508_vm0, %v5454_v5, %v5458_v58  ;;  %v5451_v61 = vsel %vm508_vm0, %v5446_v42, %v5450_v4 }
 0x42c   : >> { %4604 = vrot.lane.b32.xlu1 %v4541_v44, %s11039_s30  ;;  %v5438_v11 = vor.u32 %v5437_v49, %v20090_v30  ;;  %v1585_v17 = vsel %vm1563_vm9, %v1520_v51, %v20091_v0  ;;  %v19218_v49 = vshrl.u32 %v14871_v7, 16  ;;  %v20096_v0 = vshll.u32 %v14871_v7, 16 }
 0x42d   : >> { %4602 = vrot.lane.b32.xlu0 %v4539_v39, %s11039_s30  ;;  %v14897_v53 = vpop.f32.mrf.mxu1  ;;  %v14908_v54 = vpop.permute.xlu2 %4468  ;;  %v14912_v39 = vpack.c.b16 %v5416_v35, %v5416_v35  ;;  %v14928_v35 = vld [vmem:[%s11183_s14 + $0xa8] sm:$0xff]  ;;  %v19219_v30 = vshll.u32 %v14900_v55, 16 }
 0x42e   : >> { %20087 = vst [vmem:[#allocation170_spill] sm:$0xff] %v14897_v53  ;;  %v14916_v44 = vpop.permute.xlu1 %4448  ;;  %v5478_v51 = vrot.slane %v20096_v0, 1  ;;  %v5443_v5 = vsel %vm508_vm0, %v5438_v11, %v5442_v43  ;;  %v14945_v0 = vld [vmem:[%s11183_s14 + $0xbc] sm:$0xff]  ;;  %v20107_v53 = vshll.u32 %v14928_v35, 16 }
 0x42f   : >> { %20089 = vst [vmem:[#allocation215_spill] sm:$0xff] %v14908_v54  ;;  %v14918_v56 = vpop.permute.xlu0 %4446  ;;  %v14947_v54 = vpack.c.b16 %v5417_v28, %v5417_v28  ;;  %v5486_v42 = vrot.slane %v19219_v30, 1  ;;  %v14984_v30 = vld [vmem:[%s11183_s14 + $0xc4] sm:$0xff] }
 0x430   : >> { %20092 = vst [vmem:[#allocation16_spill] sm:$0xff] %v14916_v44  ;;  %9652 = vmatmul.msk.bf16.gmra.mxu1 %vm3010_vm8, %v1585_v17  ;;  %v5473_v17 = vrot.slane %v20097_v19, 1  ;;  %v19220_v44 = vshrl.u32 %v14843_v48, 16  ;;  %v5482_v11 = vor.u32 %v19218_v49, %v5478_v51  ;;  %v5494_v6 = vrot.slane %v20107_v53, 1 }
 0x431   : >> { %20093 = vst [vmem:[#allocation36_spill] sm:$0xff] %v14918_v56  ;;  %v1392_v53 = vsel %vm1368_vm5, %v10795_v38, %v20110_v1 }
 0x432   : >> { %20095 = vst [vmem:[#allocation155_spill] sm:$0xff] %v14928_v35  ;;  %v5462_v28 = vor.u32 %v19220_v44, %v5458_v58  ;;  %v19221_v58 = vshrl.u32 %v14928_v35, 16  ;;  %v5487_v44 = vsel %vm508_vm0, %v5482_v11, %v5486_v42 }
 0x433   : >> { %5724 = vrot.lane.b32.xlu2 %v5459_v37, %s11036_s23  ;;  %20099 = vst [vmem:[#allocation188_spill] sm:$0xff] %v14945_v0  ;;  %v20102_v37 = vshrl.u32 %v14874_v52, 16 }
 0x434   : >> { %5722 = vrot.lane.b32.xlu1 %v5451_v61, %s11036_s23  ;;  %20100 = vst [vmem:[#allocation232_spill] sm:$0xff] %v14947_v54 }
 0x435   : >> { %5720 = vrot.lane.b32.xlu0 %v5443_v5, %s11036_s23  ;;  %v14951_v43 = vpop.f32.mrf.mxu1  ;;  %v5474_v61 = vor.u32 %v5473_v17, %v20102_v37  ;;  %v14959_v4 = vpop.permute.xlu2 %4546  ;;  %v20103_v5 = vshll.u32 %v14912_v39, 16  ;;  %20109 = vst [vmem:[#allocation165_spill] sm:$0xff] %v14984_v30  ;;  %v20113_v37 = vld [vmem:[#allocation56_spill] sm:$0xff] }
 0x436   : >> { %20101 = vst [vmem:[#allocation158_spill] sm:$0xff] %v14951_v43  ;;  %v14966_v56 = vpop.permute.xlu1 %4454  ;;  %v20106_v43 = vshll.u32 %v14921_v63, 16  ;;  %v1457_v1 = vsel %vm1433_vm6, %v1392_v53, %v20113_v37  ;;  %v20118_v37 = vshrl.u32 %v14900_v55, 16 }
 0x437   : >> { %v5466_v19 = vrot.slane %v20103_v5, 1  ;;  %20104 = vst [vmem:[#allocation183_spill] sm:$0xff] %v14966_v56  ;;  %v14968_v49 = vpop.permute.xlu0 %4452  ;;  %v19222_v5 = vshll.u32 %v14947_v54, 16  ;;  %v5479_v56 = vsel %vm508_vm0, %v5474_v61, %v5478_v51  ;;  %v20111_v51 = vshrl.u32 %v14921_v63, 16 }
 0x438   : >> { %20105 = vst [vmem:[#allocation201_spill] sm:$0xff] %v14968_v49  ;;  %v5509_v17 = vrot.slane %v20106_v43, 1  ;;  %v5418_v49 = vunpack.c.l.b16 %v9942_v27  ;;  %v20112_v27 = vshll.u32 %v14945_v0, 16  ;;  %v5490_v53 = vor.u32 %v20118_v37, %v5486_v42  ;;  %v15035_v37 = vld [vmem:[%s11183_s14 + $0xd8] sm:$0xff] }
 0x439   : >> { %v5467_v43 = vsel %vm508_vm0, %v5462_v28, %v5466_v19  ;;  %v5498_v19 = vor.u32 %v19221_v58, %v5494_v6  ;;  %v5502_v28 = vrot.slane %v19222_v5, 1  ;;  %v15012_v58 = vpop.f32.mrf.mxu2  ;;  %20124 = vst [vmem:[#allocation15_spill] sm:$0xff] %v15035_v37  ;;  %v19230_v54 = vshrl.u32 %v14984_v30, 16 }
 0x43a   : >> { %v5510_v11 = vor.u32 %v5509_v17, %v20111_v51  ;;  %v5514_v61 = vrot.slane %v20112_v27, 1  ;;  %v20116_v51 = vld [vmem:[#allocation91_spill] sm:$0xff]  ;;  %20117 = vst [vmem:[#allocation69_spill] sm:$0xff] %v15012_v58  ;;  %v20125_v58 = vshll.u32 %v14981_v29, 16 }
 0x43b   : >> { %5730 = vrot.lane.b32.xlu2 %v5487_v44, %s11036_s23  ;;  %v15006_v44 = vpack.c.b16 %v5418_v49, %v5418_v49  ;;  %v1522_v27 = vsel %vm1498_vm7, %v1457_v1, %v20116_v51  ;;  %v15028_v17 = vld [vmem:[%s11183_s14 + $0xe0] sm:$0xff]  ;;  %v5503_v51 = vsel %vm508_vm0, %v5498_v19, %v5502_v28  ;;  %v15047_v28 = vld [vmem:[%s11183_s14 + $0xf0] sm:$0xff] }
 0x43c   : >> { %5728 = vrot.lane.b32.xlu1 %v5479_v56, %s11036_s23  ;;  %20123 = vst [vmem:[#allocation229_spill] sm:$0xff] %v15028_v17  ;;  %v5515_v1 = vsel %vm508_vm0, %v5510_v11, %v5514_v61  ;;  %v19237_v11 = vshrl.u32 %v14945_v0, 16  ;;  %v15078_v0 = vld [vmem:[%s11183_s14 + $0x104] sm:$0xff]  ;;  %v20140_v60 = vshll.u32 %v15047_v28, 16 }
 0x43d   : >> { %5726 = vrot.lane.b32.xlu0 %v5467_v43, %s11036_s23  ;;  %v15004_v38 = vpop.f32.mrf.mxu1  ;;  %20115 = vst [vmem:[#allocation179_spill] sm:$0xff] %v15006_v44  ;;  %v15014_v5 = vpop.permute.xlu2 %4552  ;;  %v15019_v43 = vld [vmem:[%s11183_s14 + $0xe8] sm:$0xff] }
 0x43e   : >> { %20114 = vst [vmem:[#allocation49_spill] sm:$0xff] %v15004_v38  ;;  %v20120_v38 = vld [vmem:[#allocation110_spill] sm:$0xff]  ;;  %v15023_v63 = vpop.permute.xlu1 %4460 }
 0x43f   : >> { %20119 = vst [vmem:[#allocation231_spill] sm:$0xff] %v15019_v43  ;;  %v1587_v49 = vsel %vm1563_vm9, %v1522_v27, %v20120_v38  ;;  %v15025_v56 = vpop.permute.xlu0 %4458  ;;  %v5530_v38 = vrot.slane %v20125_v58, 1  ;;  %v19229_v27 = vshll.u32 %v15006_v44, 16  ;;  %v20130_v58 = vshll.u32 %v15019_v43, 16 }
 0x440   : >> { %20121 = vst [vmem:[#allocation111_spill] sm:$0xff] %v15023_v63  ;;  %9653 = vmatmul.msk.bf16.gmra.mxu1 %vm3010_vm8, %v1587_v49  ;;  %v20126_v63 = vshll.u32 %v14984_v30, 16  ;;  %v5495_v49 = vsel %vm508_vm0, %v5490_v53, %v5494_v6  ;;  %v20129_v6 = vshrl.u32 %v14981_v29, 16 }
 0x441   : >> { %20122 = vst [vmem:[#allocation233_spill] sm:$0xff] %v15025_v56  ;;  %v5538_v19 = vrot.slane %v19229_v27, 1 }
 0x442   : >> { %v5522_v56 = vrot.slane %v20126_v63, 1  ;;  %20127 = vst [vmem:[#allocation228_spill] sm:$0xff] %v15047_v28  ;;  %v5534_v53 = vor.u32 %v20129_v6, %v5530_v38 }
 0x443   : >> { %5736 = vrot.lane.b32.xlu2 %v5515_v1, %s11036_s23  ;;  %20134 = vst [vmem:[#allocation237_spill] sm:$0xff] %v15078_v0 }
 0x444   : >> { %5734 = vrot.lane.b32.xlu1 %v5503_v51, %s11036_s23  ;;  %v5526_v42 = vor.u32 %v19230_v54, %v5522_v56  ;;  %v5518_v51 = vor.u32 %v19237_v11, %v5514_v61  ;;  %v20133_v54 = vshll.u32 %v15028_v17, 16  ;;  %v9951_v61 = vld [vmem:[%s11183_s14 + $0xf8] sm:$0x3]  ;;  %v15081_v11 = vpop.f32.mrf.mxu2 }
 0x445   : >> { %5732 = vrot.lane.b32.xlu0 %v5495_v49, %s11036_s23  ;;  %v15054_v63 = vpop.f32.mrf.mxu1  ;;  %v15062_v1 = vpop.permute.xlu2 %4558  ;;  %v5558_v49 = vrot.slane %v20130_v58, 1  ;;  %20135 = vst [vmem:[#allocation235_spill] sm:$0xff] %v15081_v11  ;;  %v5419_v35 = vunpack.c.l.b16 %v9951_v61  ;;  %v20139_v11 = vshrl.u32 %v15019_v43, 16 }
 0x446   : >> { %20128 = vst [vmem:[#allocation47_spill] sm:$0xff] %v15054_v63  ;;  %v15069_v29 = vpop.permute.xlu1 %4466  ;;  %v5550_v44 = vrot.slane %v20133_v54, 1  ;;  %v20136_v63 = vshll.u32 %v15035_v37, 16  ;;  %v5531_v27 = vsel %vm508_vm0, %v5526_v42, %v5530_v38  ;;  %v10796_v54 = vld [vmem:[%s11183_s14 + $0x6c] sm:$0xff]  ;;  %v5523_v18 = vsel %vm508_vm0, %v5518_v51, %v5522_v56  ;;  %v20142_v38 = vld [vmem:[#allocation48_spill] sm:$0xff]  ;;  %v20146_v51 = vld [vmem:[#allocation90_spill] sm:$0xff] }
 0x447   : >> { %20131 = vst [vmem:[#allocation82_spill] sm:$0xff] %v15069_v29  ;;  %v15071_v6 = vpop.permute.xlu0 %4464  ;;  %v5539_v29 = vsel %vm508_vm0, %v5534_v53, %v5538_v19  ;;  %v1394_v30 = vsel %vm1368_vm5, %v10796_v54, %v20138_v9  ;;  %v5562_v58 = vor.u32 %v20139_v11, %v5558_v49  ;;  %v20141_v19 = vshrl.u32 %v15028_v17, 16  ;;  %v15112_v11 = vld [vmem:[%s11183_s14 + $0x10c] sm:$0xff]  ;;  %v10797_v17 = vld [vmem:[%s11183_s14 + $0x74] sm:$0xff] }
 0x448   : >> { %20132 = vst [vmem:[#allocation101_spill] sm:$0xff] %v15071_v6  ;;  %v5545_v15 = vrot.slane %v20136_v63, 1  ;;  %v15089_v6 = vld [vmem:[%s11183_s14 + $0xfc] sm:$0xff]  ;;  %v5566_v63 = vrot.slane %v20140_v60, 1  ;;  %v19240_v42 = vshll.u32 %v15078_v0, 16  ;;  %v1459_v21 = vsel %vm1433_vm6, %v1394_v30, %v20142_v38 }
 0x449   : >> { %20137 = vst [vmem:[#allocation238_spill] sm:$0xff] %v15089_v6  ;;  %v5554_v53 = vor.u32 %v20141_v19, %v5550_v44  ;;  %v4609_v9 = vsel %vm1368_vm5, %v14606_v22, %v20143_v2  ;;  %v20144_v56 = vshrl.u32 %v15035_v37, 16  ;;  %v1524_v61 = vsel %vm1498_vm7, %v1459_v21, %v20146_v51  ;;  %v9960_v21 = vld [vmem:[%s11183_s14 + $0x11c] sm:$0x3]  ;;  %v20168_v37 = vld [vmem:[#allocation61_spill] sm:$0xff] }
 0x44a   : >> { %20145 = vst [vmem:[#allocation18_spill] sm:$0xff] %v15112_v11  ;;  %v4673_v54 = vsel %vm1433_vm6, %v4609_v9, %v14411_v33  ;;  %v19241_v2 = vshll.u32 %v15089_v6, 16  ;;  %v15128_v19 = vpack.c.b16 %v5419_v35, %v5419_v35 }
 0x44b   : >> { %5742 = vrot.lane.b32.xlu2 %v5539_v29, %s11036_s23  ;;  %v5546_v60 = vor.u32 %v5545_v15, %v20144_v56  ;;  %v20147_v29 = vld [vmem:[#allocation124_spill] sm:$0xff]  ;;  %v4737_v15 = vsel %vm1498_vm7, %v4673_v54, %v14637_v36  ;;  %v5559_v9 = vsel %vm508_vm0, %v5554_v53, %v5558_v49  ;;  %v5586_v56 = vrot.slane %v19240_v42, 1  ;;  %v15151_v53 = vld [vmem:[%s11183_s14 + $0x114] sm:$0xff] }
 0x44c   : >> { %5740 = vrot.lane.b32.xlu1 %v5531_v27, %s11036_s23  ;;  %v1589_v22 = vsel %vm1563_vm9, %v1524_v61, %v20147_v29  ;;  %20148 = vst [vmem:[#allocation39_spill] sm:$0xff] %v15128_v19  ;;  %v15144_v29 = vld [vmem:[%s11183_s14 + $0x120] sm:$0xff]  ;;  %v5581_v49 = vrot.slane %v19241_v2, 1  ;;  %v20154_v42 = vshll.u32 %v14838_v34, 16  ;;  %v20156_v2 = vshll.u32 %v14832_v20, 16 }
 0x44d   : >> { %5738 = vrot.lane.b32.xlu0 %v5523_v18, %s11036_s23  ;;  %v15119_v30 = vpop.f32.mrf.mxu1  ;;  %v15126_v27 = vpop.permute.xlu2 %4564  ;;  %v5567_v18 = vsel %vm508_vm0, %v5562_v58, %v5566_v63  ;;  %v5551_v35 = vsel %vm508_vm0, %v5546_v60, %v5550_v44  ;;  %20150 = vst [vmem:[#allocation115_spill] sm:$0xff] %v15144_v29  ;;  %v20157_v58 = vshrl.u32 %v15078_v0, 16  ;;  %v20162_v0 = vshrl.u32 %v15047_v28, 16  ;;  %v15209_v28 = vld [vmem:[%s11183_s14 + $0x130] sm:$0xff] }
 0x44e   : >> { %v4545_v33 = vpop.permute.xlu1 %4544  ;;  %20151 = vst [vmem:[#allocation11_spill] sm:$0xff] %v15151_v53  ;;  %v15155_v60 = vpop.f32.mrf.mxu2  ;;  %v5921_v54 = vrot.slane %v20154_v42, 2  ;;  %v5924_v51 = vrot.slane %v20156_v2, 2 }
 0x44f   : >> { %v15131_v38 = vpop.permute.xlu0 %4470  ;;  %v4801_v36 = vsel %vm1563_vm9, %v4737_v15, %v4545_v33  ;;  %v5420_v15 = vunpack.c.l.b16 %v9960_v21  ;;  %20153 = vst [vmem:[#allocation52_spill] sm:$0xff] %v15155_v60  ;;  %v20158_v21 = vshll.u32 %v15112_v11, 16  ;;  %v15171_v33 = vld [vmem:[%s11183_s14 + $0x128] sm:$0xff]  ;;  %v5570_v42 = vor.u32 %v20162_v0, %v5566_v63 }
 0x450   : >> { %20149 = vst [vmem:[#allocation81_spill] sm:$0xff] %v15131_v38  ;;  %9654 = vmatmul.msk.bf16.gmra.mxu1 %vm3010_vm8, %v1589_v22  ;;  %9882 = vmatmul.msk.bf16.vlgmr.msrb.gmra.mxu2 %vm3010_vm8, %v4801_v36  ;;  %v20152_v22 = vshrl.u32 %v14838_v34, 16  ;;  %v20155_v36 = vshrl.u32 %v14832_v20, 16  ;;  %v5590_v38 = vor.u32 %v20157_v58, %v5586_v56  ;;  %v20160_v58 = vshrl.u32 %v15089_v6, 16 }
 0x451   : >> { %20159 = vst [vmem:[#allocation72_spill] sm:$0xff] %v15171_v33 }
 0x452   : >> { %v5920_v44 = vrot.slane %v20152_v22, 1  ;;  %v5923_v61 = vrot.slane %v20155_v36, 1  ;;  %v5594_v22 = vrot.slane %v20158_v21, 1  ;;  %v5582_v36 = vor.u32 %v5581_v49, %v20160_v58  ;;  %20166 = vst [vmem:[#allocation12_spill] sm:$0xff] %v15209_v28 }
 0x453   : >> { %5748 = vrot.lane.b32.xlu2 %v5567_v18, %s11036_s23  ;;  %v15181_v18 = vpack.c.b16 %v5420_v15, %v5420_v15  ;;  %v20164_v58 = vshll.u32 %v15144_v29, 16 }
 0x454   : >> { %5746 = vrot.lane.b32.xlu1 %v5559_v9, %s11036_s23  ;;  %v5922_v60 = vor.u32 %v5921_v54, %v5920_v44  ;;  %v15174_v43 = vor.u32 %v5924_v51, %v5923_v61  ;;  %v20163_v51 = vshll.u32 %v15128_v19, 16  ;;  %v5595_v15 = vsel %vm508_vm0, %v5590_v38, %v5594_v22  ;;  %v20172_v44 = vld [vmem:[#allocation149_spill] sm:$0xff] }
 0x455   : >> { %5744 = vrot.lane.b32.xlu0 %v5551_v35, %s11036_s23  ;;  %v15177_v2 = vpop.f32.mrf.mxu1  ;;  %20161 = vst [vmem:[#allocation114_spill] sm:$0xff] %v15181_v18  ;;  %v15184_v21 = vpop.permute.xlu2 %4570  ;;  %v5617_v9 = vrot.slane %v20164_v58, 1  ;;  %v5587_v63 = vsel %vm508_vm0, %v5582_v36, %v5586_v56  ;;  %v20167_v58 = vld [vmem:[#allocation27_spill] sm:$0xff] }
 0x456   : >> { %v5574_v61 = vrot.slane %v20163_v51, 1  ;;  %v15192_v35 = vsel %vm998_vm2, %v5922_v60, %v15174_v43  ;;  %v15194_v54 = vpop.permute.xlu1 %4550  ;;  %v20165_v51 = vshll.u32 %v15151_v53, 16  ;;  %v1396_v0 = vsel %vm1368_vm5, %v10797_v17, %v20167_v58  ;;  %v15218_v36 = vpop.f32.mrf.mxu2  ;;  %v20176_v58 = vld [vmem:[#allocation80_spill] sm:$0xff] }
 0x457   : >> { %v15196_v49 = vpop.permute.xlu0 %4548  ;;  %v1461_v56 = vsel %vm1433_vm6, %v1396_v0, %v20168_v37  ;;  %20169 = vst [vmem:[#allocation50_spill] sm:$0xff] %v15218_v36  ;;  %v4611_v60 = vsel %vm1368_vm5, %v14598_v26, %v20172_v44  ;;  %v20173_v17 = vshrl.u32 %v15151_v53, 16  ;;  %v20174_v0 = vshll.u32 %v15181_v18, 16  ;;  %v20178_v36 = vld [vmem:[#allocation123_spill] sm:$0xff] }
 0x458   : >> { %v5602_v6 = vrot.slane %v20165_v51, 1  ;;  %v5575_v38 = vsel %vm508_vm0, %v5570_v42, %v5574_v61  ;;  %v20170_v51 = vshrl.u32 %v15144_v29, 16  ;;  %v20171_v42 = vshll.u32 %v15171_v33, 16 }
 0x45a   : >> { %v5618_v19 = vor.u32 %v5617_v9, %v20170_v51  ;;  %v5622_v61 = vrot.slane %v20171_v42, 1  ;;  %v5606_v37 = vor.u32 %v20173_v17, %v5602_v6  ;;  %v1526_v51 = vsel %vm1498_vm7, %v1461_v56, %v20176_v58  ;;  %v15261_v58 = vld [vmem:[%s11183_s14 + $0x90] sm:$0xff] }
 0x45b   : >> { %5754 = vrot.lane.b32.xlu2 %v5595_v15, %s11036_s23  ;;  %v5610_v15 = vrot.slane %v20174_v0, 1  ;;  %v4675_v42 = vsel %vm1433_vm6, %v4611_v60, %v14409_v24  ;;  %v1591_v0 = vsel %vm1563_vm9, %v1526_v51, %v20178_v36  ;;  %v19258_v51 = vshrl.u32 %v15209_v28, 16 }
 0x45c   : >> { %5752 = vrot.lane.b32.xlu1 %v5587_v63, %s11036_s23  ;;  %v15235_v63 = vld [vmem:[%s11183_s14 + $0x138] sm:$0xff]  ;;  %v4739_v29 = vsel %vm1498_vm7, %v4675_v42, %v14734_v47  ;;  %v5623_v60 = vsel %vm508_vm0, %v5618_v19, %v5622_v61  ;;  %v20179_v47 = vshll.u32 %v15209_v28, 16  ;;  %v7115_v19 = vshll.u32 %v15261_v58, 16 }
 0x45d   : >> { %5750 = vrot.lane.b32.xlu0 %v5575_v38, %s11036_s23  ;;  %20175 = vst [vmem:[#allocation85_spill] sm:$0xff] %v15235_v63  ;;  %v15242_v26 = vpop.f32.mrf.mxu1  ;;  %v15244_v44 = vpop.permute.xlu2 %4576  ;;  %v20177_v38 = vshrl.u32 %v15112_v11, 16  ;;  %v4803_v24 = vsel %vm1563_vm9, %v4739_v29, %v14959_v4  ;;  %v19260_v42 = vshll.u32 %v15235_v63, 16  ;;  %v15274_v4 = vld [vmem:[%s11183_s14 + $0x98] sm:$0xff]  ;;  %v5784_v29 = vrot.slane %v14838_v34, 1 }
 0x45e   : >> { %v15252_v9 = vpop.permute.xlu1 %4556  ;;  %v5630_v36 = vrot.slane %v20179_v47, 1  ;;  %v7120_v63 = vshll.u32 %v15274_v4, 16 }
 0x45f   : >> { %v5598_v17 = vor.u32 %v20177_v38, %v5594_v22  ;;  %v15254_v56 = vpop.permute.xlu0 %4554  ;;  %v5611_v22 = vsel %vm508_vm0, %v5606_v37, %v5610_v15  ;;  %v15284_v15 = vrot.slane %v19260_v42, 1  ;;  %v7113_v37 = vshrl.u32 %v15261_v58, 16 }
 0x460   : >> { %9655 = vmatmul.msk.bf16.gmra.mxu1 %vm3010_vm8, %v1591_v0  ;;  %9883 = vmatmul.msk.bf16.gmra.mxu2 %vm3010_vm8, %v4803_v24  ;;  %v19263_v0 = vshrl.u32 %v15171_v33, 16  ;;  %v20183_v42 = vrot.slane %v14832_v20, 1  ;;  %v20184_v33 = vld [vmem:[#allocation17_spill] sm:$0xff]  ;;  %v15311_v11 = vrot.slane %v7120_v63, 1 }
 0x461   : >> { %v5603_v38 = vsel %vm508_vm0, %v5598_v17, %v5602_v6  ;;  %v5634_v6 = vor.u32 %v19258_v51, %v5630_v36  ;;  %20180 = vst [vmem:[#allocation104_spill] sm:$0xff] %v15284_v15  ;;  %v15286_v17 = vpop.f32.mrf.mxu2  ;;  %v7117_v51 = vrot.slane %v7115_v19, 1 }
 0x462   : >> { %20181 = vst [vmem:[#allocation22_spill] sm:$0xff] %v15286_v17  ;;  %v5786_v17 = vsel %vm861_vm1, %v5784_v29, %v20183_v42  ;;  %v19274_v42 = vrot.slane %v14832_v20, 2  ;;  %v20185_v29 = vld [vmem:[#allocation59_spill] sm:$0xff] }
 0x463   : >> { %5760 = vrot.lane.b32.xlu2 %v5623_v60, %s11036_s23  ;;  %v5626_v60 = vor.u32 %v19263_v0, %v5622_v61  ;;  %v5639_v28 = vsel %vm508_vm0, %v5634_v6, %v15284_v15  ;;  %v10798_v0 = vld [vmem:[%s11183_s14 + $0x7c] sm:$0xff]  ;;  %v7118_v53 = vor.u32 %v7117_v51, %v7113_v37  ;;  %v20186_v15 = vld [vmem:[#allocation206_spill] sm:$0xff] }
 0x464   : >> { %5758 = vrot.lane.b32.xlu1 %v5611_v22, %s11036_s23  ;;  %v1398_v18 = vsel %vm1368_vm5, %v10798_v0, %v20184_v33  ;;  %v19273_v33 = vshrl.u32 %v15274_v4, 16  ;;  %v20187_v0 = vld [vmem:[#allocation94_spill] sm:$0xff] }
 0x465   : >> { %5756 = vrot.lane.b32.xlu0 %v5603_v38, %s11036_s23  ;;  %v15288_v24 = vpop.permute.xlu2 %4582  ;;  %v15296_v38 = vpop.f32.mrf.mxu1  ;;  %v5631_v61 = vsel %vm508_vm0, %v5626_v60, %v5630_v36  ;;  %v1463_v6 = vsel %vm1433_vm6, %v1398_v18, %v20185_v29  ;;  %v4613_v36 = vsel %vm1368_vm5, %v14602_v62, %v20186_v15 }
 0x466   : >> { %20182 = vst [vmem:[#allocation42_spill] sm:$0xff] %v15288_v24  ;;  %v15292_v22 = vpop.permute.xlu1 %4562  ;;  %v6152_v24 = vrot.slane %v14838_v34, 2  ;;  %v4677_v51 = vsel %vm1433_vm6, %v4613_v36, %v14290_v25  ;;  %v7123_v25 = vsel %vm508_vm0, %v7118_v53, %v15311_v11  ;;  %v7601_v36 = vrot.slane %v7115_v19, 2 }
 0x467   : >> { %v15294_v47 = vpop.permute.xlu0 %4560  ;;  %v4741_v18 = vsel %vm1498_vm7, %v4677_v51, %v14732_v10  ;;  %v7600_v10 = vrot.slane %v7113_v37, 1  ;;  %v7832_v53 = vrot.slane %v15261_v58, 2 }
 0x469   : >> { %v15336_v15 = vpop.f32.mrf.mxu2  ;;  %v7602_v19 = vor.u32 %v7601_v36, %v7600_v10  ;;  %v20193_v10 = vshll.u32 %v14829_v32, 16 }
 0x46a   : >> { %20190 = vst [vmem:[#allocation118_spill] sm:$0xff] %v15336_v15  ;;  %v20195_v15 = vld [vmem:[#allocation31_spill] sm:$0xff] }
 0x46b   : >> { %5856 = vrot.lane.b32.xlu2 %v5786_v17, %s11037_s24  ;;  %v20189_v17 = vld [vmem:[#allocation113_spill] sm:$0xff]  ;;  %v5928_v36 = vrot.slane %v20193_v10, 2 }
 0x46c   : >> { %5764 = vrot.lane.b32.xlu1 %v5639_v28, %s11036_s23  ;;  %v1528_v28 = vsel %vm1498_vm7, %v1463_v6, %v20187_v0  ;;  %v6154_v6 = vsel %vm1231_vm3, %v6152_v24, %v19274_v42  ;;  %v7603_v0 = vrot.slane %v19273_v33, 1  ;;  %v10799_v42 = vld [vmem:[%s11183_s14 + $0x84] sm:$0xff] }
 0x46d   : >> { %5762 = vrot.lane.b32.xlu0 %v5631_v61, %s11036_s23  ;;  %v15326_v34 = vpop.permute.xlu2 %4588  ;;  %v1593_v60 = vsel %vm1563_vm9, %v1528_v28, %v20189_v17  ;;  %v4805_v61 = vsel %vm1563_vm9, %v4741_v18, %v15196_v49  ;;  %v7604_v28 = vrot.slane %v7120_v63, 2  ;;  %v15349_v51 = vpop.f32.mrf.mxu1  ;;  %v19275_v49 = vrot.slane %v15274_v4, 2 }
 0x46e   : >> { %20188 = vst [vmem:[#allocation84_spill] sm:$0xff] %v15326_v34  ;;  %v15332_v29 = vpop.permute.xlu1 %4568  ;;  %v7464_v63 = vrot.slane %v15261_v58, 1  ;;  %v7465_v17 = vrot.slane %v15274_v4, 1  ;;  %v20196_v34 = vld [vmem:[#allocation51_spill] sm:$0xff] }
 0x46f   : >> { %v15334_v62 = vpop.permute.xlu0 %4566  ;;  %v7605_v37 = vor.u32 %v7604_v28, %v7603_v0  ;;  %v15374_v0 = vld [vmem:[%s11183_s14 + $0xa0] sm:$0xff] }
 0x470   : >> { %9656 = vmatmul.msk.bf16.gmra.mxu1 %vm3010_vm8, %v1593_v60  ;;  %9884 = vmatmul.msk.bf16.gmra.mxu2 %vm3010_vm8, %v4805_v61  ;;  %v7466_v33 = vsel %vm861_vm1, %v7464_v63, %v7465_v17 }
 0x471   : >> { %v7606_v61 = vsel %vm998_vm2, %v7602_v19, %v7605_v37  ;;  %v15376_v28 = vpop.f32.mrf.mxu2  ;;  %v20197_v19 = vld [vmem:[#allocation213_spill] sm:$0xff] }
 0x472   : >> { %20194 = vst [vmem:[#allocation55_spill] sm:$0xff] %v15376_v28  ;;  %v20214_v28 = vld [vmem:[#allocation64_spill] sm:$0xff] }
 0x473   : >> { %7400 = vrot.lane.b32.xlu2 %v7123_v25, %s11036_s23  ;;  %v20192_v25 = vshrl.u32 %v14829_v32, 16 }
 0x474   : >> { %6224 = vrot.lane.b32.xlu1 %v6154_v6, %s11039_s30 }
 0x475   : >> { %6088 = vrot.lane.b32.xlu0 %v15192_v35, %s11038_s27  ;;  %v15357_v24 = vpop.permute.xlu2 %4594  ;;  %v7834_v35 = vsel %vm1231_vm3, %v7832_v53, %v19275_v49  ;;  %v5927_v6 = vrot.slane %v20192_v25, 1  ;;  %v4615_v25 = vsel %vm1368_vm5, %v14631_v8, %v20197_v19  ;;  %v15387_v49 = vpop.f32.mrf.mxu1 }
 0x476   : >> { %20191 = vst [vmem:[#allocation21_spill] sm:$0xff] %v15357_v24  ;;  %v15361_v60 = vpop.permute.xlu1 %4574  ;;  %v1400_v24 = vsel %vm1368_vm5, %v10799_v42, %v20195_v15  ;;  %v7128_v42 = vshll.u32 %v15374_v0, 16  ;;  %v19276_v15 = vshrl.u32 %v15374_v0, 16  ;;  %v4679_v8 = vsel %vm1433_vm6, %v4615_v25, %v14455_v50 }
 0x477   : >> { %v15363_v18 = vpop.permute.xlu0 %4572  ;;  %v1465_v53 = vsel %vm1433_vm6, %v1400_v24, %v20196_v34  ;;  %v5929_v10 = vor.u32 %v5928_v36, %v5927_v6  ;;  %v20198_v34 = vld [vmem:[#allocation93_spill] sm:$0xff]  ;;  %v4743_v6 = vsel %vm1498_vm7, %v4679_v8, %v14657_v57  ;;  %v20203_v50 = vrot.slane %v14829_v32, 2 }
 0x478   : >> { %v1530_v24 = vsel %vm1498_vm7, %v1465_v53, %v20198_v34  ;;  %v4807_v53 = vsel %vm1563_vm9, %v4743_v6, %v15194_v54  ;;  %v20204_v25 = vrot.slane %v14832_v20, 2  ;;  %v7608_v8 = vrot.slane %v7128_v42, 2 }
 0x479   : >> { %v5930_v57 = vsel %vm998_vm2, %v15174_v43, %v5929_v10  ;;  %v15426_v54 = vpop.f32.mrf.mxu2  ;;  %v7467_v43 = vrot.slane %v15374_v0, 1 }
 0x47a   : >> { %v6156_v34 = vsel %vm1231_vm3, %v20204_v25, %v20203_v50  ;;  %20206 = vst [vmem:[#allocation53_spill] sm:$0xff] %v15426_v54  ;;  %v20212_v54 = vshll.u32 %v14843_v48, 16 }
 0x47b   : >> { %7904 = vrot.lane.b32.xlu2 %v7834_v35, %s11039_s30  ;;  %v5787_v35 = vrot.slane %v14829_v32, 1 }
 0x47c   : >> { %7768 = vrot.lane.b32.xlu1 %v7606_v61, %s11038_s27  ;;  %v20200_v61 = vld [vmem:[#allocation127_spill] sm:$0xff] }
 0x47d   : >> { %7536 = vrot.lane.b32.xlu0 %v7466_v33, %s11037_s24  ;;  %v15399_v19 = vpop.permute.xlu2 %4600  ;;  %v1595_v33 = vsel %vm1563_vm9, %v1530_v24, %v20200_v61  ;;  %v7607_v24 = vrot.slane %v19276_v15, 1  ;;  %v20205_v61 = vrot.slane %v14832_v20, 1  ;;  %v20208_v20 = vshrl.u32 %v15274_v4, 16 }
 0x47e   : >> { %20199 = vst [vmem:[#allocation75_spill] sm:$0xff] %v15399_v19  ;;  %v15406_v36 = vpop.permute.xlu1 %4580 }
 0x47f   : >> { %20201 = vst [vmem:[#allocation117_spill] sm:$0xff] %v15406_v36  ;;  %v15408_v63 = vpop.permute.xlu0 %4578  ;;  %v15431_v6 = vor.u32 %v7608_v8, %v7607_v24  ;;  %v7126_v25 = vor.u32 %v20208_v20, %v15311_v11  ;;  %v7468_v24 = vsel %vm861_vm1, %v7465_v17, %v7467_v43  ;;  %v20211_v8 = vshrl.u32 %v14843_v48, 16  ;;  %v10800_v11 = vld [vmem:[%s11183_s14 + $0x90] sm:$0xff]  ;;  %v20227_v36 = vld [vmem:[#allocation20_spill] sm:$0xff] }
 0x480   : >> { %20202 = vst [vmem:[#allocation13_spill] sm:$0xff] %v15408_v63  ;;  %9657 = vmatmul.msk.bf16.gmra.mxu1 %vm3010_vm8, %v1595_v33  ;;  %9885 = vmatmul.msk.bf16.gmra.mxu2 %vm3010_vm8, %v4807_v53  ;;  %v5788_v33 = vsel %vm861_vm1, %v20205_v61, %v5787_v35  ;;  %v15434_v53 = vpop.f32.mrf.mxu1  ;;  %v7130_v61 = vrot.slane %v7128_v42, 1  ;;  %v20213_v42 = vld [vmem:[#allocation30_spill] sm:$0xff]  ;;  %v10801_v17 = vld [vmem:[%s11183_s14 + $0x6c] sm:$0xff] }
 0x481   : >> { %v1402_v20 = vsel %vm1368_vm5, %v10800_v11, %v20213_v42  ;;  %v20216_v11 = vld [vmem:[#allocation83_spill] sm:$0xff]  ;;  %v15474_v42 = vpop.f32.mrf.mxu2 }
 0x482   : >> { %v7131_v19 = vsel %vm508_vm0, %v7126_v25, %v7130_v61  ;;  %v19277_v25 = vrot.slane %v14843_v48, 1  ;;  %20217 = vst [vmem:[#allocation45_spill] sm:$0xff] %v15474_v42 }
 0x483   : >> { %6226 = vrot.lane.b32.xlu2 %v6156_v34, %s11039_s30 }
 0x484   : >> { %6090 = vrot.lane.b32.xlu1 %v5930_v57, %s11038_s27  ;;  %v7610_v57 = vsel %vm998_vm2, %v7605_v37, %v15431_v6  ;;  %v1467_v37 = vsel %vm1433_vm6, %v1402_v20, %v20214_v28  ;;  %v20218_v20 = vld [vmem:[#allocation126_spill] sm:$0xff] }
 0x485   : >> { %5858 = vrot.lane.b32.xlu0 %v5788_v33, %s11037_s24  ;;  %v15436_v50 = vpop.permute.xlu2 %4606  ;;  %v5931_v33 = vrot.slane %v20211_v8, 1 }
 0x486   : >> { %20207 = vst [vmem:[#allocation88_spill] sm:$0xff] %v15436_v50  ;;  %v15441_v34 = vpop.permute.xlu1 %4586  ;;  %v5932_v50 = vrot.slane %v20212_v54, 2 }
 0x487   : >> { %20209 = vst [vmem:[#allocation107_spill] sm:$0xff] %v15441_v34  ;;  %v15443_v15 = vpop.permute.xlu0 %4584  ;;  %v20215_v34 = vld [vmem:[#allocation154_spill] sm:$0xff] }
 0x488   : >> { %20210 = vst [vmem:[#allocation25_spill] sm:$0xff] %v15443_v15  ;;  %v4617_v8 = vsel %vm1368_vm5, %v10801_v17, %v20215_v34  ;;  %v15464_v54 = vor.u32 %v5932_v50, %v5931_v33  ;;  %v15468_v15 = vld [vmem:[%s11183_s14 + $0xa8] sm:$0xff]  ;;  %v7835_v34 = vrot.slane %v15374_v0, 2 }
 0x48b   : >> { %7770 = vrot.lane.b32.xlu2 %v7610_v57, %s11038_s27  ;;  %v1532_v57 = vsel %vm1498_vm7, %v1467_v37, %v20216_v11  ;;  %v7136_v11 = vshll.u32 %v15468_v15, 16 }
 0x48c   : >> { %7538 = vrot.lane.b32.xlu1 %v7468_v24, %s11037_s24  ;;  %v4681_v24 = vsel %vm1433_vm6, %v4617_v8, %v14453_v46  ;;  %v15489_v46 = vpop.f32.mrf.mxu1  ;;  %v5934_v8 = vsel %vm998_vm2, %v5929_v10, %v15464_v54  ;;  %v20222_v10 = vshrl.u32 %v15374_v0, 16 }
 0x48d   : >> { %7402 = vrot.lane.b32.xlu0 %v7131_v19, %s11036_s23  ;;  %v15476_v28 = vpop.permute.xlu2 %5724  ;;  %v1597_v19 = vsel %vm1563_vm9, %v1532_v57, %v20218_v20  ;;  %v4745_v50 = vsel %vm1498_vm7, %v4681_v24, %v14752_v45  ;;  %v5790_v45 = vsel %vm861_vm1, %v5787_v35, %v19277_v25  ;;  %v20221_v57 = vrot.slane %v15274_v4, 2 }
 0x48e   : >> { %v15483_v33 = vpop.permute.xlu1 %4592  ;;  %v4809_v37 = vsel %vm1563_vm9, %v4745_v50, %v15014_v5  ;;  %v19278_v24 = vrot.slane %v15468_v15, 1  ;;  %v7134_v20 = vor.u32 %v20222_v10, %v7130_v61  ;;  %v6157_v50 = vrot.slane %v14843_v48, 2 }
 0x48f   : >> { %20219 = vst [vmem:[#allocation87_spill] sm:$0xff] %v15483_v33  ;;  %v15485_v17 = vpop.permute.xlu0 %4590  ;;  %v7836_v5 = vsel %vm1231_vm3, %v20221_v57, %v7835_v34  ;;  %v7140_v4 = vshrl.u32 %v15468_v15, 16  ;;  %v15517_v57 = vpop.f32.mrf.mxu2  ;;  %v20226_v25 = vrot.slane %v14829_v32, 2  ;;  %v5791_v32 = vrot.slane %v14912_v39, 1 }
 0x490   : >> { %20220 = vst [vmem:[#allocation121_spill] sm:$0xff] %v15485_v17  ;;  %9658 = vmatmul.msk.bf16.gmra.mxu1 %vm3010_vm8, %v1597_v19  ;;  %9886 = vmatmul.msk.bf16.gmra.mxu2 %vm3010_vm8, %v4809_v37  ;;  %v7138_v19 = vrot.slane %v7136_v11, 1  ;;  %v10164_v37 = vld [vmem:[%s11183_s14 + $0xb0] sm:$0x3]  ;;  %v7470_v0 = vsel %vm861_vm1, %v7467_v43, %v19278_v24  ;;  %v7612_v17 = vrot.slane %v7136_v11, 2  ;;  %v10803_v43 = vld [vmem:[%s11183_s14 + $0x74] sm:$0xff] }
 0x491   : >> { %20225 = vst [vmem:[#allocation77_spill] sm:$0xff] %v15517_v57  ;;  %v6158_v42 = vsel %vm1231_vm3, %v20226_v25, %v6157_v50  ;;  %v7611_v33 = vrot.slane %v7140_v4, 1  ;;  %v20228_v57 = vld [vmem:[#allocation62_spill] sm:$0xff]  ;;  %v7837_v25 = vrot.slane %v15468_v15, 2  ;;  %v10805_v24 = vld [vmem:[%s11183_s14 + $0x7c] sm:$0xff] }
 0x492   : >> { %v7139_v61 = vsel %vm508_vm0, %v7134_v20, %v7138_v19  ;;  %v4619_v20 = vsel %vm1368_vm5, %v10803_v43, %v14073_v40  ;;  %v20231_v40 = vld [vmem:[#allocation116_spill] sm:$0xff] }
 0x493   : >> { %6092 = vrot.lane.b32.xlu2 %v5934_v8, %s11038_s27 }
 0x494   : >> { %5860 = vrot.lane.b32.xlu1 %v5790_v45, %s11037_s24  ;;  %v15523_v10 = vpop.f32.mrf.mxu1 }
 0x495   : >> { %7906 = vrot.lane.b32.xlu0 %v7836_v5, %s11039_s30  ;;  %v15508_v35 = vpop.permute.xlu2 %5730  ;;  %v7096_v5 = vunpack.c.l.b16 %v10164_v37 }
 0x496   : >> { %v15513_v8 = vpop.permute.xlu1 %4598 }
 0x497   : >> { %20223 = vst [vmem:[#allocation24_spill] sm:$0xff] %v15513_v8  ;;  %v15515_v45 = vpop.permute.xlu0 %4596  ;;  %v10802_v8 = vld [vmem:[%s11183_s14 + $0x98] sm:$0xff]  ;;  %v15541_v11 = vpack.c.b16 %v7096_v5, %v7096_v5 }
 0x498   : >> { %20224 = vst [vmem:[#allocation58_spill] sm:$0xff] %v15515_v45  ;;  %v1404_v45 = vsel %vm1368_vm5, %v10802_v8, %v20227_v36  ;;  %v20229_v36 = vld [vmem:[#allocation97_spill] sm:$0xff]  ;;  %v4683_v8 = vsel %vm1433_vm6, %v4619_v20, %v14331_v59  ;;  %v20234_v59 = vrot.slane %v14843_v48, 1  ;;  %v7142_v48 = vor.u32 %v7140_v4, %v7138_v19  ;;  %v10804_v4 = vld [vmem:[%s11183_s14 + $0xa0] sm:$0xff] }
 0x499   : >> { %v1469_v63 = vsel %vm1433_vm6, %v1404_v45, %v20228_v57  ;;  %v7613_v57 = vor.u32 %v7612_v17, %v7611_v33  ;;  %v7838_v17 = vsel %vm1231_vm3, %v7835_v34, %v7837_v25 }
 0x49a   : >> { %v1534_v37 = vsel %vm1498_vm7, %v1469_v63, %v20229_v36  ;;  %v5792_v33 = vsel %vm861_vm1, %v20234_v59, %v5791_v32  ;;  %v7615_v32 = vshrl.u32 %v15541_v11, 16 }
 0x49b   : >> { %7540 = vrot.lane.b32.xlu2 %v7470_v0, %s11037_s24  ;;  %v5935_v0 = vshrl.u32 %v14912_v39, 16  ;;  %v7614_v20 = vsel %vm998_vm2, %v15431_v6, %v7613_v57  ;;  %v6159_v6 = vrot.slane %v14912_v39, 2 }
 0x49c   : >> { %7404 = vrot.lane.b32.xlu1 %v7139_v61, %s11036_s23  ;;  %v4747_v61 = vsel %vm1498_vm7, %v4683_v8, %v14750_v31  ;;  %v7144_v31 = vshll.u32 %v15541_v11, 16  ;;  %v15573_v8 = vpop.f32.mrf.mxu2 }
 0x49d   : >> { %6228 = vrot.lane.b32.xlu0 %v6158_v42, %s11039_s30  ;;  %v15547_v45 = vpop.permute.xlu2 %5736  ;;  %v1599_v42 = vsel %vm1563_vm9, %v1534_v37, %v20231_v40  ;;  %v4811_v63 = vsel %vm1563_vm9, %v4747_v61, %v15254_v56  ;;  %v5937_v36 = vrot.slane %v5935_v0, 1  ;;  %v20235_v56 = vshll.u32 %v14912_v39, 16  ;;  %20236 = vst [vmem:[#allocation91_spill] sm:$0xff] %v15573_v8  ;;  %v15575_v40 = vpop.f32.mrf.mxu1  ;;  %v20238_v39 = vld [vmem:[#allocation34_spill] sm:$0xff] }
 0x49e   : >> { %20230 = vst [vmem:[#allocation120_spill] sm:$0xff] %v15547_v45  ;;  %v15554_v43 = vpop.permute.xlu1 %4604  ;;  %v7146_v34 = vrot.slane %v7144_v31, 1  ;;  %v20255_v45 = vld [vmem:[#allocation143_spill] sm:$0xff] }
 0x49f   : >> { %20232 = vst [vmem:[#allocation14_spill] sm:$0xff] %v15554_v43  ;;  %v15556_v5 = vpop.permute.xlu0 %4602  ;;  %v5938_v37 = vrot.slane %v20235_v56, 2  ;;  %v1406_v56 = vsel %vm1368_vm5, %v10804_v4, %v20238_v39  ;;  %v20245_v39 = vshll.u32 %v14874_v52, 16 }
 0x4a0   : >> { %20233 = vst [vmem:[#allocation56_spill] sm:$0xff] %v15556_v5  ;;  %9659 = vmatmul.msk.bf16.gmra.mxu1 %vm3010_vm8, %v1599_v42  ;;  %9887 = vmatmul.msk.bf16.gmra.mxu2 %vm3010_vm8, %v4811_v63  ;;  %v7147_v59 = vsel %vm508_vm0, %v7142_v48, %v7146_v34  ;;  %v20254_v5 = vld [vmem:[#allocation67_spill] sm:$0xff] }
 0x4a1   : >> { %v5939_v42 = vor.u32 %v5938_v37, %v5937_v36  ;;  %v4621_v36 = vsel %vm1368_vm5, %v10805_v24, %v14067_v23  ;;  %v20239_v37 = vld [vmem:[#allocation54_spill] sm:$0xff] }
 0x4a3   : >> { %5862 = vrot.lane.b32.xlu2 %v5792_v33, %s11037_s24  ;;  %v6160_v33 = vsel %vm1231_vm3, %v6157_v50, %v6159_v6  ;;  %v5940_v19 = vsel %vm998_vm2, %v15464_v54, %v5939_v42  ;;  %v1471_v50 = vsel %vm1433_vm6, %v1406_v56, %v20239_v37  ;;  %v7839_v54 = vrot.slane %v15541_v11, 2  ;;  %v20241_v6 = vld [vmem:[#allocation96_spill] sm:$0xff] }
 0x4a4   : >> { %7908 = vrot.lane.b32.xlu1 %v7838_v17, %s11039_s30  ;;  %v7617_v17 = vrot.slane %v7615_v32, 1  ;;  %v15604_v48 = vpop.f32.mrf.mxu2  ;;  %v1536_v23 = vsel %vm1498_vm7, %v1471_v50, %v20241_v6  ;;  %v5942_v56 = vrot.slane %v20245_v39, 2  ;;  %v20247_v37 = vshll.u32 %v14871_v7, 16  ;;  %v15640_v6 = vld [vmem:[%s11183_s14 + $0xb4] sm:$0xff] }
 0x4a5   : >> { %7772 = vrot.lane.b32.xlu0 %v7614_v20, %s11038_s27  ;;  %v15582_v0 = vpop.permute.xlu2 %5742  ;;  %v7618_v20 = vrot.slane %v7144_v31, 2  ;;  %v4685_v31 = vsel %vm1433_vm6, %v4621_v36, %v14481_v12  ;;  %20240 = vst [vmem:[#allocation28_spill] sm:$0xff] %v15604_v48  ;;  %v15612_v32 = vpop.f32.mrf.mxu1  ;;  %v7471_v12 = vrot.slane %v15541_v11, 1  ;;  %v20246_v11 = vshrl.u32 %v14871_v7, 16 }
 0x4a6   : >> { %20237 = vst [vmem:[#allocation110_spill] sm:$0xff] %v15582_v0  ;;  %v15584_v61 = vpop.permute.xlu1 %5722  ;;  %v4749_v24 = vsel %vm1498_vm7, %v4685_v31, %v14681_v3  ;;  %v20244_v3 = vshrl.u32 %v14874_v52, 16  ;;  %v5945_v50 = vrot.slane %v20247_v37, 2  ;;  %v10807_v0 = vld [vmem:[%s11183_s14 + $0x84] sm:$0xff] }
 0x4a7   : >> { %v15586_v63 = vpop.permute.xlu0 %5720  ;;  %v7619_v34 = vor.u32 %v7618_v20, %v7617_v17  ;;  %v4813_v17 = vsel %vm1563_vm9, %v4749_v24, %v15252_v9  ;;  %v5944_v36 = vrot.slane %v20246_v11, 1  ;;  %v7840_v9 = vsel %vm1231_vm3, %v7837_v25, %v7839_v54 }
 0x4a8   : >> { %v5941_v4 = vrot.slane %v20244_v3, 1  ;;  %v20248_v24 = vrot.slane %v15468_v15, 1  ;;  %v7151_v54 = vshll.u32 %v15640_v6, 16  ;;  %v5793_v11 = vrot.slane %v14874_v52, 1 }
 0x4a9   : >> { %v7620_v31 = vsel %vm998_vm2, %v7613_v57, %v7619_v34  ;;  %v15652_v25 = vor.u32 %v5945_v50, %v5944_v36  ;;  %v7149_v57 = vshrl.u32 %v15640_v6, 16 }
 0x4aa   : >> { %v5943_v3 = vor.u32 %v5942_v56, %v5941_v4  ;;  %v7153_v43 = vrot.slane %v7151_v54, 1 }
 0x4ab   : >> { %7406 = vrot.lane.b32.xlu2 %v7147_v59, %s11036_s23  ;;  %v20243_v59 = vld [vmem:[#allocation130_spill] sm:$0xff] }
 0x4ac   : >> { %6230 = vrot.lane.b32.xlu1 %v6160_v33, %s11039_s30  ;;  %v1601_v33 = vsel %vm1563_vm9, %v1536_v23, %v20243_v59  ;;  %v15643_v23 = vld [vmem:[%s11183_s14 + $0xbc] sm:$0xff]  ;;  %v7472_v59 = vsel %vm861_vm1, %v20248_v24, %v7471_v12  ;;  %v15659_v12 = vpop.f32.mrf.mxu0  ;;  %v15669_v37 = vpop.f32.mrf.mxu2  ;;  %v7621_v24 = vrot.slane %v7149_v57, 1 }
 0x4ad   : >> { %6094 = vrot.lane.b32.xlu0 %v5940_v19, %s11038_s27  ;;  %v15614_v42 = vpop.permute.xlu2 %5748  ;;  %v7156_v15 = vshll.u32 %v15643_v23, 16  ;;  %v19281_v34 = vshrl.u32 %v15643_v23, 16  ;;  %20250 = vst [vmem:[#allocation90_spill] sm:$0xff] %v15669_v37  ;;  %v15671_v50 = vpop.f32.mrf.mxu1  ;;  %v20252_v37 = vrot.slane %v14871_v7, 1 }
 0x4ae   : >> { %20242 = vst [vmem:[#allocation48_spill] sm:$0xff] %v15614_v42  ;;  %v15621_v20 = vpop.permute.xlu1 %5728 }
 0x4af   : >> { %v15623_v19 = vpop.permute.xlu0 %5726  ;;  %20251 = vst [vmem:[#allocation124_spill] sm:$0xff] %v15671_v50  ;;  %v7624_v4 = vrot.slane %v19281_v34, 1  ;;  %v7625_v48 = vrot.slane %v7156_v15, 2  ;;  %v5795_v8 = vsel %vm861_vm1, %v5793_v11, %v20252_v37  ;;  %v4623_v50 = vsel %vm1368_vm5, %v10807_v0, %v20255_v45 }
 0x4b0   : >> { %9660 = vmatmul.msk.bf16.gmra.mxu1 %vm3010_vm8, %v1601_v33  ;;  %9888 = vmatmul.msk.bf16.gmra.mxu2 %vm3010_vm8, %v4813_v17  ;;  %v6161_v33 = vrot.slane %v14874_v52, 2  ;;  %v19279_v17 = vrot.slane %v14871_v7, 2  ;;  %v10533_v52 = vld [vmem:[%s19015_s1 + $0x18] sm:$0xff]  ;;  %v7473_v37 = vrot.slane %v15640_v6, 1  ;;  %v4687_v45 = vsel %vm1433_vm6, %v4623_v50, %v14479_v41 }
 0x4b1   : >> { %v15698_v11 = vor.u32 %v7625_v48, %v7624_v4  ;;  %v4751_v48 = vsel %vm1498_vm7, %v4687_v45, %v14779_v13  ;;  %v15750_v45 = vld [vmem:[%s11183_s14 + $0xc4] sm:$0xff] }
 0x4b3   : >> { %7910 = vrot.lane.b32.xlu2 %v7840_v9, %s11039_s30  ;;  %v6163_v9 = vsel %vm1231_vm3, %v6161_v33, %v19279_v17  ;;  %v6617_v33 = vand.u32 %v10533_v52, %v19857_v16  ;;  %v10806_v17 = vld [vmem:[%s11183_s14 + $0xa8] sm:$0xff] }
 0x4b4   : >> { %7774 = vrot.lane.b32.xlu1 %v7620_v31, %s11038_s27  ;;  %v5947_v31 = vsel %vm998_vm2, %v5943_v3, %v15652_v25  ;;  %v20258_v52 = vld [vmem:[#allocation129_spill] sm:$0xff] }
 0x4b5   : >> { %7542 = vrot.lane.b32.xlu0 %v7472_v59, %s11037_s24  ;;  %v15661_v39 = vpop.permute.xlu2 %5754  ;;  %v7622_v59 = vrot.slane %v7151_v54, 2  ;;  %6626 = vmatpush.bf16.msrb.mxu3 %v6617_v33  ;;  %v15734_v33 = vpop.f32.mrf.mxu2 }
 0x4b6   : >> { %20249 = vst [vmem:[#allocation153_spill] sm:$0xff] %v15661_v39  ;;  %v15665_v56 = vpop.permute.xlu1 %5734  ;;  %v20253_v39 = vld [vmem:[#allocation33_spill] sm:$0xff] }
 0x4b7   : >> { %v15667_v36 = vpop.permute.xlu0 %5732  ;;  %v1408_v3 = vsel %vm1368_vm5, %v10806_v17, %v20253_v39  ;;  %v7623_v54 = vor.u32 %v7622_v59, %v7621_v24  ;;  %v19280_v17 = vrot.slane %v15643_v23, 1  ;;  %v20256_v39 = vld [vmem:[#allocation86_spill] sm:$0xff]  ;;  %v15716_v59 = vpop.f32.mrf.mxu0  ;;  %20263 = vst [vmem:[#allocation80_spill] sm:$0xff] %v15734_v33 }
 0x4b8   : >> { %v1473_v42 = vsel %vm1433_vm6, %v1408_v3, %v20254_v5  ;;  %v15736_v3 = vpop.f32.mrf.mxu1 }
 0x4b9   : >> { %v1538_v5 = vsel %vm1498_vm7, %v1473_v42, %v20256_v39  ;;  %v4815_v42 = vsel %vm1563_vm9, %v4751_v48, %v15062_v1  ;;  %v7627_v41 = vsel %vm998_vm2, %v7623_v54, %v15698_v11  ;;  %v7475_v13 = vsel %vm861_vm1, %v7473_v37, %v19280_v17  ;;  %v10566_v1 = vld [vmem:[%s19015_s1 + $0x20] sm:$0xff]  ;;  %20264 = vst [vmem:[#allocation123_spill] sm:$0xff] %v15736_v3 }
 0x4ba   : >> { %v8297_v39 = vand.u32 %v10566_v1, %v19857_v16  ;;  %v15746_v37 = vld [vmem:[%s11183_s14 + $0xa0] sm:$0xff]  ;;  %v7841_v16 = vrot.slane %v15640_v6, 2 }
 0x4bb   : >> { %6232 = vrot.lane.b32.xlu2 %v6163_v9, %s11039_s30  ;;  %v7154_v9 = vor.u32 %v7153_v43, %v7149_v57  ;;  %v20261_v43 = vshrl.u32 %v14900_v55, 16  ;;  %v20268_v1 = vld [vmem:[#allocation23_spill] sm:$0xff] }
 0x4bc   : >> { %6096 = vrot.lane.b32.xlu1 %v5947_v31, %s11038_s27  ;;  %v7158_v31 = vrot.slane %v7156_v15, 1  ;;  %v20262_v15 = vshll.u32 %v14900_v55, 16  ;;  %8306 = vmatpush.bf16.msrb.mxu0 %v8297_v39  ;;  %v20269_v39 = vld [vmem:[#allocation65_spill] sm:$0xff] }
 0x4bd   : >> { %5864 = vrot.lane.b32.xlu0 %v5795_v8, %s11037_s24  ;;  %v15706_v0 = vpop.permute.xlu2 %5760  ;;  %v1603_v8 = vsel %vm1563_vm9, %v1538_v5, %v20258_v52  ;;  %v5948_v57 = vrot.slane %v20261_v43, 1  ;;  %v5796_v5 = vrot.slane %v15746_v37, 1  ;;  %v15775_v34 = vpop.f32.mrf.mxu2 }
 0x4be   : >> { %20257 = vst [vmem:[#allocation27_spill] sm:$0xff] %v15706_v0  ;;  %v15712_v4 = vpop.permute.xlu1 %5740  ;;  %v5949_v50 = vrot.slane %v20262_v15, 2  ;;  %v7159_v54 = vsel %vm508_vm0, %v7154_v9, %v7158_v31  ;;  %v7842_v9 = vrot.slane %v15643_v23, 2  ;;  %v20274_v0 = vld [vmem:[#allocation226_spill] sm:$0xff] }
 0x4bf   : >> { %20259 = vst [vmem:[#allocation61_spill] sm:$0xff] %v15712_v4  ;;  %v15714_v24 = vpop.permute.xlu0 %5738  ;;  %v10812_v4 = vld [vmem:[%s11183_s14 + $0xbc] sm:$0xff] }
 0x4c0   : >> { %20260 = vst [vmem:[#allocation149_spill] sm:$0xff] %v15714_v24  ;;  %9661 = vmatmul.msk.bf16.gmra.mxu1 %vm3010_vm8, %v1603_v8  ;;  %9889 = vmatmul.msk.bf16.gmra.mxu2 %vm3010_vm8, %v4815_v42  ;;  %v15743_v55 = vor.u32 %v5949_v50, %v5948_v57  ;;  %v15760_v42 = vpop.f32.mrf.mxu0  ;;  %v7164_v57 = vshll.u32 %v15750_v45, 16  ;;  %v7843_v15 = vsel %vm1231_vm3, %v7841_v16, %v7842_v9  ;;  %v10809_v50 = vld [vmem:[%s11183_s14 + $0xb4] sm:$0xff]  ;;  %v15777_v33 = vpop.f32.mrf.mxu1  ;;  %v20276_v16 = vld [vmem:[#allocation225_spill] sm:$0xff] }
 0x4c1   : >> { %20270 = vst [vmem:[#allocation206_spill] sm:$0xff] %v15775_v34  ;;  %v20293_v24 = vld [vmem:[#allocation57_spill] sm:$0xff] }
 0x4c2   : >> { %20271 = vst [vmem:[#allocation94_spill] sm:$0xff] %v15777_v33  ;;  %v20294_v33 = vld [vmem:[#allocation193_spill] sm:$0xff] }
 0x4c3   : >> { %7776 = vrot.lane.b32.xlu2 %v7627_v41, %s11038_s27  ;;  %v5951_v41 = vsel %vm998_vm2, %v15652_v25, %v15743_v55  ;;  %v10810_v25 = vld [vmem:[%s11183_s14 + $0x90] sm:$0xff] }
 0x4c4   : >> { %7544 = vrot.lane.b32.xlu1 %v7475_v13, %s11037_s24  ;;  %v20267_v13 = vrot.slane %v14871_v7, 1 }
 0x4c5   : >> { %7408 = vrot.lane.b32.xlu0 %v7159_v54, %s11036_s23  ;;  %v15752_v52 = vpop.permute.xlu2 %5856  ;;  %v1410_v54 = vsel %vm1368_vm5, %v10809_v50, %v20268_v1  ;;  %v20272_v50 = vshrl.u32 %v15643_v23, 16 }
 0x4c6   : >> { %v15756_v8 = vpop.permute.xlu1 %5746  ;;  %v5797_v43 = vsel %vm861_vm1, %v20267_v13, %v5796_v5  ;;  %v1475_v17 = vsel %vm1433_vm6, %v1410_v54, %v20269_v39  ;;  %v4625_v13 = vsel %vm1368_vm5, %v10810_v25, %v14104_v14  ;;  %v7166_v54 = vrot.slane %v7164_v57, 1  ;;  %v20273_v39 = vld [vmem:[#allocation100_spill] sm:$0xff]  ;;  %v20275_v25 = vld [vmem:[#allocation119_spill] sm:$0xff] }
 0x4c7   : >> { %20265 = vst [vmem:[#allocation17_spill] sm:$0xff] %v15756_v8  ;;  %v15758_v48 = vpop.permute.xlu0 %5744  ;;  %v7162_v1 = vor.u32 %v20272_v50, %v7158_v31  ;;  %v1540_v34 = vsel %vm1498_vm7, %v1475_v17, %v20273_v39  ;;  %v7168_v14 = vshrl.u32 %v15750_v45, 16  ;;  %v15804_v17 = vpop.f32.mrf.mxu3 }
 0x4c8   : >> { %20266 = vst [vmem:[#allocation59_spill] sm:$0xff] %v15758_v48 }
 0x4c9   : >> { %20279 = vst [vmem:[#allocation51_spill] sm:$0xff] %v15804_v17  ;;  %v7167_v39 = vsel %vm508_vm0, %v7162_v1, %v7166_v54  ;;  %v15831_v1 = vld [vmem:[%s11183_s14 + $0xa8] sm:$0xff] }
 0x4cb   : >> { %6098 = vrot.lane.b32.xlu2 %v5951_v41, %s11038_s27  ;;  %v4689_v41 = vsel %vm1433_vm6, %v4625_v13, %v20274_v0  ;;  %v20280_v13 = vrot.slane %v15750_v45, 1 }
 0x4cc   : >> { %5866 = vrot.lane.b32.xlu1 %v5797_v43, %s11037_s24  ;;  %v19282_v43 = vrot.slane %v15746_v37, 2  ;;  %v4753_v48 = vsel %vm1498_vm7, %v4689_v41, %v20276_v16  ;;  %v15816_v41 = vpop.f32.mrf.mxu0 }
 0x4cd   : >> { %7912 = vrot.lane.b32.xlu0 %v7843_v15, %s11039_s30  ;;  %v15792_v8 = vpop.permute.xlu2 %7400  ;;  %v1605_v15 = vsel %vm1563_vm9, %v1540_v34, %v20275_v25  ;;  %v4817_v0 = vsel %vm1563_vm9, %v4753_v48, %v15294_v47  ;;  %v20281_v34 = vrot.slane %v15643_v23, 1  ;;  %v20282_v25 = vrot.slane %v14871_v7, 2 }
 0x4ce   : >> { %v15800_v31 = vpop.permute.xlu1 %5752  ;;  %v7628_v48 = vrot.slane %v7168_v14, 1  ;;  %v19283_v7 = vrot.slane %v15831_v1, 1 }
 0x4cf   : >> { %20277 = vst [vmem:[#allocation113_spill] sm:$0xff] %v15800_v31  ;;  %v15802_v50 = vpop.permute.xlu0 %5750  ;;  %v7477_v16 = vsel %vm861_vm1, %v20281_v34, %v20280_v13  ;;  %v6165_v47 = vsel %vm1231_vm3, %v20282_v25, %v19282_v43  ;;  %v19284_v13 = vrot.slane %v15750_v45, 2  ;;  %v15838_v34 = vpop.f32.mrf.mxu1 }
 0x4d0   : >> { %20278 = vst [vmem:[#allocation31_spill] sm:$0xff] %v15802_v50  ;;  %9662 = vmatmul.msk.bf16.gmra.mxu1 %vm3010_vm8, %v1605_v15  ;;  %9890 = vmatmul.msk.bf16.gmra.mxu2 %vm3010_vm8, %v4817_v0  ;;  %v7629_v15 = vrot.slane %v7164_v57, 2  ;;  %v20283_v0 = vld [vmem:[#allocation192_spill] sm:$0xff]  ;;  %v15836_v57 = vld [vmem:[%s11183_s14 + $0xcc] sm:$0xff] }
 0x4d1   : >> { %v3333_v17 = vadd.f32 %v20283_v0, %v15659_v12  ;;  %20284 = vst [vmem:[#allocation213_spill] sm:$0xff] %v15838_v34  ;;  %v7845_v25 = vsel %vm1231_vm3, %v7842_v9, %v19284_v13  ;;  %v15855_v0 = vpop.f32.mrf.mxu3  ;;  %v20292_v9 = vld [vmem:[#allocation146_spill] sm:$0xff] }
 0x4d2   : >> { %20287 = vst [vmem:[#allocation30_spill] sm:$0xff] %v15855_v0  ;;  %v3335_v13 = vadd.f32 %v20292_v9, %v15716_v59  ;;  %v10813_v34 = vld [vmem:[%s11183_s14 + $0x98] sm:$0xff]  ;;  %v7170_v59 = vor.u32 %v7168_v14, %v7166_v54 }
 0x4d3   : >> { %v4948_v31 = vpop.f32.mrf.mxu2  ;;  %7546 = vrot.lane.b32.xlu2 %v7477_v16, %s11037_s24  ;;  %v15842_v16 = vor.u32 %v7629_v15, %v7628_v48  ;;  %v20288_v15 = vld [vmem:[#allocation155_spill] sm:$0xff] }
 0x4d4   : >> { %7410 = vrot.lane.b32.xlu1 %v7167_v39, %s11036_s23  ;;  %v15827_v23 = vadd.f32 %v4948_v31, %v3333_v17  ;;  %v5799_v39 = vsel %vm861_vm1, %v5796_v5, %v19283_v7  ;;  %v20289_v43 = vshrl.u32 %v20288_v15, 16  ;;  %v20291_v5 = vld [vmem:[#allocation37_spill] sm:$0xff]  ;;  %v15874_v3 = vpop.f32.mrf.mxu0 }
 0x4d5   : >> { %6234 = vrot.lane.b32.xlu0 %v6165_v47, %s11039_s30  ;;  %v15840_v12 = vpop.permute.xlu2 %7904  ;;  %v7172_v47 = vshll.u32 %v15836_v57, 16  ;;  %v7631_v48 = vsel %vm998_vm2, %v15698_v11, %v15842_v16  ;;  %v1412_v7 = vsel %vm1368_vm5, %v10812_v4, %v20291_v5  ;;  %v4627_v11 = vsel %vm1368_vm5, %v10813_v34, %v20294_v33  ;;  %v20296_v34 = vld [vmem:[#allocation203_spill] sm:$0xff] }
 0x4d6   : >> { %v15844_v31 = vpop.permute.xlu1 %5758  ;;  %v1477_v0 = vsel %vm1433_vm6, %v1412_v7, %v20293_v24  ;;  %v19286_v24 = vrot.slane %v15831_v1, 2  ;;  %v20295_v7 = vld [vmem:[#allocation99_spill] sm:$0xff]  ;;  %v4691_v5 = vsel %vm1433_vm6, %v4627_v11, %v20296_v34 }
 0x4d7   : >> { %20285 = vst [vmem:[#allocation93_spill] sm:$0xff] %v15844_v31  ;;  %v15846_v17 = vpop.permute.xlu0 %5756  ;;  %v5952_v31 = vrot.slane %v20289_v43, 1  ;;  %v1542_v33 = vsel %vm1498_vm7, %v1477_v0, %v20295_v7  ;;  %v15903_v7 = vpop.f32.mrf.mxu1 }
 0x4d8   : >> { %20286 = vst [vmem:[#allocation127_spill] sm:$0xff] %v15846_v17  ;;  %v20290_v17 = vshll.u32 %v20288_v15, 16  ;;  %v15882_v15 = vrot.slane %v7172_v47, 1 }
 0x4d9   : >> { %v15916_v34 = vpop.f32.mrf.mxu3 }
 0x4da   : >> { %v5953_v50 = vrot.slane %v20290_v17, 2  ;;  %v19285_v17 = vshrl.u32 %v15836_v57, 16  ;;  %v7175_v11 = vsel %vm508_vm0, %v7170_v59, %v15882_v15  ;;  %20302 = vst [vmem:[#allocation83_spill] sm:$0xff] %v15916_v34 }
 0x4db   : >> { %v4950_v43 = vpop.f32.mrf.mxu2  ;;  %5868 = vrot.lane.b32.xlu2 %v5799_v39, %s11037_s24 }
 0x4dc   : >> { %7914 = vrot.lane.b32.xlu1 %v7845_v25, %s11039_s30  ;;  %v15879_v4 = vadd.f32 %v4950_v43, %v3335_v13  ;;  %v15891_v25 = vor.u32 %v5953_v50, %v5952_v31  ;;  %v20297_v13 = vld [vmem:[#allocation132_spill] sm:$0xff]  ;;  %v7632_v50 = vrot.slane %v19285_v17, 1  ;;  %v7633_v31 = vrot.slane %v7172_v47, 2  ;;  %v20303_v47 = vld [vmem:[#allocation141_spill] sm:$0xff]  ;;  %v15933_v17 = vpop.f32.mrf.mxu0 }
 0x4dd   : >> { %7778 = vrot.lane.b32.xlu0 %v7631_v48, %s11038_s27  ;;  %v15889_v39 = vpop.permute.xlu2 %6226  ;;  %v1607_v9 = vsel %vm1563_vm9, %v1542_v33, %v20297_v13  ;;  %v20298_v48 = vld [vmem:[#allocation198_spill] sm:$0xff]  ;;  %v20301_v33 = vrot.slane %v15746_v37, 2  ;;  %v19287_v37 = vrot.slane %v15836_v57, 2 }
 0x4de   : >> { %v4755_v54 = vsel %vm1498_vm7, %v4691_v5, %v20298_v48  ;;  %v15897_v14 = vpop.permute.xlu1 %5764  ;;  %v5955_v5 = vsel %vm998_vm2, %v15743_v55, %v15891_v25  ;;  %v10173_v13 = vld [vmem:[%s11183_s14 + $0xd4] sm:$0x3]  ;;  %v15927_v59 = vor.u32 %v7633_v31, %v7632_v50 }
 0x4df   : >> { %20299 = vst [vmem:[#allocation64_spill] sm:$0xff] %v15897_v14  ;;  %v15899_v43 = vpop.permute.xlu0 %5762  ;;  %v4819_v0 = vsel %vm1563_vm9, %v4755_v54, %v15292_v22  ;;  %v6167_v22 = vsel %vm1231_vm3, %v20301_v33, %v19286_v24  ;;  %v7097_v55 = vunpack.c.l.b16 %v10173_v13  ;;  %v10814_v24 = vld [vmem:[%s11183_s14 + $0x6c] sm:$0xff]  ;;  %v20305_v13 = vrot.slane %v15750_v45, 2  ;;  %v15957_v34 = vpop.f32.mrf.mxu1  ;;  %v10816_v14 = vld [vmem:[%s11183_s14 + $0xa0] sm:$0xff] }
 0x4e0   : >> { %20300 = vst [vmem:[#allocation154_spill] sm:$0xff] %v15899_v43  ;;  %9663 = vmatmul.msk.bf16.gmra.mxu1 %vm3010_vm8, %v1607_v9  ;;  %9891 = vmatmul.msk.bf16.gmra.mxu2 %vm3010_vm8, %v4819_v0  ;;  %v3338_v9 = vadd.f32 %v20303_v47, %v15760_v42  ;;  %v20304_v0 = vld [vmem:[#allocation232_spill] sm:$0xff]  ;;  %v6289_v42 = vsel %vm1368_vm5, %v10814_v24, %v15586_v63 }
 0x4e1   : >> { %v5956_v33 = vshrl.u32 %v20304_v0, 16  ;;  %v6353_v50 = vsel %vm1433_vm6, %v6289_v42, %v15752_v52  ;;  %v7635_v63 = vsel %vm998_vm2, %v15842_v16, %v15927_v59  ;;  %v20306_v52 = vshll.u32 %v20304_v0, 16  ;;  %20307 = vst [vmem:[#allocation126_spill] sm:$0xff] %v15957_v34  ;;  %v20310_v16 = vld [vmem:[#allocation35_spill] sm:$0xff]  ;;  %v20313_v43 = vld [vmem:[#allocation148_spill] sm:$0xff]  ;;  %v15975_v34 = vpop.f32.mrf.mxu3 }
 0x4e2   : >> { %20314 = vst [vmem:[#allocation20_spill] sm:$0xff] %v15975_v34 }
 0x4e3   : >> { %v4953_v48 = vpop.f32.mrf.mxu2  ;;  %7412 = vrot.lane.b32.xlu2 %v7175_v11, %s11036_s23  ;;  %v5959_v42 = vrot.slane %v20306_v52, 2  ;;  %v20312_v52 = vld [vmem:[#allocation70_spill] sm:$0xff] }
 0x4e4   : >> { %6236 = vrot.lane.b32.xlu1 %v6167_v22, %s11039_s30  ;;  %v15929_v54 = vadd.f32 %v4953_v48, %v3338_v9  ;;  %v7847_v9 = vsel %vm1231_vm3, %v20305_v13, %v19287_v37  ;;  %v5958_v48 = vrot.slane %v5956_v33, 1  ;;  %v15955_v22 = vpack.c.b16 %v7097_v55, %v7097_v55  ;;  %v10815_v37 = vld [vmem:[%s11183_s14 + $0xc4] sm:$0xff]  ;;  %v20311_v33 = vld [vmem:[#allocation205_spill] sm:$0xff] }
 0x4e5   : >> { %6100 = vrot.lane.b32.xlu0 %v5955_v5, %s11038_s27  ;;  %v15938_v11 = vpop.permute.xlu2 %7770 }
 0x4e6   : >> { %v6225_v31 = vpop.permute.xlu1 %6224 }
 0x4e7   : >> { %v6089_v5 = vpop.permute.xlu0 %6088 }
 0x4e8   : >> { %v6417_v47 = vsel %vm1498_vm7, %v6353_v50, %v6089_v5  ;;  %v20308_v50 = vrot.slane %v15836_v57, 1  ;;  %v20309_v5 = vrot.slane %v15750_v45, 1  ;;  %v7969_v45 = vsel %vm1368_vm5, %v15261_v58, %v15792_v8  ;;  %v20316_v58 = vld [vmem:[#allocation186_spill] sm:$0xff] }
 0x4e9   : >> { %v6481_v24 = vsel %vm1563_vm9, %v6417_v47, %v6225_v31  ;;  %v1414_v31 = vsel %vm1368_vm5, %v10815_v37, %v20310_v16  ;;  %v3340_v47 = vadd.f32 %v20311_v33, %v15816_v41  ;;  %v6168_v41 = vrot.slane %v20304_v0, 2  ;;  %v20315_v16 = vld [vmem:[#allocation89_spill] sm:$0xff]  ;;  %v20317_v33 = vld [vmem:[#allocation131_spill] sm:$0xff] }
 0x4ea   : >> { %10122 = vmatmul.msk.bf16.vlgmr.msrb.gmra.mxu3 %vm3010_vm8, %v6481_v24  ;;  %v7479_v13 = vsel %vm861_vm1, %v20309_v5, %v20308_v50  ;;  %v1479_v55 = vsel %vm1433_vm6, %v1414_v31, %v20312_v52  ;;  %v4629_v24 = vsel %vm1368_vm5, %v10816_v14, %v20313_v43  ;;  %v5960_v5 = vor.u32 %v5959_v42, %v5958_v48  ;;  %v20318_v52 = vld [vmem:[#allocation242_spill] sm:$0xff] }
 0x4eb   : >> { %v4955_v50 = vpop.f32.mrf.mxu2  ;;  %7916 = vrot.lane.b32.xlu2 %v7847_v9, %s11039_s30  ;;  %v7180_v14 = vshll.u32 %v15955_v22, 16  ;;  %v7636_v43 = vshrl.u32 %v15955_v22, 16  ;;  %v1544_v31 = vsel %vm1498_vm7, %v1479_v55, %v20315_v16  ;;  %v4693_v8 = vsel %vm1433_vm6, %v4629_v24, %v20316_v58 }
 0x4ec   : >> { %7780 = vrot.lane.b32.xlu1 %v7635_v63, %s11038_s27  ;;  %v15983_v37 = vadd.f32 %v4955_v50, %v3340_v47  ;;  %v5800_v63 = vrot.slane %v20304_v0, 1  ;;  %v1609_v47 = vsel %vm1563_vm9, %v1544_v31, %v20317_v33  ;;  %v4757_v48 = vsel %vm1498_vm7, %v4693_v8, %v20318_v52  ;;  %v15999_v50 = vpop.f32.mrf.mxu0  ;;  %v20321_v52 = vld [vmem:[#allocation170_spill] sm:$0xff] }
 0x4ed   : >> { %7548 = vrot.lane.b32.xlu0 %v7479_v13, %s11037_s24  ;;  %v15992_v9 = vpop.permute.xlu2 %6092  ;;  %v4821_v55 = vsel %vm1563_vm9, %v4757_v48, %v15126_v27  ;;  %v20319_v24 = vrot.slane %v15831_v1, 2  ;;  %v5961_v58 = vsel %vm998_vm2, %v15891_v25, %v5960_v5  ;;  %v7638_v8 = vrot.slane %v7636_v43, 1  ;;  %v16020_v48 = vpop.f32.mrf.mxu1 }
 0x4ee   : >> { %v7769_v42 = vpop.permute.xlu1 %7768  ;;  %v7639_v33 = vrot.slane %v7180_v14, 2  ;;  %v7480_v25 = vrot.slane %v15955_v22, 1  ;;  %v16028_v5 = vpop.f32.mrf.mxu3  ;;  %v20323_v43 = vshrl.u32 %v15836_v57, 16 }
 0x4ef   : >> { %v7537_v13 = vpop.permute.xlu0 %7536  ;;  %v6169_v0 = vsel %vm1231_vm3, %v20319_v24, %v6168_v41  ;;  %v3343_v41 = vadd.f32 %v20321_v52, %v15874_v3  ;;  %20322 = vst [vmem:[#allocation62_spill] sm:$0xff] %v16028_v5 }
 0x4f0   : >> { %v8033_v16 = vsel %vm1433_vm6, %v7969_v45, %v7537_v13  ;;  %9664 = vmatmul.msk.bf16.gmra.mxu1 %vm3010_vm8, %v1609_v47  ;;  %9892 = vmatmul.msk.bf16.gmra.mxu2 %vm3010_vm8, %v4821_v55  ;;  %v20320_v45 = vrot.slane %v15831_v1, 1  ;;  %v7640_v1 = vor.u32 %v7639_v33, %v7638_v8  ;;  %v7182_v13 = vrot.slane %v7180_v14, 1  ;;  %v10817_v55 = vld [vmem:[%s11183_s14 + $0x74] sm:$0xff] }
 0x4f1   : >> { %v8097_v31 = vsel %vm1498_vm7, %v8033_v16, %v7769_v42  ;;  %v6291_v16 = vsel %vm1368_vm5, %v10817_v55, %v15584_v61  ;;  %v20325_v33 = vld [vmem:[#allocation78_spill] sm:$0xff] }
 0x4f2   : >> { %v8161_v27 = vsel %vm1563_vm9, %v8097_v31, %v15840_v12  ;;  %v5801_v47 = vsel %vm861_vm1, %v20320_v45, %v5800_v63  ;;  %v7178_v63 = vor.u32 %v20323_v43, %v15882_v15  ;;  %v20327_v15 = vshll.u32 %v20325_v33, 16 }
 0x4f3   : >> { %10362 = vmatmul.msk.bf16.vlgmr.msrb.gmra.mxu0 %vm3010_vm8, %v8161_v27  ;;  %v4958_v42 = vpop.f32.mrf.mxu2  ;;  %6238 = vrot.lane.b32.xlu2 %v6169_v0, %s11039_s30  ;;  %v20326_v27 = vshrl.u32 %v20325_v33, 16  ;;  %v7641_v61 = vsel %vm998_vm2, %v15927_v59, %v7640_v1  ;;  %v10818_v33 = vld [vmem:[%s11183_s14 + $0xcc] sm:$0xff]  ;;  %v20332_v59 = vld [vmem:[#allocation158_spill] sm:$0xff] }
 0x4f4   : >> { %6102 = vrot.lane.b32.xlu1 %v5961_v58, %s11038_s27  ;;  %v16025_v12 = vadd.f32 %v4958_v42, %v3343_v41  ;;  %v20324_v58 = vrot.slane %v15836_v57, 1  ;;  %v5963_v14 = vrot.slane %v20327_v15, 2  ;;  %v20328_v41 = vld [vmem:[#allocation188_spill] sm:$0xff]  ;;  %v3345_v1 = vadd.f32 %v20332_v59, %v15933_v17 }
 0x4f5   : >> { %5870 = vrot.lane.b32.xlu0 %v5801_v47, %s11037_s24  ;;  %v16030_v3 = vpop.permute.xlu2 %7540  ;;  %v5962_v45 = vrot.slane %v20326_v27, 1  ;;  %v16047_v47 = vld [vmem:[%s11183_s14 + $0xd8] sm:$0xff]  ;;  %v20329_v42 = vshrl.u32 %v20328_v41, 16  ;;  %v20330_v55 = vshll.u32 %v20328_v41, 16  ;;  %v10819_v41 = vld [vmem:[%s11183_s14 + $0xa8] sm:$0xff] }
 0x4f6   : >> { %v6091_v24 = vpop.permute.xlu1 %6090  ;;  %v7481_v8 = vsel %vm861_vm1, %v20324_v58, %v7480_v25  ;;  %v7183_v58 = vsel %vm508_vm0, %v7178_v63, %v7182_v13  ;;  %v20331_v27 = vld [vmem:[#allocation26_spill] sm:$0xff]  ;;  %v16104_v5 = vpop.f32.mrf.mxu3 }
 0x4f7   : >> { %v5859_v0 = vpop.permute.xlu0 %5858  ;;  %v5965_v43 = vrot.slane %v20329_v42, 1  ;;  %v5966_v25 = vrot.slane %v20330_v55, 2  ;;  %v20334_v42 = vld [vmem:[#allocation142_spill] sm:$0xff]  ;;  %v5964_v13 = vor.u32 %v5963_v14, %v5962_v45  ;;  %v20337_v14 = vld [vmem:[#allocation135_spill] sm:$0xff]  ;;  %20341 = vst [vmem:[#allocation34_spill] sm:$0xff] %v16104_v5 }
 0x4f8   : >> { %v6355_v31 = vsel %vm1433_vm6, %v6291_v16, %v5859_v0  ;;  %v16056_v16 = vpop.f32.mrf.mxu0 }
 0x4f9   : >> { %v6419_v52 = vsel %vm1498_vm7, %v6355_v31, %v6091_v24  ;;  %v1416_v24 = vsel %vm1368_vm5, %v10818_v33, %v20331_v27  ;;  %v20333_v31 = vld [vmem:[#allocation68_spill] sm:$0xff]  ;;  %v16078_v17 = vor.u32 %v5966_v25, %v5965_v43  ;;  %v16085_v27 = vld [vmem:[%s11183_s14 + $0xbc] sm:$0xff]  ;;  %v7848_v25 = vrot.slane %v15955_v22, 2 }
 0x4fa   : >> { %v6483_v0 = vsel %vm1563_vm9, %v6419_v52, %v15889_v39  ;;  %v1481_v15 = vsel %vm1433_vm6, %v1416_v24, %v20333_v31  ;;  %v4631_v39 = vsel %vm1368_vm5, %v10819_v41, %v20334_v42  ;;  %v7187_v52 = vshll.u32 %v16047_v47, 16  ;;  %v20340_v41 = vld [vmem:[#allocation216_spill] sm:$0xff] }
 0x4fb   : >> { %10123 = vmatmul.msk.bf16.gmra.mxu3 %vm3010_vm8, %v6483_v0  ;;  %v4960_v63 = vpop.f32.mrf.mxu2  ;;  %7782 = vrot.lane.b32.xlu2 %v7641_v61, %s11038_s27  ;;  %v16081_v0 = vld [vmem:[%s11183_s14 + $0xb4] sm:$0xff]  ;;  %v16089_v61 = vld [vmem:[%s11183_s14 + $0xe0] sm:$0xff]  ;;  %v4695_v59 = vsel %vm1433_vm6, %v4631_v39, %v20337_v14  ;;  %v7185_v39 = vshrl.u32 %v16047_v47, 16 }
 0x4fc   : >> { %7550 = vrot.lane.b32.xlu1 %v7481_v8, %s11037_s24  ;;  %v16075_v55 = vadd.f32 %v4960_v63, %v3345_v1  ;;  %v5802_v33 = vrot.slane %v16081_v0, 1  ;;  %v20336_v8 = vld [vmem:[#allocation103_spill] sm:$0xff]  ;;  %v20339_v1 = vld [vmem:[#allocation122_spill] sm:$0xff]  ;;  %v4759_v42 = vsel %vm1498_vm7, %v4695_v59, %v20340_v41  ;;  %v20342_v59 = vrot.slane %v16085_v27, 1 }
 0x4fd   : >> { %7414 = vrot.lane.b32.xlu0 %v7183_v58, %s11036_s23  ;;  %v1546_v45 = vsel %vm1498_vm7, %v1481_v15, %v20336_v8  ;;  %v16095_v58 = vpop.f32.mrf.mxu1  ;;  %v16097_v43 = vpop.permute.xlu2 %5862  ;;  %v4823_v15 = vsel %vm1563_vm9, %v4759_v42, %v15334_v62  ;;  %v7189_v8 = vrot.slane %v7187_v52, 1  ;;  %v10822_v14 = vld [vmem:[%s11183_s14 + $0x98] sm:$0xff]  ;;  %v7192_v41 = vshll.u32 %v16089_v61, 16  ;;  %v20344_v42 = vld [vmem:[#allocation49_spill] sm:$0xff] }
 0x4fe   : >> { %20335 = vst [vmem:[#allocation97_spill] sm:$0xff] %v16075_v55  ;;  %v1611_v31 = vsel %vm1563_vm9, %v1546_v45, %v20339_v1  ;;  %v7539_v63 = vpop.permute.xlu1 %7538  ;;  %v5968_v45 = vsel %vm998_vm2, %v5964_v13, %v16078_v17  ;;  %v5804_v1 = vsel %vm861_vm1, %v5802_v33, %v20342_v59  ;;  %v20343_v62 = vrot.slane %v15836_v57, 2 }
 0x4ff   : >> { %20338 = vst [vmem:[#allocation116_spill] sm:$0xff] %v16095_v58  ;;  %v7403_v24 = vpop.permute.xlu0 %7402  ;;  %v3348_v5 = vadd.f32 %v20344_v42, %v15999_v50  ;;  %v7482_v13 = vrot.slane %v16047_v47, 1  ;;  %v19288_v33 = vrot.slane %v16089_v61, 1  ;;  %v6170_v50 = vrot.slane %v16081_v0, 2  ;;  %v10824_v58 = vld [vmem:[%s11183_s14 + $0x7c] sm:$0xff] }
 0x500   : >> { %9665 = vmatmul.msk.bf16.gmra.mxu1 %vm3010_vm8, %v1611_v31  ;;  %v7971_v22 = vsel %vm1368_vm5, %v10822_v14, %v7403_v24  ;;  %9893 = vmatmul.msk.bf16.gmra.mxu2 %vm3010_vm8, %v4823_v15  ;;  %v7849_v31 = vsel %vm1231_vm3, %v20343_v62, %v7848_v25  ;;  %v16124_v34 = vpop.f32.mrf.mxu0  ;;  %v7190_v14 = vor.u32 %v7189_v8, %v7185_v39  ;;  %v16134_v25 = vrot.slane %v7192_v41, 1 }
 0x501   : >> { %v8035_v24 = vsel %vm1433_vm6, %v7971_v22, %v7539_v63  ;;  %v19289_v63 = vrot.slane %v16085_v27, 2 }
 0x502   : >> { %v7195_v42 = vsel %vm508_vm0, %v7190_v14, %v16134_v25  ;;  %v20350_v14 = vld [vmem:[#allocation47_spill] sm:$0xff] }
 0x503   : >> { %v4963_v15 = vpop.f32.mrf.mxu2  ;;  %6104 = vrot.lane.b32.xlu2 %v5968_v45, %s11038_s27  ;;  %v16155_v45 = vpop.f32.mrf.mxu3 }
 0x504   : >> { %5872 = vrot.lane.b32.xlu1 %v5804_v1, %s11037_s24  ;;  %v16131_v57 = vadd.f32 %v4963_v15, %v3348_v5  ;;  %v8099_v5 = vsel %vm1498_vm7, %v8035_v24, %v15938_v11  ;;  %v6172_v15 = vsel %vm1231_vm3, %v6170_v50, %v19289_v63  ;;  %20347 = vst [vmem:[#allocation130_spill] sm:$0xff] %v16155_v45  ;;  %v7642_v11 = vrot.slane %v7185_v39, 1  ;;  %v20351_v63 = vld [vmem:[#allocation60_spill] sm:$0xff]  ;;  %v20352_v45 = vld [vmem:[#allocation187_spill] sm:$0xff] }
 0x505   : >> { %7918 = vrot.lane.b32.xlu0 %v7849_v31, %s11039_s30  ;;  %v16138_v22 = vpop.permute.xlu2 %7406  ;;  %v16143_v8 = vpop.f32.mrf.mxu1  ;;  %v7484_v31 = vsel %vm861_vm1, %v7482_v13, %v19288_v33  ;;  %v7643_v24 = vrot.slane %v7187_v52, 2  ;;  %v3350_v33 = vadd.f32 %v20350_v14, %v16056_v16  ;;  %v6293_v50 = vsel %vm1368_vm5, %v10824_v58, %v15476_v28  ;;  %v10825_v52 = vld [vmem:[%s11183_s14 + $0xb4] sm:$0xff]  ;;  %v16182_v28 = vld [vmem:[%s11183_s14 + $0xc4] sm:$0xff] }
 0x506   : >> { %20345 = vst [vmem:[#allocation54_spill] sm:$0xff] %v16131_v57  ;;  %v5861_v59 = vpop.permute.xlu1 %5860  ;;  %v20349_v57 = vld [vmem:[#allocation40_spill] sm:$0xff] }
 0x507   : >> { %v7907_v1 = vpop.permute.xlu0 %7906  ;;  %20346 = vst [vmem:[#allocation96_spill] sm:$0xff] %v16143_v8  ;;  %v10823_v8 = vld [vmem:[%s11183_s14 + $0xd8] sm:$0xff] }
 0x508   : >> { %v8163_v62 = vsel %vm1563_vm9, %v8099_v5, %v7907_v1  ;;  %v20348_v1 = vshrl.u32 %v16089_v61, 16  ;;  %v1418_v13 = vsel %vm1368_vm5, %v10823_v8, %v20349_v57  ;;  %v16176_v57 = vld [vmem:[%s11183_s14 + $0xe8] sm:$0xff] }
 0x509   : >> { %10363 = vmatmul.msk.bf16.gmra.mxu0 %vm3010_vm8, %v8163_v62  ;;  %v7646_v62 = vrot.slane %v7192_v41, 2  ;;  %v1483_v39 = vsel %vm1433_vm6, %v1418_v13, %v20351_v63  ;;  %v6357_v41 = vsel %vm1433_vm6, %v6293_v50, %v5861_v59  ;;  %v7850_v63 = vrot.slane %v16047_v47, 2  ;;  %v20353_v59 = vld [vmem:[#allocation102_spill] sm:$0xff]  ;;  %v20354_v13 = vld [vmem:[#allocation236_spill] sm:$0xff] }
 0x50a   : >> { %v7645_v5 = vrot.slane %v20348_v1, 1  ;;  %v4633_v1 = vsel %vm1368_vm5, %v10825_v52, %v20352_v45  ;;  %v1548_v8 = vsel %vm1498_vm7, %v1483_v39, %v20353_v59  ;;  %v20356_v52 = vld [vmem:[#allocation240_spill] sm:$0xff]  ;;  %v6421_v39 = vsel %vm1498_vm7, %v6357_v41, %v15992_v9 }
 0x50b   : >> { %v4965_v55 = vpop.f32.mrf.mxu2  ;;  %7552 = vrot.lane.b32.xlu2 %v7484_v31, %s11037_s24  ;;  %v3113_v31 = vpop.f32.mrf.mxu0  ;;  %v20359_v9 = vrot.slane %v16089_v61, 2 }
 0x50c   : >> { %7416 = vrot.lane.b32.xlu1 %v7195_v42, %s11036_s23  ;;  %v16178_v16 = vadd.f32 %v4965_v55, %v3350_v33  ;;  %v4697_v42 = vsel %vm1433_vm6, %v4633_v1, %v20354_v13  ;;  %v7644_v55 = vor.u32 %v7643_v24, %v7642_v11  ;;  %v16193_v33 = vor.u32 %v7646_v62, %v7645_v5 }
 0x50d   : >> { %6240 = vrot.lane.b32.xlu0 %v6172_v15, %s11039_s30  ;;  %v16191_v14 = vpop.permute.xlu2 %7910  ;;  %v20355_v15 = vld [vmem:[#allocation134_spill] sm:$0xff]  ;;  %v4761_v47 = vsel %vm1498_vm7, %v4697_v42, %v20356_v52  ;;  %v7200_v24 = vshll.u32 %v16176_v57, 16  ;;  %v20357_v5 = vrot.slane %v16182_v28, 1  ;;  %v20358_v62 = vrot.slane %v16085_v27, 1  ;;  %v16216_v41 = vpop.f32.mrf.mxu1  ;;  %v20360_v42 = vld [vmem:[#allocation165_spill] sm:$0xff] }
 0x50e   : >> { %v1613_v50 = vsel %vm1563_vm9, %v1548_v8, %v20355_v15  ;;  %v7405_v45 = vpop.permute.xlu1 %7404  ;;  %v4825_v1 = vsel %vm1563_vm9, %v4761_v47, %v15332_v29  ;;  %v7852_v29 = vsel %vm1231_vm3, %v7850_v63, %v20359_v9  ;;  %v10827_v8 = vld [vmem:[%s11183_s14 + $0xa0] sm:$0xff]  ;;  %v7648_v13 = vsel %vm998_vm2, %v7644_v55, %v16193_v33 }
 0x50f   : >> { %v6229_v58 = vpop.permute.xlu0 %6228  ;;  %v5806_v59 = vsel %vm861_vm1, %v20358_v62, %v20357_v5  ;;  %v20361_v15 = vshrl.u32 %v20360_v42, 16  ;;  %v20362_v52 = vshll.u32 %v20360_v42, 16  ;;  %v7204_v62 = vshrl.u32 %v16176_v57, 16 }
 0x510   : >> { %9666 = vmatmul.msk.bf16.gmra.mxu1 %vm3010_vm8, %v1613_v50  ;;  %v6485_v11 = vsel %vm1563_vm9, %v6421_v39, %v6229_v58  ;;  %9894 = vmatmul.msk.bf16.gmra.mxu2 %vm3010_vm8, %v4825_v1  ;;  %v7973_v58 = vsel %vm1368_vm5, %v10827_v8, %v7405_v45  ;;  %v3353_v39 = vadd.f32 %v15119_v30, %v16124_v34  ;;  %v16228_v1 = vpop.f32.mrf.mxu3  ;;  %v20364_v45 = vshrl.u32 %v16089_v61, 16 }
 0x511   : >> { %10124 = vmatmul.msk.bf16.gmra.mxu3 %vm3010_vm8, %v6485_v11  ;;  %v5969_v50 = vrot.slane %v20361_v15, 1  ;;  %v5970_v47 = vrot.slane %v20362_v52, 2  ;;  %20363 = vst [vmem:[#allocation33_spill] sm:$0xff] %v16228_v1  ;;  %v16235_v11 = vrot.slane %v7200_v24, 1  ;;  %v8037_v30 = vsel %vm1433_vm6, %v7973_v58, %v16030_v3 }
 0x512   : >> { %v7198_v55 = vor.u32 %v20364_v45, %v16134_v25  ;;  %v6173_v34 = vrot.slane %v16182_v28, 2  ;;  %v20365_v58 = vrot.slane %v16085_v27, 2  ;;  %v7650_v52 = vrot.slane %v7200_v24, 2  ;;  %v20366_v45 = vld [vmem:[#allocation38_spill] sm:$0xff] }
 0x513   : >> { %v4968_v63 = vpop.f32.mrf.mxu2  ;;  %5874 = vrot.lane.b32.xlu2 %v5806_v59, %s11037_s24  ;;  %v16246_v9 = vor.u32 %v5970_v47, %v5969_v50  ;;  %v3116_v8 = vpop.f32.mrf.mxu0  ;;  %v7649_v50 = vrot.slane %v7204_v62, 1  ;;  %v19291_v24 = vrot.slane %v16176_v57, 2 }
 0x514   : >> { %7920 = vrot.lane.b32.xlu1 %v7852_v29, %s11039_s30  ;;  %v16237_v5 = vadd.f32 %v4968_v63, %v3353_v39  ;;  %v6174_v15 = vsel %vm1231_vm3, %v20365_v58, %v6173_v34  ;;  %v3355_v39 = vadd.f32 %v15177_v2, %v3113_v31  ;;  %v10828_v63 = vld [vmem:[%s11183_s14 + $0xe0] sm:$0xff] }
 0x515   : >> { %7784 = vrot.lane.b32.xlu0 %v7648_v13, %s11038_s27  ;;  %v16244_v59 = vpop.permute.xlu2 %6232  ;;  %v7203_v13 = vsel %vm508_vm0, %v7198_v55, %v16235_v11  ;;  %v5972_v47 = vsel %vm998_vm2, %v16078_v17, %v16246_v9  ;;  %v1420_v55 = vsel %vm1368_vm5, %v10828_v63, %v20366_v45  ;;  %v16267_v27 = vpop.f32.mrf.mxu1  ;;  %v10829_v17 = vld [vmem:[%s11183_s14 + $0xbc] sm:$0xff]  ;;  %v20369_v58 = vld [vmem:[#allocation92_spill] sm:$0xff] }
 0x516   : >> { %v7909_v29 = vpop.permute.xlu1 %7908  ;;  %v20370_v63 = vld [vmem:[#allocation204_spill] sm:$0xff] }
 0x517   : >> { %v7773_v25 = vpop.permute.xlu0 %7772 }
 0x518   : >> { %v8101_v42 = vsel %vm1498_vm7, %v8037_v30, %v7773_v25  ;;  %v16286_v45 = vpop.f32.mrf.mxu3 }
 0x519   : >> { %v8165_v3 = vsel %vm1563_vm9, %v8101_v42, %v7909_v29  ;;  %v20367_v29 = vld [vmem:[#allocation73_spill] sm:$0xff]  ;;  %v20368_v42 = vld [vmem:[#allocation207_spill] sm:$0xff]  ;;  %20371 = vst [vmem:[#allocation67_spill] sm:$0xff] %v16286_v45 }
 0x51a   : >> { %10364 = vmatmul.msk.bf16.gmra.mxu0 %vm3010_vm8, %v8165_v3  ;;  %v1485_v25 = vsel %vm1433_vm6, %v1420_v55, %v20367_v29  ;;  %v4635_v2 = vsel %vm1368_vm5, %v10829_v17, %v20368_v42  ;;  %v16280_v3 = vor.u32 %v7650_v52, %v7649_v50  ;;  %v10830_v55 = vld [vmem:[%s11183_s14 + $0x84] sm:$0xff]  ;;  %v20373_v52 = vld [vmem:[#allocation189_spill] sm:$0xff] }
 0x51b   : >> { %v4970_v30 = vpop.f32.mrf.mxu2  ;;  %7418 = vrot.lane.b32.xlu2 %v7203_v13, %s11036_s23  ;;  %v1550_v13 = vsel %vm1498_vm7, %v1485_v25, %v20369_v58  ;;  %v6295_v29 = vsel %vm1368_vm5, %v10830_v55, %v15623_v19  ;;  %v20375_v55 = vld [vmem:[#allocation19_spill] sm:$0xff] }
 0x51c   : >> { %6242 = vrot.lane.b32.xlu1 %v6174_v15, %s11039_s30  ;;  %v16277_v31 = vadd.f32 %v4970_v30, %v3355_v39  ;;  %v4699_v15 = vsel %vm1433_vm6, %v4635_v2, %v20370_v63  ;;  %v19293_v39 = vrot.slane %v16176_v57, 1  ;;  %v6359_v25 = vsel %vm1433_vm6, %v6295_v29, %v16097_v43 }
 0x51d   : >> { %6106 = vrot.lane.b32.xlu0 %v5972_v47, %s11038_s27  ;;  %v16291_v17 = vpop.permute.xlu2 %7776  ;;  %v20372_v47 = vld [vmem:[#allocation133_spill] sm:$0xff]  ;;  %v4763_v30 = vsel %vm1498_vm7, %v4699_v15, %v20373_v52  ;;  %v20374_v63 = vrot.slane %v16089_v61, 2  ;;  %v20376_v29 = vshrl.u32 %v20375_v55, 16 }
 0x51e   : >> { %v1615_v50 = vsel %vm1563_vm9, %v1550_v13, %v20372_v47  ;;  %v6231_v42 = vpop.permute.xlu1 %6230  ;;  %v4827_v58 = vsel %vm1563_vm9, %v4763_v30, %v15184_v21  ;;  %v16310_v15 = vld [vmem:[%s11183_s14 + $0xf0] sm:$0xff]  ;;  %v7652_v21 = vsel %vm998_vm2, %v16193_v33, %v16280_v3  ;;  %v3118_v30 = vpop.f32.mrf.mxu0 }
 0x51f   : >> { %v6095_v2 = vpop.permute.xlu0 %6094  ;;  %v7854_v13 = vsel %vm1231_vm3, %v20374_v63, %v19291_v24  ;;  %v5973_v47 = vrot.slane %v20376_v29, 1  ;;  %v7208_v33 = vshll.u32 %v16310_v15, 16  ;;  %v10831_v63 = vld [vmem:[%s11183_s14 + $0xa8] sm:$0xff] }
 0x520   : >> { %v6423_v19 = vsel %vm1498_vm7, %v6359_v25, %v6095_v2  ;;  %9667 = vmatmul.msk.bf16.gmra.mxu1 %vm3010_vm8, %v1615_v50  ;;  %9895 = vmatmul.msk.bf16.gmra.mxu2 %vm3010_vm8, %v4827_v58  ;;  %v20377_v50 = vshll.u32 %v20375_v55, 16  ;;  %v20378_v25 = vrot.slane %v16089_v61, 1  ;;  %v3358_v2 = vadd.f32 %v15242_v26, %v3116_v8  ;;  %v16339_v61 = vld [vmem:[%s11183_s14 + $0xcc] sm:$0xff] }
 0x521   : >> { %v6487_v43 = vsel %vm1563_vm9, %v6423_v19, %v6231_v42  ;;  %v19290_v19 = vshrl.u32 %v16310_v15, 16  ;;  %v19292_v26 = vrot.slane %v16339_v61, 2  ;;  %v19294_v29 = vrot.slane %v16339_v61, 1  ;;  %v20381_v24 = vld [vmem:[#allocation29_spill] sm:$0xff] }
 0x522   : >> { %v5974_v52 = vrot.slane %v20377_v50, 2  ;;  %10125 = vmatmul.msk.bf16.gmra.mxu3 %vm3010_vm8, %v6487_v43  ;;  %v7486_v42 = vsel %vm861_vm1, %v20378_v25, %v19293_v39  ;;  %v7975_v43 = vsel %vm1368_vm5, %v10831_v63, %v16138_v22  ;;  %v16349_v22 = vpop.f32.mrf.mxu3 }
 0x523   : >> { %v4973_v58 = vpop.f32.mrf.mxu2  ;;  %7922 = vrot.lane.b32.xlu2 %v7854_v13, %s11039_s30  ;;  %v16344_v13 = vpop.f32.mrf.mxu1  ;;  %20379 = vst [vmem:[#allocation143_spill] sm:$0xff] %v16349_v22 }
 0x524   : >> { %7786 = vrot.lane.b32.xlu1 %v7652_v21, %s11038_s27  ;;  %v16335_v55 = vadd.f32 %v4973_v58, %v3358_v2  ;;  %v16342_v8 = vor.u32 %v5974_v52, %v5973_v47  ;;  %v7654_v58 = vrot.slane %v7208_v33, 2  ;;  %v6176_v52 = vsel %vm1231_vm3, %v6173_v34, %v19292_v26 }
 0x525   : >> { %7554 = vrot.lane.b32.xlu0 %v7486_v42, %s11037_s24  ;;  %v16346_v21 = vpop.permute.xlu2 %6098  ;;  %v7653_v42 = vrot.slane %v19290_v19, 1  ;;  %v10833_v19 = vld [vmem:[%s11183_s14 + $0xe8] sm:$0xff] }
 0x526   : >> { %v7775_v50 = vpop.permute.xlu1 %7774  ;;  %v5976_v63 = vsel %vm998_vm2, %v16246_v9, %v16342_v8  ;;  %v1422_v34 = vsel %vm1368_vm5, %v10833_v19, %v20381_v24  ;;  %v3121_v26 = vpop.f32.mrf.mxu0  ;;  %v20382_v9 = vld [vmem:[#allocation71_spill] sm:$0xff] }
 0x527   : >> { %v7543_v25 = vpop.permute.xlu0 %7542  ;;  %v20384_v19 = vld [vmem:[#allocation179_spill] sm:$0xff] }
 0x528   : >> { %v8039_v2 = vsel %vm1433_vm6, %v7975_v43, %v7543_v25  ;;  %v20380_v25 = vrot.slane %v16182_v28, 1  ;;  %v10835_v28 = vld [vmem:[%s11183_s14 + $0x90] sm:$0xff] }
 0x529   : >> { %v8103_v47 = vsel %vm1498_vm7, %v8039_v2, %v7775_v50  ;;  %v3360_v2 = vadd.f32 %v15296_v38, %v3118_v30  ;;  %v1487_v38 = vsel %vm1433_vm6, %v1422_v34, %v20382_v9  ;;  %v10834_v30 = vld [vmem:[%s11183_s14 + $0xc4] sm:$0xff]  ;;  %v7206_v34 = vor.u32 %v7204_v62, %v16235_v11 }
 0x52a   : >> { %v8167_v43 = vsel %vm1563_vm9, %v8103_v47, %v16191_v14  ;;  %v5808_v50 = vsel %vm861_vm1, %v20380_v25, %v19294_v29  ;;  %v16377_v14 = vor.u32 %v7654_v58, %v7653_v42  ;;  %v20383_v47 = vld [vmem:[#allocation197_spill] sm:$0xff]  ;;  %v20385_v25 = vld [vmem:[#allocation106_spill] sm:$0xff]  ;;  %v20386_v58 = vld [vmem:[#allocation160_spill] sm:$0xff]  ;;  %v7210_v9 = vrot.slane %v7208_v33, 1 }
 0x52b   : >> { %10365 = vmatmul.msk.bf16.gmra.mxu0 %vm3010_vm8, %v8167_v43  ;;  %v4975_v39 = vpop.f32.mrf.mxu2  ;;  %6244 = vrot.lane.b32.xlu2 %v6176_v52, %s11039_s30  ;;  %v4637_v43 = vsel %vm1368_vm5, %v10834_v30, %v20383_v47  ;;  %v5977_v52 = vshrl.u32 %v20384_v19, 16  ;;  %v1552_v42 = vsel %vm1498_vm7, %v1487_v38, %v20385_v25  ;;  %v10182_v30 = vld [vmem:[%s11183_s14 + $0xf8] sm:$0x3]  ;;  %v6297_v38 = vsel %vm1368_vm5, %v10835_v28, %v15621_v20  ;;  %v16408_v22 = vpop.f32.mrf.mxu1 }
 0x52c   : >> { %6108 = vrot.lane.b32.xlu1 %v5976_v63, %s11038_s27  ;;  %v16385_v24 = vadd.f32 %v4975_v39, %v3360_v2  ;;  %v4701_v63 = vsel %vm1433_vm6, %v4637_v43, %v20386_v58  ;;  %v20387_v39 = vld [vmem:[#allocation125_spill] sm:$0xff]  ;;  %v7656_v62 = vsel %vm998_vm2, %v16280_v3, %v16377_v14  ;;  %v20389_v33 = vrot.slane %v16310_v15, 1 }
 0x52d   : >> { %5876 = vrot.lane.b32.xlu0 %v5808_v50, %s11037_s24  ;;  %v16393_v29 = vpop.permute.xlu2 %7546  ;;  %v1617_v2 = vsel %vm1563_vm9, %v1552_v42, %v20387_v39  ;;  %v20388_v50 = vld [vmem:[#allocation174_spill] sm:$0xff]  ;;  %v20390_v42 = vrot.slane %v16176_v57, 1 }
 0x52e   : >> { %v4765_v47 = vsel %vm1498_vm7, %v4701_v63, %v20388_v50  ;;  %v6097_v25 = vpop.permute.xlu1 %6096  ;;  %v20391_v63 = vshll.u32 %v20384_v19, 16  ;;  %v7098_v50 = vunpack.c.l.b16 %v10182_v30 }
 0x52f   : >> { %v5865_v43 = vpop.permute.xlu0 %5864  ;;  %v4829_v58 = vsel %vm1563_vm9, %v4765_v47, %v15363_v18  ;;  %v7488_v20 = vsel %vm861_vm1, %v20390_v42, %v20389_v33  ;;  %v5979_v18 = vrot.slane %v5977_v52, 1  ;;  %v7211_v47 = vsel %vm508_vm0, %v7206_v34, %v7210_v9  ;;  %v3123_v34 = vpop.f32.mrf.mxu0 }
 0x530   : >> { %v6361_v11 = vsel %vm1433_vm6, %v6297_v38, %v5865_v43  ;;  %9668 = vmatmul.msk.bf16.gmra.mxu1 %vm3010_vm8, %v1617_v2  ;;  %9896 = vmatmul.msk.bf16.gmra.mxu2 %vm3010_vm8, %v4829_v58  ;;  %v5980_v39 = vrot.slane %v20391_v63, 2  ;;  %v16424_v2 = vpop.f32.mrf.mxu3  ;;  %v3363_v38 = vadd.f32 %v15349_v51, %v3121_v26  ;;  %v19295_v26 = vrot.slane %v16310_v15, 2 }
 0x531   : >> { %v6425_v28 = vsel %vm1498_vm7, %v6361_v11, %v6097_v25  ;;  %20392 = vst [vmem:[#allocation86_spill] sm:$0xff] %v16424_v2  ;;  %v5809_v25 = vrot.slane %v20384_v19, 1  ;;  %v20393_v42 = vrot.slane %v16339_v61, 1  ;;  %v20394_v63 = vrot.slane %v16176_v57, 2 }
 0x532   : >> { %v6489_v3 = vsel %vm1563_vm9, %v6425_v28, %v16244_v59  ;;  %v5981_v30 = vor.u32 %v5980_v39, %v5979_v18  ;;  %v16437_v59 = vpack.c.b16 %v7098_v50, %v7098_v50  ;;  %v10836_v50 = vld [vmem:[%s11183_s14 + $0xf0] sm:$0xff] }
 0x533   : >> { %10126 = vmatmul.msk.bf16.gmra.mxu3 %vm3010_vm8, %v6489_v3  ;;  %v4978_v43 = vpop.f32.mrf.mxu2  ;;  %7788 = vrot.lane.b32.xlu2 %v7656_v62, %s11038_s27  ;;  %v16450_v18 = vpop.f32.mrf.mxu1  ;;  %v7856_v39 = vsel %vm1231_vm3, %v20394_v63, %v19295_v26  ;;  %v20395_v3 = vld [vmem:[#allocation43_spill] sm:$0xff] }
 0x534   : >> { %7556 = vrot.lane.b32.xlu1 %v7488_v20, %s11037_s24  ;;  %v16433_v52 = vadd.f32 %v4978_v43, %v3363_v38  ;;  %v5982_v33 = vsel %vm998_vm2, %v16342_v8, %v5981_v30  ;;  %v5810_v20 = vsel %vm861_vm1, %v20393_v42, %v5809_v25  ;;  %v7216_v28 = vshll.u32 %v16437_v59, 16  ;;  %v10837_v43 = vld [vmem:[%s11183_s14 + $0xcc] sm:$0xff] }
 0x535   : >> { %7420 = vrot.lane.b32.xlu0 %v7211_v47, %s11036_s23  ;;  %v16439_v51 = vpop.permute.xlu2 %5868  ;;  %v3365_v8 = vadd.f32 %v15387_v49, %v3123_v34  ;;  %v20396_v47 = vld [vmem:[#allocation63_spill] sm:$0xff]  ;;  %v20397_v30 = vld [vmem:[#allocation161_spill] sm:$0xff]  ;;  %v7489_v63 = vrot.slane %v16437_v59, 1  ;;  %v20399_v49 = vshrl.u32 %v16310_v15, 16 }
 0x536   : >> { %v7545_v58 = vpop.permute.xlu1 %7544  ;;  %v4639_v25 = vsel %vm1368_vm5, %v10837_v43, %v20397_v30  ;;  %v20402_v43 = vld [vmem:[#allocation137_spill] sm:$0xff]  ;;  %v20403_v30 = vld [vmem:[#allocation176_spill] sm:$0xff] }
 0x537   : >> { %v7409_v11 = vpop.permute.xlu0 %7408  ;;  %v7214_v34 = vor.u32 %v20399_v49, %v7210_v9 }
 0x538   : >> { %v7977_v62 = vsel %vm1368_vm5, %v15640_v6, %v7409_v11  ;;  %v1424_v6 = vsel %vm1368_vm5, %v10836_v50, %v20395_v3  ;;  %v16466_v11 = vpop.f32.mrf.mxu3  ;;  %v7218_v3 = vrot.slane %v7216_v28, 1 }
 0x539   : >> { %v1489_v38 = vsel %vm1433_vm6, %v1424_v6, %v20396_v47  ;;  %20398 = vst [vmem:[#allocation129_spill] sm:$0xff] %v16466_v11  ;;  %v8041_v42 = vsel %vm1433_vm6, %v7977_v62, %v7545_v58  ;;  %v7657_v6 = vshrl.u32 %v16437_v59, 16  ;;  %v20400_v47 = vld [vmem:[#allocation105_spill] sm:$0xff] }
 0x53a   : >> { %v1554_v58 = vsel %vm1498_vm7, %v1489_v38, %v20400_v47  ;;  %v20401_v62 = vld [vmem:[#allocation169_spill] sm:$0xff]  ;;  %v8105_v49 = vsel %vm1498_vm7, %v8041_v42, %v16291_v17  ;;  %v3126_v38 = vpop.f32.mrf.mxu0  ;;  %v7219_v42 = vsel %vm508_vm0, %v7214_v34, %v7218_v3  ;;  %v16521_v34 = vld [vmem:[%s11183_s14 + $0x104] sm:$0xff] }
 0x53b   : >> { %v4980_v57 = vpop.f32.mrf.mxu2  ;;  %6110 = vrot.lane.b32.xlu2 %v5982_v33, %s11038_s27  ;;  %v4703_v33 = vsel %vm1433_vm6, %v4639_v25, %v20401_v62  ;;  %v7659_v62 = vrot.slane %v7657_v6, 1  ;;  %v20412_v11 = vld [vmem:[#allocation229_spill] sm:$0xff] }
 0x53c   : >> { %5878 = vrot.lane.b32.xlu1 %v5810_v20, %s11037_s24  ;;  %v16472_v50 = vadd.f32 %v4980_v57, %v3365_v8  ;;  %v6177_v8 = vrot.slane %v20384_v19, 2  ;;  %v4767_v9 = vsel %vm1498_vm7, %v4703_v33, %v20403_v30  ;;  %v16496_v19 = vld [vmem:[%s11183_s14 + $0xfc] sm:$0xff]  ;;  %v20413_v2 = vshrl.u32 %v20412_v11, 16 }
 0x53d   : >> { %7924 = vrot.lane.b32.xlu0 %v7856_v39, %s11039_s30  ;;  %v16482_v20 = vpop.permute.xlu2 %7412  ;;  %v1619_v39 = vsel %vm1563_vm9, %v1554_v58, %v20402_v43  ;;  %v4831_v25 = vsel %vm1563_vm9, %v4767_v9, %v15361_v60  ;;  %v20404_v58 = vrot.slane %v16310_v15, 1  ;;  %v7660_v60 = vrot.slane %v7216_v28, 2  ;;  %v16511_v9 = vpop.f32.mrf.mxu1 }
 0x53e   : >> { %v5867_v57 = vpop.permute.xlu1 %5866  ;;  %v3368_v43 = vadd.f32 %v15434_v53, %v3126_v38  ;;  %v19296_v53 = vshll.u32 %v16496_v19, 16 }
 0x53f   : >> { %v7913_v26 = vpop.permute.xlu0 %7912  ;;  %v7490_v17 = vsel %vm861_vm1, %v20404_v58, %v7489_v63  ;;  %v20407_v58 = vld [vmem:[#allocation41_spill] sm:$0xff] }
 0x540   : >> { %v8169_v47 = vsel %vm1563_vm9, %v8105_v49, %v7913_v26  ;;  %9669 = vmatmul.msk.bf16.gmra.mxu1 %vm3010_vm8, %v1619_v39  ;;  %9897 = vmatmul.msk.bf16.gmra.mxu2 %vm3010_vm8, %v4831_v25  ;;  %v20405_v26 = vrot.slane %v16339_v61, 2  ;;  %v10838_v39 = vld [vmem:[%s11183_s14 + $0x98] sm:$0xff]  ;;  %v16532_v38 = vpop.f32.mrf.mxu3 }
 0x541   : >> { %10366 = vmatmul.msk.bf16.gmra.mxu0 %vm3010_vm8, %v8169_v47  ;;  %v6299_v30 = vsel %vm1368_vm5, %v10838_v39, %v15508_v35  ;;  %v16517_v61 = vld [vmem:[%s11183_s14 + $0xd8] sm:$0xff]  ;;  %v16528_v35 = vld [vmem:[%s11183_s14 + $0xe0] sm:$0xff]  ;;  %20406 = vst [vmem:[#allocation23_spill] sm:$0xff] %v16532_v38 }
 0x542   : >> { %v6178_v33 = vsel %vm1231_vm3, %v20405_v26, %v6177_v8  ;;  %v6363_v49 = vsel %vm1433_vm6, %v6299_v30, %v5867_v57  ;;  %v5811_v28 = vrot.slane %v16517_v61, 1  ;;  %v19297_v6 = vrot.slane %v16528_v35, 1  ;;  %v10841_v47 = vld [vmem:[%s11183_s14 + $0xfc] sm:$0xff] }
 0x543   : >> { %v4983_v63 = vpop.f32.mrf.mxu2  ;;  %7558 = vrot.lane.b32.xlu2 %v7490_v17, %s11037_s24  ;;  %v7857_v8 = vrot.slane %v16437_v59, 2  ;;  %v7661_v57 = vor.u32 %v7660_v60, %v7659_v62  ;;  %v1426_v17 = vsel %vm1368_vm5, %v10841_v47, %v20407_v58  ;;  %v6427_v26 = vsel %vm1498_vm7, %v6363_v49, %v16346_v21 }
 0x544   : >> { %7422 = vrot.lane.b32.xlu1 %v7219_v42, %s11036_s23  ;;  %v16524_v3 = vadd.f32 %v4983_v63, %v3368_v43  ;;  %v7221_v59 = vshrl.u32 %v16496_v19, 16  ;;  %v7225_v62 = vrot.slane %v19296_v53, 1  ;;  %v7228_v60 = vshll.u32 %v16521_v34, 16  ;;  %v20409_v63 = vld [vmem:[#allocation15_spill] sm:$0xff] }
 0x545   : >> { %6246 = vrot.lane.b32.xlu0 %v6178_v33, %s11039_s30  ;;  %v16534_v25 = vpop.permute.xlu2 %7916  ;;  %v5813_v39 = vsel %vm861_vm1, %v5811_v28, %v19297_v6  ;;  %v20408_v30 = vrot.slane %v16310_v15, 2  ;;  %v7662_v49 = vsel %vm998_vm2, %v16377_v14, %v7661_v57  ;;  %v20410_v47 = vshrl.u32 %v20409_v63, 16  ;;  %v10843_v14 = vld [vmem:[%s11183_s14 + $0xd8] sm:$0xff] }
 0x546   : >> { %v7411_v42 = vpop.permute.xlu1 %7410  ;;  %v5986_v28 = vrot.slane %v20413_v2, 1  ;;  %v20414_v15 = vshll.u32 %v20412_v11, 16  ;;  %v20416_v57 = vld [vmem:[#allocation178_spill] sm:$0xff]  ;;  %v6179_v2 = vrot.slane %v16517_v61, 2  ;;  %v6180_v11 = vrot.slane %v16528_v35, 2 }
 0x547   : >> { %v6235_v33 = vpop.permute.xlu0 %6234  ;;  %v7858_v21 = vsel %vm1231_vm3, %v20408_v30, %v7857_v8  ;;  %v5983_v58 = vrot.slane %v20410_v47, 1  ;;  %v20415_v8 = vld [vmem:[#allocation76_spill] sm:$0xff]  ;;  %v4641_v47 = vsel %vm1368_vm5, %v10843_v14, %v20416_v57 }
 0x548   : >> { %v6491_v43 = vsel %vm1563_vm9, %v6427_v26, %v6235_v33  ;;  %v3128_v26 = vpop.f32.mrf.mxu0  ;;  %v10842_v33 = vld [vmem:[%s11183_s14 + $0xbc] sm:$0xff]  ;;  %v5987_v6 = vrot.slane %v20414_v15, 2  ;;  %v1491_v30 = vsel %vm1433_vm6, %v1426_v17, %v20415_v8  ;;  %v16589_v15 = vpop.f32.mrf.mxu1 }
 0x549   : >> { %10127 = vmatmul.msk.bf16.gmra.mxu3 %vm3010_vm8, %v6491_v43  ;;  %v7979_v53 = vsel %vm1368_vm5, %v10842_v33, %v7411_v42  ;;  %v20411_v43 = vshll.u32 %v20409_v63, 16  ;;  %v3370_v45 = vadd.f32 %v15489_v46, %v3128_v26  ;;  %v7226_v42 = vor.u32 %v7225_v62, %v7221_v59  ;;  %v20417_v33 = vld [vmem:[#allocation234_spill] sm:$0xff]  ;;  %v20419_v26 = vld [vmem:[#allocation159_spill] sm:$0xff] }
 0x54a   : >> { %v16573_v63 = vrot.slane %v7228_v60, 1  ;;  %v4705_v17 = vsel %vm1433_vm6, %v4641_v47, %v20417_v33  ;;  %v8043_v46 = vsel %vm1433_vm6, %v7979_v53, %v16393_v29 }
 0x54b   : >> { %v5984_v38 = vrot.slane %v20411_v43, 2  ;;  %v4985_v1 = vpop.f32.mrf.mxu2  ;;  %5880 = vrot.lane.b32.xlu2 %v5813_v39, %s11037_s24  ;;  %v7232_v39 = vshrl.u32 %v16521_v34, 16  ;;  %v4769_v61 = vsel %vm1498_vm7, %v4705_v17, %v20419_v26  ;;  %v19298_v26 = vrot.slane %v16521_v34, 2 }
 0x54c   : >> { %7926 = vrot.lane.b32.xlu1 %v7858_v21, %s11039_s30  ;;  %v16579_v43 = vadd.f32 %v4985_v1, %v3370_v45  ;;  %v20418_v21 = vld [vmem:[#allocation95_spill] sm:$0xff]  ;;  %v16593_v1 = vor.u32 %v5987_v6, %v5986_v28  ;;  %v20420_v45 = vld [vmem:[#allocation136_spill] sm:$0xff]  ;;  %v4833_v29 = vsel %vm1563_vm9, %v4769_v61, %v15244_v44  ;;  %v7231_v47 = vsel %vm508_vm0, %v7226_v42, %v16573_v63 }
 0x54d   : >> { %7790 = vrot.lane.b32.xlu0 %v7662_v49, %s11038_s27  ;;  %v1556_v62 = vsel %vm1498_vm7, %v1491_v30, %v20418_v21  ;;  %v16591_v8 = vpop.permute.xlu2 %6238  ;;  %v5985_v14 = vor.u32 %v5984_v38, %v5983_v58  ;;  %v6181_v6 = vsel %vm1231_vm3, %v6179_v2, %v6180_v11  ;;  %v7663_v38 = vrot.slane %v7221_v59, 1  ;;  %v16606_v58 = vpop.f32.mrf.mxu3  ;;  %v20423_v59 = vld [vmem:[#allocation173_spill] sm:$0xff] }
 0x54e   : >> { %v1621_v49 = vsel %vm1563_vm9, %v1556_v62, %v20420_v45  ;;  %v7915_v53 = vpop.permute.xlu1 %7914  ;;  %20421 = vst [vmem:[#allocation65_spill] sm:$0xff] %v16606_v58  ;;  %v20422_v28 = vshll.u32 %v16496_v19, 16  ;;  %v7666_v17 = vrot.slane %v7232_v39, 1  ;;  %v3373_v2 = vadd.f32 %v15523_v10, %v20423_v59 }
 0x54f   : >> { %v7779_v57 = vpop.permute.xlu0 %7778  ;;  %v5989_v42 = vsel %vm998_vm2, %v5985_v14, %v16593_v1  ;;  %v7859_v62 = vrot.slane %v16496_v19, 2  ;;  %v10844_v14 = vld [vmem:[%s11183_s14 + $0xa0] sm:$0xff] }
 0x550   : >> { %v8107_v30 = vsel %vm1498_vm7, %v8043_v46, %v7779_v57  ;;  %9670 = vmatmul.msk.bf16.gmra.mxu1 %vm3010_vm8, %v1621_v49  ;;  %9898 = vmatmul.msk.bf16.gmra.mxu2 %vm3010_vm8, %v4833_v29  ;;  %v7664_v33 = vrot.slane %v20422_v28, 2  ;;  %v7667_v46 = vrot.slane %v7228_v60, 2  ;;  %v6301_v10 = vsel %vm1368_vm5, %v10844_v14, %v15667_v36  ;;  %v20424_v28 = vld [vmem:[#allocation231_spill] sm:$0xff]  ;;  %v20429_v14 = vld [vmem:[#allocation221_spill] sm:$0xff] }
 0x551   : >> { %v8171_v44 = vsel %vm1563_vm9, %v8107_v30, %v7915_v53  ;;  %v7491_v29 = vrot.slane %v16496_v19, 1  ;;  %v19299_v53 = vrot.slane %v16521_v34, 1  ;;  %v6365_v57 = vsel %vm1433_vm6, %v6301_v10, %v16439_v51 }
 0x552   : >> { %10367 = vmatmul.msk.bf16.gmra.mxu0 %vm3010_vm8, %v8171_v44  ;;  %v7665_v60 = vor.u32 %v7664_v33, %v7663_v38  ;;  %v16626_v45 = vor.u32 %v7667_v46, %v7666_v17  ;;  %v7861_v36 = vsel %vm1231_vm3, %v7859_v62, %v19298_v26  ;;  %v20425_v33 = vshrl.u32 %v20424_v28, 16  ;;  %v20437_v26 = vld [vmem:[#allocation13_spill] sm:$0xff] }
 0x553   : >> { %v4988_v21 = vpop.f32.mrf.mxu2  ;;  %7424 = vrot.lane.b32.xlu2 %v7231_v47, %s11036_s23  ;;  %v20426_v17 = vshll.u32 %v20424_v28, 16  ;;  %v7493_v59 = vsel %vm861_vm1, %v7491_v29, %v19299_v53  ;;  %v3375_v10 = vadd.f32 %v15575_v40, %v20429_v14  ;;  %v10847_v28 = vld [vmem:[%s11183_s14 + $0xc4] sm:$0xff] }
 0x554   : >> { %6248 = vrot.lane.b32.xlu1 %v6181_v6, %s11039_s30  ;;  %v16623_v61 = vadd.f32 %v4988_v21, %v3373_v2  ;;  %v16637_v6 = vpop.f32.mrf.mxu1  ;;  %v7669_v19 = vsel %vm998_vm2, %v7665_v60, %v16626_v45  ;;  %v5990_v51 = vrot.slane %v20425_v33, 1  ;;  %v10845_v2 = vld [vmem:[%s11183_s14 + $0x104] sm:$0xff]  ;;  %v7981_v29 = vsel %vm1368_vm5, %v10847_v28, %v16482_v20  ;;  %v20433_v20 = vld [vmem:[#allocation109_spill] sm:$0xff] }
 0x555   : >> { %6112 = vrot.lane.b32.xlu0 %v5989_v42, %s11038_s27  ;;  %v16631_v49 = vpop.permute.xlu2 %7782  ;;  %v5991_v46 = vrot.slane %v20426_v17, 2  ;;  %v16651_v42 = vld [vmem:[%s11183_s14 + $0x10c] sm:$0xff]  ;;  %v20427_v21 = vld [vmem:[#allocation32_spill] sm:$0xff]  ;;  %v16660_v60 = vpop.f32.mrf.mxu3 }
 0x556   : >> { %v6237_v30 = vpop.permute.xlu1 %6236  ;;  %v1428_v62 = vsel %vm1368_vm5, %v10845_v2, %v20427_v21  ;;  %20428 = vst [vmem:[#allocation100_spill] sm:$0xff] %v16660_v60  ;;  %v16675_v17 = vld [vmem:[%s11183_s14 + $0xe8] sm:$0xff]  ;;  %v19302_v14 = vshrl.u32 %v16651_v42, 16 }
 0x557   : >> { %v6101_v47 = vpop.permute.xlu0 %6100  ;;  %v19300_v40 = vrot.slane %v16675_v17, 2  ;;  %v16681_v21 = vor.u32 %v5991_v46, %v5990_v51 }
 0x558   : >> { %v6429_v38 = vsel %vm1498_vm7, %v6365_v57, %v6101_v47  ;;  %v20430_v57 = vld [vmem:[#allocation74_spill] sm:$0xff]  ;;  %v10846_v47 = vld [vmem:[%s11183_s14 + $0xe0] sm:$0xff] }
 0x559   : >> { %v6493_v44 = vsel %vm1563_vm9, %v6429_v38, %v6237_v30  ;;  %v1493_v30 = vsel %vm1433_vm6, %v1428_v62, %v20430_v57  ;;  %v20431_v38 = vld [vmem:[#allocation218_spill] sm:$0xff]  ;;  %v7236_v62 = vshll.u32 %v16651_v42, 16 }
 0x55a   : >> { %10128 = vmatmul.msk.bf16.gmra.mxu3 %vm3010_vm8, %v6493_v44  ;;  %v4643_v44 = vsel %vm1368_vm5, %v10846_v47, %v20431_v38  ;;  %v1558_v57 = vsel %vm1498_vm7, %v1493_v30, %v20433_v20  ;;  %v19303_v38 = vrot.slane %v16675_v17, 1 }
 0x55b   : >> { %v4990_v33 = vpop.f32.mrf.mxu2  ;;  %7928 = vrot.lane.b32.xlu2 %v7861_v36, %s11039_s30  ;;  %v20434_v36 = vld [vmem:[#allocation171_spill] sm:$0xff] }
 0x55c   : >> { %7792 = vrot.lane.b32.xlu1 %v7669_v19, %s11038_s27  ;;  %v16678_v2 = vadd.f32 %v4990_v33, %v3375_v10  ;;  %v4707_v19 = vsel %vm1433_vm6, %v4643_v44, %v20434_v36  ;;  %v20435_v10 = vld [vmem:[#allocation128_spill] sm:$0xff]  ;;  %v6183_v44 = vsel %vm1231_vm3, %v6180_v11, %v19300_v40  ;;  %v16712_v36 = vpop.f32.mrf.mxu1  ;;  %v20438_v11 = vrot.slane %v16528_v35, 1 }
 0x55d   : >> { %7560 = vrot.lane.b32.xlu0 %v7493_v59, %s11037_s24  ;;  %v16689_v47 = vpop.permute.xlu2 %6104  ;;  %v1623_v28 = vsel %vm1563_vm9, %v1558_v57, %v20435_v10  ;;  %v20436_v59 = vld [vmem:[#allocation239_spill] sm:$0xff]  ;;  %v5993_v57 = vsel %vm998_vm2, %v16593_v1, %v16681_v21  ;;  %v20439_v10 = vld [vmem:[#allocation220_spill] sm:$0xff]  ;;  %v19301_v35 = vrot.slane %v16651_v42, 1 }
 0x55e   : >> { %20432 = vst [vmem:[#allocation226_spill] sm:$0xff] %v16678_v2  ;;  %v4771_v51 = vsel %vm1498_vm7, %v4707_v19, %v20436_v59  ;;  %v7781_v46 = vpop.permute.xlu1 %7780  ;;  %v16726_v59 = vpop.f32.mrf.mxu3 }
 0x55f   : >> { %v7549_v33 = vpop.permute.xlu0 %7548  ;;  %v4835_v53 = vsel %vm1563_vm9, %v4771_v51, %v20437_v26  ;;  %v7670_v26 = vrot.slane %v19302_v14, 1  ;;  %20440 = vst [vmem:[#allocation119_spill] sm:$0xff] %v16726_v59 }
 0x560   : >> { %v8045_v30 = vsel %vm1433_vm6, %v7981_v29, %v7549_v33  ;;  %9671 = vmatmul.msk.bf16.gmra.mxu1 %vm3010_vm8, %v1623_v28  ;;  %9899 = vmatmul.msk.bf16.gmra.mxu2 %vm3010_vm8, %v4835_v53  ;;  %v7671_v29 = vrot.slane %v7236_v62, 2  ;;  %v5815_v53 = vsel %vm861_vm1, %v20438_v11, %v19303_v38  ;;  %v3378_v28 = vadd.f32 %v15612_v32, %v20439_v10  ;;  %v20456_v38 = vld [vmem:[#allocation8_spill] sm:$0xff] }
 0x561   : >> { %v8109_v20 = vsel %vm1498_vm7, %v8045_v30, %v7781_v46  ;;  %v7234_v32 = vor.u32 %v7232_v39, %v16573_v63  ;;  %v16739_v33 = vrot.slane %v7236_v62, 1  ;;  %v10849_v30 = vld [vmem:[%s11183_s14 + $0xa8] sm:$0xff] }
 0x562   : >> { %v8173_v19 = vsel %vm1563_vm9, %v8109_v20, %v16534_v25  ;;  %v16731_v25 = vor.u32 %v7671_v29, %v7670_v26  ;;  %v20442_v29 = vld [vmem:[#allocation228_spill] sm:$0xff] }
 0x563   : >> { %10368 = vmatmul.msk.bf16.gmra.mxu0 %vm3010_vm8, %v8173_v19  ;;  %v4993_v1 = vpop.f32.mrf.mxu2  ;;  %6250 = vrot.lane.b32.xlu2 %v6183_v44, %s11039_s30  ;;  %v6303_v44 = vsel %vm1368_vm5, %v10849_v30, %v15665_v56  ;;  %v20443_v19 = vshrl.u32 %v20442_v29, 16  ;;  %v20445_v56 = vrot.slane %v16521_v34, 1  ;;  %v20446_v30 = vld [vmem:[#allocation211_spill] sm:$0xff] }
 0x564   : >> { %6114 = vrot.lane.b32.xlu1 %v5993_v57, %s11038_s27  ;;  %v16728_v51 = vadd.f32 %v4993_v1, %v3378_v28  ;;  %v7673_v39 = vsel %vm998_vm2, %v16626_v45, %v16731_v25  ;;  %v7239_v1 = vsel %vm508_vm0, %v7234_v32, %v16739_v33  ;;  %v10850_v45 = vld [vmem:[%s11183_s14 + $0x10c] sm:$0xff]  ;;  %v20449_v32 = vld [vmem:[#allocation66_spill] sm:$0xff] }
 0x565   : >> { %5882 = vrot.lane.b32.xlu0 %v5815_v53, %s11037_s24  ;;  %v16734_v46 = vpop.permute.xlu2 %7552  ;;  %v5994_v11 = vrot.slane %v20443_v19, 1  ;;  %v20444_v53 = vshll.u32 %v20442_v29, 16  ;;  %v7495_v62 = vsel %vm861_vm1, %v20445_v56, %v19301_v35  ;;  %v16768_v29 = vpop.f32.mrf.mxu1  ;;  %v20450_v56 = vld [vmem:[#allocation219_spill] sm:$0xff] }
 0x566   : >> { %20441 = vst [vmem:[#allocation225_spill] sm:$0xff] %v16728_v51  ;;  %v6103_v20 = vpop.permute.xlu1 %6102 }
 0x567   : >> { %v5871_v57 = vpop.permute.xlu0 %5870  ;;  %v5995_v10 = vrot.slane %v20444_v53, 2 }
 0x568   : >> { %v6367_v26 = vsel %vm1433_vm6, %v6303_v44, %v5871_v57  ;;  %v20447_v44 = vld [vmem:[#allocation124_spill] sm:$0xff]  ;;  %v20448_v57 = vld [vmem:[#allocation46_spill] sm:$0xff] }
 0x569   : >> { %v6431_v63 = vsel %vm1498_vm7, %v6367_v26, %v6103_v20  ;;  %v3380_v20 = vadd.f32 %v20447_v44, %v20446_v30  ;;  %v1430_v26 = vsel %vm1368_vm5, %v10850_v45, %v20448_v57  ;;  %v16783_v45 = vld [vmem:[%s11183_s14 + $0xf0] sm:$0xff] }
 0x56a   : >> { %v6495_v28 = vsel %vm1563_vm9, %v6431_v63, %v16591_v8  ;;  %v16772_v8 = vor.u32 %v5995_v10, %v5994_v11  ;;  %v1495_v53 = vsel %vm1433_vm6, %v1430_v26, %v20449_v32  ;;  %v10851_v63 = vld [vmem:[%s11183_s14 + $0xe8] sm:$0xff]  ;;  %v20454_v32 = vld [vmem:[#allocation139_spill] sm:$0xff] }
 0x56b   : >> { %10129 = vmatmul.msk.bf16.gmra.mxu3 %vm3010_vm8, %v6495_v28  ;;  %v4995_v19 = vpop.f32.mrf.mxu2  ;;  %7794 = vrot.lane.b32.xlu2 %v7673_v39, %s11038_s27  ;;  %v4645_v28 = vsel %vm1368_vm5, %v10851_v63, %v20450_v56  ;;  %v19304_v39 = vrot.slane %v16783_v45, 1  ;;  %v20452_v11 = vld [vmem:[#allocation108_spill] sm:$0xff]  ;;  %v20453_v57 = vld [vmem:[#allocation145_spill] sm:$0xff] }
 0x56c   : >> { %7562 = vrot.lane.b32.xlu1 %v7495_v62, %s11037_s24  ;;  %v16779_v30 = vadd.f32 %v4995_v19, %v3380_v20  ;;  %v16787_v62 = vld [vmem:[%s11183_s14 + $0x114] sm:$0xff]  ;;  %v1560_v10 = vsel %vm1498_vm7, %v1495_v53, %v20452_v11  ;;  %v4709_v26 = vsel %vm1433_vm6, %v4645_v28, %v20453_v57  ;;  %v20455_v56 = vld [vmem:[#allocation241_spill] sm:$0xff]  ;;  %v16802_v53 = vperm.slane %v20456_v38, 0 }
 0x56d   : >> { %7426 = vrot.lane.b32.xlu0 %v7239_v1, %s11036_s23  ;;  %v6628_v44 = vpop.f32.mrf.mxu3  ;;  %v16794_v19 = vpop.permute.xlu2 %5874  ;;  %v19305_v1 = vrot.slane %v16651_v42, 2  ;;  %v1625_v63 = vsel %vm1563_vm9, %v1560_v10, %v20454_v32  ;;  %v4773_v40 = vsel %vm1498_vm7, %v4709_v26, %v20455_v56  ;;  %v20457_v28 = vld [vmem:[#allocation117_spill] sm:$0xff]  ;;  %v20458_v38 = vrot.slane %v16675_v17, 1  ;;  %v20460_v56 = vld [vmem:[#allocation140_spill] sm:$0xff] }
 0x56e   : >> { %20451 = vst [vmem:[#allocation192_spill] sm:$0xff] %v16779_v30  ;;  %v6788_v20 = vadd.f32 %v6628_v44, %v15827_v23  ;;  %v7551_v35 = vpop.permute.xlu1 %7550  ;;  %v4837_v11 = vsel %vm1563_vm9, %v4773_v40, %v20457_v28  ;;  %v5997_v44 = vsel %vm998_vm2, %v16681_v21, %v16772_v8  ;;  %v10853_v10 = vld [vmem:[%s11183_s14 + $0xcc] sm:$0xff]  ;;  %v7244_v32 = vshll.u32 %v16787_v62, 16  ;;  %v20477_v30 = vld [vmem:[#allocation39_spill] sm:$0xff] }
 0x56f   : >> { %v7415_v14 = vpop.permute.xlu0 %7414  ;;  %v5817_v40 = vsel %vm861_vm1, %v20458_v38, %v19304_v39  ;;  %v5818_v51 = vrot.slane %v20477_v30, 1 }
 0x570   : >> { %v8308_v23 = vpop.f32.mrf.mxu0  ;;  %9672 = vmatmul.msk.bf16.gmra.mxu1 %vm3010_vm8, %v1625_v63  ;;  %v7983_v57 = vsel %vm1368_vm5, %v10853_v10, %v7415_v14  ;;  %9900 = vmatmul.msk.bf16.gmra.mxu2 %vm3010_vm8, %v4837_v11  ;;  %v20459_v63 = vrot.slane %v16521_v34, 2  ;;  %v20461_v14 = vld [vmem:[#allocation123_spill] sm:$0xff]  ;;  %v10854_v11 = vld [vmem:[%s11183_s14 + $0x114] sm:$0xff] }
 0x571   : >> { %v8468_v26 = vadd.f32 %v8308_v23, %v6788_v20  ;;  %v3383_v20 = vadd.f32 %v20461_v14, %v20460_v56  ;;  %v20462_v23 = vld [vmem:[#allocation44_spill] sm:$0xff]  ;;  %v8047_v38 = vsel %vm1433_vm6, %v7983_v57, %v7551_v35  ;;  %v20464_v35 = vshrl.u32 %v16651_v42, 16  ;;  %v20466_v34 = vld [vmem:[#allocation98_spill] sm:$0xff] }
 0x572   : >> { %v7863_v21 = vsel %vm1231_vm3, %v20459_v63, %v19305_v1  ;;  %v1432_v10 = vsel %vm1368_vm5, %v10854_v11, %v20462_v23  ;;  %v16844_v14 = vrot.slane %v7244_v32, 1  ;;  %v10191_v11 = vld [vmem:[%s11183_s14 + $0x11c] sm:$0x3]  ;;  %v16849_v23 = vpop.f32.mrf.mxu1 }
 0x573   : >> { %v8535_v28 = vadd.f32 %v16802_v53, %v8468_v26  ;;  %v4998_v39 = vpop.f32.mrf.mxu2  ;;  %6116 = vrot.lane.b32.xlu2 %v5997_v44, %s11038_s27  ;;  %v7242_v57 = vor.u32 %v20464_v35, %v16739_v33  ;;  %v20465_v44 = vld [vmem:[#allocation79_spill] sm:$0xff]  ;;  %v8111_v35 = vsel %vm1498_vm7, %v8047_v38, %v16631_v49  ;;  %v20470_v49 = vrot.slane %v16651_v42, 1 }
 0x574   : >> { %5884 = vrot.lane.b32.xlu1 %v5817_v40, %s11037_s24  ;;  %v16838_v26 = vadd.f32 %v4998_v39, %v3383_v20  ;;  %v1497_v40 = vsel %vm1433_vm6, %v1432_v10, %v20465_v44  ;;  %v20467_v44 = vld [vmem:[#allocation138_spill] sm:$0xff] }
 0x575   : >> { %v8599_v63 = vpack.c.bf16 %v8535_v28, %v8535_v28  ;;  %7930 = vrot.lane.b32.xlu0 %v7863_v21, %s11039_s30  ;;  %v6630_v56 = vpop.f32.mrf.mxu3  ;;  %v16852_v39 = vpop.permute.xlu2 %7418  ;;  %v1562_v59 = vsel %vm1498_vm7, %v1497_v40, %v20466_v34  ;;  %v20471_v40 = vld [vmem:[#allocation120_spill] sm:$0xff] }
 0x576   : >> { %20463 = vst [vmem:[#allocation155_spill] sm:$0xff] %v16838_v26  ;;  %v6789_v1 = vadd.f32 %v6630_v56, %v15879_v4  ;;  %v5873_v33 = vpop.permute.xlu1 %5872  ;;  %v1627_v60 = vsel %vm1563_vm9, %v1562_v59, %v20467_v44  ;;  %v10855_v4 = vld [vmem:[%s11183_s14 + $0xf0] sm:$0xff]  ;;  %v20468_v56 = vld [vmem:[#allocation208_spill] sm:$0xff]  ;;  %v7099_v26 = vunpack.c.l.b16 %v10191_v11  ;;  %v7247_v59 = vsel %vm508_vm0, %v7242_v57, %v16844_v14 }
 0x577   : >> { %8667 = vst.msk [vmem:[%s16833_s13] sm:$0xf] %vm8666_vm10, %v8599_v63  ;;  %v7919_v10 = vpop.permute.xlu0 %7918  ;;  %v4647_v58 = vsel %vm1368_vm5, %v10855_v4, %v20468_v56  ;;  %v20469_v63 = vrot.slane %v16787_v62, 1  ;;  %v6305_v44 = vsel %vm1368_vm5, %v16081_v0, %v20471_v40  ;;  %v20473_v11 = vrot.slane %v16675_v17, 2  ;;  %v20475_v4 = vld [vmem:[#allocation200_spill] sm:$0xff]  ;;  %v20476_v56 = vld [vmem:[#allocation94_spill] sm:$0xff] }
 0x578   : >> { %v8175_v21 = vsel %vm1563_vm9, %v8111_v35, %v7919_v10  ;;  %v8310_v20 = vpop.f32.mrf.mxu0  ;;  %v20472_v35 = vrot.slane %v16783_v45, 2  ;;  %v7675_v10 = vrot.slane %v7244_v32, 2  ;;  %v8732_v0 = vsel %vm8731_vm11, %v8535_v28, 0.0 }
 0x579   : >> { %v8469_v34 = vadd.f32 %v8310_v20, %v6789_v1  ;;  %10369 = vmatmul.msk.bf16.gmra.mxu0 %vm3010_vm8, %v8175_v21  ;;  %v7497_v38 = vsel %vm861_vm1, %v20470_v49, %v20469_v63  ;;  %v20474_v21 = vshrl.u32 %v16787_v62, 16  ;;  %v3385_v63 = vadd.f32 %v20476_v56, %v20475_v4  ;;  %v20479_v4 = vld [vmem:[#allocation36_spill] sm:$0xff] }
 0x57a   : >> { %v6185_v1 = vsel %vm1231_vm3, %v20473_v11, %v20472_v35  ;;  %v8866_v49 = vmul.f32 %v8535_v28, %v8535_v28  ;;  %v6369_v40 = vsel %vm1433_vm6, %v6305_v44, %v5873_v33  ;;  %v19306_v17 = vrot.slane %v16787_v62, 2  ;;  %v20478_v28 = vld [vmem:[#allocation151_spill] sm:$0xff] }
 0x57b   : >> { %v7674_v20 = vrot.slane %v20474_v21, 1  ;;  %v8536_v57 = vadd.f32 %v16802_v53, %v8469_v34  ;;  %v5000_v2 = vpop.f32.mrf.mxu2  ;;  %7564 = vrot.lane.b32.xlu2 %v7497_v38, %s11037_s24  ;;  %v16895_v32 = vpack.c.b16 %v7099_v26, %v7099_v26  ;;  %v4711_v33 = vsel %vm1433_vm6, %v4647_v58, %v20478_v28 }
 0x57c   : >> { %7428 = vrot.lane.b32.xlu1 %v7247_v59, %s11036_s23  ;;  %v16898_v21 = vadd.f32 %v5000_v2, %v3385_v63  ;;  %v5998_v26 = vshrl.u32 %v20477_v30, 16  ;;  %v4775_v56 = vsel %vm1498_vm7, %v4711_v33, %v20479_v4  ;;  %v6433_v58 = vsel %vm1498_vm7, %v6369_v40, %v16689_v47 }
 0x57d   : >> { %v8600_v35 = vpack.c.bf16 %v8536_v57, %v8536_v57  ;;  %v8733_v11 = vsel %vm8731_vm11, %v8536_v57, 0.0  ;;  %v8867_v34 = vmul.f32 %v8536_v57, %v8536_v57  ;;  %6252 = vrot.lane.b32.xlu0 %v6185_v1, %s11039_s30  ;;  %v16905_v38 = vpop.permute.xlu2 %7922  ;;  %v16907_v59 = vor.u32 %v7675_v10, %v7674_v20  ;;  %v16920_v10 = vpop.f32.mrf.mxu1 }
 0x57e   : >> { %v16903_v44 = vadd.f32 %v8733_v11, %v8732_v0  ;;  %v8930_v57 = vsel %vm8731_vm11, %v8866_v49, 0.0  ;;  %v7417_v1 = vpop.permute.xlu1 %7416  ;;  %v20480_v0 = vld [vmem:[#allocation42_spill] sm:$0xff]  ;;  %v6633_v28 = vpop.f32.mrf.mxu3  ;;  %v20481_v47 = vrot.slane %v16783_v45, 1  ;;  %v7252_v33 = vshll.u32 %v16895_v32, 16 }
 0x57f   : >> { %8668 = vst.msk [vmem:[%s16833_s13 + $0x4] sm:$0xf] %vm8666_vm10, %v8600_v35  ;;  %v8931_v2 = vsel %vm8731_vm11, %v8867_v34, 0.0  ;;  %v6241_v63 = vpop.permute.xlu0 %6240  ;;  %v4839_v20 = vsel %vm1563_vm9, %v4775_v56, %v20480_v0  ;;  %v20482_v35 = vrot.slane %v16651_v42, 2  ;;  %v6000_v4 = vrot.slane %v5998_v26, 1 }
 0x580   : >> { %v16922_v11 = vadd.f32 %v8931_v2, %v8930_v57  ;;  %v6497_v49 = vsel %vm1563_vm9, %v6433_v58, %v6241_v63  ;;  %9673 = vmatmul.msk.bf16.gmra.mxu1 %vm3010_vm8, %v1627_v60  ;;  %9901 = vmatmul.msk.bf16.gmra.mxu2 %vm3010_vm8, %v4839_v20  ;;  %v5819_v40 = vsel %vm861_vm1, %v20481_v47, %v5818_v51  ;;  %v20483_v56 = vshll.u32 %v20477_v30, 16  ;;  %v20484_v2 = vld [vmem:[#allocation222_spill] sm:$0xff]  ;;  %v20485_v58 = vld [vmem:[#allocation213_spill] sm:$0xff] }
 0x581   : >> { %10130 = vmatmul.msk.bf16.gmra.mxu3 %vm3010_vm8, %v6497_v49  ;;  %v7865_v34 = vsel %vm1231_vm3, %v20482_v35, %v19306_v17  ;;  %v7677_v60 = vsel %vm998_vm2, %v16731_v25, %v16907_v59  ;;  %v3388_v63 = vadd.f32 %v20485_v58, %v20484_v2  ;;  %v10856_v51 = vld [vmem:[%s11183_s14 + $0xd8] sm:$0xff]  ;;  %v20486_v42 = vshrl.u32 %v16787_v62, 16 }
 0x582   : >> { %v6001_v57 = vrot.slane %v20483_v56, 2  ;;  %v7985_v0 = vsel %vm1368_vm5, %v10856_v51, %v7417_v1  ;;  %v7678_v25 = vshrl.u32 %v16895_v32, 16  ;;  %v6790_v26 = vadd.f32 %v6633_v28, %v15929_v54  ;;  %v10857_v17 = vld [vmem:[%s11183_s14 + $0xfc] sm:$0xff] }
 0x583   : >> { %v5003_v20 = vpop.f32.mrf.mxu2  ;;  %5886 = vrot.lane.b32.xlu2 %v5819_v40, %s11037_s24  ;;  %v7250_v49 = vor.u32 %v20486_v42, %v16844_v14  ;;  %v7254_v35 = vrot.slane %v7252_v33, 1  ;;  %v6186_v1 = vrot.slane %v20477_v30, 2  ;;  %v8049_v40 = vsel %vm1433_vm6, %v7985_v0, %v16734_v46  ;;  %v20488_v46 = vld [vmem:[#allocation168_spill] sm:$0xff] }
 0x584   : >> { %7932 = vrot.lane.b32.xlu1 %v7865_v34, %s11039_s30  ;;  %v16953_v47 = vadd.f32 %v5003_v20, %v3388_v63  ;;  %v6002_v34 = vor.u32 %v6001_v57, %v6000_v4  ;;  %v7680_v42 = vrot.slane %v7678_v25, 1  ;;  %v7681_v54 = vrot.slane %v7252_v33, 2  ;;  %v20489_v57 = vld [vmem:[#allocation223_spill] sm:$0xff] }
 0x585   : >> { %7796 = vrot.lane.b32.xlu0 %v7677_v60, %s11038_s27  ;;  %v16959_v58 = vpop.permute.xlu2 %6244  ;;  %v7255_v63 = vsel %vm508_vm0, %v7250_v49, %v7254_v35  ;;  %v20487_v30 = vrot.slane %v16783_v45, 2  ;;  %v4649_v4 = vsel %vm1368_vm5, %v10857_v17, %v20488_v46  ;;  %v3390_v0 = vadd.f32 %v15903_v7, %v20489_v57  ;;  %v20490_v17 = vld [vmem:[#allocation167_spill] sm:$0xff]  ;;  %v20496_v46 = vld [vmem:[#allocation126_spill] sm:$0xff] }
 0x586   : >> { %v8313_v56 = vpop.f32.mrf.mxu0  ;;  %v7921_v14 = vpop.permute.xlu1 %7920  ;;  %v6003_v25 = vsel %vm998_vm2, %v16772_v8, %v6002_v34  ;;  %v7866_v35 = vrot.slane %v16895_v32, 2  ;;  %v7682_v8 = vor.u32 %v7681_v54, %v7680_v42  ;;  %v7498_v34 = vrot.slane %v16895_v32, 1  ;;  %v10858_v54 = vld [vmem:[%s11183_s14 + $0xbc] sm:$0xff]  ;;  %v20494_v32 = vld [vmem:[#allocation149_spill] sm:$0xff] }
 0x587   : >> { %v8470_v2 = vadd.f32 %v8313_v56, %v6790_v26  ;;  %v7785_v51 = vpop.permute.xlu0 %7784  ;;  %v6187_v20 = vsel %vm1231_vm3, %v20487_v30, %v6186_v1  ;;  %v6635_v26 = vpop.f32.mrf.mxu3  ;;  %v4713_v1 = vsel %vm1433_vm6, %v4649_v4, %v20490_v17 }
 0x588   : >> { %v8113_v60 = vsel %vm1498_vm7, %v8049_v40, %v7785_v51  ;;  %v6791_v51 = vadd.f32 %v6635_v26, %v15983_v37 }
 0x589   : >> { %v8537_v28 = vadd.f32 %v16802_v53, %v8470_v2  ;;  %v8177_v33 = vsel %vm1563_vm9, %v8113_v60, %v7921_v14  ;;  %v20491_v2 = vld [vmem:[#allocation16_spill] sm:$0xff]  ;;  %v20493_v60 = vld [vmem:[#allocation25_spill] sm:$0xff] }
 0x58a   : >> { %10370 = vmatmul.msk.bf16.gmra.mxu0 %vm3010_vm8, %v8177_v33  ;;  %v4777_v14 = vsel %vm1498_vm7, %v4713_v1, %v20491_v2  ;;  %v20498_v1 = vrot.slane %v16787_v62, 1  ;;  %v20499_v2 = vld [vmem:[#allocation238_spill] sm:$0xff] }
 0x58b   : >> { %v8601_v56 = vpack.c.bf16 %v8537_v28, %v8537_v28  ;;  %v8735_v49 = vsel %vm8731_vm11, %v8537_v28, 0.0  ;;  %v8868_v45 = vmul.f32 %v8537_v28, %v8537_v28  ;;  %v5005_v40 = vpop.f32.mrf.mxu2  ;;  %7430 = vrot.lane.b32.xlu2 %v7255_v63, %s11036_s23  ;;  %v4841_v42 = vsel %vm1563_vm9, %v4777_v14, %v20493_v60 }
 0x58c   : >> { %v8736_v7 = vadd.f32 %v8735_v49, %v16903_v44  ;;  %6254 = vrot.lane.b32.xlu1 %v6187_v20, %s11039_s30  ;;  %v16990_v44 = vadd.f32 %v5005_v40, %v3390_v0  ;;  %v6307_v63 = vsel %vm1368_vm5, %v10858_v54, %v20494_v32  ;;  %v20495_v20 = vld [vmem:[#allocation224_spill] sm:$0xff]  ;;  %v7499_v40 = vsel %vm861_vm1, %v20498_v1, %v7498_v34  ;;  %v20502_v32 = vld [vmem:[#allocation237_spill] sm:$0xff]  ;;  %v10860_v34 = vld [vmem:[%s11183_s14 + $0xfc] sm:$0xff] }
 0x58d   : >> { %8669 = vst.msk [vmem:[%s16833_s13 + $0x8] sm:$0xf] %vm8666_vm10, %v8601_v56  ;;  %v8933_v28 = vsel %vm8731_vm11, %v8868_v45, 0.0  ;;  %6118 = vrot.lane.b32.xlu0 %v6003_v25, %s11038_s27  ;;  %v3393_v4 = vadd.f32 %v20496_v46, %v20495_v20  ;;  %v6371_v57 = vsel %vm1433_vm6, %v6307_v63, %v16794_v19  ;;  %v17003_v26 = vpop.permute.xlu2 %7788  ;;  %v20497_v25 = vrot.slane %v16787_v62, 2  ;;  %v17009_v49 = vld [vmem:[%s11183_s14 + $0x120] sm:$0xff] }
 0x58e   : >> { %20492 = vst [vmem:[#allocation37_spill] sm:$0xff] %v16990_v44  ;;  %v8934_v37 = vadd.f32 %v8933_v28, %v16922_v11  ;;  %v8315_v30 = vpop.f32.mrf.mxu0  ;;  %v6243_v33 = vpop.permute.xlu1 %6242  ;;  %v10859_v11 = vld [vmem:[%s11183_s14 + $0xe0] sm:$0xff]  ;;  %v7683_v19 = vsel %vm998_vm2, %v16907_v59, %v7682_v8  ;;  %v20500_v14 = vshrl.u32 %v20499_v2, 16  ;;  %v17022_v28 = vld [vmem:[%s11183_s14 + $0x128] sm:$0xff]  ;;  %v20503_v59 = vshrl.u32 %v20502_v32, 16 }
 0x58f   : >> { %v8471_v0 = vadd.f32 %v8315_v30, %v6791_v51  ;;  %v7867_v56 = vsel %vm1231_vm3, %v20497_v25, %v7866_v35  ;;  %v7987_v45 = vsel %vm1368_vm5, %v10859_v11, %v16852_v39  ;;  %v6107_v17 = vpop.permute.xlu0 %6106  ;;  %v20501_v39 = vshll.u32 %v20499_v2, 16  ;;  %v17034_v30 = vld [vmem:[%s11183_s14 + $0x104] sm:$0xff] }
 0x590   : >> { %v6004_v51 = vrot.slane %v20500_v14, 1  ;;  %v6435_v60 = vsel %vm1498_vm7, %v6371_v57, %v6107_v17  ;;  %9902 = vmatmul.msk.bf16.gmra.mxu2 %vm3010_vm8, %v4841_v42  ;;  %v6007_v8 = vrot.slane %v20503_v59, 1  ;;  %v6188_v63 = vrot.slane %v10860_v34, 2  ;;  %v20510_v44 = vld [vmem:[#allocation180_spill] sm:$0xff] }
 0x591   : >> { %v8538_v35 = vadd.f32 %v16802_v53, %v8471_v0  ;;  %v6005_v54 = vrot.slane %v20501_v39, 2  ;;  %v6499_v62 = vsel %vm1563_vm9, %v6435_v60, %v6243_v33  ;;  %v20504_v46 = vshll.u32 %v20502_v32, 16 }
 0x592   : >> { %10131 = vmatmul.msk.bf16.gmra.mxu3 %vm3010_vm8, %v6499_v62  ;;  %v7257_v11 = vshrl.u32 %v17009_v49, 16  ;;  %v7259_v2 = vshll.u32 %v17009_v49, 16  ;;  %v7264_v14 = vshll.u32 %v17022_v28, 16  ;;  %v5821_v62 = vrot.slane %v17034_v30, 1 }
 0x593   : >> { %v6008_v57 = vrot.slane %v20504_v46, 2  ;;  %v8602_v0 = vpack.c.bf16 %v8538_v35, %v8538_v35  ;;  %v8737_v42 = vsel %vm8731_vm11, %v8538_v35, 0.0  ;;  %v8869_v25 = vmul.f32 %v8538_v35, %v8538_v35  ;;  %v5008_v33 = vpop.f32.mrf.mxu2  ;;  %7934 = vrot.lane.b32.xlu2 %v7867_v56, %s11039_s30  ;;  %v10862_v46 = vld [vmem:[%s11183_s14 + $0x104] sm:$0xff] }
 0x594   : >> { %v8738_v17 = vadd.f32 %v8737_v42, %v8736_v7  ;;  %v6638_v1 = vpop.f32.mrf.mxu3  ;;  %7798 = vrot.lane.b32.xlu1 %v7683_v19, %s11038_s27  ;;  %v17050_v39 = vadd.f32 %v5008_v33, %v3393_v4  ;;  %v6006_v32 = vor.u32 %v6005_v54, %v6004_v51  ;;  %v5820_v19 = vrot.slane %v10860_v34, 1  ;;  %v20506_v42 = vld [vmem:[#allocation214_spill] sm:$0xff] }
 0x595   : >> { %8670 = vst.msk [vmem:[%s16833_s13 + $0xc] sm:$0xf] %vm8666_vm10, %v8602_v0  ;;  %v8935_v35 = vsel %vm8731_vm11, %v8869_v25, 0.0  ;;  %v6792_v7 = vadd.f32 %v6638_v1, %v16025_v12  ;;  %7566 = vrot.lane.b32.xlu0 %v7499_v40, %s11037_s24  ;;  %v17054_v59 = vor.u32 %v6008_v57, %v6007_v8  ;;  %v4651_v20 = vsel %vm1368_vm5, %v10862_v46, %v20506_v42  ;;  %v17060_v0 = vpop.permute.xlu2 %6110  ;;  %v20508_v54 = vld [vmem:[#allocation166_spill] sm:$0xff] }
 0x596   : >> { %20505 = vst [vmem:[#allocation146_spill] sm:$0xff] %v17050_v39  ;;  %v8936_v56 = vadd.f32 %v8935_v35, %v8934_v37  ;;  %v7787_v25 = vpop.permute.xlu1 %7786  ;;  %v7684_v60 = vrot.slane %v7257_v11, 1  ;;  %v7685_v12 = vrot.slane %v7259_v2, 2  ;;  %v20507_v40 = vshrl.u32 %v17022_v28, 16 }
 0x597   : >> { %v8318_v4 = vpop.f32.mrf.mxu0  ;;  %v7555_v33 = vpop.permute.xlu0 %7554  ;;  %v7688_v37 = vrot.slane %v7264_v14, 2  ;;  %v4715_v8 = vsel %vm1433_vm6, %v4651_v20, %v20508_v54  ;;  %v20509_v1 = vrot.slane %v17034_v30, 2  ;;  %v6010_v42 = vsel %vm998_vm2, %v6006_v32, %v17054_v59 }
 0x598   : >> { %v7687_v51 = vrot.slane %v20507_v40, 1  ;;  %v8472_v34 = vadd.f32 %v8318_v4, %v6792_v7  ;;  %v8051_v57 = vsel %vm1433_vm6, %v7987_v45, %v7555_v33  ;;  %v5822_v40 = vsel %vm861_vm1, %v5820_v19, %v5821_v62  ;;  %v20511_v7 = vld [vmem:[#allocation230_spill] sm:$0xff] }
 0x599   : >> { %v6190_v35 = vsel %vm1231_vm3, %v6188_v63, %v20509_v1  ;;  %v8115_v46 = vsel %vm1498_vm7, %v8051_v57, %v7787_v25  ;;  %v7261_v39 = vrot.slane %v7259_v2, 1  ;;  %v4779_v20 = vsel %vm1498_vm7, %v4715_v8, %v20510_v44  ;;  %v20512_v57 = vld [vmem:[#allocation97_spill] sm:$0xff] }
 0x59a   : >> { %v3395_v45 = vadd.f32 %v16020_v48, %v20511_v7  ;;  %v8539_v4 = vadd.f32 %v16802_v53, %v8472_v34  ;;  %v8179_v63 = vsel %vm1563_vm9, %v8115_v46, %v16905_v38  ;;  %v7686_v19 = vor.u32 %v7685_v12, %v7684_v60 }
 0x59b   : >> { %10371 = vmatmul.msk.bf16.gmra.mxu0 %vm3010_vm8, %v8179_v63  ;;  %v5010_v25 = vpop.f32.mrf.mxu2  ;;  %6256 = vrot.lane.b32.xlu2 %v6190_v35, %s11039_s30  ;;  %v17085_v2 = vor.u32 %v7688_v37, %v7687_v51  ;;  %v7500_v44 = vrot.slane %v17009_v49, 1  ;;  %v7501_v33 = vrot.slane %v17022_v28, 1  ;;  %v7262_v12 = vor.u32 %v7261_v39, %v7257_v11  ;;  %v20513_v37 = vld [vmem:[#allocation107_spill] sm:$0xff]  ;;  %v20515_v11 = vld [vmem:[#allocation18_spill] sm:$0xff] }
 0x59c   : >> { %v6640_v32 = vpop.f32.mrf.mxu3  ;;  %v8603_v48 = vpack.c.bf16 %v8539_v4, %v8539_v4  ;;  %v8739_v54 = vsel %vm8731_vm11, %v8539_v4, 0.0  ;;  %v8870_v8 = vmul.f32 %v8539_v4, %v8539_v4  ;;  %v17090_v38 = vadd.f32 %v5010_v25, %v3395_v45  ;;  %6120 = vrot.lane.b32.xlu1 %v6010_v42, %s11038_s27  ;;  %v10863_v45 = vld [vmem:[%s11183_s14 + $0xc4] sm:$0xff]  ;;  %v20514_v42 = vld [vmem:[#allocation61_spill] sm:$0xff] }
 0x59d   : >> { %5888 = vrot.lane.b32.xlu0 %v5822_v40, %s11037_s24  ;;  %v8740_v34 = vadd.f32 %v8739_v54, %v8738_v17  ;;  %v6793_v60 = vadd.f32 %v6640_v32, %v20512_v57  ;;  %v17095_v51 = vrot.slane %v7264_v14, 1  ;;  %v4843_v1 = vsel %vm1563_vm9, %v4779_v20, %v20513_v37  ;;  %v17102_v46 = vpop.permute.xlu2 %7558  ;;  %v20518_v37 = vld [vmem:[#allocation152_spill] sm:$0xff] }
 0x59e   : >> { %8671 = vst.msk [vmem:[%s16833_s13 + $0x10] sm:$0xf] %vm8666_vm10, %v8603_v48  ;;  %v8937_v35 = vsel %vm8731_vm11, %v8870_v8, 0.0  ;;  %v6109_v7 = vpop.permute.xlu1 %6108  ;;  %v6309_v40 = vsel %vm1368_vm5, %v10863_v45, %v20514_v42  ;;  %v20516_v14 = vshrl.u32 %v20515_v11, 16  ;;  %v20517_v25 = vshll.u32 %v20515_v11, 16  ;;  %v17135_v42 = vld [vmem:[%s11183_s14 + $0x130] sm:$0xff] }
 0x59f   : >> { %v8938_v17 = vadd.f32 %v8937_v35, %v8936_v56  ;;  %v8320_v4 = vpop.f32.mrf.mxu0  ;;  %v5877_v63 = vpop.permute.xlu0 %5876  ;;  %v7690_v54 = vsel %vm998_vm2, %v7686_v19, %v17085_v2  ;;  %v7502_v8 = vsel %vm861_vm1, %v7500_v44, %v7501_v33  ;;  %v7267_v57 = vsel %vm508_vm0, %v7262_v12, %v17095_v51  ;;  %v20519_v35 = vld [vmem:[#allocation116_spill] sm:$0xff]  ;;  %v17131_v44 = vld [vmem:[%s11183_s14 + $0x10c] sm:$0xff] }
 0x5a0   : >> { %v6011_v39 = vrot.slane %v20516_v14, 1  ;;  %v6012_v20 = vrot.slane %v20517_v25, 2  ;;  %v8473_v32 = vadd.f32 %v8320_v4, %v6793_v60  ;;  %v6373_v48 = vsel %vm1433_vm6, %v6309_v40, %v5877_v63  ;;  %9903 = vmatmul.msk.bf16.gmra.mxu2 %vm3010_vm8, %v4843_v1 }
 0x5a1   : >> { %v6437_v56 = vsel %vm1498_vm7, %v6373_v48, %v6109_v7  ;;  %v3398_v60 = vadd.f32 %v20519_v35, %v20518_v37  ;;  %v5823_v12 = vrot.slane %v17131_v44, 1 }
 0x5a2   : >> { %v8540_v45 = vadd.f32 %v16802_v53, %v8473_v32  ;;  %v6501_v1 = vsel %vm1563_vm9, %v6437_v56, %v16959_v58  ;;  %v17128_v7 = vor.u32 %v6012_v20, %v6011_v39  ;;  %v20520_v39 = vld [vmem:[#allocation54_spill] sm:$0xff]  ;;  %v7868_v20 = vrot.slane %v17009_v49, 2 }
 0x5a3   : >> { %10132 = vmatmul.msk.bf16.gmra.mxu3 %vm3010_vm8, %v6501_v1  ;;  %v5013_v19 = vpop.f32.mrf.mxu2  ;;  %7800 = vrot.lane.b32.xlu2 %v7690_v54, %s11038_s27  ;;  %v19307_v32 = vrot.slane %v17022_v28, 2  ;;  %v10866_v1 = vld [vmem:[%s11183_s14 + $0x10c] sm:$0xff] }
 0x5a4   : >> { %v8604_v40 = vpack.c.bf16 %v8540_v45, %v8540_v45  ;;  %v8741_v4 = vsel %vm8731_vm11, %v8540_v45, 0.0  ;;  %v8871_v63 = vmul.f32 %v8540_v45, %v8540_v45  ;;  %v17138_v11 = vadd.f32 %v5013_v19, %v3398_v60  ;;  %7568 = vrot.lane.b32.xlu1 %v7502_v8, %s11037_s24  ;;  %v20521_v19 = vld [vmem:[#allocation147_spill] sm:$0xff] }
 0x5a5   : >> { %7432 = vrot.lane.b32.xlu0 %v7267_v57, %s11036_s23  ;;  %v6643_v58 = vpop.f32.mrf.mxu3  ;;  %v8742_v14 = vadd.f32 %v8741_v4, %v8740_v34  ;;  %v17148_v54 = vpop.permute.xlu2 %5880  ;;  %v7272_v57 = vshll.u32 %v17135_v42, 16  ;;  %v10865_v34 = vld [vmem:[%s11183_s14 + $0xe8] sm:$0xff]  ;;  %v6014_v49 = vsel %vm998_vm2, %v17054_v59, %v17128_v7  ;;  %v7870_v4 = vsel %vm1231_vm3, %v7868_v20, %v19307_v32 }
 0x5a6   : >> { %v6794_v25 = vadd.f32 %v6643_v58, %v20520_v39  ;;  %8672 = vst.msk [vmem:[%s16833_s13 + $0x14] sm:$0xf] %vm8666_vm10, %v8604_v40  ;;  %v8939_v48 = vsel %vm8731_vm11, %v8871_v63, 0.0  ;;  %v7557_v56 = vpop.permute.xlu1 %7556  ;;  %v4653_v40 = vsel %vm1368_vm5, %v10866_v1, %v20521_v19  ;;  %v20522_v63 = vld [vmem:[#allocation199_spill] sm:$0xff]  ;;  %v20523_v39 = vld [vmem:[#allocation162_spill] sm:$0xff] }
 0x5a7   : >> { %v8940_v37 = vadd.f32 %v8939_v48, %v8938_v17  ;;  %v7421_v8 = vpop.permute.xlu0 %7420  ;;  %v5824_v17 = vsel %vm861_vm1, %v5821_v62, %v5823_v12  ;;  %v4717_v58 = vsel %vm1433_vm6, %v4653_v40, %v20522_v63  ;;  %v19309_v62 = vrot.slane %v17135_v42, 1 }
 0x5a8   : >> { %v8323_v35 = vpop.f32.mrf.mxu0  ;;  %v7989_v60 = vsel %vm1368_vm5, %v10865_v34, %v7421_v8  ;;  %v20525_v34 = vshrl.u32 %v17022_v28, 16  ;;  %v17178_v1 = vrot.slane %v7272_v57, 1 }
 0x5a9   : >> { %v8474_v45 = vadd.f32 %v8323_v35, %v6794_v25  ;;  %v20524_v25 = vld [vmem:[#allocation96_spill] sm:$0xff]  ;;  %v8053_v8 = vsel %vm1433_vm6, %v7989_v60, %v7557_v56 }
 0x5aa   : >> { %v3400_v59 = vadd.f32 %v20524_v25, %v20523_v39  ;;  %v7270_v20 = vor.u32 %v20525_v34, %v17095_v51  ;;  %v7276_v51 = vshrl.u32 %v17135_v42, 16  ;;  %v20526_v25 = vld [vmem:[#allocation201_spill] sm:$0xff] }
 0x5ab   : >> { %v8541_v48 = vadd.f32 %v16802_v53, %v8474_v45  ;;  %v5015_v35 = vpop.f32.mrf.mxu2  ;;  %6122 = vrot.lane.b32.xlu2 %v6014_v49, %s11038_s27  ;;  %v6191_v49 = vrot.slane %v17131_v44, 2  ;;  %v4781_v34 = vsel %vm1498_vm7, %v4717_v58, %v20526_v25  ;;  %v10867_v25 = vld [vmem:[%s11183_s14 + $0xcc] sm:$0xff] }
 0x5ac   : >> { %v17181_v39 = vadd.f32 %v5015_v35, %v3400_v59  ;;  %5890 = vrot.lane.b32.xlu1 %v5824_v17, %s11037_s24 }
 0x5ad   : >> { %v8605_v19 = vpack.c.bf16 %v8541_v48, %v8541_v48  ;;  %v8743_v40 = vsel %vm8731_vm11, %v8541_v48, 0.0  ;;  %v8872_v63 = vmul.f32 %v8541_v48, %v8541_v48  ;;  %7936 = vrot.lane.b32.xlu0 %v7870_v4, %s11039_s30  ;;  %v6645_v56 = vpop.f32.mrf.mxu3  ;;  %v17193_v48 = vpop.permute.xlu2 %7424  ;;  %v20527_v4 = vld [vmem:[#allocation84_spill] sm:$0xff] }
 0x5ae   : >> { %v8744_v60 = vadd.f32 %v8743_v40, %v8742_v14  ;;  %v6795_v45 = vadd.f32 %v6645_v56, %v16178_v16  ;;  %v5879_v17 = vpop.permute.xlu1 %5878  ;;  %v4845_v14 = vsel %vm1563_vm9, %v4781_v34, %v20527_v4  ;;  %v8117_v16 = vsel %vm1498_vm7, %v8053_v8, %v17003_v26  ;;  %v20529_v34 = vld [vmem:[#allocation110_spill] sm:$0xff] }
 0x5af   : >> { %8673 = vst.msk [vmem:[%s16833_s13 + $0x18] sm:$0xf] %vm8666_vm10, %v8605_v19  ;;  %v8941_v59 = vsel %vm8731_vm11, %v8872_v63, 0.0  ;;  %v7925_v40 = vpop.permute.xlu0 %7924  ;;  %v7504_v19 = vsel %vm861_vm1, %v7501_v33, %v19309_v62  ;;  %v20528_v26 = vrot.slane %v17034_v30, 2  ;;  %v7691_v63 = vrot.slane %v7276_v51, 1 }
 0x5b0   : >> { %v8942_v35 = vadd.f32 %v8941_v59, %v8940_v37  ;;  %v8325_v56 = vpop.f32.mrf.mxu0  ;;  %v8181_v32 = vsel %vm1563_vm9, %v8117_v16, %v7925_v40  ;;  %9904 = vmatmul.msk.bf16.gmra.mxu2 %vm3010_vm8, %v4845_v14  ;;  %v7275_v37 = vsel %vm508_vm0, %v7270_v20, %v17178_v1  ;;  %v6311_v33 = vsel %vm1368_vm5, %v10867_v25, %v20529_v34  ;;  %v20530_v59 = vld [vmem:[#allocation194_spill] sm:$0xff] }
 0x5b1   : >> { %v8475_v58 = vadd.f32 %v8325_v56, %v6795_v45  ;;  %10372 = vmatmul.msk.bf16.gmra.mxu0 %vm3010_vm8, %v8181_v32  ;;  %v6192_v8 = vsel %vm1231_vm3, %v20528_v26, %v6191_v49  ;;  %v7692_v45 = vrot.slane %v7272_v57, 2  ;;  %v3403_v32 = vadd.f32 %v16216_v41, %v20530_v59  ;;  %v17225_v14 = vld [vmem:[%s11183_s14 + $0x114] sm:$0xff] }
 0x5b2   : >> { %v6375_v4 = vsel %vm1433_vm6, %v6311_v33, %v5879_v17  ;;  %v19308_v57 = vrot.slane %v17225_v14, 1  ;;  %v17234_v41 = vld [vmem:[%s11183_s14 + $0x138] sm:$0xff] }
 0x5b3   : >> { %v8542_v20 = vadd.f32 %v16802_v53, %v8475_v58  ;;  %v5018_v30 = vpop.f32.mrf.mxu2  ;;  %7570 = vrot.lane.b32.xlu2 %v7504_v19, %s11037_s24  ;;  %v7871_v58 = vrot.slane %v17135_v42, 2  ;;  %v17237_v19 = vor.u32 %v7692_v45, %v7691_v63  ;;  %v7280_v45 = vshll.u32 %v17234_v41, 16 }
 0x5b4   : >> { %v17229_v26 = vadd.f32 %v5018_v30, %v3403_v32  ;;  %7434 = vrot.lane.b32.xlu1 %v7275_v37, %s11036_s23  ;;  %v5826_v63 = vsel %vm861_vm1, %v5823_v12, %v19308_v57 }
 0x5b5   : >> { %v8606_v16 = vpack.c.bf16 %v8542_v20, %v8542_v20  ;;  %v8745_v40 = vsel %vm8731_vm11, %v8542_v20, 0.0  ;;  %v8873_v56 = vmul.f32 %v8542_v20, %v8542_v20  ;;  %6258 = vrot.lane.b32.xlu0 %v6192_v8, %s11039_s30  ;;  %v17242_v34 = vpop.permute.xlu2 %7928  ;;  %v6439_v8 = vsel %vm1498_vm7, %v6375_v4, %v17060_v0  ;;  %v20532_v4 = vld [vmem:[#allocation11_spill] sm:$0xff] }
 0x5b6   : >> { %v8746_v17 = vadd.f32 %v8745_v40, %v8744_v60  ;;  %v7423_v33 = vpop.permute.xlu1 %7422  ;;  %v6648_v37 = vpop.f32.mrf.mxu3  ;;  %v7694_v0 = vsel %vm998_vm2, %v17085_v2, %v17237_v19  ;;  %v20533_v30 = vshrl.u32 %v20532_v4, 16  ;;  %v20534_v40 = vshll.u32 %v20532_v4, 16  ;;  %v20537_v4 = vld [vmem:[#allocation195_spill] sm:$0xff] }
 0x5b7   : >> { %8674 = vst.msk [vmem:[%s16833_s13 + $0x1c] sm:$0xf] %vm8666_vm10, %v8606_v16  ;;  %v8943_v25 = vsel %vm8731_vm11, %v8873_v56, 0.0  ;;  %v6247_v60 = vpop.permute.xlu0 %6246  ;;  %v20535_v56 = vld [vmem:[#allocation181_spill] sm:$0xff]  ;;  %v7284_v2 = vshrl.u32 %v17234_v41, 16 }
 0x5b8   : >> { %v17244_v59 = vadd.f32 %v8943_v25, %v8942_v35  ;;  %v6503_v32 = vsel %vm1563_vm9, %v6439_v8, %v6247_v60  ;;  %v20531_v35 = vrot.slane %v17022_v28, 2  ;;  %v6015_v16 = vrot.slane %v20533_v30, 1  ;;  %v10869_v8 = vld [vmem:[%s11183_s14 + $0xf0] sm:$0xff]  ;;  %v20536_v28 = vld [vmem:[#allocation184_spill] sm:$0xff] }
 0x5b9   : >> { %10133 = vmatmul.msk.bf16.gmra.mxu3 %vm3010_vm8, %v6503_v32  ;;  %v6016_v12 = vrot.slane %v20534_v40, 2  ;;  %v3405_v25 = vadd.f32 %v16267_v27, %v20535_v56  ;;  %v7991_v60 = vsel %vm1368_vm5, %v10869_v8, %v7423_v33  ;;  %v10870_v32 = vld [vmem:[%s11183_s14 + $0x114] sm:$0xff]  ;;  %v6796_v30 = vadd.f32 %v6648_v37, %v16237_v5 }
 0x5ba   : >> { %v7872_v20 = vsel %vm1231_vm3, %v20531_v35, %v7871_v58  ;;  %v4655_v35 = vsel %vm1368_vm5, %v10870_v32, %v20536_v28  ;;  %v7278_v27 = vor.u32 %v7276_v51, %v17178_v1  ;;  %v17285_v33 = vrot.slane %v7280_v45, 1  ;;  %v20539_v51 = vld [vmem:[#allocation121_spill] sm:$0xff] }
 0x5bb   : >> { %v5020_v57 = vpop.f32.mrf.mxu2  ;;  %5892 = vrot.lane.b32.xlu2 %v5826_v63, %s11037_s24  ;;  %v4719_v40 = vsel %vm1433_vm6, %v4655_v35, %v20537_v4  ;;  %v8055_v5 = vsel %vm1433_vm6, %v7991_v60, %v17102_v46  ;;  %v17292_v37 = vor.u32 %v6016_v12, %v6015_v16  ;;  %v7695_v28 = vrot.slane %v7284_v2, 1  ;;  %v10200_v60 = vld [vmem:[%s11183_s14 + $0x140] sm:$0x3] }
 0x5bc   : >> { %v17278_v62 = vadd.f32 %v5020_v57, %v3405_v25  ;;  %7938 = vrot.lane.b32.xlu1 %v7872_v20, %s11039_s30  ;;  %v6193_v57 = vrot.slane %v17225_v14, 2  ;;  %v20538_v20 = vld [vmem:[#allocation183_spill] sm:$0xff]  ;;  %v7696_v35 = vrot.slane %v7280_v45, 2  ;;  %v7283_v12 = vsel %vm508_vm0, %v7278_v27, %v17285_v33 }
 0x5bd   : >> { %7802 = vrot.lane.b32.xlu0 %v7694_v0, %s11038_s27  ;;  %v4783_v0 = vsel %vm1498_vm7, %v4719_v40, %v20538_v20  ;;  %v17296_v25 = vpop.permute.xlu2 %6250  ;;  %v6018_v40 = vsel %vm998_vm2, %v17128_v7, %v17292_v37 }
 0x5be   : >> { %v8328_v63 = vpop.f32.mrf.mxu0  ;;  %v7927_v1 = vpop.permute.xlu1 %7926  ;;  %v4847_v8 = vsel %vm1563_vm9, %v4783_v0, %v20539_v51  ;;  %v6194_v45 = vsel %vm1231_vm3, %v6191_v49, %v6193_v57  ;;  %v17322_v44 = vor.u32 %v7696_v35, %v7695_v28  ;;  %v7100_v49 = vunpack.c.l.b16 %v10200_v60  ;;  %v20541_v35 = vld [vmem:[#allocation114_spill] sm:$0xff] }
 0x5bf   : >> { %v8476_v56 = vadd.f32 %v8328_v63, %v6796_v30  ;;  %v7791_v32 = vpop.permute.xlu0 %7790  ;;  %v6650_v30 = vpop.f32.mrf.mxu3  ;;  %v20540_v63 = vld [vmem:[#allocation175_spill] sm:$0xff]  ;;  %v7505_v28 = vrot.slane %v17234_v41, 1 }
 0x5c0   : >> { %v8119_v16 = vsel %vm1498_vm7, %v8055_v5, %v7791_v32  ;;  %9905 = vmatmul.msk.bf16.gmra.mxu2 %vm3010_vm8, %v4847_v8  ;;  %v3408_v5 = vadd.f32 %v16344_v13, %v20540_v63  ;;  %v6797_v51 = vadd.f32 %v6650_v30, %v16277_v31  ;;  %v6019_v31 = vshrl.u32 %v20541_v35, 16  ;;  %v20543_v63 = vld [vmem:[#allocation190_spill] sm:$0xff] }
 0x5c1   : >> { %v8543_v46 = vadd.f32 %v16802_v53, %v8476_v56  ;;  %v8183_v4 = vsel %vm1563_vm9, %v8119_v16, %v7927_v1  ;;  %v20542_v16 = vld [vmem:[#allocation59_spill] sm:$0xff] }
 0x5c2   : >> { %10373 = vmatmul.msk.bf16.gmra.mxu0 %vm3010_vm8, %v8183_v4 }
 0x5c3   : >> { %v8607_v20 = vpack.c.bf16 %v8543_v46, %v8543_v46  ;;  %v8747_v27 = vsel %vm8731_vm11, %v8543_v46, 0.0  ;;  %v8874_v0 = vmul.f32 %v8543_v46, %v8543_v46  ;;  %v5023_v1 = vpop.f32.mrf.mxu2  ;;  %7436 = vrot.lane.b32.xlu2 %v7283_v12, %s11036_s23  ;;  %v10871_v46 = vld [vmem:[%s11183_s14 + $0xd8] sm:$0xff] }
 0x5c4   : >> { %v8748_v56 = vadd.f32 %v8747_v27, %v8746_v17  ;;  %v17328_v7 = vadd.f32 %v5023_v1, %v3408_v5  ;;  %6260 = vrot.lane.b32.xlu1 %v6194_v45, %s11039_s30  ;;  %v19310_v17 = vrot.slane %v17234_v41, 2  ;;  %v6313_v12 = vsel %vm1368_vm5, %v10871_v46, %v20542_v16  ;;  %v10872_v45 = vld [vmem:[%s11183_s14 + $0x120] sm:$0xff] }
 0x5c5   : >> { %8675 = vst.msk [vmem:[%s16833_s13 + $0x20] sm:$0xf] %vm8666_vm10, %v8607_v20  ;;  %v8945_v13 = vsel %vm8731_vm11, %v8874_v0, 0.0  ;;  %6124 = vrot.lane.b32.xlu0 %v6018_v40, %s11038_s27  ;;  %v17339_v30 = vpop.permute.xlu2 %7794  ;;  %v4657_v40 = vsel %vm1368_vm5, %v10872_v45, %v20543_v63  ;;  %v17346_v20 = vpack.c.b16 %v7100_v49, %v7100_v49  ;;  %v20545_v46 = vshll.u32 %v20541_v35, 16 }
 0x5c6   : >> { %v8946_v8 = vadd.f32 %v8945_v13, %v17244_v59  ;;  %v8330_v32 = vpop.f32.mrf.mxu0  ;;  %v6249_v4 = vpop.permute.xlu1 %6248  ;;  %v6377_v59 = vsel %vm1433_vm6, %v6313_v12, %v17148_v54  ;;  %v7874_v1 = vsel %vm1231_vm3, %v7871_v58, %v19310_v17  ;;  %v20544_v54 = vrot.slane %v17135_v42, 1  ;;  %v20546_v12 = vld [vmem:[#allocation196_spill] sm:$0xff] }
 0x5c7   : >> { %v8477_v60 = vadd.f32 %v8330_v32, %v6797_v51  ;;  %v6113_v5 = vpop.permute.xlu0 %6112  ;;  %v7698_v51 = vsel %vm998_vm2, %v17237_v19, %v17322_v44  ;;  %v6021_v32 = vrot.slane %v6019_v31, 1  ;;  %v6022_v16 = vrot.slane %v20545_v46, 2 }
 0x5c8   : >> { %v6441_v0 = vsel %vm1498_vm7, %v6377_v59, %v6113_v5  ;;  %v7506_v49 = vsel %vm861_vm1, %v20544_v54, %v7505_v28  ;;  %v3410_v58 = vadd.f32 %v16408_v22, %v20546_v12  ;;  %v7288_v31 = vshll.u32 %v17346_v20, 16 }
 0x5c9   : >> { %v8544_v27 = vadd.f32 %v16802_v53, %v8477_v60  ;;  %v6505_v13 = vsel %vm1563_vm9, %v6441_v0, %v6249_v4  ;;  %v20547_v4 = vld [vmem:[#allocation202_spill] sm:$0xff]  ;;  %v7699_v0 = vshrl.u32 %v17346_v20, 16  ;;  %v6023_v46 = vor.u32 %v6022_v16, %v6021_v32 }
 0x5ca   : >> { %10134 = vmatmul.msk.bf16.gmra.mxu3 %vm3010_vm8, %v6505_v13  ;;  %v4721_v42 = vsel %vm1433_vm6, %v4657_v40, %v20547_v4  ;;  %v10873_v40 = vld [vmem:[%s11183_s14 + $0xfc] sm:$0xff]  ;;  %v5827_v12 = vrot.slane %v20541_v35, 1  ;;  %v20550_v16 = vrot.slane %v17225_v14, 1  ;;  %v7507_v14 = vrot.slane %v17346_v20, 1 }
 0x5cb   : >> { %v8608_v60 = vpack.c.bf16 %v8544_v27, %v8544_v27  ;;  %v8749_v45 = vsel %vm8731_vm11, %v8544_v27, 0.0  ;;  %v8875_v19 = vmul.f32 %v8544_v27, %v8544_v27  ;;  %v5025_v59 = vpop.f32.mrf.mxu2  ;;  %7940 = vrot.lane.b32.xlu2 %v7874_v1, %s11039_s30  ;;  %v7993_v1 = vsel %vm1368_vm5, %v10873_v40, %v17193_v48 }
 0x5cc   : >> { %v8750_v63 = vadd.f32 %v8749_v45, %v8748_v56  ;;  %v6653_v5 = vpop.f32.mrf.mxu3  ;;  %v17378_v27 = vadd.f32 %v5025_v59, %v3410_v58  ;;  %7804 = vrot.lane.b32.xlu1 %v7698_v51, %s11038_s27  ;;  %v6195_v56 = vrot.slane %v20541_v35, 2  ;;  %v7701_v59 = vrot.slane %v7699_v0, 1  ;;  %v20551_v0 = vld [vmem:[#allocation112_spill] sm:$0xff] }
 0x5cd   : >> { %8676 = vst.msk [vmem:[%s16833_s13 + $0x24] sm:$0xf] %vm8666_vm10, %v8608_v60  ;;  %v8947_v22 = vsel %vm8731_vm11, %v8875_v19, 0.0  ;;  %v6798_v13 = vadd.f32 %v6653_v5, %v16335_v55  ;;  %7572 = vrot.lane.b32.xlu0 %v7506_v49, %s11037_s24  ;;  %v20548_v60 = vld [vmem:[#allocation163_spill] sm:$0xff]  ;;  %v17390_v45 = vpop.permute.xlu2 %6116  ;;  %v7702_v5 = vrot.slane %v7288_v31, 2  ;;  %v6024_v32 = vsel %vm998_vm2, %v17292_v37, %v6023_v46 }
 0x5ce   : >> { %v8948_v54 = vadd.f32 %v8947_v22, %v8946_v8  ;;  %v4785_v58 = vsel %vm1498_vm7, %v4721_v42, %v20548_v60  ;;  %v7793_v55 = vpop.permute.xlu1 %7792  ;;  %v20549_v19 = vld [vmem:[#allocation87_spill] sm:$0xff]  ;;  %v6196_v8 = vsel %vm1231_vm3, %v6193_v57, %v6195_v56  ;;  %v5828_v42 = vsel %vm861_vm1, %v20550_v16, %v5827_v12 }
 0x5cf   : >> { %v4849_v51 = vsel %vm1563_vm9, %v4785_v58, %v20549_v19  ;;  %v8333_v49 = vpop.f32.mrf.mxu0  ;;  %v7561_v4 = vpop.permute.xlu0 %7560  ;;  %v3413_v22 = vadd.f32 %v16450_v18, %v20551_v0  ;;  %v7703_v37 = vor.u32 %v7702_v5, %v7701_v59  ;;  %v7286_v60 = vor.u32 %v7284_v2, %v17285_v33  ;;  %v20552_v19 = vld [vmem:[#allocation17_spill] sm:$0xff] }
 0x5d0   : >> { %v8478_v17 = vadd.f32 %v8333_v49, %v6798_v13  ;;  %v8057_v48 = vsel %vm1433_vm6, %v7993_v1, %v7561_v4  ;;  %9906 = vmatmul.msk.bf16.gmra.mxu2 %vm3010_vm8, %v4849_v51  ;;  %v7290_v58 = vrot.slane %v7288_v31, 1 }
 0x5d1   : >> { %v8121_v35 = vsel %vm1498_vm7, %v8057_v48, %v7793_v55  ;;  %v10874_v55 = vld [vmem:[%s11183_s14 + $0xe0] sm:$0xff] }
 0x5d2   : >> { %v8545_v13 = vadd.f32 %v16802_v53, %v8478_v17  ;;  %v8185_v40 = vsel %vm1563_vm9, %v8121_v35, %v17242_v34  ;;  %v6315_v51 = vsel %vm1368_vm5, %v10874_v55, %v20552_v19  ;;  %v20556_v35 = vld [vmem:[#allocation72_spill] sm:$0xff]  ;;  %v20560_v55 = vld [vmem:[#allocation185_spill] sm:$0xff] }
 0x5d3   : >> { %10374 = vmatmul.msk.bf16.gmra.mxu0 %vm3010_vm8, %v8185_v40  ;;  %v5028_v57 = vpop.f32.mrf.mxu2  ;;  %6262 = vrot.lane.b32.xlu2 %v6196_v8, %s11039_s30  ;;  %v7704_v40 = vsel %vm998_vm2, %v17322_v44, %v7703_v37  ;;  %v20561_v37 = vld [vmem:[#allocation69_spill] sm:$0xff] }
 0x5d4   : >> { %v6655_v56 = vpop.f32.mrf.mxu3  ;;  %v8609_v1 = vpack.c.bf16 %v8545_v13, %v8545_v13  ;;  %v8751_v46 = vsel %vm8731_vm11, %v8545_v13, 0.0  ;;  %v8876_v18 = vmul.f32 %v8545_v13, %v8545_v13  ;;  %v17414_v12 = vadd.f32 %v5028_v57, %v3413_v22  ;;  %6126 = vrot.lane.b32.xlu1 %v6024_v32, %s11038_s27  ;;  %v10875_v57 = vld [vmem:[%s11183_s14 + $0x128] sm:$0xff] }
 0x5d5   : >> { %5894 = vrot.lane.b32.xlu0 %v5828_v42, %s11037_s24  ;;  %v8752_v34 = vadd.f32 %v8751_v46, %v8750_v63  ;;  %v6799_v17 = vadd.f32 %v6655_v56, %v16385_v24  ;;  %v17428_v4 = vpop.permute.xlu2 %7564  ;;  %v20553_v63 = vld [vmem:[#allocation115_spill] sm:$0xff]  ;;  %v20557_v32 = vshrl.u32 %v20556_v35, 16  ;;  %v20558_v42 = vshll.u32 %v20556_v35, 16 }
 0x5d6   : >> { %8677 = vst.msk [vmem:[%s16833_s13 + $0x28] sm:$0xf] %vm8666_vm10, %v8609_v1  ;;  %v8949_v49 = vsel %vm8731_vm11, %v8876_v18, 0.0  ;;  %v6115_v59 = vpop.permute.xlu1 %6114  ;;  %v20554_v5 = vshrl.u32 %v20553_v63, 16  ;;  %v20555_v33 = vshll.u32 %v20553_v63, 16  ;;  %v7508_v46 = vsel %vm861_vm1, %v7505_v28, %v7507_v14  ;;  %v17468_v63 = vld [vmem:[%s11183_s14 + $0x128] sm:$0xff] }
 0x5d7   : >> { %v8950_v48 = vadd.f32 %v8949_v49, %v8948_v54  ;;  %v8335_v8 = vpop.f32.mrf.mxu0  ;;  %v5883_v2 = vpop.permute.xlu0 %5882  ;;  %v6028_v16 = vrot.slane %v20557_v32, 1  ;;  %v6029_v0 = vrot.slane %v20558_v42, 2  ;;  %v20559_v54 = vld [vmem:[#allocation182_spill] sm:$0xff]  ;;  %v7291_v18 = vsel %vm508_vm0, %v7286_v60, %v7290_v58  ;;  %v17464_v60 = vld [vmem:[%s11183_s14 + $0x120] sm:$0xff]  ;;  %v20562_v42 = vld [vmem:[#allocation233_spill] sm:$0xff] }
 0x5d8   : >> { %v6025_v24 = vrot.slane %v20554_v5, 1  ;;  %v6026_v31 = vrot.slane %v20555_v33, 2  ;;  %v8479_v22 = vadd.f32 %v8335_v8, %v6799_v17  ;;  %v6379_v13 = vsel %vm1433_vm6, %v6315_v51, %v5883_v2  ;;  %v17450_v17 = vld [vmem:[%s11183_s14 + $0x144] sm:$0xff]  ;;  %v17472_v5 = vld [vmem:[%s11183_s14 + $0x14c] sm:$0xff] }
 0x5d9   : >> { %v4659_v56 = vsel %vm1368_vm5, %v10875_v57, %v20559_v54  ;;  %v6443_v1 = vsel %vm1498_vm7, %v6379_v13, %v6115_v59  ;;  %v3415_v19 = vadd.f32 %v16511_v9, %v20561_v37  ;;  %v17461_v14 = vor.u32 %v6029_v0, %v6028_v16  ;;  %v20563_v57 = vld [vmem:[#allocation21_spill] sm:$0xff] }
 0x5da   : >> { %v4723_v44 = vsel %vm1433_vm6, %v4659_v56, %v20560_v55  ;;  %v8546_v51 = vadd.f32 %v16802_v53, %v8479_v22  ;;  %v6507_v49 = vsel %vm1563_vm9, %v6443_v1, %v17296_v25  ;;  %v6027_v28 = vor.u32 %v6026_v31, %v6025_v24  ;;  %v10878_v1 = vld [vmem:[%s11183_s14 + $0x104] sm:$0xff] }
 0x5db   : >> { %10135 = vmatmul.msk.bf16.gmra.mxu3 %vm3010_vm8, %v6507_v49  ;;  %v5030_v59 = vpop.f32.mrf.mxu2  ;;  %7806 = vrot.lane.b32.xlu2 %v7704_v40, %s11038_s27  ;;  %v5829_v58 = vrot.slane %v17464_v60, 1  ;;  %v5830_v9 = vrot.slane %v17468_v63, 1  ;;  %v7875_v32 = vrot.slane %v17346_v20, 2  ;;  %v7295_v16 = vshll.u32 %v17450_v17, 16  ;;  %v20565_v49 = vld [vmem:[#allocation235_spill] sm:$0xff] }
 0x5dc   : >> { %v8610_v25 = vpack.c.bf16 %v8546_v51, %v8546_v51  ;;  %v8753_v8 = vsel %vm8731_vm11, %v8546_v51, 0.0  ;;  %v8877_v2 = vmul.f32 %v8546_v51, %v8546_v51  ;;  %v17475_v33 = vadd.f32 %v5030_v59, %v3415_v19  ;;  %7574 = vrot.lane.b32.xlu1 %v7508_v46, %s11037_s24 }
 0x5dd   : >> { %7438 = vrot.lane.b32.xlu0 %v7291_v18, %s11036_s23  ;;  %v6658_v24 = vpop.f32.mrf.mxu3  ;;  %v8754_v31 = vadd.f32 %v8753_v8, %v8752_v34  ;;  %v4787_v0 = vsel %vm1498_vm7, %v4723_v44, %v20562_v42  ;;  %v17487_v13 = vpop.permute.xlu2 %5886  ;;  %v7300_v20 = vshll.u32 %v17472_v5, 16  ;;  %v6031_v55 = vsel %vm998_vm2, %v6027_v28, %v17461_v14 }
 0x5de   : >> { %v6800_v35 = vadd.f32 %v6658_v24, %v16433_v52  ;;  %8678 = vst.msk [vmem:[%s16833_s13 + $0x2c] sm:$0xf] %vm8666_vm10, %v8610_v25  ;;  %v8951_v22 = vsel %vm8731_vm11, %v8877_v2, 0.0  ;;  %v7563_v40 = vpop.permute.xlu1 %7562  ;;  %v4851_v54 = vsel %vm1563_vm9, %v4787_v0, %v20563_v57  ;;  %v5831_v44 = vsel %vm861_vm1, %v5829_v58, %v5830_v9 }
 0x5df   : >> { %v8952_v34 = vadd.f32 %v8951_v22, %v8950_v48  ;;  %v7427_v56 = vpop.permute.xlu0 %7426  ;;  %v20564_v37 = vrot.slane %v17234_v41, 2  ;;  %v7293_v19 = vshrl.u32 %v17450_v17, 16  ;;  %v7297_v51 = vrot.slane %v7295_v16, 1 }
 0x5e0   : >> { %v8338_v52 = vpop.f32.mrf.mxu0  ;;  %v7995_v46 = vsel %vm1368_vm5, %v10878_v1, %v7427_v56  ;;  %9907 = vmatmul.msk.bf16.gmra.mxu2 %vm3010_vm8, %v4851_v54  ;;  %v3418_v59 = vadd.f32 %v16589_v15, %v20565_v49  ;;  %v7509_v8 = vrot.slane %v17450_v17, 1  ;;  %v7510_v28 = vrot.slane %v17472_v5, 1 }
 0x5e1   : >> { %v8480_v18 = vadd.f32 %v8338_v52, %v6800_v35  ;;  %v7876_v48 = vsel %vm1231_vm3, %v20564_v37, %v7875_v32  ;;  %v8059_v2 = vsel %vm1433_vm6, %v7995_v46, %v7563_v40  ;;  %v6197_v41 = vrot.slane %v17464_v60, 2 }
 0x5e2   : >> { %v6198_v58 = vrot.slane %v17468_v63, 2  ;;  %v17513_v35 = vrot.slane %v7300_v20, 1  ;;  %v7298_v60 = vor.u32 %v7297_v51, %v7293_v19  ;;  %v7304_v54 = vshrl.u32 %v17472_v5, 16 }
 0x5e3   : >> { %v8547_v25 = vadd.f32 %v16802_v53, %v8480_v18  ;;  %v5033_v24 = vpop.f32.mrf.mxu2  ;;  %6128 = vrot.lane.b32.xlu2 %v6031_v55, %s11038_s27  ;;  %v8123_v18 = vsel %vm1498_vm7, %v8059_v2, %v17339_v30  ;;  %v7706_v37 = vrot.slane %v7295_v16, 2  ;;  %v20567_v2 = vld [vmem:[#allocation157_spill] sm:$0xff] }
 0x5e4   : >> { %v17516_v0 = vadd.f32 %v5033_v24, %v3418_v59  ;;  %5896 = vrot.lane.b32.xlu1 %v5831_v44, %s11037_s24  ;;  %v6199_v30 = vsel %vm1231_vm3, %v6197_v41, %v6198_v58  ;;  %v7303_v16 = vsel %vm508_vm0, %v7298_v60, %v17513_v35  ;;  %v20570_v41 = vld [vmem:[#allocation111_spill] sm:$0xff] }
 0x5e5   : >> { %v8611_v32 = vpack.c.bf16 %v8547_v25, %v8547_v25  ;;  %v8755_v15 = vsel %vm8731_vm11, %v8547_v25, 0.0  ;;  %v8878_v42 = vmul.f32 %v8547_v25, %v8547_v25  ;;  %7942 = vrot.lane.b32.xlu0 %v7876_v48, %s11039_s30  ;;  %v6660_v22 = vpop.f32.mrf.mxu3  ;;  %v17525_v52 = vpop.permute.xlu2 %7430  ;;  %v20566_v48 = vld [vmem:[#allocation191_spill] sm:$0xff]  ;;  %v7709_v25 = vrot.slane %v7300_v20, 2  ;;  %v17557_v20 = vld [vmem:[%s11183_s14 + $0x130] sm:$0xff] }
 0x5e6   : >> { %v8756_v40 = vadd.f32 %v8755_v15, %v8754_v31  ;;  %v6801_v57 = vadd.f32 %v6660_v22, %v16472_v50  ;;  %v5885_v1 = vpop.permute.xlu1 %5884  ;;  %v7705_v31 = vrot.slane %v7293_v19, 1  ;;  %v10879_v50 = vld [vmem:[%s11183_s14 + $0x130] sm:$0xff]  ;;  %v7708_v19 = vrot.slane %v7304_v54, 1  ;;  %v20568_v15 = vld [vmem:[#allocation48_spill] sm:$0xff] }
 0x5e7   : >> { %8679 = vst.msk [vmem:[%s16833_s13 + $0x30] sm:$0xf] %vm8666_vm10, %v8611_v32  ;;  %v8953_v56 = vsel %vm8731_vm11, %v8878_v42, 0.0  ;;  %v7931_v55 = vpop.permute.xlu0 %7930  ;;  %v4661_v51 = vsel %vm1368_vm5, %v10879_v50, %v20566_v48  ;;  %v10880_v32 = vld [vmem:[%s11183_s14 + $0xe8] sm:$0xff] }
 0x5e8   : >> { %v8954_v46 = vadd.f32 %v8953_v56, %v8952_v34  ;;  %v8340_v44 = vpop.f32.mrf.mxu0  ;;  %v8187_v49 = vsel %vm1563_vm9, %v8123_v18, %v7931_v55  ;;  %v7511_v34 = vsel %vm861_vm1, %v7509_v8, %v7510_v28  ;;  %v4725_v24 = vsel %vm1433_vm6, %v4661_v51, %v20567_v2  ;;  %v20569_v42 = vld [vmem:[#allocation52_spill] sm:$0xff]  ;;  %v20571_v2 = vld [vmem:[#allocation58_spill] sm:$0xff] }
 0x5e9   : >> { %v8481_v59 = vadd.f32 %v8340_v44, %v6801_v57  ;;  %10375 = vmatmul.msk.bf16.gmra.mxu0 %vm3010_vm8, %v8187_v49  ;;  %v6317_v8 = vsel %vm1368_vm5, %v10880_v32, %v20568_v15  ;;  %v3420_v22 = vadd.f32 %v16637_v6, %v20569_v42  ;;  %v4789_v56 = vsel %vm1498_vm7, %v4725_v24, %v20570_v41 }
 0x5ea   : >> { %v6381_v60 = vsel %vm1433_vm6, %v6317_v8, %v5885_v1  ;;  %v5832_v55 = vrot.slane %v17557_v20, 1  ;;  %v7707_v44 = vor.u32 %v7706_v37, %v7705_v31  ;;  %v17565_v49 = vor.u32 %v7709_v25, %v7708_v19  ;;  %v20572_v25 = vld [vmem:[#allocation12_spill] sm:$0xff] }
 0x5eb   : >> { %v8548_v57 = vadd.f32 %v16802_v53, %v8481_v59  ;;  %v5035_v18 = vpop.f32.mrf.mxu2  ;;  %7576 = vrot.lane.b32.xlu2 %v7511_v34, %s11037_s24  ;;  %v7877_v59 = vrot.slane %v17450_v17, 2  ;;  %v7878_v34 = vrot.slane %v17472_v5, 2  ;;  %v4853_v31 = vsel %vm1563_vm9, %v4789_v56, %v20571_v2  ;;  %v20575_v56 = vld [vmem:[#allocation50_spill] sm:$0xff] }
 0x5ec   : >> { %v17561_v51 = vadd.f32 %v5035_v18, %v3420_v22  ;;  %7440 = vrot.lane.b32.xlu1 %v7303_v16, %s11036_s23  ;;  %v6445_v17 = vsel %vm1498_vm7, %v6381_v60, %v17390_v45  ;;  %v20573_v32 = vshrl.u32 %v20572_v25, 16  ;;  %v20574_v8 = vshll.u32 %v20572_v25, 16  ;;  %v10882_v18 = vld [vmem:[%s11183_s14 + $0x10c] sm:$0xff] }
 0x5ed   : >> { %v8612_v50 = vpack.c.bf16 %v8548_v57, %v8548_v57  ;;  %v8757_v48 = vsel %vm8731_vm11, %v8548_v57, 0.0  ;;  %v8879_v6 = vmul.f32 %v8548_v57, %v8548_v57  ;;  %6264 = vrot.lane.b32.xlu0 %v6199_v30, %s11039_s30  ;;  %v17574_v24 = vpop.permute.xlu2 %7934  ;;  %v17592_v57 = vld [vmem:[%s11183_s14 + $0x154] sm:$0xff]  ;;  %v7711_v45 = vsel %vm998_vm2, %v7707_v44, %v17565_v49 }
 0x5ee   : >> { %v8758_v1 = vadd.f32 %v8757_v48, %v8756_v40  ;;  %v7429_v30 = vpop.permute.xlu1 %7428  ;;  %v6663_v40 = vpop.f32.mrf.mxu3  ;;  %v6032_v15 = vrot.slane %v20573_v32, 1  ;;  %v6033_v42 = vrot.slane %v20574_v8, 2  ;;  %v7879_v41 = vsel %vm1231_vm3, %v7877_v59, %v7878_v34 }
 0x5ef   : >> { %8680 = vst.msk [vmem:[%s16833_s13 + $0x34] sm:$0xf] %vm8666_vm10, %v8612_v50  ;;  %v8955_v37 = vsel %vm8731_vm11, %v8879_v6, 0.0  ;;  %v6253_v19 = vpop.permute.xlu0 %6252  ;;  %v3423_v60 = vadd.f32 %v16712_v36, %v20575_v56  ;;  %v7997_v50 = vsel %vm1368_vm5, %v10882_v18, %v7429_v30  ;;  %v6802_v6 = vadd.f32 %v6663_v40, %v16524_v3  ;;  %v10883_v18 = vld [vmem:[%s11183_s14 + $0x138] sm:$0xff] }
 0x5f0   : >> { %v17576_v16 = vadd.f32 %v8955_v37, %v8954_v46  ;;  %v6509_v22 = vsel %vm1563_vm9, %v6445_v17, %v6253_v19  ;;  %9908 = vmatmul.msk.bf16.gmra.mxu2 %vm3010_vm8, %v4853_v31  ;;  %v5833_v46 = vsel %vm861_vm1, %v5830_v9, %v5832_v55  ;;  %v17605_v9 = vor.u32 %v6033_v42, %v6032_v15 }
 0x5f1   : >> { %10136 = vmatmul.msk.bf16.gmra.mxu3 %vm3010_vm8, %v6509_v22  ;;  %v7308_v44 = vshll.u32 %v17592_v57, 16  ;;  %v7306_v36 = vor.u32 %v7304_v54, %v17513_v35  ;;  %v8061_v31 = vsel %vm1433_vm6, %v7997_v50, %v17428_v4  ;;  %v6200_v37 = vrot.slane %v17557_v20, 2  ;;  %v20577_v50 = vld [vmem:[#allocation144_spill] sm:$0xff] }
 0x5f2   : >> { %v7312_v3 = vshrl.u32 %v17592_v57, 16  ;;  %v6035_v4 = vsel %vm998_vm2, %v17461_v14, %v17605_v9  ;;  %v4663_v63 = vsel %vm1368_vm5, %v10883_v18, %v20577_v50 }
 0x5f3   : >> { %v5038_v48 = vpop.f32.mrf.mxu2  ;;  %5898 = vrot.lane.b32.xlu2 %v5833_v46, %s11037_s24  ;;  %v17622_v19 = vrot.slane %v7308_v44, 1  ;;  %v6201_v42 = vsel %vm1231_vm3, %v6198_v58, %v6200_v37  ;;  %v7713_v46 = vrot.slane %v7308_v44, 2 }
 0x5f4   : >> { %v17608_v2 = vadd.f32 %v5038_v48, %v3423_v60  ;;  %7944 = vrot.lane.b32.xlu1 %v7879_v41, %s11039_s30  ;;  %v7712_v22 = vrot.slane %v7312_v3, 1 }
 0x5f5   : >> { %7808 = vrot.lane.b32.xlu0 %v7711_v45, %s11038_s27  ;;  %v17620_v40 = vpop.permute.xlu2 %6256  ;;  %v7311_v54 = vsel %vm508_vm0, %v7306_v36, %v17622_v19  ;;  %v20576_v45 = vld [vmem:[#allocation22_spill] sm:$0xff] }
 0x5f6   : >> { %v8343_v59 = vpop.f32.mrf.mxu0  ;;  %v7933_v17 = vpop.permute.xlu1 %7932  ;;  %v3425_v14 = vadd.f32 %v16768_v29, %v20576_v45 }
 0x5f7   : >> { %v8482_v30 = vadd.f32 %v8343_v59, %v6802_v6  ;;  %v7797_v25 = vpop.permute.xlu0 %7796  ;;  %v6665_v15 = vpop.f32.mrf.mxu3  ;;  %v17647_v6 = vld [vmem:[%s11183_s14 + $0x138] sm:$0xff] }
 0x5f8   : >> { %v8125_v35 = vsel %vm1498_vm7, %v8061_v31, %v7797_v25  ;;  %v5640_v44 = vshrl.u32 %v17647_v6, 16  ;;  %v6803_v29 = vadd.f32 %v6665_v15, %v16579_v43  ;;  %v7512_v25 = vrot.slane %v17592_v57, 1  ;;  %v20579_v43 = vld [vmem:[#allocation209_spill] sm:$0xff]  ;;  %v20580_v15 = vld [vmem:[#allocation31_spill] sm:$0xff] }
 0x5f9   : >> { %v8549_v32 = vadd.f32 %v16802_v53, %v8482_v30  ;;  %v8189_v8 = vsel %vm1563_vm9, %v8125_v35, %v7933_v17  ;;  %v5834_v5 = vrot.slane %v17647_v6, 1 }
 0x5fa   : >> { %10376 = vmatmul.msk.bf16.gmra.mxu0 %vm3010_vm8, %v8189_v8 }
 0x5fb   : >> { %v8613_v41 = vpack.c.bf16 %v8549_v32, %v8549_v32  ;;  %v8759_v56 = vsel %vm8731_vm11, %v8549_v32, 0.0  ;;  %v8880_v60 = vmul.f32 %v8549_v32, %v8549_v32  ;;  %v5040_v58 = vpop.f32.mrf.mxu2  ;;  %7442 = vrot.lane.b32.xlu2 %v7311_v54, %s11036_s23  ;;  %v17663_v32 = vor.u32 %v7713_v46, %v7712_v22  ;;  %v10885_v54 = vld [vmem:[%s11183_s14 + $0xf0] sm:$0xff] }
 0x5fc   : >> { %v8760_v48 = vadd.f32 %v8759_v56, %v8758_v1  ;;  %v17655_v59 = vadd.f32 %v5040_v58, %v3425_v14  ;;  %6266 = vrot.lane.b32.xlu1 %v6201_v42, %s11039_s30  ;;  %v20578_v1 = vld [vmem:[#allocation156_spill] sm:$0xff]  ;;  %v6319_v8 = vsel %vm1368_vm5, %v10885_v54, %v20580_v15  ;;  %v7880_v14 = vrot.slane %v17592_v57, 2 }
 0x5fd   : >> { %8681 = vst.msk [vmem:[%s16833_s13 + $0x38] sm:$0xf] %vm8666_vm10, %v8613_v41  ;;  %v8957_v36 = vsel %vm8731_vm11, %v8880_v60, 0.0  ;;  %6130 = vrot.lane.b32.xlu0 %v6035_v4, %s11038_s27  ;;  %v4727_v31 = vsel %vm1433_vm6, %v4663_v63, %v20578_v1  ;;  %v17670_v45 = vpop.permute.xlu2 %7800  ;;  %v20581_v41 = vld [vmem:[#allocation24_spill] sm:$0xff]  ;;  %v6383_v22 = vsel %vm1433_vm6, %v6319_v8, %v17487_v13  ;;  %v6036_v56 = vrot.slane %v5640_v44, 1  ;;  %v20582_v60 = vld [vmem:[#allocation85_spill] sm:$0xff] }
 0x5fe   : >> { %v8958_v30 = vadd.f32 %v8957_v36, %v17576_v16  ;;  %v8345_v17 = vpop.f32.mrf.mxu0  ;;  %v4791_v35 = vsel %vm1498_vm7, %v4727_v31, %v20579_v43  ;;  %v6255_v42 = vpop.permute.xlu1 %6254  ;;  %v20583_v18 = vshll.u32 %v20582_v60, 16  ;;  %v7881_v13 = vsel %vm1231_vm3, %v7878_v34, %v7880_v14  ;;  %v20584_v31 = vld [vmem:[#allocation118_spill] sm:$0xff]  ;;  %v9969_v60 = vld [vmem:[%s11183_s14 + $0x140] sm:$0x3] }
 0x5ff   : >> { %v8483_v4 = vadd.f32 %v8345_v17, %v6803_v29  ;;  %v4855_v16 = vsel %vm1563_vm9, %v4791_v35, %v20581_v41  ;;  %v6119_v46 = vpop.permute.xlu0 %6118  ;;  %v7513_v36 = vsel %vm861_vm1, %v7510_v28, %v7512_v25  ;;  %v7715_v1 = vsel %vm998_vm2, %v17565_v49, %v17663_v32  ;;  %v10886_v41 = vld [vmem:[%s11183_s14 + $0x114] sm:$0xff] }
 0x600   : >> { %v6037_v50 = vrot.slane %v20583_v18, 2  ;;  %v6447_v58 = vsel %vm1498_vm7, %v6383_v22, %v6119_v46  ;;  %9909 = vmatmul.msk.bf16.gmra.mxu2 %vm3010_vm8, %v4855_v16  ;;  %v3428_v17 = vadd.f32 %v16849_v23, %v20584_v31  ;;  %v7999_v16 = vsel %vm1368_vm5, %v10886_v41, %v17525_v52 }
 0x601   : >> { %v8550_v63 = vadd.f32 %v16802_v53, %v8483_v4  ;;  %v6511_v29 = vsel %vm1563_vm9, %v6447_v58, %v6255_v42  ;;  %v17706_v4 = vld [vmem:[%s11183_s14 + $0x15c] sm:$0xff]  ;;  %v7314_v41 = vor.u32 %v7312_v3, %v17622_v19 }
 0x602   : >> { %10137 = vmatmul.msk.bf16.gmra.mxu3 %vm3010_vm8, %v6511_v29  ;;  %v17703_v28 = vor.u32 %v6037_v50, %v6036_v56  ;;  %v7320_v58 = vshrl.u32 %v17706_v4, 16  ;;  %v7514_v19 = vrot.slane %v17706_v4, 1 }
 0x603   : >> { %v8614_v43 = vpack.c.bf16 %v8550_v63, %v8550_v63  ;;  %v8761_v35 = vsel %vm8731_vm11, %v8550_v63, 0.0  ;;  %v8881_v34 = vmul.f32 %v8550_v63, %v8550_v63  ;;  %v5043_v15 = vpop.f32.mrf.mxu2  ;;  %7946 = vrot.lane.b32.xlu2 %v7881_v13, %s11039_s30  ;;  %v7316_v63 = vshll.u32 %v17706_v4, 16 }
 0x604   : >> { %v8762_v54 = vadd.f32 %v8761_v35, %v8760_v48  ;;  %v6668_v8 = vpop.f32.mrf.mxu3  ;;  %v17712_v49 = vadd.f32 %v5043_v15, %v3428_v17  ;;  %7810 = vrot.lane.b32.xlu1 %v7715_v1, %s11038_s27  ;;  %v6202_v48 = vrot.slane %v17647_v6, 2  ;;  %v7716_v1 = vrot.slane %v7320_v58, 1  ;;  %v10887_v17 = vld [vmem:[%s11183_s14 + $0x144] sm:$0xff] }
 0x605   : >> { %8682 = vst.msk [vmem:[%s16833_s13 + $0x3c] sm:$0xf] %vm8666_vm10, %v8614_v43  ;;  %v8959_v23 = vsel %vm8731_vm11, %v8881_v34, 0.0  ;;  %v6804_v42 = vadd.f32 %v6668_v8, %v16623_v61  ;;  %7578 = vrot.lane.b32.xlu0 %v7513_v36, %s11037_s24  ;;  %v17721_v46 = vpop.permute.xlu2 %6122  ;;  %v5835_v61 = vsel %vm861_vm1, %v5832_v55, %v5834_v5  ;;  %v5421_v55 = vunpack.c.l.b16 %v9969_v60  ;;  %v20585_v43 = vld [vmem:[#allocation172_spill] sm:$0xff]  ;;  %v20586_v34 = vld [vmem:[#allocation55_spill] sm:$0xff] }
 0x606   : >> { %v8960_v22 = vadd.f32 %v8959_v23, %v8958_v30  ;;  %v7799_v56 = vpop.permute.xlu1 %7798  ;;  %v6039_v30 = vsel %vm998_vm2, %v17605_v9, %v17703_v28  ;;  %v6203_v29 = vsel %vm1231_vm3, %v6200_v37, %v6202_v48  ;;  %v7717_v31 = vrot.slane %v7316_v63, 2  ;;  %v20587_v37 = vld [vmem:[#allocation227_spill] sm:$0xff] }
 0x607   : >> { %v8348_v18 = vpop.f32.mrf.mxu0  ;;  %v7567_v50 = vpop.permute.xlu0 %7566  ;;  %v4665_v35 = vsel %vm1368_vm5, %v10887_v17, %v20585_v43  ;;  %v3430_v9 = vadd.f32 %v16920_v10, %v20586_v34  ;;  %v20591_v17 = vld [vmem:[#allocation113_spill] sm:$0xff] }
 0x608   : >> { %v8484_v13 = vadd.f32 %v8348_v18, %v6804_v42  ;;  %v8063_v52 = vsel %vm1433_vm6, %v7999_v16, %v7567_v50  ;;  %v4729_v8 = vsel %vm1433_vm6, %v4665_v35, %v20587_v37  ;;  %v17757_v16 = vrot.slane %v7316_v63, 1 }
 0x609   : >> { %v8127_v36 = vsel %vm1498_vm7, %v8063_v52, %v7799_v56  ;;  %v17760_v10 = vor.u32 %v7717_v31, %v7716_v1  ;;  %v17769_v63 = vpack.c.b16 %v5421_v55, %v5421_v55  ;;  %v20589_v52 = vld [vmem:[#allocation101_spill] sm:$0xff]  ;;  %v20590_v31 = vld [vmem:[#allocation75_spill] sm:$0xff] }
 0x60a   : >> { %v8551_v15 = vadd.f32 %v16802_v53, %v8484_v13  ;;  %v8191_v20 = vsel %vm1563_vm9, %v8127_v36, %v17574_v24  ;;  %v20588_v13 = vld [vmem:[#allocation226_spill] sm:$0xff] }
 0x60b   : >> { %10377 = vmatmul.msk.bf16.gmra.mxu0 %vm3010_vm8, %v8191_v20  ;;  %v5045_v23 = vpop.f32.mrf.mxu2  ;;  %6268 = vrot.lane.b32.xlu2 %v6203_v29, %s11039_s30  ;;  %v4793_v29 = vsel %vm1498_vm7, %v4729_v8, %v20589_v52  ;;  %v7719_v20 = vsel %vm998_vm2, %v17663_v32, %v17760_v10  ;;  %v7319_v8 = vsel %vm508_vm0, %v7314_v41, %v17757_v16 }
 0x60c   : >> { %v6670_v42 = vpop.f32.mrf.mxu3  ;;  %v8615_v56 = vpack.c.bf16 %v8551_v15, %v8551_v15  ;;  %v8763_v24 = vsel %vm8731_vm11, %v8551_v15, 0.0  ;;  %v8882_v60 = vmul.f32 %v8551_v15, %v8551_v15  ;;  %v17763_v18 = vadd.f32 %v5045_v23, %v3430_v9  ;;  %6132 = vrot.lane.b32.xlu1 %v6039_v30, %s11038_s27  ;;  %v10888_v30 = vld [vmem:[%s11183_s14 + $0xfc] sm:$0xff] }
 0x60d   : >> { %5900 = vrot.lane.b32.xlu0 %v5835_v61, %s11037_s24  ;;  %v8764_v50 = vadd.f32 %v8763_v24, %v8762_v54  ;;  %v6805_v3 = vadd.f32 %v6670_v42, %v20588_v13  ;;  %v17776_v1 = vpop.permute.xlu2 %7570  ;;  %v4857_v54 = vsel %vm1563_vm9, %v4793_v29, %v20590_v31  ;;  %v6321_v43 = vsel %vm1368_vm5, %v10888_v30, %v20591_v17  ;;  %v10209_v42 = vld [vmem:[%s11183_s14 + $0x164] sm:$0x3] }
 0x60e   : >> { %8683 = vst.msk [vmem:[%s16833_s13 + $0x40] sm:$0xf] %vm8666_vm10, %v8615_v56  ;;  %v8961_v36 = vsel %vm8731_vm11, %v8882_v60, 0.0  ;;  %v6121_v61 = vpop.permute.xlu1 %6120  ;;  %v5644_v23 = vshll.u32 %v17769_v63, 16  ;;  %v6040_v24 = vshrl.u32 %v17769_v63, 16  ;;  %v7882_v29 = vrot.slane %v17706_v4, 2 }
 0x60f   : >> { %v8962_v55 = vadd.f32 %v8961_v36, %v8960_v22  ;;  %v8350_v35 = vpop.f32.mrf.mxu0  ;;  %v5889_v34 = vpop.permute.xlu0 %5888  ;;  %v7515_v22 = vsel %vm861_vm1, %v7512_v25, %v7514_v19  ;;  %v7101_v25 = vunpack.c.l.b16 %v10209_v42 }
 0x610   : >> { %v8485_v9 = vadd.f32 %v8350_v35, %v6805_v3  ;;  %v6385_v15 = vsel %vm1433_vm6, %v6321_v43, %v5889_v34  ;;  %9910 = vmatmul.msk.bf16.gmra.mxu2 %vm3010_vm8, %v4857_v54  ;;  %v20593_v54 = vld [vmem:[#allocation225_spill] sm:$0xff] }
 0x611   : >> { %v6449_v37 = vsel %vm1498_vm7, %v6385_v15, %v6121_v61  ;;  %v5646_v61 = vrot.slane %v5644_v23, 1  ;;  %v6042_v15 = vrot.slane %v6040_v24, 1 }
 0x612   : >> { %v8552_v56 = vadd.f32 %v16802_v53, %v8485_v9  ;;  %v6513_v32 = vsel %vm1563_vm9, %v6449_v37, %v17620_v40  ;;  %v20592_v40 = vld [vmem:[#allocation104_spill] sm:$0xff]  ;;  %v17818_v37 = vpack.c.b16 %v7101_v25, %v7101_v25 }
 0x613   : >> { %10138 = vmatmul.msk.bf16.gmra.mxu3 %vm3010_vm8, %v6513_v32  ;;  %7812 = vrot.lane.b32.xlu2 %v7719_v20, %s11038_s27  ;;  %v5642_v36 = vor.u32 %v5640_v44, %v20592_v40  ;;  %v6043_v20 = vrot.slane %v5644_v23, 2  ;;  %v10890_v32 = vld [vmem:[%s11183_s14 + $0x14c] sm:$0xff] }
 0x614   : >> { %v8616_v41 = vpack.c.bf16 %v8552_v56, %v8552_v56  ;;  %v8765_v60 = vsel %vm8731_vm11, %v8552_v56, 0.0  ;;  %v8883_v13 = vmul.f32 %v8552_v56, %v8552_v56  ;;  %7580 = vrot.lane.b32.xlu1 %v7515_v22, %s11037_s24  ;;  %v20594_v23 = vld [vmem:[#allocation177_spill] sm:$0xff]  ;;  %v7720_v25 = vshrl.u32 %v17818_v37, 16 }
 0x615   : >> { %7444 = vrot.lane.b32.xlu0 %v7319_v8, %s11036_s23  ;;  %v8766_v3 = vadd.f32 %v8765_v60, %v8764_v50  ;;  %v6673_v52 = vpop.f32.mrf.mxu3  ;;  %v17815_v17 = vpop.permute.xlu2 %5892  ;;  %v5836_v50 = vrot.slane %v17769_v63, 1  ;;  %v10889_v8 = vld [vmem:[%s11183_s14 + $0x120] sm:$0xff]  ;;  %v5647_v56 = vsel %vm508_vm0, %v5642_v36, %v5646_v61  ;;  %v4667_v24 = vsel %vm1368_vm5, %v10890_v32, %v20594_v23 }
 0x616   : >> { %8684 = vst.msk [vmem:[%s16833_s13 + $0x44] sm:$0xf] %vm8666_vm10, %v8616_v41  ;;  %v8963_v31 = vsel %vm8731_vm11, %v8883_v13, 0.0  ;;  %v6806_v30 = vadd.f32 %v6673_v52, %v20593_v54  ;;  %v7569_v43 = vpop.permute.xlu1 %7568  ;;  %v20595_v41 = vld [vmem:[#allocation210_spill] sm:$0xff]  ;;  %v6044_v57 = vor.u32 %v6043_v20, %v6042_v15  ;;  %v7322_v20 = vor.u32 %v7320_v58, %v17757_v16 }
 0x617   : >> { %v8964_v35 = vadd.f32 %v8963_v31, %v8962_v55  ;;  %v7433_v34 = vpop.permute.xlu0 %7432  ;;  %v5837_v44 = vsel %vm861_vm1, %v5834_v5, %v5836_v50  ;;  %v7883_v55 = vsel %vm1231_vm3, %v7880_v14, %v7882_v29  ;;  %v4731_v60 = vsel %vm1433_vm6, %v4667_v24, %v20595_v41  ;;  %v20596_v54 = vld [vmem:[#allocation82_spill] sm:$0xff]  ;;  %v20597_v50 = vld [vmem:[#allocation192_spill] sm:$0xff] }
 0x618   : >> { %v8353_v9 = vpop.f32.mrf.mxu0  ;;  %v8001_v22 = vsel %vm1368_vm5, %v10889_v8, %v7433_v34  ;;  %v7324_v14 = vshll.u32 %v17818_v37, 16  ;;  %v6204_v31 = vrot.slane %v17769_v63, 2  ;;  %v7722_v16 = vrot.slane %v7720_v25, 1 }
 0x619   : >> { %v8486_v42 = vadd.f32 %v8353_v9, %v6806_v30  ;;  %v8065_v13 = vsel %vm1433_vm6, %v8001_v22, %v7569_v43  ;;  %v4795_v30 = vsel %vm1498_vm7, %v4731_v60, %v20596_v54  ;;  %v6045_v41 = vsel %vm998_vm2, %v17703_v28, %v6044_v57 }
 0x61a   : >> { %v7723_v23 = vrot.slane %v7324_v14, 2  ;;  %v7516_v6 = vrot.slane %v17818_v37, 1 }
 0x61b   : >> { %v8553_v5 = vadd.f32 %v16802_v53, %v8486_v42  ;;  %5902 = vrot.lane.b32.xlu2 %v5837_v44, %s11037_s24  ;;  %v20598_v44 = vld [vmem:[#allocation56_spill] sm:$0xff] }
 0x61c   : >> { %5766 = vrot.lane.b32.xlu1 %v5647_v56, %s11036_s23  ;;  %v4859_v8 = vsel %vm1563_vm9, %v4795_v30, %v20598_v44  ;;  %v17861_v42 = vld [vmem:[%s11183_s14 + $0x144] sm:$0xff] }
 0x61d   : >> { %7948 = vrot.lane.b32.xlu0 %v7883_v55, %s11039_s30  ;;  %v8617_v52 = vpack.c.bf16 %v8553_v5, %v8553_v5  ;;  %v8767_v40 = vsel %vm8731_vm11, %v8553_v5, 0.0  ;;  %v8884_v36 = vmul.f32 %v8553_v5, %v8553_v5  ;;  %v6675_v61 = vpop.f32.mrf.mxu3  ;;  %v17848_v9 = vpop.permute.xlu2 %7436  ;;  %v7326_v55 = vrot.slane %v7324_v14, 1  ;;  %v20599_v5 = vld [vmem:[#allocation153_spill] sm:$0xff] }
 0x61e   : >> { %v8768_v43 = vadd.f32 %v8767_v40, %v8766_v3  ;;  %v6807_v34 = vadd.f32 %v6675_v61, %v20597_v50  ;;  %v5891_v15 = vpop.permute.xlu1 %5890  ;;  %v8129_v3 = vsel %vm1498_vm7, %v8065_v13, %v17670_v45  ;;  %v6205_v45 = vsel %vm1231_vm3, %v6202_v48, %v6204_v31  ;;  %v17877_v14 = vld [vmem:[%s11183_s14 + $0x14c] sm:$0xff] }
 0x61f   : >> { %8685 = vst.msk [vmem:[%s16833_s13 + $0x48] sm:$0xf] %vm8666_vm10, %v8617_v52  ;;  %v8965_v63 = vsel %vm8731_vm11, %v8884_v36, 0.0  ;;  %v7937_v22 = vpop.permute.xlu0 %7936  ;;  %v7327_v60 = vsel %vm508_vm0, %v7322_v20, %v7326_v55  ;;  %v5651_v25 = vshll.u32 %v17861_v42, 16  ;;  %v7724_v48 = vor.u32 %v7723_v23, %v7722_v16  ;;  %v10892_v16 = vld [vmem:[%s11183_s14 + $0x154] sm:$0xff]  ;;  %v20600_v23 = vld [vmem:[#allocation217_spill] sm:$0xff] }
 0x620   : >> { %v8966_v56 = vadd.f32 %v8965_v63, %v8964_v35  ;;  %v8193_v32 = vsel %vm1563_vm9, %v8129_v3, %v7937_v22  ;;  %v8355_v58 = vpop.f32.mrf.mxu0  ;;  %9911 = vmatmul.msk.bf16.gmra.mxu2 %vm3010_vm8, %v4859_v8  ;;  %v10891_v35 = vld [vmem:[%s11183_s14 + $0x104] sm:$0xff]  ;;  %v7884_v61 = vrot.slane %v17818_v37, 2  ;;  %v5649_v30 = vshrl.u32 %v17861_v42, 16 }
 0x621   : >> { %v8487_v24 = vadd.f32 %v8355_v58, %v6807_v34  ;;  %10378 = vmatmul.msk.bf16.gmra.mxu0 %vm3010_vm8, %v8193_v32  ;;  %v6323_v13 = vsel %vm1368_vm5, %v10891_v35, %v20599_v5  ;;  %v5653_v44 = vrot.slane %v5651_v25, 1  ;;  %v5656_v37 = vshll.u32 %v17877_v14, 16  ;;  %v17902_v3 = vld [vmem:[%s11183_s14 + $0x168] sm:$0xff] }
 0x622   : >> { %v6387_v28 = vsel %vm1433_vm6, %v6323_v13, %v5891_v15  ;;  %v7885_v22 = vsel %vm1231_vm3, %v7882_v29, %v7884_v61  ;;  %v5660_v55 = vshrl.u32 %v17877_v14, 16  ;;  %v10893_v29 = vld [vmem:[%s11183_s14 + $0x128] sm:$0xff]  ;;  %v6046_v4 = vrot.slane %v5649_v30, 1 }
 0x623   : >> { %v8554_v52 = vadd.f32 %v16802_v53, %v8487_v24  ;;  %7446 = vrot.lane.b32.xlu2 %v7327_v60, %s11036_s23  ;;  %v6451_v15 = vsel %vm1498_vm7, %v6387_v28, %v17721_v46  ;;  %v7517_v46 = vsel %vm861_vm1, %v7514_v19, %v7516_v6  ;;  %v6050_v58 = vrot.slane %v5656_v37, 2  ;;  %v20601_v5 = vld [vmem:[#allocation164_spill] sm:$0xff] }
 0x624   : >> { %6270 = vrot.lane.b32.xlu1 %v6205_v45, %s11039_s30  ;;  %v6049_v32 = vrot.slane %v5660_v55, 1  ;;  %v4669_v24 = vsel %vm1368_vm5, %v10892_v16, %v20600_v23  ;;  %v5654_v45 = vor.u32 %v5653_v44, %v5649_v30  ;;  %v7331_v19 = vshll.u32 %v17902_v3, 16 }
 0x625   : >> { %6134 = vrot.lane.b32.xlu0 %v6045_v41, %s11038_s27  ;;  %v8618_v57 = vpack.c.bf16 %v8554_v52, %v8554_v52  ;;  %v8769_v40 = vsel %vm8731_vm11, %v8554_v52, 0.0  ;;  %v8885_v36 = vmul.f32 %v8554_v52, %v8554_v52  ;;  %v17889_v54 = vpop.permute.xlu2 %7940  ;;  %v6047_v35 = vrot.slane %v5651_v25, 2  ;;  %v20602_v52 = vld [vmem:[#allocation155_spill] sm:$0xff]  ;;  %v20604_v25 = vld [vmem:[#allocation14_spill] sm:$0xff] }
 0x626   : >> { %v17887_v31 = vadd.f32 %v8769_v40, %v8768_v43  ;;  %v7435_v34 = vpop.permute.xlu1 %7434  ;;  %v6678_v8 = vpop.f32.mrf.mxu3  ;;  %v17927_v60 = vor.u32 %v6050_v58, %v6049_v32  ;;  %v4733_v13 = vsel %vm1433_vm6, %v4669_v24, %v20601_v5  ;;  %v5838_v6 = vrot.slane %v17861_v42, 1  ;;  %v20603_v40 = vld [vmem:[#allocation215_spill] sm:$0xff] }
 0x627   : >> { %8686 = vst.msk [vmem:[%s16833_s13 + $0x4c] sm:$0xf] %vm8666_vm10, %v8618_v57  ;;  %v8967_v50 = vsel %vm8731_vm11, %v8885_v36, 0.0  ;;  %v6259_v20 = vpop.permute.xlu0 %6258  ;;  %v8003_v41 = vsel %vm1368_vm5, %v10893_v29, %v7435_v34  ;;  %v6808_v28 = vadd.f32 %v6678_v8, %v20602_v52  ;;  %v17935_v57 = vld [vmem:[%s11183_s14 + $0x170] sm:$0xff]  ;;  %v4797_v36 = vsel %vm1498_vm7, %v4733_v13, %v20603_v40 }
 0x628   : >> { %v17898_v43 = vadd.f32 %v8967_v50, %v8966_v56  ;;  %v6515_v63 = vsel %vm1563_vm9, %v6451_v15, %v6259_v20  ;;  %v7725_v56 = vsel %vm998_vm2, %v17760_v10, %v7724_v48  ;;  %v17924_v10 = vrot.slane %v5656_v37, 1 }
 0x629   : >> { %10139 = vmatmul.msk.bf16.gmra.mxu3 %vm3010_vm8, %v6515_v63  ;;  %v5839_v48 = vrot.slane %v17877_v14, 1  ;;  %v8067_v30 = vsel %vm1433_vm6, %v8003_v41, %v17776_v1  ;;  %v6048_v50 = vor.u32 %v6047_v35, %v6046_v4  ;;  %v4861_v34 = vsel %vm1563_vm9, %v4797_v36, %v20604_v25  ;;  %v20605_v36 = vld [vmem:[#allocation212_spill] sm:$0xff] }
 0x62a   : >> { %v5659_v8 = vsel %vm508_vm0, %v5654_v45, %v17924_v10  ;;  %v7329_v63 = vshrl.u32 %v17902_v3, 16  ;;  %v7336_v58 = vshll.u32 %v17935_v57, 16  ;;  %v6206_v24 = vrot.slane %v17861_v42, 2 }
 0x62b   : >> { %7950 = vrot.lane.b32.xlu2 %v7885_v22, %s11039_s30  ;;  %v7333_v22 = vrot.slane %v7331_v19, 1  ;;  %v6052_v1 = vsel %vm998_vm2, %v6048_v50, %v17927_v60  ;;  %v5840_v32 = vsel %vm861_vm1, %v5838_v6, %v5839_v48  ;;  %v6207_v4 = vrot.slane %v17877_v14, 2  ;;  %v20606_v50 = vld [vmem:[#allocation127_spill] sm:$0xff] }
 0x62c   : >> { %7814 = vrot.lane.b32.xlu1 %v7725_v56, %s11038_s27  ;;  %v7340_v42 = vshrl.u32 %v17935_v57, 16  ;;  %v7519_v13 = vrot.slane %v17935_v57, 1  ;;  %v17972_v6 = vrot.slane %v7336_v58, 1  ;;  %v7518_v40 = vrot.slane %v17902_v3, 1 }
 0x62d   : >> { %7582 = vrot.lane.b32.xlu0 %v7517_v46, %s11037_s24  ;;  %v17943_v20 = vpop.permute.xlu2 %6262  ;;  %v7334_v5 = vor.u32 %v7333_v22, %v7329_v63 }
 0x62e   : >> { %v8358_v61 = vpop.f32.mrf.mxu0  ;;  %v7939_v44 = vpop.permute.xlu1 %7938  ;;  %v7342_v14 = vor.u32 %v7340_v42, %v17972_v6 }
 0x62f   : >> { %v8488_v15 = vadd.f32 %v8358_v61, %v6808_v28  ;;  %v7803_v37 = vpop.permute.xlu0 %7802  ;;  %v6680_v16 = vpop.f32.mrf.mxu3 }
 0x630   : >> { %9912 = vmatmul.msk.bf16.gmra.mxu2 %vm3010_vm8, %v4861_v34  ;;  %v8131_v56 = vsel %vm1498_vm7, %v8067_v30, %v7803_v37  ;;  %v6809_v52 = vadd.f32 %v6680_v16, %v16898_v21  ;;  %v10895_v30 = vld [vmem:[%s11183_s14 + $0x10c] sm:$0xff]  ;;  %v7729_v16 = vrot.slane %v7340_v42, 1 }
 0x631   : >> { %v8555_v46 = vadd.f32 %v16802_v53, %v8488_v15  ;;  %v8195_v23 = vsel %vm1563_vm9, %v8131_v56, %v7939_v44  ;;  %v6325_v25 = vsel %vm1368_vm5, %v10895_v30, %v20606_v50  ;;  %v20607_v15 = vld [vmem:[#allocation150_spill] sm:$0xff] }
 0x632   : >> { %10379 = vmatmul.msk.bf16.gmra.mxu0 %vm3010_vm8, %v8195_v23  ;;  %v6389_v37 = vsel %vm1433_vm6, %v6325_v25, %v17815_v17  ;;  %v7730_v23 = vrot.slane %v7336_v58, 2 }
 0x633   : >> { %v8619_v29 = vpack.c.bf16 %v8555_v46, %v8555_v46  ;;  %v8771_v41 = vsel %vm8731_vm11, %v8555_v46, 0.0  ;;  %v8886_v45 = vmul.f32 %v8555_v46, %v8555_v46  ;;  %6136 = vrot.lane.b32.xlu2 %v6052_v1, %s11038_s27  ;;  %v7726_v46 = vrot.slane %v7329_v63, 1 }
 0x634   : >> { %v8772_v35 = vadd.f32 %v8771_v41, %v17887_v31  ;;  %5904 = vrot.lane.b32.xlu1 %v5840_v32, %s11037_s24  ;;  %v10894_v31 = vld [vmem:[%s11183_s14 + $0x15c] sm:$0xff]  ;;  %v7727_v32 = vrot.slane %v7331_v19, 2  ;;  %v6208_v63 = vsel %vm1231_vm3, %v6206_v24, %v6207_v4  ;;  %v7339_v19 = vsel %vm508_vm0, %v7334_v5, %v17972_v6 }
 0x635   : >> { %5768 = vrot.lane.b32.xlu0 %v5659_v8, %s11036_s23  ;;  %8687 = vst.msk [vmem:[%s16833_s13 + $0x50] sm:$0xf] %vm8666_vm10, %v8619_v29  ;;  %v8969_v28 = vsel %vm8731_vm11, %v8886_v45, 0.0  ;;  %v4671_v61 = vsel %vm1368_vm5, %v10894_v31, %v20605_v36  ;;  %v17986_v22 = vpop.permute.xlu2 %7806  ;;  %v7520_v29 = vsel %vm861_vm1, %v7518_v40, %v7519_v13  ;;  %v20608_v45 = vld [vmem:[#allocation81_spill] sm:$0xff]  ;;  %v18014_v50 = vor.u32 %v7730_v23, %v7729_v16 }
 0x636   : >> { %v8970_v34 = vadd.f32 %v8969_v28, %v17898_v43  ;;  %v8360_v21 = vpop.f32.mrf.mxu0  ;;  %v4735_v44 = vsel %vm1433_vm6, %v4671_v61, %v20607_v15  ;;  %v6261_v1 = vpop.permute.xlu1 %6260  ;;  %v17991_v43 = vld [vmem:[%s11183_s14 + $0x154] sm:$0xff]  ;;  %v7728_v30 = vor.u32 %v7727_v32, %v7726_v46  ;;  %v7886_v15 = vrot.slane %v17902_v3, 2  ;;  %v20609_v46 = vld [vmem:[#allocation88_spill] sm:$0xff] }
 0x637   : >> { %v8489_v8 = vadd.f32 %v8360_v21, %v6809_v52  ;;  %v6125_v56 = vpop.permute.xlu0 %6124  ;;  %v4799_v58 = vsel %vm1498_vm7, %v4735_v44, %v20608_v45  ;;  %v10896_v28 = vld [vmem:[%s11183_s14 + $0x130] sm:$0xff]  ;;  %v5664_v25 = vshll.u32 %v17991_v43, 16 }
 0x638   : >> { %v6453_v41 = vsel %vm1498_vm7, %v6389_v37, %v6125_v56  ;;  %v8005_v40 = vsel %vm1368_vm5, %v10896_v28, %v17848_v9  ;;  %v7887_v37 = vrot.slane %v17935_v57, 2  ;;  %v4863_v56 = vsel %vm1563_vm9, %v4799_v58, %v20609_v46  ;;  %v18053_v28 = vld [vmem:[%s11183_s14 + $0x178] sm:$0xff] }
 0x639   : >> { %v8556_v17 = vadd.f32 %v16802_v53, %v8489_v8  ;;  %v6517_v52 = vsel %vm1563_vm9, %v6453_v41, %v6261_v1  ;;  %v5668_v8 = vshrl.u32 %v17991_v43, 16  ;;  %v18027_v1 = vrot.slane %v5664_v25, 1 }
 0x63a   : >> { %10140 = vmatmul.msk.bf16.gmra.mxu3 %vm3010_vm8, %v6517_v52  ;;  %v5841_v52 = vrot.slane %v17991_v43, 1 }
 0x63b   : >> { %v8620_v31 = vpack.c.bf16 %v8556_v17, %v8556_v17  ;;  %v8773_v36 = vsel %vm8731_vm11, %v8556_v17, 0.0  ;;  %v8887_v61 = vmul.f32 %v8556_v17, %v8556_v17  ;;  %7584 = vrot.lane.b32.xlu2 %v7520_v29, %s11037_s24  ;;  %v7888_v17 = vsel %vm1231_vm3, %v7886_v15, %v7887_v37 }
 0x63c   : >> { %v8774_v24 = vadd.f32 %v8773_v36, %v8772_v35  ;;  %v6683_v5 = vpop.f32.mrf.mxu3  ;;  %7448 = vrot.lane.b32.xlu1 %v7339_v19, %s11036_s23  ;;  %v5662_v35 = vor.u32 %v5660_v55, %v17924_v10  ;;  %v6053_v41 = vrot.slane %v5668_v8, 1 }
 0x63d   : >> { %6272 = vrot.lane.b32.xlu0 %v6208_v63, %s11039_s30  ;;  %8688 = vst.msk [vmem:[%s16833_s13 + $0x54] sm:$0xf] %vm8666_vm10, %v8620_v31  ;;  %v8971_v9 = vsel %vm8731_vm11, %v8887_v61, 0.0  ;;  %v6810_v21 = vadd.f32 %v6683_v5, %v16953_v47  ;;  %v18031_v32 = vpop.permute.xlu2 %6128  ;;  %v6054_v63 = vrot.slane %v5664_v25, 2  ;;  %v20610_v5 = vld [vmem:[#allocation37_spill] sm:$0xff] }
 0x63e   : >> { %v8972_v44 = vadd.f32 %v8971_v9, %v8970_v34  ;;  %v7805_v16 = vpop.permute.xlu1 %7804  ;;  %v5667_v3 = vsel %vm508_vm0, %v5662_v35, %v18027_v1  ;;  %v7732_v34 = vsel %vm998_vm2, %v7728_v30, %v18014_v50  ;;  %v10897_v9 = vld [vmem:[%s11183_s14 + $0x114] sm:$0xff] }
 0x63f   : >> { %v8363_v47 = vpop.f32.mrf.mxu0  ;;  %v7573_v23 = vpop.permute.xlu0 %7572  ;;  %v18059_v25 = vor.u32 %v6054_v63, %v6053_v41 }
 0x640   : >> { %9913 = vmatmul.msk.bf16.gmra.mxu2 %vm3010_vm8, %v4863_v56  ;;  %v8490_v55 = vadd.f32 %v8363_v47, %v6810_v21  ;;  %v8069_v10 = vsel %vm1433_vm6, %v8005_v40, %v7573_v23  ;;  %v6209_v40 = vrot.slane %v17991_v43, 2  ;;  %v20611_v21 = vld [vmem:[#allocation93_spill] sm:$0xff] }
 0x641   : >> { %v8133_v29 = vsel %vm1498_vm7, %v8069_v10, %v7805_v16  ;;  %v6327_v15 = vsel %vm1368_vm5, %v10897_v9, %v20611_v21  ;;  %v18106_v9 = vld [vmem:[%s11183_s14 + $0x15c] sm:$0xff] }
 0x642   : >> { %v8557_v19 = vadd.f32 %v16802_v53, %v8490_v55  ;;  %v8197_v45 = vsel %vm1563_vm9, %v8133_v29, %v17889_v54  ;;  %v7348_v55 = vshrl.u32 %v18053_v28, 16 }
 0x643   : >> { %5770 = vrot.lane.b32.xlu2 %v5667_v3, %s11036_s23  ;;  %10380 = vmatmul.msk.bf16.gmra.mxu0 %vm3010_vm8, %v8197_v45  ;;  %v7344_v3 = vshll.u32 %v18053_v28, 16 }
 0x644   : >> { %v6685_v58 = vpop.f32.mrf.mxu3  ;;  %v8621_v31 = vpack.c.bf16 %v8557_v19, %v8557_v19  ;;  %v8775_v36 = vsel %vm8731_vm11, %v8557_v19, 0.0  ;;  %v8888_v61 = vmul.f32 %v8557_v19, %v8557_v19  ;;  %7952 = vrot.lane.b32.xlu1 %v7888_v17, %s11039_s30  ;;  %v6056_v17 = vsel %vm998_vm2, %v17927_v60, %v18059_v25 }
 0x645   : >> { %7816 = vrot.lane.b32.xlu0 %v7732_v34, %s11038_s27  ;;  %v6811_v54 = vadd.f32 %v6685_v58, %v20610_v5  ;;  %v8776_v30 = vadd.f32 %v8775_v36, %v8774_v24  ;;  %v18067_v46 = vpop.permute.xlu2 %7576  ;;  %v6210_v24 = vsel %vm1231_vm3, %v6207_v4, %v6209_v40  ;;  %v7733_v4 = vrot.slane %v7348_v55, 1 }
 0x646   : >> { %8689 = vst.msk [vmem:[%s16833_s13 + $0x58] sm:$0xf] %vm8666_vm10, %v8621_v31  ;;  %v8973_v35 = vsel %vm8731_vm11, %v8888_v61, 0.0  ;;  %v6127_v56 = vpop.permute.xlu1 %6126  ;;  %v7734_v41 = vrot.slane %v7344_v3, 2  ;;  %v20612_v61 = vld [vmem:[#allocation146_spill] sm:$0xff] }
 0x647   : >> { %v8974_v16 = vadd.f32 %v8973_v35, %v8972_v44  ;;  %v8365_v47 = vpop.f32.mrf.mxu0  ;;  %v5895_v23 = vpop.permute.xlu0 %5894  ;;  %v5842_v44 = vsel %vm861_vm1, %v5839_v48, %v5841_v52 }
 0x648   : >> { %v8491_v10 = vadd.f32 %v8365_v47, %v6811_v54  ;;  %v6391_v34 = vsel %vm1433_vm6, %v6327_v15, %v5895_v23  ;;  %v18097_v60 = vor.u32 %v7734_v41, %v7733_v4  ;;  %v7521_v54 = vrot.slane %v18053_v28, 1 }
 0x649   : >> { %v6455_v29 = vsel %vm1498_vm7, %v6391_v34, %v6127_v56 }
 0x64a   : >> { %v8558_v63 = vadd.f32 %v16802_v53, %v8491_v10  ;;  %v6519_v19 = vsel %vm1563_vm9, %v6455_v29, %v17943_v20  ;;  %v18101_v20 = vrot.slane %v7344_v3, 1  ;;  %v10898_v3 = vld [vmem:[%s11183_s14 + $0x138] sm:$0xff]  ;;  %v7522_v10 = vsel %vm861_vm1, %v7519_v13, %v7521_v54 }
 0x64b   : >> { %6274 = vrot.lane.b32.xlu2 %v6210_v24, %s11039_s30  ;;  %10141 = vmatmul.msk.bf16.gmra.mxu3 %vm3010_vm8, %v6519_v19  ;;  %v5843_v29 = vrot.slane %v18106_v9, 1 }
 0x64c   : >> { %v8622_v48 = vpack.c.bf16 %v8558_v63, %v8558_v63  ;;  %v8777_v45 = vsel %vm8731_vm11, %v8558_v63, 0.0  ;;  %v8889_v58 = vmul.f32 %v8558_v63, %v8558_v63  ;;  %6138 = vrot.lane.b32.xlu1 %v6056_v17, %s11038_s27  ;;  %v7347_v23 = vsel %vm508_vm0, %v7342_v14, %v18101_v20 }
 0x64d   : >> { %5906 = vrot.lane.b32.xlu0 %v5842_v44, %s11037_s24  ;;  %v6688_v31 = vpop.f32.mrf.mxu3  ;;  %v8778_v36 = vadd.f32 %v8777_v45, %v8776_v30  ;;  %v18111_v6 = vpop.permute.xlu2 %5898  ;;  %v7736_v30 = vsel %vm998_vm2, %v18014_v50, %v18097_v60  ;;  %v5676_v50 = vshrl.u32 %v18106_v9, 16  ;;  %v7889_v44 = vrot.slane %v18053_v28, 2 }
 0x64e   : >> { %v6812_v5 = vadd.f32 %v6688_v31, %v20612_v61  ;;  %8690 = vst.msk [vmem:[%s16833_s13 + $0x5c] sm:$0xf] %vm8666_vm10, %v8622_v48  ;;  %v8975_v42 = vsel %vm8731_vm11, %v8889_v58, 0.0  ;;  %v7575_v21 = vpop.permute.xlu1 %7574  ;;  %v5670_v48 = vor.u32 %v5668_v8, %v18027_v1  ;;  %v18151_v1 = vld [vmem:[%s11183_s14 + $0x180] sm:$0xff] }
 0x64f   : >> { %v8976_v15 = vadd.f32 %v8975_v42, %v8974_v16  ;;  %v7439_v35 = vpop.permute.xlu0 %7438  ;;  %v5672_v16 = vshll.u32 %v18106_v9, 16  ;;  %v6057_v61 = vrot.slane %v5676_v50, 1 }
 0x650   : >> { %v8368_v56 = vpop.f32.mrf.mxu0  ;;  %v8007_v24 = vsel %vm1368_vm5, %v10898_v3, %v7439_v35  ;;  %v5844_v35 = vsel %vm861_vm1, %v5841_v52, %v5843_v29  ;;  %v10899_v52 = vld [vmem:[%s11183_s14 + $0x120] sm:$0xff] }
 0x651   : >> { %v8492_v47 = vadd.f32 %v8368_v56, %v6812_v5  ;;  %v8071_v17 = vsel %vm1433_vm6, %v8007_v24, %v7575_v21  ;;  %v18139_v45 = vrot.slane %v5672_v16, 1  ;;  %v6058_v8 = vrot.slane %v5672_v16, 2 }
 0x652   : >> { %v7352_v24 = vshll.u32 %v18151_v1, 16 }
 0x653   : >> { %v8559_v34 = vadd.f32 %v16802_v53, %v8492_v47  ;;  %7818 = vrot.lane.b32.xlu2 %v7736_v30, %s11038_s27  ;;  %v18173_v57 = vor.u32 %v6058_v8, %v6057_v61 }
 0x654   : >> { %7586 = vrot.lane.b32.xlu1 %v7522_v10, %s11037_s24 }
 0x655   : >> { %7450 = vrot.lane.b32.xlu0 %v7347_v23, %s11036_s23  ;;  %v8623_v4 = vpack.c.bf16 %v8559_v34, %v8559_v34  ;;  %v8779_v13 = vsel %vm8731_vm11, %v8559_v34, 0.0  ;;  %v8890_v41 = vmul.f32 %v8559_v34, %v8559_v34  ;;  %v6690_v63 = vpop.f32.mrf.mxu3  ;;  %v18146_v5 = vpop.permute.xlu2 %7442  ;;  %v20613_v23 = vld [vmem:[#allocation27_spill] sm:$0xff] }
 0x656   : >> { %v8780_v19 = vadd.f32 %v8779_v13, %v8778_v36  ;;  %v6813_v14 = vadd.f32 %v6690_v63, %v17090_v38  ;;  %v5897_v31 = vpop.permute.xlu1 %5896  ;;  %v8135_v38 = vsel %vm1498_vm7, %v8071_v17, %v17986_v22  ;;  %v7890_v22 = vsel %vm1231_vm3, %v7887_v37, %v7889_v44 }
 0x657   : >> { %8691 = vst.msk [vmem:[%s16833_s13 + $0x60] sm:$0xf] %vm8666_vm10, %v8623_v4  ;;  %v8977_v58 = vsel %vm8731_vm11, %v8890_v41, 0.0  ;;  %v7943_v42 = vpop.permute.xlu0 %7942  ;;  %v6329_v3 = vsel %vm1368_vm5, %v10899_v52, %v20613_v23  ;;  %v6211_v37 = vrot.slane %v18106_v9, 2  ;;  %v9978_v4 = vld [vmem:[%s11183_s14 + $0x164] sm:$0x3] }
 0x658   : >> { %v8978_v36 = vadd.f32 %v8977_v58, %v8976_v15  ;;  %v8370_v21 = vpop.f32.mrf.mxu0  ;;  %v8199_v56 = vsel %vm1563_vm9, %v8135_v38, %v7943_v42  ;;  %v5675_v15 = vsel %vm508_vm0, %v5670_v48, %v18139_v45  ;;  %v6393_v10 = vsel %vm1433_vm6, %v6329_v3, %v5897_v31 }
 0x659   : >> { %v8493_v30 = vadd.f32 %v8370_v21, %v6813_v14  ;;  %10381 = vmatmul.msk.bf16.gmra.mxu0 %vm3010_vm8, %v8199_v56  ;;  %v7356_v41 = vshrl.u32 %v18151_v1, 16  ;;  %v18182_v63 = vrot.slane %v7352_v24, 1  ;;  %v7350_v14 = vor.u32 %v7348_v55, %v18101_v20  ;;  %v10900_v56 = vld [vmem:[%s11183_s14 + $0x144] sm:$0xff] }
 0x65a   : >> { %v5422_v21 = vunpack.c.l.b16 %v9978_v4  ;;  %v6060_v20 = vsel %vm998_vm2, %v18059_v25, %v18173_v57 }
 0x65b   : >> { %v8560_v47 = vadd.f32 %v16802_v53, %v8493_v30  ;;  %5908 = vrot.lane.b32.xlu2 %v5844_v35, %s11037_s24  ;;  %v7355_v8 = vsel %vm508_vm0, %v7350_v14, %v18182_v63  ;;  %v7738_v35 = vrot.slane %v7352_v24, 2  ;;  %v10218_v24 = vld [vmem:[%s11183_s14 + $0x188] sm:$0x3] }
 0x65c   : >> { %5772 = vrot.lane.b32.xlu1 %v5675_v15, %s11036_s23  ;;  %v18212_v25 = vpack.c.b16 %v5422_v21, %v5422_v21 }
 0x65d   : >> { %7954 = vrot.lane.b32.xlu0 %v7890_v22, %s11039_s30  ;;  %v8624_v16 = vpack.c.bf16 %v8560_v47, %v8560_v47  ;;  %v8781_v34 = vsel %vm8731_vm11, %v8560_v47, 0.0  ;;  %v8891_v17 = vmul.f32 %v8560_v47, %v8560_v47  ;;  %v18190_v31 = vpop.permute.xlu2 %7946  ;;  %v7891_v22 = vrot.slane %v18151_v1, 2 }
 0x65e   : >> { %v8782_v13 = vadd.f32 %v8781_v34, %v8780_v19  ;;  %v7441_v58 = vpop.permute.xlu1 %7440  ;;  %v6693_v38 = vpop.f32.mrf.mxu3  ;;  %v6457_v19 = vsel %vm1498_vm7, %v6393_v10, %v18031_v32  ;;  %v7737_v32 = vrot.slane %v7356_v41, 1  ;;  %v5680_v34 = vshll.u32 %v18212_v25, 16 }
 0x65f   : >> { %8692 = vst.msk [vmem:[%s16833_s13 + $0x64] sm:$0xf] %vm8666_vm10, %v8624_v16  ;;  %v8979_v48 = vsel %vm8731_vm11, %v8891_v17, 0.0  ;;  %v6265_v42 = vpop.permute.xlu0 %6264  ;;  %v8009_v30 = vsel %vm1368_vm5, %v10900_v56, %v7441_v58  ;;  %v6814_v43 = vadd.f32 %v6693_v38, %v17138_v11  ;;  %v7892_v11 = vsel %vm1231_vm3, %v7889_v44, %v7891_v22 }
 0x660   : >> { %v8980_v61 = vadd.f32 %v8979_v48, %v8978_v36  ;;  %v6521_v55 = vsel %vm1563_vm9, %v6457_v19, %v6265_v42  ;;  %v6212_v36 = vsel %vm1231_vm3, %v6209_v40, %v6211_v37  ;;  %v7523_v40 = vrot.slane %v18151_v1, 1 }
 0x661   : >> { %10142 = vmatmul.msk.bf16.gmra.mxu3 %vm3010_vm8, %v6521_v55  ;;  %v8073_v47 = vsel %vm1433_vm6, %v8009_v30, %v18067_v46  ;;  %v18220_v52 = vor.u32 %v7738_v35, %v7737_v32  ;;  %v6061_v14 = vshrl.u32 %v18212_v25, 16  ;;  %v7102_v38 = vunpack.c.l.b16 %v10218_v24  ;;  %v10901_v30 = vld [vmem:[%s11183_s14 + $0x128] sm:$0xff] }
 0x662   : >> { %v7524_v4 = vsel %vm861_vm1, %v7521_v54, %v7523_v40  ;;  %v5678_v54 = vor.u32 %v5676_v50, %v18139_v45 }
 0x663   : >> { %7452 = vrot.lane.b32.xlu2 %v7355_v8, %s11036_s23  ;;  %v7740_v44 = vsel %vm998_vm2, %v18097_v60, %v18220_v52  ;;  %v5682_v8 = vrot.slane %v5680_v34, 1  ;;  %v18256_v56 = vpack.c.b16 %v7102_v38, %v7102_v38 }
 0x664   : >> { %6276 = vrot.lane.b32.xlu1 %v6212_v36, %s11039_s30  ;;  %v6064_v36 = vrot.slane %v5680_v34, 2 }
 0x665   : >> { %6140 = vrot.lane.b32.xlu0 %v6060_v20, %s11038_s27  ;;  %v18223_v10 = vpop.permute.xlu2 %6268  ;;  %v6063_v20 = vrot.slane %v6061_v14, 1 }
 0x666   : >> { %v8373_v15 = vpop.f32.mrf.mxu0  ;;  %v7945_v3 = vpop.permute.xlu1 %7944 }
 0x667   : >> { %v8494_v23 = vadd.f32 %v8373_v15, %v6814_v43  ;;  %v7809_v16 = vpop.permute.xlu0 %7808  ;;  %v6695_v48 = vpop.f32.mrf.mxu3  ;;  %v20614_v43 = vld [vmem:[#allocation154_spill] sm:$0xff] }
 0x668   : >> { %v8137_v46 = vsel %vm1498_vm7, %v8073_v47, %v7809_v16  ;;  %v6815_v60 = vadd.f32 %v6695_v48, %v17181_v39  ;;  %v6331_v50 = vsel %vm1368_vm5, %v10901_v30, %v20614_v43  ;;  %v6065_v47 = vor.u32 %v6064_v36, %v6063_v20 }
 0x669   : >> { %v8561_v17 = vadd.f32 %v16802_v53, %v8494_v23  ;;  %v8201_v58 = vsel %vm1563_vm9, %v8137_v46, %v7945_v3  ;;  %v6395_v23 = vsel %vm1433_vm6, %v6331_v50, %v18111_v6  ;;  %v5683_v16 = vsel %vm508_vm0, %v5678_v54, %v5682_v8 }
 0x66a   : >> { %10382 = vmatmul.msk.bf16.gmra.mxu0 %vm3010_vm8, %v8201_v58  ;;  %v6066_v34 = vsel %vm998_vm2, %v18173_v57, %v6065_v47  ;;  %v7360_v6 = vshll.u32 %v18256_v56, 16  ;;  %v7741_v48 = vshrl.u32 %v18256_v56, 16  ;;  %v7358_v54 = vor.u32 %v7356_v41, %v18182_v63 }
 0x66b   : >> { %v8625_v19 = vpack.c.bf16 %v8561_v17, %v8561_v17  ;;  %v8783_v42 = vsel %vm8731_vm11, %v8561_v17, 0.0  ;;  %v8892_v21 = vmul.f32 %v8561_v17, %v8561_v17  ;;  %7956 = vrot.lane.b32.xlu2 %v7892_v11, %s11039_s30 }
 0x66c   : >> { %v8784_v28 = vadd.f32 %v8783_v42, %v8782_v13  ;;  %7820 = vrot.lane.b32.xlu1 %v7740_v44, %s11038_s27  ;;  %v5845_v13 = vrot.slane %v18212_v25, 1  ;;  %v10902_v44 = vld [vmem:[%s11183_s14 + $0x14c] sm:$0xff]  ;;  %v6213_v42 = vrot.slane %v18212_v25, 2  ;;  %v7362_v8 = vrot.slane %v7360_v6, 1 }
 0x66d   : >> { %7588 = vrot.lane.b32.xlu0 %v7524_v4, %s11037_s24  ;;  %8693 = vst.msk [vmem:[%s16833_s13 + $0x68] sm:$0xf] %vm8666_vm10, %v8625_v19  ;;  %v8981_v55 = vsel %vm8731_vm11, %v8892_v21, 0.0  ;;  %v18261_v15 = vpop.permute.xlu2 %7812  ;;  %v8011_v38 = vsel %vm1368_vm5, %v10902_v44, %v18146_v5  ;;  %v18290_v21 = vld [vmem:[%s11183_s14 + $0x168] sm:$0xff]  ;;  %v7743_v36 = vrot.slane %v7741_v48, 1  ;;  %v7744_v5 = vrot.slane %v7360_v6, 2 }
 0x66e   : >> { %v8982_v32 = vadd.f32 %v8981_v55, %v8980_v61  ;;  %v8375_v35 = vpop.f32.mrf.mxu0  ;;  %v6267_v39 = vpop.permute.xlu1 %6266  ;;  %v5846_v17 = vsel %vm861_vm1, %v5843_v29, %v5845_v13  ;;  %v18297_v13 = vld [vmem:[%s11183_s14 + $0x170] sm:$0xff]  ;;  %v6214_v41 = vsel %vm1231_vm3, %v6211_v37, %v6213_v42  ;;  %v5687_v63 = vshll.u32 %v18290_v21, 16 }
 0x66f   : >> { %v8495_v45 = vadd.f32 %v8375_v35, %v6815_v60  ;;  %v6131_v3 = vpop.permute.xlu0 %6130  ;;  %v7525_v60 = vrot.slane %v18256_v56, 1  ;;  %v7745_v47 = vor.u32 %v7744_v5, %v7743_v36 }
 0x670   : >> { %v6459_v24 = vsel %vm1498_vm7, %v6395_v23, %v6131_v3  ;;  %v5689_v9 = vrot.slane %v5687_v63, 1 }
 0x671   : >> { %v8562_v61 = vadd.f32 %v16802_v53, %v8495_v45  ;;  %v6523_v11 = vsel %vm1563_vm9, %v6459_v24, %v6267_v39  ;;  %v7526_v25 = vsel %vm861_vm1, %v7523_v40, %v7525_v60  ;;  %v7363_v45 = vsel %vm508_vm0, %v7358_v54, %v7362_v8 }
 0x672   : >> { %10143 = vmatmul.msk.bf16.gmra.mxu3 %vm3010_vm8, %v6523_v11  ;;  %v5685_v40 = vshrl.u32 %v18290_v21, 16  ;;  %v6068_v60 = vrot.slane %v5687_v63, 2 }
 0x673   : >> { %v8626_v46 = vpack.c.bf16 %v8562_v61, %v8562_v61  ;;  %v8785_v4 = vsel %vm8731_vm11, %v8562_v61, 0.0  ;;  %v8893_v14 = vmul.f32 %v8562_v61, %v8562_v61  ;;  %6142 = vrot.lane.b32.xlu2 %v6066_v34, %s11038_s27  ;;  %v7893_v34 = vrot.slane %v18256_v56, 2 }
 0x674   : >> { %v8786_v57 = vadd.f32 %v8785_v4, %v8784_v28  ;;  %v6698_v58 = vpop.f32.mrf.mxu3  ;;  %5910 = vrot.lane.b32.xlu1 %v5846_v17, %s11037_s24  ;;  %v5696_v17 = vshrl.u32 %v18297_v13, 16  ;;  %v6067_v8 = vrot.slane %v5685_v40, 1 }
 0x675   : >> { %5774 = vrot.lane.b32.xlu0 %v5683_v16, %s11036_s23  ;;  %8694 = vst.msk [vmem:[%s16833_s13 + $0x6c] sm:$0xf] %vm8666_vm10, %v8626_v46  ;;  %v8983_v29 = vsel %vm8731_vm11, %v8893_v14, 0.0  ;;  %v6816_v19 = vadd.f32 %v6698_v58, %v17229_v26  ;;  %v18299_v30 = vpop.permute.xlu2 %5902  ;;  %v5690_v46 = vor.u32 %v5689_v9, %v5685_v40  ;;  %v18330_v58 = vld [vmem:[%s11183_s14 + $0x18c] sm:$0xff]  ;;  %v7894_v54 = vsel %vm1231_vm3, %v7891_v22, %v7893_v34 }
 0x676   : >> { %v8984_v28 = vadd.f32 %v8983_v29, %v8982_v32  ;;  %v7811_v20 = vpop.permute.xlu1 %7810  ;;  %v7367_v1 = vshll.u32 %v18330_v58, 16  ;;  %v6215_v40 = vrot.slane %v18290_v21, 2 }
 0x677   : >> { %v8378_v55 = vpop.f32.mrf.mxu0  ;;  %v7579_v26 = vpop.permute.xlu0 %7578 }
 0x678   : >> { %v8496_v35 = vadd.f32 %v8378_v55, %v6816_v19  ;;  %v8075_v32 = vsel %vm1433_vm6, %v8011_v38, %v7579_v26  ;;  %v7746_v38 = vsel %vm998_vm2, %v18220_v52, %v7745_v47  ;;  %v6070_v52 = vrot.slane %v5696_v17, 1 }
 0x679   : >> { %v8139_v50 = vsel %vm1498_vm7, %v8075_v32, %v7811_v20  ;;  %v5847_v32 = vrot.slane %v18290_v21, 1 }
 0x67a   : >> { %v8563_v43 = vadd.f32 %v16802_v53, %v8496_v35  ;;  %v8203_v39 = vsel %vm1563_vm9, %v8139_v50, %v18190_v31  ;;  %v5692_v31 = vshll.u32 %v18297_v13, 16  ;;  %v18352_v35 = vld [vmem:[%s11183_s14 + $0x194] sm:$0xff]  ;;  %v6216_v50 = vrot.slane %v18297_v13, 2 }
 0x67b   : >> { %7590 = vrot.lane.b32.xlu2 %v7526_v25, %s11037_s24  ;;  %10383 = vmatmul.msk.bf16.gmra.mxu0 %vm3010_vm8, %v8203_v39  ;;  %v7376_v34 = vshrl.u32 %v18352_v35, 16 }
 0x67c   : >> { %v8627_v23 = vpack.c.bf16 %v8563_v43, %v8563_v43  ;;  %v8787_v37 = vsel %vm8731_vm11, %v8563_v43, 0.0  ;;  %v8894_v3 = vmul.f32 %v8563_v43, %v8563_v43  ;;  %v6700_v61 = vpop.f32.mrf.mxu3  ;;  %7454 = vrot.lane.b32.xlu1 %v7363_v45, %s11036_s23  ;;  %v18327_v6 = vrot.slane %v5692_v31, 1 }
 0x67d   : >> { %6278 = vrot.lane.b32.xlu0 %v6214_v41, %s11039_s30  ;;  %v8788_v24 = vadd.f32 %v8787_v37, %v8786_v57  ;;  %v6817_v16 = vadd.f32 %v6700_v61, %v17278_v62  ;;  %v10903_v57 = vld [vmem:[%s11183_s14 + $0x130] sm:$0xff]  ;;  %v20615_v62 = vld [vmem:[#allocation64_spill] sm:$0xff]  ;;  %v18337_v19 = vpop.permute.xlu2 %7446  ;;  %v6071_v36 = vrot.slane %v5692_v31, 2  ;;  %v6069_v43 = vor.u32 %v6068_v60, %v6067_v8 }
 0x67e   : >> { %8695 = vst.msk [vmem:[%s16833_s13 + $0x70] sm:$0xf] %vm8666_vm10, %v8627_v23  ;;  %v8985_v11 = vsel %vm8731_vm11, %v8894_v3, 0.0  ;;  %v6133_v48 = vpop.permute.xlu1 %6132  ;;  %v6333_v29 = vsel %vm1368_vm5, %v10903_v57, %v20615_v62  ;;  %v5695_v42 = vsel %vm508_vm0, %v5690_v46, %v18327_v6  ;;  %v7365_v37 = vshrl.u32 %v18330_v58, 16 }
 0x67f   : >> { %v8986_v4 = vadd.f32 %v8985_v11, %v8984_v28  ;;  %v8380_v14 = vpop.f32.mrf.mxu0  ;;  %v5901_v44 = vpop.permute.xlu0 %5900  ;;  %v18367_v47 = vor.u32 %v6071_v36, %v6070_v52  ;;  %v7369_v3 = vrot.slane %v7367_v1, 1  ;;  %v7372_v61 = vshll.u32 %v18352_v35, 16 }
 0x680   : >> { %v8497_v56 = vadd.f32 %v8380_v14, %v6817_v16  ;;  %v6397_v28 = vsel %vm1433_vm6, %v6333_v29, %v5901_v44  ;;  %v6217_v16 = vsel %vm1231_vm3, %v6215_v40, %v6216_v50  ;;  %v7750_v57 = vrot.slane %v7376_v34, 1 }
 0x681   : >> { %v6461_v20 = vsel %vm1498_vm7, %v6397_v28, %v6133_v48  ;;  %v6073_v48 = vsel %vm998_vm2, %v6069_v43, %v18367_v47  ;;  %v7751_v62 = vrot.slane %v7372_v61, 2  ;;  %v18388_v44 = vrot.slane %v7372_v61, 1 }
 0x682   : >> { %v8564_v55 = vadd.f32 %v16802_v53, %v8497_v56  ;;  %v6525_v5 = vsel %vm1563_vm9, %v6461_v20, %v18223_v10  ;;  %v5848_v10 = vrot.slane %v18297_v13, 1  ;;  %v7370_v56 = vor.u32 %v7369_v3, %v7365_v37  ;;  %v10905_v3 = vld [vmem:[%s11183_s14 + $0x138] sm:$0xff]  ;;  %v18502_v13 = vld [vmem:[%s11183_s14 + $0x180] sm:$0xff] }
 0x683   : >> { %5776 = vrot.lane.b32.xlu2 %v5695_v42, %s11036_s23  ;;  %10144 = vmatmul.msk.bf16.gmra.mxu3 %vm3010_vm8, %v6525_v5  ;;  %v18393_v42 = vor.u32 %v7751_v62, %v7750_v57  ;;  %v7747_v28 = vrot.slane %v7365_v37, 1 }
 0x684   : >> { %v8628_v22 = vpack.c.bf16 %v8564_v55, %v8564_v55  ;;  %v8789_v26 = vsel %vm8731_vm11, %v8564_v55, 0.0  ;;  %v8895_v25 = vmul.f32 %v8564_v55, %v8564_v55  ;;  %7958 = vrot.lane.b32.xlu1 %v7894_v54, %s11039_s30  ;;  %v5849_v11 = vsel %vm861_vm1, %v5847_v32, %v5848_v10 }
 0x685   : >> { %7822 = vrot.lane.b32.xlu0 %v7746_v38, %s11038_s27  ;;  %v8790_v41 = vadd.f32 %v8789_v26, %v8788_v24  ;;  %v6703_v63 = vpop.f32.mrf.mxu3  ;;  %v18379_v46 = vpop.permute.xlu2 %7950  ;;  %v7527_v38 = vrot.slane %v18330_v58, 1  ;;  %v7748_v54 = vrot.slane %v7367_v1, 2  ;;  %v18401_v26 = vld [vmem:[%s11183_s14 + $0x178] sm:$0xff] }
 0x686   : >> { %8696 = vst.msk [vmem:[%s16833_s13 + $0x74] sm:$0xf] %vm8666_vm10, %v8628_v22  ;;  %v8987_v45 = vsel %vm8731_vm11, %v8895_v25, 0.0  ;;  %v6818_v39 = vadd.f32 %v6703_v63, %v17328_v7  ;;  %v7581_v23 = vpop.permute.xlu1 %7580  ;;  %v7528_v22 = vrot.slane %v18352_v35, 1 }
 0x687   : >> { %v8988_v9 = vadd.f32 %v8987_v45, %v8986_v4  ;;  %v7445_v31 = vpop.permute.xlu0 %7444  ;;  %v10904_v4 = vld [vmem:[%s11183_s14 + $0x154] sm:$0xff]  ;;  %v7749_v25 = vor.u32 %v7748_v54, %v7747_v28 }
 0x688   : >> { %v8383_v24 = vpop.f32.mrf.mxu0  ;;  %v8013_v14 = vsel %vm1368_vm5, %v10904_v4, %v7445_v31 }
 0x689   : >> { %v8498_v7 = vadd.f32 %v8383_v24, %v6818_v39  ;;  %v8077_v8 = vsel %vm1433_vm6, %v8013_v14, %v7581_v23  ;;  %v7375_v23 = vsel %vm508_vm0, %v7370_v56, %v18388_v44  ;;  %v7895_v24 = vrot.slane %v18330_v58, 2 }
 0x68a   : >> { %v8141_v43 = vsel %vm1498_vm7, %v8077_v8, %v18261_v15  ;;  %v5700_v15 = vshll.u32 %v18401_v26, 16 }
 0x68b   : >> { %v8565_v29 = vadd.f32 %v16802_v53, %v8498_v7  ;;  %6280 = vrot.lane.b32.xlu2 %v6217_v16, %s11039_s30  ;;  %v7896_v16 = vrot.slane %v18352_v35, 2  ;;  %v5850_v7 = vrot.slane %v18401_v26, 1 }
 0x68c   : >> { %6144 = vrot.lane.b32.xlu1 %v6073_v48, %s11038_s27  ;;  %v5704_v48 = vshrl.u32 %v18401_v26, 16  ;;  %v18436_v56 = vrot.slane %v5700_v15, 1 }
 0x68d   : >> { %5912 = vrot.lane.b32.xlu0 %v5849_v11, %s11037_s24  ;;  %v8629_v60 = vpack.c.bf16 %v8565_v29, %v8565_v29  ;;  %v8791_v55 = vsel %vm8731_vm11, %v8565_v29, 0.0  ;;  %v8896_v20 = vmul.f32 %v8565_v29, %v8565_v29  ;;  %v6705_v52 = vpop.f32.mrf.mxu3  ;;  %v18413_v37 = vpop.permute.xlu2 %6136  ;;  %v5698_v29 = vor.u32 %v5696_v17, %v18327_v6 }
 0x68e   : >> { %v8792_v36 = vadd.f32 %v8791_v55, %v8790_v41  ;;  %v6819_v5 = vadd.f32 %v6705_v52, %v17378_v27  ;;  %v5767_v32 = vpop.permute.xlu1 %5766  ;;  %v7753_v27 = vsel %vm998_vm2, %v7749_v25, %v18393_v42  ;;  %v18442_v55 = vld [vmem:[%s11183_s14 + $0x19c] sm:$0xff]  ;;  %v7897_v6 = vsel %vm1231_vm3, %v7895_v24, %v7896_v16 }
 0x68f   : >> { %8697 = vst.msk [vmem:[%s16833_s13 + $0x78] sm:$0xf] %vm8666_vm10, %v8629_v60  ;;  %v8989_v1 = vsel %vm8731_vm11, %v8896_v20, 0.0  ;;  %v7949_v45 = vpop.permute.xlu0 %7948  ;;  %v6335_v61 = vsel %vm1368_vm5, %v10905_v3, %v5767_v32  ;;  %v6074_v20 = vrot.slane %v5704_v48, 1  ;;  %v6075_v52 = vrot.slane %v5700_v15, 2 }
 0x690   : >> { %v8990_v63 = vadd.f32 %v8989_v1, %v8988_v9  ;;  %v8385_v39 = vpop.f32.mrf.mxu0  ;;  %v8205_v41 = vsel %vm1563_vm9, %v8141_v43, %v7949_v45  ;;  %v7529_v9 = vsel %vm861_vm1, %v7527_v38, %v7528_v22  ;;  %v6399_v62 = vsel %vm1433_vm6, %v6335_v61, %v18299_v30  ;;  %v10906_v43 = vld [vmem:[%s11183_s14 + $0x15c] sm:$0xff] }
 0x691   : >> { %v8499_v40 = vadd.f32 %v8385_v39, %v6819_v5  ;;  %10384 = vmatmul.msk.bf16.gmra.mxu0 %vm3010_vm8, %v8205_v41  ;;  %v5851_v30 = vsel %vm861_vm1, %v5848_v10, %v5850_v7  ;;  %v5703_v25 = vsel %vm508_vm0, %v5698_v29, %v18436_v56  ;;  %v7380_v10 = vshll.u32 %v18442_v55, 16 }
 0x692   : >> { %v18466_v32 = vor.u32 %v6075_v52, %v6074_v20  ;;  %v8015_v45 = vsel %vm1368_vm5, %v10906_v43, %v18337_v19  ;;  %v7384_v41 = vshrl.u32 %v18442_v55, 16  ;;  %v5708_v52 = vshll.u32 %v18502_v13, 16 }
 0x693   : >> { %v8566_v31 = vadd.f32 %v16802_v53, %v8499_v40  ;;  %7824 = vrot.lane.b32.xlu2 %v7753_v27, %s11038_s27  ;;  %v6218_v27 = vrot.slane %v18401_v26, 2  ;;  %v18476_v40 = vrot.slane %v7380_v10, 1 }
 0x694   : >> { %7592 = vrot.lane.b32.xlu1 %v7529_v9, %s11037_s24  ;;  %v6077_v19 = vsel %vm998_vm2, %v18367_v47, %v18466_v32 }
 0x695   : >> { %7456 = vrot.lane.b32.xlu0 %v7375_v23, %s11036_s23  ;;  %v8630_v11 = vpack.c.bf16 %v8566_v31, %v8566_v31  ;;  %v8793_v4 = vsel %vm8731_vm11, %v8566_v31, 0.0  ;;  %v8897_v14 = vmul.f32 %v8566_v31, %v8566_v31  ;;  %v6219_v24 = vsel %vm1231_vm3, %v6216_v50, %v6218_v27 }
 0x696   : >> { %v8794_v57 = vadd.f32 %v8793_v4, %v8792_v36  ;;  %v6271_v28 = vpop.permute.xlu1 %6270  ;;  %v6708_v8 = vpop.f32.mrf.mxu3  ;;  %v7755_v4 = vrot.slane %v7380_v10, 2  ;;  %v7898_v50 = vrot.slane %v18442_v55, 2 }
 0x697   : >> { %8698 = vst.msk [vmem:[%s16833_s13 + $0x7c] sm:$0xf] %vm8666_vm10, %v8630_v11  ;;  %v8991_v38 = vsel %vm8731_vm11, %v8897_v14, 0.0  ;;  %v6135_v60 = vpop.permute.xlu0 %6134  ;;  %v18455_v36 = vpop.permute.xlu2 %7584  ;;  %v6820_v1 = vadd.f32 %v6708_v8, %v17414_v12  ;;  %v7754_v11 = vrot.slane %v7384_v41, 1 }
 0x698   : >> { %v8992_v54 = vadd.f32 %v8991_v38, %v8990_v63  ;;  %v6463_v17 = vsel %vm1498_vm7, %v6399_v62, %v6135_v60  ;;  %v7378_v63 = vor.u32 %v7376_v34, %v18388_v44 }
 0x699   : >> { %v6527_v5 = vsel %vm1563_vm9, %v6463_v17, %v6271_v28 }
 0x69a   : >> { %10145 = vmatmul.msk.bf16.gmra.mxu3 %vm3010_vm8, %v6527_v5  ;;  %v7383_v15 = vsel %vm508_vm0, %v7378_v63, %v18476_v40  ;;  %v5712_v5 = vshrl.u32 %v18502_v13, 16 }
 0x69b   : >> { %5914 = vrot.lane.b32.xlu2 %v5851_v30, %s11037_s24  ;;  %v18511_v30 = vor.u32 %v7755_v4, %v7754_v11 }
 0x69c   : >> { %5778 = vrot.lane.b32.xlu1 %v5703_v25, %s11036_s23  ;;  %v6078_v43 = vrot.slane %v5712_v5, 1 }
 0x69d   : >> { %7960 = vrot.lane.b32.xlu0 %v7897_v6, %s11039_s30 }
 0x69e   : >> { %v8388_v39 = vpop.f32.mrf.mxu0  ;;  %v7815_v23 = vpop.permute.xlu1 %7814 }
 0x69f   : >> { %v8500_v12 = vadd.f32 %v8388_v39, %v6820_v1  ;;  %v7583_v9 = vpop.permute.xlu0 %7582  ;;  %v18485_v44 = vpop.permute.xlu2 %5770  ;;  %v10907_v1 = vld [vmem:[%s11183_s14 + $0x144] sm:$0xff] }
 0x6a0   : >> { %v8079_v34 = vsel %vm1433_vm6, %v8015_v45, %v7583_v9  ;;  %v6710_v61 = vpop.f32.mrf.mxu3  ;;  %v6079_v45 = vrot.slane %v5708_v52, 2 }
 0x6a1   : >> { %v8567_v3 = vadd.f32 %v16802_v53, %v8500_v12  ;;  %v8143_v31 = vsel %vm1498_vm7, %v8079_v34, %v7815_v23  ;;  %v6821_v28 = vadd.f32 %v6710_v61, %v17475_v33  ;;  %v7899_v33 = vsel %vm1231_vm3, %v7896_v16, %v7898_v50 }
 0x6a2   : >> { %v8207_v29 = vsel %vm1563_vm9, %v8143_v31, %v18379_v46  ;;  %v7530_v46 = vrot.slane %v18442_v55, 1  ;;  %v7757_v16 = vsel %vm998_vm2, %v18393_v42, %v18511_v30  ;;  %v18541_v42 = vor.u32 %v6079_v45, %v6078_v43 }
 0x6a3   : >> { %v8631_v14 = vpack.c.bf16 %v8567_v3, %v8567_v3  ;;  %v8795_v62 = vsel %vm8731_vm11, %v8567_v3, 0.0  ;;  %v8898_v47 = vmul.f32 %v8567_v3, %v8567_v3  ;;  %7458 = vrot.lane.b32.xlu2 %v7383_v15, %s11036_s23  ;;  %10385 = vmatmul.msk.bf16.gmra.mxu0 %vm3010_vm8, %v8207_v29  ;;  %v5706_v15 = vor.u32 %v5704_v48, %v18436_v56  ;;  %v18553_v48 = vld [vmem:[%s11183_s14 + $0x1a4] sm:$0xff] }
 0x6a4   : >> { %v8796_v38 = vadd.f32 %v8795_v62, %v8794_v57  ;;  %6282 = vrot.lane.b32.xlu1 %v6219_v24, %s11039_s30  ;;  %v18549_v61 = vrot.slane %v5708_v52, 1  ;;  %v5852_v24 = vrot.slane %v18502_v13, 1  ;;  %v7386_v43 = vor.u32 %v7384_v41, %v18476_v40 }
 0x6a5   : >> { %6146 = vrot.lane.b32.xlu0 %v6077_v19, %s11038_s27  ;;  %8699 = vst.msk [vmem:[%s16833_s13 + $0x80] sm:$0xf] %vm8666_vm10, %v8631_v14  ;;  %v8993_v8 = vsel %vm8731_vm11, %v8898_v47, 0.0 }
 0x6a6   : >> { %v8994_v57 = vadd.f32 %v8993_v8, %v8992_v54  ;;  %v8390_v60 = vpop.f32.mrf.mxu0  ;;  %v5905_v6 = vpop.permute.xlu1 %5904  ;;  %v7531_v54 = vsel %vm861_vm1, %v7528_v22, %v7530_v46  ;;  %v5711_v29 = vsel %vm508_vm0, %v5706_v15, %v18549_v61  ;;  %v7388_v8 = vshll.u32 %v18553_v48, 16 }
 0x6a7   : >> { %v8501_v17 = vadd.f32 %v8390_v60, %v6821_v28  ;;  %v5769_v20 = vpop.permute.xlu0 %5768  ;;  %v18526_v10 = vpop.permute.xlu2 %6274  ;;  %v9987_v28 = vld [vmem:[%s11183_s14 + $0x188] sm:$0x3] }
 0x6a8   : >> { %v6337_v63 = vsel %vm1368_vm5, %v10907_v1, %v5769_v20  ;;  %v6220_v20 = vrot.slane %v18502_v13, 2  ;;  %v5423_v52 = vunpack.c.l.b16 %v9987_v28  ;;  %v18589_v45 = vrot.slane %v7388_v8, 1 }
 0x6a9   : >> { %v8568_v25 = vadd.f32 %v16802_v53, %v8501_v17  ;;  %v6401_v34 = vsel %vm1433_vm6, %v6337_v63, %v5905_v6  ;;  %v7392_v17 = vshrl.u32 %v18553_v48, 16  ;;  %v7759_v15 = vrot.slane %v7388_v8, 2 }
 0x6aa   : >> { %v6465_v11 = vsel %vm1498_vm7, %v6401_v34, %v18413_v37  ;;  %v5853_v37 = vsel %vm861_vm1, %v5850_v7, %v5852_v24  ;;  %v7532_v7 = vrot.slane %v18553_v48, 1  ;;  %v6221_v34 = vsel %vm1231_vm3, %v6218_v27, %v6220_v20 }
 0x6ab   : >> { %v8632_v39 = vpack.c.bf16 %v8568_v25, %v8568_v25  ;;  %v8797_v12 = vsel %vm8731_vm11, %v8568_v25, 0.0  ;;  %v8899_v23 = vmul.f32 %v8568_v25, %v8568_v25  ;;  %7962 = vrot.lane.b32.xlu2 %v7899_v33, %s11039_s30 }
 0x6ac   : >> { %v8798_v22 = vadd.f32 %v8797_v12, %v8796_v38  ;;  %v6713_v9 = vpop.f32.mrf.mxu3  ;;  %7826 = vrot.lane.b32.xlu1 %v7757_v16, %s11038_s27  ;;  %v7533_v41 = vsel %vm861_vm1, %v7530_v46, %v7532_v7  ;;  %v10909_v46 = vld [vmem:[%s11183_s14 + $0x14c] sm:$0xff] }
 0x6ad   : >> { %7594 = vrot.lane.b32.xlu0 %v7531_v54, %s11037_s24  ;;  %8700 = vst.msk [vmem:[%s16833_s13 + $0x84] sm:$0xf] %vm8666_vm10, %v8632_v39  ;;  %v8995_v3 = vsel %vm8731_vm11, %v8899_v23, 0.0  ;;  %v6822_v19 = vadd.f32 %v6713_v9, %v17516_v0  ;;  %v6081_v0 = vsel %vm998_vm2, %v18466_v32, %v18541_v42 }
 0x6ae   : >> { %v8996_v31 = vadd.f32 %v8995_v3, %v8994_v57  ;;  %v7449_v56 = vpop.permute.xlu1 %7448  ;;  %v10908_v57 = vld [vmem:[%s11183_s14 + $0x168] sm:$0xff] }
 0x6af   : >> { %v8393_v4 = vpop.f32.mrf.mxu0  ;;  %v6273_v14 = vpop.permute.xlu0 %6272  ;;  %v8017_v60 = vsel %vm1368_vm5, %v10908_v57, %v7449_v56  ;;  %v7391_v56 = vsel %vm508_vm0, %v7386_v43, %v18589_v45 }
 0x6b0   : >> { %v8502_v62 = vadd.f32 %v8393_v4, %v6822_v19  ;;  %v6529_v47 = vsel %vm1563_vm9, %v6465_v11, %v6273_v14  ;;  %v18563_v38 = vpop.permute.xlu2 %7818  ;;  %v8081_v16 = vsel %vm1433_vm6, %v8017_v60, %v18455_v36  ;;  %v18596_v36 = vpack.c.b16 %v5423_v52, %v5423_v52 }
 0x6b1   : >> { %10146 = vmatmul.msk.bf16.gmra.mxu3 %vm3010_vm8, %v6529_v47  ;;  %v6339_v4 = vsel %vm1368_vm5, %v10909_v46, %v18485_v44  ;;  %v5714_v44 = vor.u32 %v5712_v5, %v18549_v61 }
 0x6b2   : >> { %v8569_v32 = vadd.f32 %v16802_v53, %v8502_v62  ;;  %v5716_v14 = vshll.u32 %v18596_v36, 16  ;;  %v6082_v8 = vshrl.u32 %v18596_v36, 16 }
 0x6b3   : >> { %6148 = vrot.lane.b32.xlu2 %v6081_v0, %s11038_s27 }
 0x6b4   : >> { %v6715_v6 = vpop.f32.mrf.mxu3  ;;  %v8633_v33 = vpack.c.bf16 %v8569_v32, %v8569_v32  ;;  %v8799_v25 = vsel %vm8731_vm11, %v8569_v32, 0.0  ;;  %v8900_v54 = vmul.f32 %v8569_v32, %v8569_v32  ;;  %5916 = vrot.lane.b32.xlu1 %v5853_v37, %s11037_s24  ;;  %v10227_v32 = vld [vmem:[%s11183_s14 + $0x1ac] sm:$0x3]  ;;  %v5718_v57 = vrot.slane %v5716_v14, 1 }
 0x6b5   : >> { %5780 = vrot.lane.b32.xlu0 %v5711_v29, %s11036_s23  ;;  %v6823_v1 = vadd.f32 %v6715_v6, %v17561_v51  ;;  %v8800_v63 = vadd.f32 %v8799_v25, %v8798_v22  ;;  %v7758_v51 = vrot.slane %v7392_v17, 1  ;;  %v7900_v29 = vrot.slane %v18553_v48, 2 }
 0x6b6   : >> { %8701 = vst.msk [vmem:[%s16833_s13 + $0x88] sm:$0xf] %vm8666_vm10, %v8633_v33  ;;  %v8997_v39 = vsel %vm8731_vm11, %v8900_v54, 0.0  ;;  %v7953_v12 = vpop.permute.xlu1 %7952  ;;  %v5719_v54 = vsel %vm508_vm0, %v5714_v44, %v5718_v57  ;;  %v7103_v61 = vunpack.c.l.b16 %v10227_v32 }
 0x6b7   : >> { %v8998_v23 = vadd.f32 %v8997_v39, %v8996_v31  ;;  %v8395_v22 = vpop.f32.mrf.mxu0  ;;  %v7817_v9 = vpop.permute.xlu0 %7816  ;;  %v18621_v27 = vor.u32 %v7759_v15, %v7758_v51  ;;  %v7901_v5 = vsel %vm1231_vm3, %v7898_v50, %v7900_v29  ;;  %v6085_v51 = vrot.slane %v5716_v14, 2 }
 0x6b8   : >> { %v8503_v40 = vadd.f32 %v8395_v22, %v6823_v1  ;;  %v8145_v3 = vsel %vm1498_vm7, %v8081_v16, %v7817_v9  ;;  %v18609_v19 = vpop.permute.xlu2 %5908  ;;  %v5854_v50 = vrot.slane %v18596_v36, 1  ;;  %v18657_v22 = vpack.c.b16 %v7103_v61, %v7103_v61 }
 0x6b9   : >> { %v8209_v31 = vsel %vm1563_vm9, %v8145_v3, %v7953_v12  ;;  %v7761_v16 = vsel %vm998_vm2, %v18511_v30, %v18621_v27  ;;  %v6084_v12 = vrot.slane %v6082_v8, 1  ;;  %v6222_v9 = vrot.slane %v18596_v36, 2 }
 0x6ba   : >> { %v8570_v11 = vadd.f32 %v16802_v53, %v8503_v40  ;;  %10386 = vmatmul.msk.bf16.gmra.mxu0 %vm3010_vm8, %v8209_v31 }
 0x6bb   : >> { %7596 = vrot.lane.b32.xlu2 %v7533_v41, %s11037_s24  ;;  %v6086_v3 = vor.u32 %v6085_v51, %v6084_v12  ;;  %v6223_v36 = vsel %vm1231_vm3, %v6220_v20, %v6222_v9 }
 0x6bc   : >> { %v8634_v0 = vpack.c.bf16 %v8570_v11, %v8570_v11  ;;  %v8801_v62 = vsel %vm8731_vm11, %v8570_v11, 0.0  ;;  %v8901_v47 = vmul.f32 %v8570_v11, %v8570_v11  ;;  %7460 = vrot.lane.b32.xlu1 %v7391_v56, %s11036_s23 }
 0x6bd   : >> { %6284 = vrot.lane.b32.xlu0 %v6221_v34, %s11039_s30  ;;  %v8802_v28 = vadd.f32 %v8801_v62, %v8800_v63  ;;  %v6718_v37 = vpop.f32.mrf.mxu3  ;;  %v7396_v62 = vshll.u32 %v18657_v22, 16  ;;  %v6087_v32 = vsel %vm998_vm2, %v18541_v42, %v6086_v3 }
 0x6be   : >> { %8702 = vst.msk [vmem:[%s16833_s13 + $0x8c] sm:$0xf] %vm8666_vm10, %v8634_v0  ;;  %v8999_v60 = vsel %vm8731_vm11, %v8901_v47, 0.0  ;;  %v6824_v6 = vadd.f32 %v6718_v37, %v17608_v2  ;;  %v6139_v52 = vpop.permute.xlu1 %6138  ;;  %v5855_v0 = vsel %vm861_vm1, %v5852_v24, %v5854_v50 }
 0x6bf   : >> { %v9000_v33 = vadd.f32 %v8999_v60, %v8998_v23  ;;  %v5907_v25 = vpop.permute.xlu0 %5906  ;;  %v7765_v44 = vrot.slane %v7396_v62, 2  ;;  %v7394_v60 = vor.u32 %v7392_v17, %v18589_v45 }
 0x6c0   : >> { %v6403_v1 = vsel %vm1433_vm6, %v6339_v4, %v5907_v25  ;;  %v8398_v63 = vpop.f32.mrf.mxu0  ;;  %v18646_v2 = vpop.permute.xlu2 %7452 }
 0x6c1   : >> { %v6467_v43 = vsel %vm1498_vm7, %v6403_v1, %v6139_v52  ;;  %v8504_v39 = vadd.f32 %v8398_v63, %v6824_v6  ;;  %v7398_v6 = vrot.slane %v7396_v62, 1 }
 0x6c2   : >> { %v6531_v23 = vsel %vm1563_vm9, %v6467_v43, %v18526_v10 }
 0x6c3   : >> { %5782 = vrot.lane.b32.xlu2 %v5719_v54, %s11036_s23  ;;  %v8571_v30 = vadd.f32 %v16802_v53, %v8504_v39  ;;  %10147 = vmatmul.msk.bf16.gmra.mxu3 %vm3010_vm8, %v6531_v23  ;;  %v7534_v54 = vrot.slane %v18657_v22, 1  ;;  %v7399_v12 = vsel %vm508_vm0, %v7394_v60, %v7398_v6 }
 0x6c4   : >> { %7964 = vrot.lane.b32.xlu1 %v7901_v5, %s11039_s30 }
 0x6c5   : >> { %7828 = vrot.lane.b32.xlu0 %v7761_v16, %s11038_s27  ;;  %v8635_v15 = vpack.c.bf16 %v8571_v30, %v8571_v30  ;;  %v8803_v10 = vsel %vm8731_vm11, %v8571_v30, 0.0  ;;  %v8902_v41 = vmul.f32 %v8571_v30, %v8571_v30  ;;  %v6720_v40 = vpop.f32.mrf.mxu3  ;;  %v7535_v23 = vsel %vm861_vm1, %v7532_v7, %v7534_v54  ;;  %v10911_v30 = vld [vmem:[%s11183_s14 + $0x154] sm:$0xff] }
 0x6c6   : >> { %v8804_v34 = vadd.f32 %v8803_v10, %v8802_v28  ;;  %v6825_v31 = vadd.f32 %v6720_v40, %v17655_v59  ;;  %v7587_v56 = vpop.permute.xlu1 %7586  ;;  %v7762_v59 = vshrl.u32 %v18657_v22, 16  ;;  %v10910_v28 = vld [vmem:[%s11183_s14 + $0x170] sm:$0xff] }
 0x6c7   : >> { %8703 = vst.msk [vmem:[%s16833_s13 + $0x90] sm:$0xf] %vm8666_vm10, %v8635_v15  ;;  %v9001_v11 = vsel %vm8731_vm11, %v8902_v41, 0.0  ;;  %v7451_v46 = vpop.permute.xlu0 %7450  ;;  %v3432_v15 = vpop.f32.mrf.mxu1 }
 0x6c8   : >> { %v9002_v4 = vadd.f32 %v9001_v11, %v9000_v33  ;;  %v8400_v14 = vpop.f32.mrf.mxu0  ;;  %v18672_v47 = vpop.permute.xlu2 %7956  ;;  %v8019_v37 = vsel %vm1368_vm5, %v10910_v28, %v7451_v46  ;;  %v7764_v20 = vrot.slane %v7762_v59, 1 }
 0x6c9   : >> { %v8505_v8 = vadd.f32 %v8400_v14, %v6825_v31  ;;  %v8083_v57 = vsel %vm1433_vm6, %v8019_v37, %v7587_v56 }
 0x6ca   : >> { %v7766_v52 = vor.u32 %v7765_v44, %v7764_v20  ;;  %v8147_v5 = vsel %vm1498_vm7, %v8083_v57, %v18563_v38  ;;  %v20616_v44 = vld [vmem:[#allocation53_spill] sm:$0xff] }
 0x6cb   : >> { %6286 = vrot.lane.b32.xlu2 %v6223_v36, %s11039_s30  ;;  %v8572_v24 = vadd.f32 %v16802_v53, %v8505_v8 }
 0x6cc   : >> { %6150 = vrot.lane.b32.xlu1 %v6087_v32, %s11038_s27  ;;  %v7767_v17 = vsel %vm998_vm2, %v18621_v27, %v7766_v52  ;;  %v7902_v27 = vrot.slane %v18657_v22, 2 }
 0x6cd   : >> { %5918 = vrot.lane.b32.xlu0 %v5855_v0, %s11037_s24  ;;  %v8636_v42 = vpack.c.bf16 %v8572_v24, %v8572_v24  ;;  %v8805_v33 = vsel %vm8731_vm11, %v8572_v24, 0.0  ;;  %v8903_v25 = vmul.f32 %v8572_v24, %v8572_v24  ;;  %v10912_v0 = vld [vmem:[%s11183_s14 + $0x178] sm:$0xff]  ;;  %v3433_v24 = vadd.f32 %v3432_v15, %v20616_v44 }
 0x6ce   : >> { %v8806_v1 = vadd.f32 %v8805_v33, %v8804_v34  ;;  %v5773_v63 = vpop.permute.xlu1 %5772  ;;  %v6723_v43 = vpop.f32.mrf.mxu3  ;;  %v7903_v34 = vsel %vm1231_vm3, %v7900_v29, %v7902_v27  ;;  %v8021_v62 = vsel %vm1368_vm5, %v10912_v0, %v18646_v2 }
 0x6cf   : >> { %8704 = vst.msk [vmem:[%s16833_s13 + $0x94] sm:$0xf] %vm8666_vm10, %v8636_v42  ;;  %v9003_v16 = vsel %vm8731_vm11, %v8903_v25, 0.0  ;;  %v7955_v61 = vpop.permute.xlu0 %7954  ;;  %v6341_v38 = vsel %vm1368_vm5, %v10911_v30, %v5773_v63  ;;  %v6826_v50 = vadd.f32 %v6723_v43, %v17712_v49  ;;  %v3434_v57 = vpop.f32.mrf.mxu1 }
 0x6d0   : >> { %v9004_v45 = vadd.f32 %v9003_v16, %v9002_v4  ;;  %v8211_v39 = vsel %vm1563_vm9, %v8147_v5, %v7955_v61  ;;  %v18698_v51 = vpop.permute.xlu2 %6142  ;;  %v6405_v9 = vsel %vm1433_vm6, %v6341_v38, %v18609_v19  ;;  %v5048_v19 = vpop.f32.mrf.mxu2 }
 0x6d1   : >> { %10387 = vmatmul.msk.bf16.gmra.mxu0 %vm3010_vm8, %v8211_v39  ;;  %v5148_v52 = vadd.f32 %v5048_v19, %v3433_v24  ;;  %v20617_v39 = vld [vmem:[#allocation45_spill] sm:$0xff] }
 0x6d3   : >> { %7830 = vrot.lane.b32.xlu2 %v7767_v17, %s11038_s27 }
 0x6d4   : >> { %7598 = vrot.lane.b32.xlu1 %v7535_v23, %s11037_s24  ;;  %v10913_v23 = vld [vmem:[%s11183_s14 + $0x15c] sm:$0xff]  ;;  %s9097_s24 = sshll.u32 (%p241_p0), %s219_s25, 4  ;;  %s9098_s24 = int_to_ptr.vmem [resolvable:$true] %s9097_s24 }
 0x6d5   : >> { %7462 = vrot.lane.b32.xlu0 %v7399_v12, %s11036_s23  ;;  %v3435_v12 = vadd.f32 %v3434_v57, %v20617_v39 }
 0x6d6   : >> { %v8403_v10 = vpop.f32.mrf.mxu0  ;;  %v6277_v40 = vpop.permute.xlu1 %6276 }
 0x6d7   : >> { %v8506_v41 = vadd.f32 %v8403_v10, %v6826_v50  ;;  %v6141_v7 = vpop.permute.xlu0 %6140  ;;  %v6725_v56 = vpop.f32.mrf.mxu3 }
 0x6d8   : >> { %v6469_v3 = vsel %vm1498_vm7, %v6405_v9, %v6141_v7  ;;  %v18719_v31 = vpop.permute.xlu2 %7590  ;;  %v6827_v14 = vadd.f32 %v6725_v56, %v17763_v18  ;;  %v5050_v54 = vpop.f32.mrf.mxu2 }
 0x6d9   : >> { %v8573_v22 = vadd.f32 %v16802_v53, %v8506_v41  ;;  %v6533_v49 = vsel %vm1563_vm9, %v6469_v3, %v6277_v40  ;;  %v3437_v27 = vpop.f32.mrf.mxu1  ;;  %v5149_v50 = vadd.f32 %v5050_v54, %v3435_v12 }
 0x6da   : >> { %10148 = vmatmul.msk.bf16.gmra.mxu3 %vm3010_vm8, %v6533_v49 }
 0x6db   : >> { %v8637_v11 = vpack.c.bf16 %v8573_v22, %v8573_v22  ;;  %v8807_v46 = vsel %vm8731_vm11, %v8573_v22, 0.0  ;;  %v8904_v36 = vmul.f32 %v8573_v22, %v8573_v22 }
 0x6dc   : >> { %v8808_v4 = vadd.f32 %v8807_v46, %v8806_v1 }
 0x6dd   : >> { %7966 = vrot.lane.b32.xlu0 %v7903_v34, %s11039_s30  ;;  %8705 = vst.msk [vmem:[%s16833_s13 + $0x98] sm:$0xf] %vm8666_vm10, %v8637_v11  ;;  %v9005_v29 = vsel %vm8731_vm11, %v8904_v36, 0.0 }
 0x6de   : >> { %v9006_v59 = vadd.f32 %v9005_v29, %v9004_v45  ;;  %v8405_v28 = vpop.f32.mrf.mxu0  ;;  %v7821_v32 = vpop.permute.xlu1 %7820  ;;  %v20618_v29 = vld [vmem:[#allocation77_spill] sm:$0xff] }
 0x6df   : >> { %v8507_v37 = vadd.f32 %v8405_v28, %v6827_v14  ;;  %v7589_v8 = vpop.permute.xlu0 %7588  ;;  %v3438_v0 = vadd.f32 %v3437_v27, %v20618_v29 }
 0x6e0   : >> { %v8085_v20 = vsel %vm1433_vm6, %v8021_v62, %v7589_v8  ;;  %v18739_v25 = vpop.permute.xlu2 %5776  ;;  %v5053_v22 = vpop.f32.mrf.mxu2 }
 0x6e1   : >> { %v8574_v18 = vadd.f32 %v16802_v53, %v8507_v37  ;;  %v8149_v60 = vsel %vm1498_vm7, %v8085_v20, %v7821_v32  ;;  %v5150_v37 = vadd.f32 %v5053_v22, %v3438_v0  ;;  %v3439_v20 = vpop.f32.mrf.mxu1  ;;  %v6345_v39 = vsel %vm1368_vm5, %v18290_v21, %v18739_v25  ;;  %v20620_v0 = vld [vmem:[#allocation28_spill] sm:$0xff] }
 0x6e2   : >> { %v8213_v6 = vsel %vm1563_vm9, %v8149_v60, %v18672_v47 }
 0x6e3   : >> { %v8638_v2 = vpack.c.bf16 %v8574_v18, %v8574_v18  ;;  %v8809_v42 = vsel %vm8731_vm11, %v8574_v18, 0.0  ;;  %v8905_v33 = vmul.f32 %v8574_v18, %v8574_v18  ;;  %10388 = vmatmul.msk.bf16.gmra.mxu0 %vm3010_vm8, %v8213_v6 }
 0x6e4   : >> { %v8810_v1 = vadd.f32 %v8809_v42, %v8808_v4  ;;  %v6728_v63 = vpop.f32.mrf.mxu3 }
 0x6e5   : >> { %8706 = vst.msk [vmem:[%s16833_s13 + $0x9c] sm:$0xf] %vm8666_vm10, %v8638_v2  ;;  %v9007_v16 = vsel %vm8731_vm11, %v8905_v33, 0.0  ;;  %v6828_v5 = vadd.f32 %v6728_v63, %v5148_v52 }
 0x6e6   : >> { %v9008_v61 = vadd.f32 %v9007_v16, %v9006_v59  ;;  %v5911_v43 = vpop.permute.xlu1 %5910  ;;  %v10914_v59 = vld [vmem:[%s11183_s14 + $0x180] sm:$0xff] }
 0x6e7   : >> { %v8408_v47 = vpop.f32.mrf.mxu0  ;;  %v5775_v17 = vpop.permute.xlu0 %5774 }
 0x6e8   : >> { %v8508_v45 = vadd.f32 %v8408_v47, %v6828_v5  ;;  %v6343_v30 = vsel %vm1368_vm5, %v10913_v23, %v5775_v17  ;;  %v6281_v34 = vpop.permute.xlu2 %6280  ;;  %v20619_v5 = vld [vmem:[#allocation91_spill] sm:$0xff] }
 0x6e9   : >> { %v6407_v41 = vsel %vm1433_vm6, %v6343_v30, %v5911_v43 }
 0x6ea   : >> { %v8575_v38 = vadd.f32 %v16802_v53, %v8508_v45  ;;  %v6471_v56 = vsel %vm1498_vm7, %v6407_v41, %v18698_v51 }
 0x6ec   : >> { %v8639_v9 = vpack.c.bf16 %v8575_v38, %v8575_v38  ;;  %v8811_v15 = vsel %vm8731_vm11, %v8575_v38, 0.0  ;;  %v8906_v10 = vmul.f32 %v8575_v38, %v8575_v38  ;;  %v6730_v7 = vpop.f32.mrf.mxu3  ;;  %v3442_v38 = vpop.f32.mrf.mxu1 }
 0x6ed   : >> { %v8812_v40 = vadd.f32 %v8811_v15, %v8810_v1  ;;  %v6829_v3 = vadd.f32 %v6730_v7, %v5149_v50  ;;  %v5055_v1 = vpop.f32.mrf.mxu2 }
 0x6ee   : >> { %8707 = vst.msk [vmem:[%s16833_s13 + $0xa0] sm:$0xf] %vm8666_vm10, %v8639_v9  ;;  %v9009_v49 = vsel %vm8731_vm11, %v8906_v10, 0.0  ;;  %v7455_v14 = vpop.permute.xlu1 %7454 }
 0x6ef   : >> { %v9010_v19 = vadd.f32 %v9009_v49, %v9008_v61  ;;  %v8410_v11 = vpop.f32.mrf.mxu0  ;;  %v6279_v46 = vpop.permute.xlu0 %6278  ;;  %v8023_v28 = vsel %vm1368_vm5, %v10914_v59, %v7455_v14 }
 0x6f0   : >> { %v8509_v36 = vadd.f32 %v8410_v11, %v6829_v3  ;;  %v6535_v4 = vsel %vm1563_vm9, %v6471_v56, %v6279_v46  ;;  %v8087_v24 = vsel %vm1433_vm6, %v8023_v28, %v18719_v31  ;;  %v7825_v2 = vpop.permute.xlu2 %7824  ;;  %v3440_v31 = vadd.f32 %v3439_v20, %v20619_v5 }
 0x6f1   : >> { %10149 = vmatmul.msk.bf16.gmra.mxu3 %vm3010_vm8, %v6535_v4 }
 0x6f2   : >> { %v8576_v62 = vadd.f32 %v16802_v53, %v8509_v36  ;;  %v5151_v47 = vadd.f32 %v5055_v1, %v3440_v31 }
 0x6f4   : >> { %v8640_v8 = vpack.c.bf16 %v8576_v62, %v8576_v62  ;;  %v8813_v51 = vsel %vm8731_vm11, %v8576_v62, 0.0  ;;  %v8907_v32 = vmul.f32 %v8576_v62, %v8576_v62  ;;  %v3444_v59 = vpop.f32.mrf.mxu1 }
 0x6f5   : >> { %v8814_v44 = vadd.f32 %v8813_v51, %v8812_v40  ;;  %v6733_v57 = vpop.f32.mrf.mxu3  ;;  %v5058_v25 = vpop.f32.mrf.mxu2 }
 0x6f6   : >> { %8708 = vst.msk [vmem:[%s16833_s13 + $0xa4] sm:$0xf] %vm8666_vm10, %v8640_v8  ;;  %v9011_v18 = vsel %vm8731_vm11, %v8907_v32, 0.0  ;;  %v6830_v60 = vadd.f32 %v6733_v57, %v5150_v37  ;;  %v7959_v33 = vpop.permute.xlu1 %7958 }
 0x6f7   : >> { %v9012_v6 = vadd.f32 %v9011_v18, %v9010_v19  ;;  %v7823_v52 = vpop.permute.xlu0 %7822 }
 0x6f8   : >> { %v8151_v42 = vsel %vm1498_vm7, %v8087_v24, %v7823_v52  ;;  %v8413_v54 = vpop.f32.mrf.mxu0  ;;  %v5915_v3 = vpop.permute.xlu2 %5914 }
 0x6f9   : >> { %v8215_v63 = vsel %vm1563_vm9, %v8151_v42, %v7959_v33  ;;  %v8510_v16 = vadd.f32 %v8413_v54, %v6830_v60  ;;  %v10915_v33 = vld [vmem:[%s11183_s14 + $0x170] sm:$0xff]  ;;  %s10397_s14 = sshll.u32 (%p241_p0), %s11010_s19, 2 }
 0x6fa   : >> { %10389 = vmatmul.msk.bf16.gmra.mxu0 %vm3010_vm8, %v8215_v63  ;;  %s9093_s23 = sadd.s32 (%p241_p0), %s11006_s18, %s10397_s14 }
 0x6fb   : >> { %v8577_v61 = vadd.f32 %v16802_v53, %v8510_v16  ;;  %s10398_s27 = sshll.u32 (%p241_p0), %s9093_s23, 1 }
 0x6fc   : >> { %v3447_v5 = vpop.f32.mrf.mxu1  ;;  %s9095_s21 = scalar_lea.hbm (%p241_p0), %s19018_s4, %s10398_s27 }
 0x6fd   : >> { %v8641_v17 = vpack.c.bf16 %v8577_v61, %v8577_v61  ;;  %v8815_v45 = vsel %vm8731_vm11, %v8577_v61, 0.0  ;;  %v8908_v43 = vmul.f32 %v8577_v61, %v8577_v61  ;;  %v6735_v12 = vpop.f32.mrf.mxu3  ;;  %v5060_v51 = vpop.f32.mrf.mxu2  ;;  %s9099_s26 = sshll.u32 (%p241_p0), %s9095_s21, 4  ;;  %s9100_s26 = int_to_ptr.hbm [resolvable:$true] %s9099_s26 }
 0x6fe   : >> { %v8816_v23 = vadd.f32 %v8815_v45, %v8814_v44  ;;  %v6831_v30 = vadd.f32 %v6735_v12, %v5151_v47  ;;  %v6145_v10 = vpop.permute.xlu1 %6144  ;;  %s10930_s9 = sshra.s32 (%p241_p0), %s9100_s26, 4  ;;  %s10931_s9 = int_to_ptr.hbm [resolvable:$true] %s10930_s9 }
 0x6ff   : >> { %8709 = vst.msk [vmem:[%s16833_s13 + $0xa8] sm:$0xf] %vm8666_vm10, %v8641_v17  ;;  %v9013_v27 = vsel %vm8731_vm11, %v8908_v43, 0.0  ;;  %v5913_v50 = vpop.permute.xlu0 %5912  ;;  %s10932_s10 = scalar_lea.hbm (%p241_p0), %s10931_s9, 2  ;;  %p10937_p5 = scmp.lt.s32.totalorder (%p241_p0), %s10931_s9, %s19018_s4 }
 0x700   : >> { %v9014_v9 = vadd.f32 %v9013_v27, %v9012_v6  ;;  %v6409_v15 = vsel %vm1433_vm6, %v6345_v39, %v5913_v50  ;;  %v8415_v41 = vpop.f32.mrf.mxu0  ;;  %v7459_v37 = vpop.permute.xlu2 %7458  ;;  %v20621_v6 = vld [vmem:[#allocation90_spill] sm:$0xff]  ;;  %p10933_p1 = scmp.ne.s32.totalorder (%p241_p0), %s10931_s9, %s10932_s10 }
 0x701   : >> { %v6473_v7 = vsel %vm1498_vm7, %v6409_v15, %v6145_v10  ;;  %v8511_v40 = vadd.f32 %v8415_v41, %v6831_v30  ;;  %v3445_v52 = vadd.f32 %v3444_v59, %v20621_v6  ;;  %v20622_v15 = vld [vmem:[#allocation80_spill] sm:$0xff]  ;;  %v20623_v59 = vld [vmem:[#allocation206_spill] sm:$0xff] }
 0x702   : >> { %v6537_v21 = vsel %vm1563_vm9, %v6473_v7, %v6281_v34  ;;  %v3443_v34 = vadd.f32 %v3442_v38, %v20620_v0  ;;  %v3448_v10 = vadd.f32 %v3447_v5, %v20622_v15  ;;  %p10934_p2 = pnand (%p241_p0), %p10933_p1, %p11117_p3 }
 0x703   : >> { %v8578_v22 = vadd.f32 %v16802_v53, %v8511_v40  ;;  %10150 = vmatmul.msk.bf16.gmra.mxu3 %vm3010_vm8, %v6537_v21  ;;  %v5153_v1 = vadd.f32 %v5060_v51, %v3445_v52 }
 0x704   : >> { %v5152_v28 = vadd.f32 %v5058_v25, %v3443_v34  ;;  %p10935_p4 = pneg (%p241_p0), %p10934_p2 }
 0x705   : >> { %v8642_v49 = vpack.c.bf16 %v8578_v22, %v8578_v22  ;;  %v8817_v19 = vsel %vm8731_vm11, %v8578_v22, 0.0  ;;  %v8909_v56 = vmul.f32 %v8578_v22, %v8578_v22  ;;  %v5063_v12 = vpop.f32.mrf.mxu2  ;;  %v8027_v22 = vsel %vm1368_vm5, %v18352_v35, %v7459_v37 }
 0x706   : >> { %v8818_v11 = vadd.f32 %v8817_v19, %v8816_v23  ;;  %v6738_v14 = vpop.f32.mrf.mxu3  ;;  %v7593_v29 = vpop.permute.xlu1 %7592 }
 0x707   : >> { %8710 = vst.msk [vmem:[%s16833_s13 + $0xac] sm:$0xf] %vm8666_vm10, %v8642_v49  ;;  %v9015_v46 = vsel %vm8731_vm11, %v8909_v56, 0.0  ;;  %v7457_v36 = vpop.permute.xlu0 %7456  ;;  %v6832_v32 = vadd.f32 %v6738_v14, %v5152_v28  ;;  %v3449_v19 = vpop.f32.mrf.mxu1 }
 0x708   : >> { %v9016_v4 = vadd.f32 %v9015_v46, %v9014_v9  ;;  %v8025_v62 = vsel %vm1368_vm5, %v18330_v58, %v7457_v36  ;;  %v7963_v45 = vpop.permute.xlu2 %7962  ;;  %v3450_v28 = vadd.f32 %v3449_v19, %v20623_v59 }
 0x709   : >> { %v8089_v8 = vsel %vm1433_vm6, %v8025_v62, %v7593_v29 }
 0x70a   : >> { %v8153_v44 = vsel %vm1498_vm7, %v8089_v8, %v7825_v2 }
 0x70d   : >> { %v5065_v0 = vpop.f32.mrf.mxu2 }
 0x70e   : >> { %v8418_v20 = vpop.f32.mrf.mxu0  ;;  %v5779_v60 = vpop.permute.xlu1 %5778  ;;  %v5155_v37 = vadd.f32 %v5065_v0, %v3450_v28 }
 0x70f   : >> { %v8512_v24 = vadd.f32 %v8418_v20, %v6832_v32  ;;  %v7961_v57 = vpop.permute.xlu0 %7960  ;;  %v6740_v42 = vpop.f32.mrf.mxu3  ;;  %v6347_v54 = vsel %vm1368_vm5, %v10915_v33, %v5779_v60 }
 0x710   : >> { %v8217_v18 = vsel %vm1563_vm9, %v8153_v44, %v7961_v57  ;;  %v6833_v61 = vadd.f32 %v6740_v42, %v5153_v1  ;;  %v6411_v17 = vsel %vm1433_vm6, %v6347_v54, %v5915_v3  ;;  %v5154_v3 = vadd.f32 %v5063_v12, %v3448_v10  ;;  %v6149_v36 = vpop.permute.xlu2 %6148 }
 0x711   : >> { %v8579_v58 = vadd.f32 %v16802_v53, %v8512_v24  ;;  %10390 = vmatmul.msk.bf16.gmra.mxu0 %vm3010_vm8, %v8217_v18 }
 0x713   : >> { %v8643_v63 = vpack.c.bf16 %v8579_v58, %v8579_v58  ;;  %v8819_v2 = vsel %vm8731_vm11, %v8579_v58, 0.0  ;;  %v8910_v16 = vmul.f32 %v8579_v58, %v8579_v58 }
 0x714   : >> { %v8820_v31 = vadd.f32 %v8819_v2, %v8818_v11 }
 0x715   : >> { %8711 = vst.msk [vmem:[%s16833_s13 + $0xb0] sm:$0xf] %vm8666_vm10, %v8643_v63  ;;  %v9017_v47 = vsel %vm8731_vm11, %v8910_v16, 0.0  ;;  %v3452_v63 = vpop.f32.mrf.mxu1 }
 0x716   : >> { %v9018_v43 = vadd.f32 %v9017_v47, %v9016_v4  ;;  %v8420_v39 = vpop.f32.mrf.mxu0  ;;  %v6283_v27 = vpop.permute.xlu1 %6282 }
 0x717   : >> { %v8513_v23 = vadd.f32 %v8420_v39, %v6833_v61  ;;  %v6147_v30 = vpop.permute.xlu0 %6146  ;;  %v5068_v61 = vpop.f32.mrf.mxu2 }
 0x718   : >> { %v6475_v38 = vsel %vm1498_vm7, %v6411_v17, %v6147_v30  ;;  %v7597_v54 = vpop.permute.xlu2 %7596 }
 0x719   : >> { %v8580_v50 = vadd.f32 %v16802_v53, %v8513_v23  ;;  %v6539_v9 = vsel %vm1563_vm9, %v6475_v38, %v6283_v27  ;;  %v20624_v23 = vld [vmem:[#allocation51_spill] sm:$0xff] }
 0x71a   : >> { %10151 = vmatmul.msk.bf16.gmra.mxu3 %vm3010_vm8, %v6539_v9  ;;  %v3453_v30 = vadd.f32 %v3452_v63, %v20624_v23 }
 0x71b   : >> { %v8644_v41 = vpack.c.bf16 %v8580_v50, %v8580_v50  ;;  %v8821_v7 = vsel %vm8731_vm11, %v8580_v50, 0.0  ;;  %v8911_v40 = vmul.f32 %v8580_v50, %v8580_v50 }
 0x71c   : >> { %v8822_v21 = vadd.f32 %v8821_v7, %v8820_v31  ;;  %v5156_v27 = vadd.f32 %v5068_v61, %v3453_v30  ;;  %v20627_v30 = vld [vmem:[#allocation20_spill] sm:$0xff] }
 0x71d   : >> { %8712 = vst.msk [vmem:[%s16833_s13 + $0xb4] sm:$0xf] %vm8666_vm10, %v8644_v41  ;;  %v9019_v25 = vsel %vm8731_vm11, %v8911_v40, 0.0  ;;  %v6743_v49 = vpop.f32.mrf.mxu3  ;;  %v3454_v41 = vpop.f32.mrf.mxu1 }
 0x71e   : >> { %v9020_v56 = vadd.f32 %v9019_v25, %v9018_v43  ;;  %v6834_v11 = vadd.f32 %v6743_v49, %v5154_v3  ;;  %v7827_v14 = vpop.permute.xlu1 %7826  ;;  %v20625_v49 = vld [vmem:[#allocation30_spill] sm:$0xff] }
 0x71f   : >> { %v7595_v46 = vpop.permute.xlu0 %7594  ;;  %v5070_v3 = vpop.f32.mrf.mxu2  ;;  %v3455_v19 = vadd.f32 %v3454_v41, %v20625_v49 }
 0x720   : >> { %v8091_v4 = vsel %vm1433_vm6, %v8027_v22, %v7595_v46  ;;  %v8423_v29 = vpop.f32.mrf.mxu0  ;;  %v5783_v9 = vpop.permute.xlu2 %5782 }
 0x721   : >> { %v8155_v34 = vsel %vm1498_vm7, %v8091_v4, %v7827_v14  ;;  %v8514_v62 = vadd.f32 %v8423_v29, %v6834_v11  ;;  %v5157_v11 = vadd.f32 %v5070_v3, %v3455_v19  ;;  %v6351_v0 = vsel %vm1368_vm5, %v18502_v13, %v5783_v9 }
 0x722   : >> { %v8219_v8 = vsel %vm1563_vm9, %v8155_v34, %v7963_v45 }
 0x723   : >> { %v8581_v35 = vadd.f32 %v16802_v53, %v8514_v62  ;;  %10391 = vmatmul.msk.bf16.gmra.mxu0 %vm3010_vm8, %v8219_v8 }
 0x725   : >> { %v8645_v51 = vpack.c.bf16 %v8581_v35, %v8581_v35  ;;  %v8823_v32 = vsel %vm8731_vm11, %v8581_v35, 0.0  ;;  %v8912_v20 = vmul.f32 %v8581_v35, %v8581_v35  ;;  %v6745_v44 = vpop.f32.mrf.mxu3 }
 0x726   : >> { %v8824_v24 = vadd.f32 %v8823_v32, %v8822_v21  ;;  %v6835_v57 = vadd.f32 %v6745_v44, %v5155_v37  ;;  %v5917_v52 = vpop.permute.xlu1 %5916 }
 0x727   : >> { %8713 = vst.msk [vmem:[%s16833_s13 + $0xb8] sm:$0xf] %vm8666_vm10, %v8645_v51  ;;  %v9021_v18 = vsel %vm8731_vm11, %v8912_v20, 0.0  ;;  %v5781_v60 = vpop.permute.xlu0 %5780  ;;  %v3457_v20 = vpop.f32.mrf.mxu1 }
 0x728   : >> { %v9022_v6 = vadd.f32 %v9021_v18, %v9020_v56  ;;  %v8425_v58 = vpop.f32.mrf.mxu0  ;;  %v6349_v42 = vsel %vm1368_vm5, %v18401_v26, %v5781_v60  ;;  %v6287_v59 = vpop.permute.xlu2 %6286 }
 0x729   : >> { %v8515_v33 = vadd.f32 %v8425_v58, %v6835_v57  ;;  %v6413_v2 = vsel %vm1433_vm6, %v6349_v42, %v5917_v52  ;;  %v5073_v57 = vpop.f32.mrf.mxu2 }
 0x72a   : >> { %v6477_v45 = vsel %vm1498_vm7, %v6413_v2, %v6149_v36 }
 0x72b   : >> { %v8582_v1 = vadd.f32 %v16802_v53, %v8515_v33 }
 0x72d   : >> { %v8646_v16 = vpack.c.bf16 %v8582_v1, %v8582_v1  ;;  %v8825_v5 = vsel %vm8731_vm11, %v8582_v1, 0.0  ;;  %v8913_v31 = vmul.f32 %v8582_v1, %v8582_v1  ;;  %v20626_v1 = vld [vmem:[#allocation83_spill] sm:$0xff] }
 0x72e   : >> { %v8826_v47 = vadd.f32 %v8825_v5, %v8824_v24  ;;  %v7461_v12 = vpop.permute.xlu1 %7460  ;;  %v3458_v63 = vadd.f32 %v3457_v20, %v20626_v1 }
 0x72f   : >> { %8714 = vst.msk [vmem:[%s16833_s13 + $0xbc] sm:$0xf] %vm8666_vm10, %v8646_v16  ;;  %v9023_v17 = vsel %vm8731_vm11, %v8913_v31, 0.0  ;;  %v6285_v26 = vpop.permute.xlu0 %6284  ;;  %v8029_v38 = vsel %vm1368_vm5, %v18442_v55, %v7461_v12  ;;  %v3459_v5 = vpop.f32.mrf.mxu1 }
 0x730   : >> { %v9024_v43 = vadd.f32 %v9023_v17, %v9022_v6  ;;  %v6541_v39 = vsel %vm1563_vm9, %v6477_v45, %v6285_v26  ;;  %v8093_v15 = vsel %vm1433_vm6, %v8029_v38, %v7597_v54  ;;  %v5158_v31 = vadd.f32 %v5073_v57, %v3458_v63 }
 0x731   : >> { %10152 = vmatmul.msk.bf16.gmra.mxu3 %vm3010_vm8, %v6541_v39  ;;  %v5075_v17 = vpop.f32.mrf.mxu2  ;;  %v3460_v38 = vadd.f32 %v3459_v5, %v20627_v30 }
 0x734   : >> { %v6748_v50 = vpop.f32.mrf.mxu3 }
 0x735   : >> { %v6836_v10 = vadd.f32 %v6748_v50, %v5156_v27  ;;  %v5159_v50 = vadd.f32 %v5075_v17, %v3460_v38  ;;  %v20631_v38 = vld [vmem:[#allocation33_spill] sm:$0xff] }
 0x736   : >> { %v7965_v22 = vpop.permute.xlu1 %7964 }
 0x737   : >> { %v8428_v7 = vpop.f32.mrf.mxu0  ;;  %v7829_v40 = vpop.permute.xlu0 %7828 }
 0x738   : >> { %v8516_v21 = vadd.f32 %v8428_v7, %v6836_v10  ;;  %v8157_v25 = vsel %vm1498_vm7, %v8093_v15, %v7829_v40  ;;  %v3462_v7 = vpop.f32.mrf.mxu1 }
 0x739   : >> { %v8221_v56 = vsel %vm1563_vm9, %v8157_v25, %v7965_v22  ;;  %v5078_v22 = vpop.f32.mrf.mxu2 }
 0x73a   : >> { %v8583_v55 = vadd.f32 %v16802_v53, %v8516_v21  ;;  %10392 = vmatmul.msk.bf16.gmra.mxu0 %vm3010_vm8, %v8221_v56  ;;  %v20628_v56 = vld [vmem:[#allocation62_spill] sm:$0xff] }
 0x73c   : >> { %v8647_v46 = vpack.c.bf16 %v8583_v55, %v8583_v55  ;;  %v8827_v36 = vsel %vm8731_vm11, %v8583_v55, 0.0  ;;  %v8914_v4 = vmul.f32 %v8583_v55, %v8583_v55  ;;  %v6750_v14 = vpop.f32.mrf.mxu3  ;;  %v3463_v55 = vadd.f32 %v3462_v7, %v20628_v56 }
 0x73d   : >> { %v8828_v29 = vadd.f32 %v8827_v36, %v8826_v47  ;;  %v6837_v34 = vadd.f32 %v6750_v14, %v5157_v11  ;;  %v7831_v47 = vpop.permute.xlu2 %7830 }
 0x73e   : >> { %8715 = vst.msk [vmem:[%s16833_s13 + $0xc0] sm:$0xf] %vm8666_vm10, %v8647_v46  ;;  %v9025_v62 = vsel %vm8731_vm11, %v8914_v4, 0.0  ;;  %v6151_v32 = vpop.permute.xlu1 %6150  ;;  %v5160_v4 = vadd.f32 %v5078_v22, %v3463_v55 }
 0x73f   : >> { %v9026_v28 = vadd.f32 %v9025_v62, %v9024_v43  ;;  %v8430_v8 = vpop.f32.mrf.mxu0  ;;  %v5919_v35 = vpop.permute.xlu0 %5918 }
 0x740   : >> { %v8517_v37 = vadd.f32 %v8430_v8, %v6837_v34  ;;  %v6415_v51 = vsel %vm1433_vm6, %v6351_v0, %v5919_v35 }
 0x741   : >> { %v6479_v44 = vsel %vm1498_vm7, %v6415_v51, %v6151_v32  ;;  %v5080_v8 = vpop.f32.mrf.mxu2 }
 0x742   : >> { %v8584_v24 = vadd.f32 %v16802_v53, %v8517_v37  ;;  %v6543_v13 = vsel %vm1563_vm9, %v6479_v44, %v6287_v59  ;;  %v3464_v59 = vpop.f32.mrf.mxu1  ;;  %v20629_v37 = vld [vmem:[#allocation34_spill] sm:$0xff] }
 0x743   : >> { %10153 = vmatmul.msk.bf16.gmra.mxu3 %vm3010_vm8, %v6543_v13  ;;  %v3465_v51 = vadd.f32 %v3464_v59, %v20629_v37 }
 0x744   : >> { %v8648_v18 = vpack.c.bf16 %v8584_v24, %v8584_v24  ;;  %v8829_v60 = vsel %vm8731_vm11, %v8584_v24, 0.0  ;;  %v8915_v6 = vmul.f32 %v8584_v24, %v8584_v24 }
 0x745   : >> { %v8830_v52 = vadd.f32 %v8829_v60, %v8828_v29  ;;  %v5161_v20 = vadd.f32 %v5080_v8, %v3465_v51  ;;  %v20633_v51 = vld [vmem:[#allocation143_spill] sm:$0xff] }
 0x746   : >> { %8716 = vst.msk [vmem:[%s16833_s13 + $0xc4] sm:$0xf] %vm8666_vm10, %v8648_v18  ;;  %v9027_v58 = vsel %vm8731_vm11, %v8915_v6, 0.0  ;;  %v6753_v54 = vpop.f32.mrf.mxu3  ;;  %v7599_v16 = vpop.permute.xlu1 %7598 }
 0x747   : >> { %v9028_v42 = vadd.f32 %v9027_v58, %v9026_v28  ;;  %v7463_v33 = vpop.permute.xlu0 %7462  ;;  %v6838_v45 = vadd.f32 %v6753_v54, %v5158_v31 }
 0x748   : >> { %v8031_v2 = vsel %vm1368_vm5, %v18553_v48, %v7463_v33 }
 0x749   : >> { %v8095_v61 = vsel %vm1433_vm6, %v8031_v2, %v7599_v16  ;;  %v5083_v16 = vpop.f32.mrf.mxu2 }
 0x74a   : >> { %v8159_v43 = vsel %vm1498_vm7, %v8095_v61, %v7831_v47  ;;  %v3467_v54 = vpop.f32.mrf.mxu1  ;;  %v20630_v47 = vld [vmem:[#allocation130_spill] sm:$0xff] }
 0x74b   : >> { %v3468_v17 = vadd.f32 %v3467_v54, %v20630_v47  ;;  %v20635_v47 = vld [vmem:[#allocation129_spill] sm:$0xff] }
 0x74e   : >> { %v8433_v26 = vpop.f32.mrf.mxu0  ;;  %v6755_v27 = vpop.f32.mrf.mxu3 }
 0x74f   : >> { %v8518_v39 = vadd.f32 %v8433_v26, %v6838_v45  ;;  %v7967_v12 = vpop.permute.xlu0 %7966  ;;  %v6839_v40 = vadd.f32 %v6755_v27, %v5159_v50  ;;  %v5162_v45 = vadd.f32 %v5083_v16, %v3468_v17 }
 0x750   : >> { %v8223_v23 = vsel %vm1563_vm9, %v8159_v43, %v7967_v12 }
 0x751   : >> { %v8585_v48 = vadd.f32 %v16802_v53, %v8518_v39  ;;  %10393 = vmatmul.msk.bf16.gmra.mxu0 %vm3010_vm8, %v8223_v23  ;;  %v5085_v23 = vpop.f32.mrf.mxu2 }
 0x752   : >> { %v3469_v39 = vpop.f32.mrf.mxu1 }
 0x753   : >> { %v8649_v9 = vpack.c.bf16 %v8585_v48, %v8585_v48  ;;  %v8831_v15 = vsel %vm8731_vm11, %v8585_v48, 0.0  ;;  %v8916_v10 = vmul.f32 %v8585_v48, %v8585_v48  ;;  %v3470_v48 = vadd.f32 %v3469_v39, %v20631_v38 }
 0x754   : >> { %v8832_v41 = vadd.f32 %v8831_v15, %v8830_v52 }
 0x755   : >> { %8717 = vst.msk [vmem:[%s16833_s13 + $0xc8] sm:$0xf] %vm8666_vm10, %v8649_v9  ;;  %v9029_v3 = vsel %vm8731_vm11, %v8916_v10, 0.0  ;;  %v5163_v50 = vadd.f32 %v5085_v23, %v3470_v48 }
 0x756   : >> { %v9030_v21 = vadd.f32 %v9029_v3, %v9028_v42  ;;  %v8435_v25 = vpop.f32.mrf.mxu0 }
 0x757   : >> { %v8519_v49 = vadd.f32 %v8435_v25, %v6839_v40 }
 0x759   : >> { %v8586_v19 = vadd.f32 %v16802_v53, %v8519_v49  ;;  %v5088_v56 = vpop.f32.mrf.mxu2 }
 0x75a   : >> { %v3472_v49 = vpop.f32.mrf.mxu1 }
 0x75b   : >> { %v8650_v11 = vpack.c.bf16 %v8586_v19, %v8586_v19  ;;  %v8833_v46 = vsel %vm8731_vm11, %v8586_v19, 0.0  ;;  %v8917_v36 = vmul.f32 %v8586_v19, %v8586_v19 }
 0x75c   : >> { %v8834_v14 = vadd.f32 %v8833_v46, %v8832_v41 }
 0x75d   : >> { %8718 = vst.msk [vmem:[%s16833_s13 + $0xcc] sm:$0xf] %vm8666_vm10, %v8650_v11  ;;  %v9031_v29 = vsel %vm8731_vm11, %v8917_v36, 0.0  ;;  %v6758_v0 = vpop.f32.mrf.mxu3 }
 0x75e   : >> { %v9032_v34 = vadd.f32 %v9031_v29, %v9030_v21  ;;  %v6840_v62 = vadd.f32 %v6758_v0, %v5160_v4  ;;  %v20632_v0 = vld [vmem:[#allocation67_spill] sm:$0xff] }
 0x760   : >> { %v8438_v28 = vpop.f32.mrf.mxu0 }
 0x761   : >> { %v8520_v35 = vadd.f32 %v8438_v28, %v6840_v62  ;;  %v5090_v28 = vpop.f32.mrf.mxu2 }
 0x762   : >> { %v3474_v62 = vpop.f32.mrf.mxu1 }
 0x763   : >> { %v8587_v32 = vadd.f32 %v16802_v53, %v8520_v35 }
 0x765   : >> { %v8651_v44 = vpack.c.bf16 %v8587_v32, %v8587_v32  ;;  %v8835_v24 = vsel %vm8731_vm11, %v8587_v32, 0.0  ;;  %v8918_v13 = vmul.f32 %v8587_v32, %v8587_v32  ;;  %v6760_v57 = vpop.f32.mrf.mxu3  ;;  %v3475_v32 = vadd.f32 %v3474_v62, %v20633_v51 }
 0x766   : >> { %v8836_v18 = vadd.f32 %v8835_v24, %v8834_v14  ;;  %v6841_v60 = vadd.f32 %v6760_v57, %v5161_v20 }
 0x767   : >> { %8719 = vst.msk [vmem:[%s16833_s13 + $0xd0] sm:$0xf] %vm8666_vm10, %v8651_v44  ;;  %v9033_v6 = vsel %vm8731_vm11, %v8918_v13, 0.0  ;;  %v5165_v24 = vadd.f32 %v5090_v28, %v3475_v32 }
 0x768   : >> { %v9034_v52 = vadd.f32 %v9033_v6, %v9032_v34  ;;  %v8440_v58 = vpop.f32.mrf.mxu0  ;;  %v3473_v34 = vadd.f32 %v3472_v49, %v20632_v0 }
 0x769   : >> { %v8521_v42 = vadd.f32 %v8440_v58, %v6841_v60  ;;  %v5093_v6 = vpop.f32.mrf.mxu2 }
 0x76a   : >> { %v5164_v59 = vadd.f32 %v5088_v56, %v3473_v34  ;;  %v3477_v57 = vpop.f32.mrf.mxu1 }
 0x76b   : >> { %v8588_v33 = vadd.f32 %v16802_v53, %v8521_v42  ;;  %v20634_v42 = vld [vmem:[#allocation86_spill] sm:$0xff] }
 0x76d   : >> { %v8652_v1 = vpack.c.bf16 %v8588_v33, %v8588_v33  ;;  %v8837_v63 = vsel %vm8731_vm11, %v8588_v33, 0.0  ;;  %v8919_v2 = vmul.f32 %v8588_v33, %v8588_v33  ;;  %v3478_v33 = vadd.f32 %v3477_v57, %v20634_v42 }
 0x76e   : >> { %v8838_v5 = vadd.f32 %v8837_v63, %v8836_v18 }
 0x76f   : >> { %8720 = vst.msk [vmem:[%s16833_s13 + $0xd4] sm:$0xf] %vm8666_vm10, %v8652_v1  ;;  %v9035_v31 = vsel %vm8731_vm11, %v8919_v2, 0.0  ;;  %v5166_v1 = vadd.f32 %v5093_v6, %v3478_v33 }
 0x770   : >> { %v9036_v61 = vadd.f32 %v9035_v31, %v9034_v52 }
 0x771   : >> { %v5095_v31 = vpop.f32.mrf.mxu2 }
 0x772   : >> { %v3479_v16 = vpop.f32.mrf.mxu1 }
 0x773   : >> { %v3480_v17 = vadd.f32 %v3479_v16, %v20635_v47 }
 0x774   : >> { %v6763_v26 = vpop.f32.mrf.mxu3 }
 0x775   : >> { %v6842_v43 = vadd.f32 %v6763_v26, %v5162_v45  ;;  %v5167_v26 = vadd.f32 %v5095_v31, %v3480_v17 }
 0x777   : >> { %v8443_v12 = vpop.f32.mrf.mxu0 }
 0x778   : >> { %v8522_v30 = vadd.f32 %v8443_v12, %v6842_v43 }
 0x77a   : >> { %v8589_v27 = vadd.f32 %v16802_v53, %v8522_v30  ;;  %v3482_v48 = vpop.f32.mrf.mxu1 }
 0x77c   : >> { %v8653_v9 = vpack.c.bf16 %v8589_v27, %v8589_v27  ;;  %v8839_v15 = vsel %vm8731_vm11, %v8589_v27, 0.0  ;;  %v8920_v10 = vmul.f32 %v8589_v27, %v8589_v27  ;;  %v6765_v41 = vpop.f32.mrf.mxu3 }
 0x77d   : >> { %v8840_v7 = vadd.f32 %v8839_v15, %v8838_v5  ;;  %v6843_v40 = vadd.f32 %v6765_v41, %v5163_v50  ;;  %v5098_v50 = vpop.f32.mrf.mxu2 }
 0x77e   : >> { %8721 = vst.msk [vmem:[%s16833_s13 + $0xd8] sm:$0xf] %vm8666_vm10, %v8653_v9  ;;  %v9037_v3 = vsel %vm8731_vm11, %v8920_v10, 0.0  ;;  %v20636_v9 = vld [vmem:[#allocation23_spill] sm:$0xff] }
 0x77f   : >> { %v9038_v21 = vadd.f32 %v9037_v3, %v9036_v61  ;;  %v8445_v25 = vpop.f32.mrf.mxu0  ;;  %v3483_v15 = vadd.f32 %v3482_v48, %v20636_v9 }
 0x780   : >> { %v8523_v22 = vadd.f32 %v8445_v25, %v6843_v40 }
 0x781   : >> { %v5168_v10 = vadd.f32 %v5098_v50, %v3483_v15 }
 0x782   : >> { %v8590_v19 = vadd.f32 %v16802_v53, %v8523_v22  ;;  %v3484_v40 = vpop.f32.mrf.mxu1  ;;  %v20637_v22 = vld [vmem:[#allocation65_spill] sm:$0xff] }
 0x783   : >> { %v3485_v49 = vadd.f32 %v3484_v40, %v20637_v22 }
 0x784   : >> { %v8654_v55 = vpack.c.bf16 %v8590_v19, %v8590_v19  ;;  %v8841_v11 = vsel %vm8731_vm11, %v8590_v19, 0.0  ;;  %v8921_v46 = vmul.f32 %v8590_v19, %v8590_v19 }
 0x785   : >> { %v18899_v36 = vadd.f32 %v8841_v11, %v8840_v7 }
 0x786   : >> { %8722 = vst.msk [vmem:[%s16833_s13 + $0xdc] sm:$0xf] %vm8666_vm10, %v8654_v55  ;;  %v9039_v4 = vsel %vm8731_vm11, %v8921_v46, 0.0  ;;  %v6768_v29 = vpop.f32.mrf.mxu3 }
 0x787   : >> { %v18904_v14 = vadd.f32 %v9039_v4, %v9038_v21  ;;  %v6844_v8 = vadd.f32 %v6768_v29, %v5164_v59  ;;  %v5100_v21 = vpop.f32.mrf.mxu2 }
 0x788   : >> { %v5169_v56 = vadd.f32 %v5100_v21, %v3485_v49 }
 0x78a   : >> { %v3487_v34 = vpop.f32.mrf.mxu1 }
 0x78e   : >> { %v8448_v35 = vpop.f32.mrf.mxu0  ;;  %v6770_v44 = vpop.f32.mrf.mxu3 }
 0x78f   : >> { %v8524_v37 = vadd.f32 %v8448_v35, %v6844_v8  ;;  %v6845_v18 = vadd.f32 %v6770_v44, %v5165_v24  ;;  %v5103_v59 = vpop.f32.mrf.mxu2  ;;  %v20638_v8 = vld [vmem:[#allocation100_spill] sm:$0xff] }
 0x790   : >> { %v3488_v35 = vadd.f32 %v3487_v34, %v20638_v8 }
 0x791   : >> { %v8591_v20 = vadd.f32 %v16802_v53, %v8524_v37 }
 0x792   : >> { %v5170_v51 = vadd.f32 %v5103_v59, %v3488_v35  ;;  %v3489_v24 = vpop.f32.mrf.mxu1 }
 0x793   : >> { %v8655_v13 = vpack.c.bf16 %v8591_v20, %v8591_v20  ;;  %v8922_v37 = vmul.f32 %v8591_v20, %v8591_v20  ;;  %v8843_v32 = vsel %vm8731_vm11, %v8591_v20, 0.0 }
 0x794   : >> { %v8844_v6 = vadd.f32 %v8843_v32, %v18899_v36 }
 0x795   : >> { %8723 = vst.msk [vmem:[%s16833_s13 + $0xe0] sm:$0xf] %vm8666_vm10, %v8655_v13  ;;  %v9041_v13 = vsel %vm8731_vm11, %v8922_v37, 0.0 }
 0x796   : >> { %v8450_v60 = vpop.f32.mrf.mxu0  ;;  %v9042_v16 = vadd.f32 %v9041_v13, %v18904_v14 }
 0x797   : >> { %v8525_v52 = vadd.f32 %v8450_v60, %v6845_v18  ;;  %v5105_v42 = vpop.f32.mrf.mxu2 }
 0x799   : >> { %v8592_v58 = vadd.f32 %v16802_v53, %v8525_v52 }
 0x79b   : >> { %v8656_v54 = vpack.c.bf16 %v8592_v58, %v8592_v58  ;;  %v8923_v44 = vmul.f32 %v8592_v58, %v8592_v58  ;;  %v8845_v57 = vsel %vm8731_vm11, %v8592_v58, 0.0 }
 0x79d   : >> { %8724 = vst.msk [vmem:[%s16833_s13 + $0xe4] sm:$0xf] %vm8666_vm10, %v8656_v54  ;;  %v6773_v63 = vpop.f32.mrf.mxu3  ;;  %v9043_v33 = vsel %vm8731_vm11, %v8923_v44, 0.0 }
 0x79e   : >> { %v6846_v2 = vadd.f32 %v6773_v63, %v5166_v1  ;;  %v9044_v17 = vadd.f32 %v9043_v33, %v9042_v16 }
 0x7a0   : >> { %v8453_v5 = vpop.f32.mrf.mxu0 }
 0x7a1   : >> { %v8526_v61 = vadd.f32 %v8453_v5, %v6846_v2  ;;  %v20639_v2 = vld [vmem:[#allocation119_spill] sm:$0xff]  ;;  %v8846_v5 = vadd.f32 %v8845_v57, %v8844_v6 }
 0x7a2   : >> { %v3490_v20 = vadd.f32 %v3489_v24, %v20639_v2  ;;  %v20640_v24 = vld [vmem:[#allocation10_spill] sm:$0xff] }
 0x7a3   : >> { %v8593_v45 = vadd.f32 %v16802_v53, %v8526_v61 }
 0x7a4   : >> { %v5171_v47 = vadd.f32 %v5105_v42, %v3490_v20 }
 0x7a5   : >> { %v8657_v43 = vpack.c.bf16 %v8593_v45, %v8593_v45  ;;  %v6775_v39 = vpop.f32.mrf.mxu3  ;;  %v8924_v18 = vmul.f32 %v8593_v45, %v8593_v45  ;;  %v8847_v54 = vsel %vm8731_vm11, %v8593_v45, 0.0 }
 0x7a6   : >> { %v6847_v12 = vadd.f32 %v6775_v39, %v5167_v26  ;;  %v8848_v26 = vadd.f32 %v8847_v54, %v8846_v5 }
 0x7a7   : >> { %8725 = vst.msk [vmem:[%s16833_s13 + $0xe8] sm:$0xf] %vm8666_vm10, %v8657_v43  ;;  %v9045_v31 = vsel %vm8731_vm11, %v8924_v18, 0.0  ;;  %v20641_v18 = vld [vmem:[#allocation9_spill] sm:$0xff] }
 0x7a8   : >> { %v8455_v23 = vpop.f32.mrf.mxu0  ;;  %v9046_v14 = vadd.f32 %v9045_v31, %v9044_v17 }
 0x7a9   : >> { %v8527_v30 = vadd.f32 %v8455_v23, %v6847_v12 }
 0x7ab   : >> { %v8594_v38 = vadd.f32 %v16802_v53, %v8527_v30 }
 0x7ad   : >> { %v8658_v27 = vpack.c.bf16 %v8594_v38, %v8594_v38  ;;  %v8925_v1 = vmul.f32 %v8594_v38, %v8594_v38  ;;  %v8849_v58 = vsel %vm8731_vm11, %v8594_v38, 0.0 }
 0x7ae   : >> { %v8850_v30 = vadd.f32 %v8849_v58, %v8848_v26 }
 0x7af   : >> { %8726 = vst.msk [vmem:[%s16833_s13 + $0xec] sm:$0xf] %vm8666_vm10, %v8658_v27  ;;  %v9047_v45 = vsel %vm8731_vm11, %v8925_v1, 0.0 }
 0x7b0   : >> { %v9048_v9 = vadd.f32 %v9047_v45, %v9046_v14 }
 0x7b4   : >> { %v6778_v41 = vpop.f32.mrf.mxu3 }
 0x7b5   : >> { %v6848_v7 = vadd.f32 %v6778_v41, %v5168_v10 }
 0x7b7   : >> { %v8458_v3 = vpop.f32.mrf.mxu0 }
 0x7b8   : >> { %v8528_v25 = vadd.f32 %v8458_v3, %v6848_v7 }
 0x7ba   : >> { %v8595_v19 = vadd.f32 %v16802_v53, %v8528_v25 }
 0x7bc   : >> { %v8659_v55 = vpack.c.bf16 %v8595_v19, %v8595_v19  ;;  %v6780_v11 = vpop.f32.mrf.mxu3  ;;  %v8926_v61 = vmul.f32 %v8595_v19, %v8595_v19  ;;  %v8851_v39 = vsel %vm8731_vm11, %v8595_v19, 0.0 }
 0x7bd   : >> { %v6849_v46 = vadd.f32 %v6780_v11, %v5169_v56  ;;  %v8852_v15 = vadd.f32 %v8851_v39, %v8850_v30 }
 0x7be   : >> { %8727 = vst.msk [vmem:[%s16833_s13 + $0xf0] sm:$0xf] %vm8666_vm10, %v8659_v55  ;;  %v9049_v48 = vsel %vm8731_vm11, %v8926_v61, 0.0 }
 0x7bf   : >> { %v8460_v4 = vpop.f32.mrf.mxu0  ;;  %v9050_v3 = vadd.f32 %v9049_v48, %v9048_v9 }
 0x7c0   : >> { %v8529_v29 = vadd.f32 %v8460_v4, %v6849_v46 }
 0x7c2   : >> { %v8596_v0 = vadd.f32 %v16802_v53, %v8529_v29 }
 0x7c4   : >> { %v8660_v62 = vpack.c.bf16 %v8596_v0, %v8596_v0  ;;  %v8927_v12 = vmul.f32 %v8596_v0, %v8596_v0  ;;  %v8853_v38 = vsel %vm8731_vm11, %v8596_v0, 0.0 }
 0x7c5   : >> { %v8854_v21 = vadd.f32 %v8853_v38, %v8852_v15 }
 0x7c6   : >> { %8728 = vst.msk [vmem:[%s16833_s13 + $0xf4] sm:$0xf] %vm8666_vm10, %v8660_v62  ;;  %v6783_v28 = vpop.f32.mrf.mxu3  ;;  %v9051_v41 = vsel %vm8731_vm11, %v8927_v12, 0.0 }
 0x7c7   : >> { %v6850_v60 = vadd.f32 %v6783_v28, %v5170_v51  ;;  %v9052_v49 = vadd.f32 %v9051_v41, %v9050_v3 }
 0x7ce   : >> { %v8463_v52 = vpop.f32.mrf.mxu0  ;;  %v6785_v43 = vpop.f32.mrf.mxu3 }
 0x7cf   : >> { %v8530_v63 = vadd.f32 %v8463_v52, %v6850_v60  ;;  %v6851_v27 = vadd.f32 %v6785_v43, %v5171_v47 }
 0x7d1   : >> { %v8597_v36 = vadd.f32 %v16802_v53, %v8530_v63 }
 0x7d3   : >> { %v8661_v23 = vpack.c.bf16 %v8597_v36, %v8597_v36  ;;  %v8928_v50 = vmul.f32 %v8597_v36, %v8597_v36  ;;  %v8855_v7 = vsel %vm8731_vm11, %v8597_v36, 0.0 }
 0x7d4   : >> { %v8856_v19 = vadd.f32 %v8855_v7, %v8854_v21 }
 0x7d5   : >> { %8729 = vst.msk [vmem:[%s16833_s13 + $0xf8] sm:$0xf] %vm8666_vm10, %v8661_v23  ;;  %v9053_v25 = vsel %vm8731_vm11, %v8928_v50, 0.0 }
 0x7d6   : >> { %v8465_v10 = vpop.f32.mrf.mxu0  ;;  %v9054_v46 = vadd.f32 %v9053_v25, %v9052_v49 }
 0x7d7   : >> { %v8531_v40 = vadd.f32 %v8465_v10, %v6851_v27 }
 0x7d9   : >> { %v8598_v22 = vadd.f32 %v16802_v53, %v8531_v40 }
 0x7db   : >> { %v8662_v56 = vpack.c.bf16 %v8598_v22, %v8598_v22  ;;  %v8857_v55 = vsel %vm8731_vm11, %v8598_v22, 0.0  ;;  %v8929_v11 = vmul.f32 %v8598_v22, %v8598_v22 }
 0x7dc   : >> { %v8858_v4 = vadd.f32 %v8857_v55, %v8856_v19 }
 0x7dd   : >> { %8730 = vst.msk [vmem:[%s16833_s13 + $0xfc] sm:$0xf] %vm8666_vm10, %v8662_v56  ;;  %v9055_v29 = vsel %vm8731_vm11, %v8929_v11, 0.0 }
 0x7de   : >> { %v8859_v0 = vrot.slane %v8858_v4, 4  ;;  %v9056_v34 = vadd.f32 %v9055_v29, %v9054_v46 }
 0x7e0   : >> { %v8860_v62 = vadd.f32 %v8859_v0, %v8858_v4  ;;  %v9057_v59 = vrot.slane %v9056_v34, 4 }
 0x7e2   : >> { %v8861_v28 = vrot.slane %v8860_v62, 2  ;;  %v9058_v8 = vadd.f32 %v9057_v59, %v9056_v34 }
 0x7e4   : >> { %v8862_v35 = vadd.f32 %v8861_v28, %v8860_v62  ;;  %v9059_v53 = vrot.slane %v9058_v8, 2 }
 0x7e6   : >> { %v8863_v37 = vrot.slane %v8862_v35, 1  ;;  %v9060_v51 = vadd.f32 %v9059_v53, %v9058_v8 }
 0x7e8   : >> { %v8864_v32 = vadd.f32 %v8863_v37, %v8862_v35  ;;  %v9061_v44 = vrot.slane %v9060_v51, 1 }
 0x7ea   : >> { %v8865_v13 = vadd.f32 %v20640_v24, %v8864_v32   ;;  %v9062_v57 = vadd.f32 %v9061_v44, %v9060_v51  ;;  %243 = sbr.rel (!%p241_p0) target bundleno = 38 (0x26), region = 96 }
 0x7ec   : >> { %v9063_v60 = vadd.f32 %v20641_v18, %v9062_v57   ;;  %v20643_v2 = vmov %v8865_v13 }
 0x7ee   : >> { %v20642_v1 = vmov %v9063_v60  ;;  %v9065_v6 = vsel (%p241_p0), %vm9064_vm12, %v8865_v13, %v9063_v60 }
 0x7ef   : > { %9067 = vst.msk [vmem:[%s219_s25] sm:$0x3] %vm9066_vm13, %v9065_v6  ;;  %s10936_s25 = scalar_lea.hbm %s19018_s4, 16 }
 0x7f0   : > { %p10938_p6 = scmp.lt.s32.totalorder %s10936_s25, %s10932_s10 }
 0x7f2   : > { %p10939_p7 = por %p10938_p6, %p10937_p5 }
 0x7f4   : > { %p10940_p9 = pnand %p10939_p7, %p10935_p4 }
 0x7f6   : > { %10943 = shalt.err (!%p10940_p9)
}
 0x7f7   : > { %10573 = dma.vmem_to_hbm [thread:$0]  (%p11117_p3), %s9098_s24, 32, %s9100_s26, %s9079_s6  }
 0x7f8 PF: > { %p10579_p10 = scmp.ge.s32.totalorder %s11022_s22, 2  ;;  %s9124_s8 = sand.u32 1, %s10994_s15  }
 0x7f9   : > { %s9125_s13 = scalar_lea.sflag [#allocation3], %s9124_s8 }
 0x7fa   : > { %p10576_p11 = pnand %p10579_p10, %p11126_p8 }
 0x7fc   : > { %p10577_p12 = pneg %p10576_p11 }
 0x7fe   : > { %10989 = dma.done.wait (%p10577_p12), %s9125_s13, 32  }
 0x7ff   : > { %10991 = vsyncadd (%p10577_p12), %s9125_s13, 4294967264  ;;  %s18_s22 = sadd.s32 1, %s11022_s22   ;;  %s20645_s19 = sld [smem:[#allocation5_spill]] }
 0x800   : > { %p15_p13 = scmp.ge.s32.totalorder %s18_s22, 10   ;;  %s20646_s28 = sld [smem:[#allocation6_spill]] }
 0x801   : > { %s20647_s21 = sld [smem:[#allocation7_spill]]  ;;  %s20648_s15 = smov %s10998_s16 }
 0x802   : > { %s20649_s16 = smov %s11002_s17  ;;  %s20650_s17 = smov %s11135_s7 }
 0x803   : > { %s20651_s18 = smov %s11014_s20  ;;  %17 = sbr.rel (!%p15_p13) target bundleno = 7 (0x7), region = 107 }
 0x806   : > { %s20652_s20 = smov %s20646_s28 }
 0x808   :  { %9131 = vsyncpa [#allocation3], 1 }
 0x809   :  { %9133 = vsyncpa [#allocation3 + $0x1], 1 }

</bundles_post_ra>
